<compile_context>
chip_gen: v5e
topology: v5e:2x2
jax: 0.10.0
libtpu: 0.0.40
codegen_flags: <defaults>
</compile_context>

<pallas_src>
import functools

import numpy as np
import jax
import jax.numpy as jnp
from jax.experimental import pallas as pl
from jax.experimental.pallas import tpu as pltpu

# The reference module uses a global N_BINS_PER_OCTAVE (not provided) — define it here.
N_BINS_PER_OCTAVE = 12
BN_EPS = 1e-5
CP = 128   # lane-dense padded output-channel width for every conv
TM = 256   # matmul row tile (multiple of 8/16)


def _round_up(x, m):
  return (x + m - 1) // m * m


def _row_tiling(m):
  """Row-tile size and padded row count for a matmul with m rows."""
  if m >= TM:
    return TM, _round_up(m, TM)
  t = _round_up(m, 8)
  return t, t


def _vmem_limit(tm, k):
  """Derive a scoped-VMEM request from the double-buffered block footprint (cap 48 MiB)."""
  blocks = 2 * (tm * k * 2 + k * CP * 2 + tm * CP * 4 + 2 * CP * 4)
  return int(min(48 * 1024 * 1024, max(blocks + 8 * 1024 * 1024, 16 * 1024 * 1024)))


# ----------------------------- Pallas kernels ------------------------------ #

def _conv_stats_kernel(x_ref, w_ref, y_ref, s_ref):
  """One row tile of y = x @ w (bf16 MXU operands, f32 accumulate) + per-tile partial
  channel sums for BatchNorm.  Partial stats are reduced in JAX, so each grid step
  writes only its own blocks and the grid axis stays 'parallel'.

  x_ref: (tm, K) bf16   w_ref: (K, CP) bf16
  y_ref: (tm, CP) f32   s_ref: (1, 2, CP) f32  [row0 = sum, row1 = sum of squares]
  """
  y = jnp.dot(x_ref[...], w_ref[...], preferred_element_type=jnp.float32)
  y_ref[...] = y
  ssum = jnp.sum(y, axis=0, keepdims=True)
  ssq = jnp.sum(y * y, axis=0, keepdims=True)
  s_ref[...] = jnp.concatenate([ssum, ssq], axis=0)[None]


def _conv_bias_kernel(x_ref, w_ref, b_ref, y_ref):
  """y = x @ w + b  (bf16 MXU operands, f32 accumulate) — used for the non-BN head convs."""
  y_ref[...] = jnp.dot(x_ref[...], w_ref[...],
                       preferred_element_type=jnp.float32) + b_ref[...]


def _bn_relu_kernel(y_ref, sc_ref, sh_ref, o_ref):
  """o = relu(y * scale + shift) in f32, stored as bf16 (next conv consumes bf16)."""
  o_ref[...] = jnp.maximum(y_ref[...] * sc_ref[...] + sh_ref[...], 0.0).astype(o_ref.dtype)


# --------------------------- Pallas call wrappers --------------------------- #

def _matmul_stats(patches, w_p, tm, mp):
  """patches: (M, K) bf16, w_p: (K, CP) bf16 -> y (mp, CP) f32, stats (2, CP) f32."""
  m, k = patches.shape
  ntiles = mp // tm
  if mp != m:
    patches = jnp.pad(patches, ((0, mp - m), (0, 0)))
  y, pstats = pl.pallas_call(
      _conv_stats_kernel,
      out_shape=(jax.ShapeDtypeStruct((mp, CP), jnp.float32),
                 jax.ShapeDtypeStruct((ntiles, 2, CP), jnp.float32)),
      grid=(ntiles,),
      in_specs=[pl.BlockSpec((tm, k), lambda i: (i, 0)),
                pl.BlockSpec((k, CP), lambda i: (0, 0))],
      out_specs=(pl.BlockSpec((tm, CP), lambda i: (i, 0)),
                 pl.BlockSpec((1, 2, CP), lambda i: (i, 0, 0))),
      compiler_params=pltpu.CompilerParams(
          dimension_semantics=("parallel",),
          vmem_limit_bytes=_vmem_limit(tm, k)),
  )(patches, w_p)
  return y, jnp.sum(pstats, axis=0)


def _matmul_bias(patches, w_p, b_p, tm, mp):
  """patches: (M, K) bf16, w_p: (K, CP) bf16, b_p: (1, CP) f32 -> y (M, CP) f32."""
  m, k = patches.shape
  ntiles = mp // tm
  if mp != m:
    patches = jnp.pad(patches, ((0, mp - m), (0, 0)))
  y = pl.pallas_call(
      _conv_bias_kernel,
      out_shape=jax.ShapeDtypeStruct((mp, CP), jnp.float32),
      grid=(ntiles,),
      in_specs=[pl.BlockSpec((tm, k), lambda i: (i, 0)),
                pl.BlockSpec((k, CP), lambda i: (0, 0)),
                pl.BlockSpec((1, CP), lambda i: (0, 0))],
      out_specs=pl.BlockSpec((tm, CP), lambda i: (i, 0)),
      compiler_params=pltpu.CompilerParams(
          dimension_semantics=("parallel",),
          vmem_limit_bytes=_vmem_limit(tm, k)),
  )(patches, w_p, b_p)
  return y[:m]


def _bn_relu(y, scale_p, shift_p, tm):
  """y: (mp, CP) f32, scale/shift: (1, CP) f32 -> bf16 (mp, CP)."""
  mp = y.shape[0]
  ntiles = mp // tm
  return pl.pallas_call(
      _bn_relu_kernel,
      out_shape=jax.ShapeDtypeStruct((mp, CP), jnp.bfloat16),
      grid=(ntiles,),
      in_specs=[pl.BlockSpec((tm, CP), lambda i: (i, 0)),
                pl.BlockSpec((1, CP), lambda i: (0, 0)),
                pl.BlockSpec((1, CP), lambda i: (0, 0))],
      out_specs=pl.BlockSpec((tm, CP), lambda i: (i, 0)),
      compiler_params=pltpu.CompilerParams(
          dimension_semantics=("parallel",),
          vmem_limit_bytes=32 * 1024 * 1024),
  )(y, scale_p, shift_p)


# ------------------------------ JAX glue ops -------------------------------- #

def harmonic_stack(x, shifts):
  """x: (N, n_bins, n_frames) -> (N, n_harmonics, n_bins, n_frames), matching torch ref."""
  n, b, f = x.shape
  outs = []
  for s in shifts:
    if s == 0:
      outs.append(x)
    elif s > 0:
      if s < b:
        outs.append(jnp.concatenate([x[:, s:, :], jnp.zeros((n, s, f), x.dtype)], axis=1))
      else:
        outs.append(jnp.zeros_like(x))
    else:
      s2 = -s
      if s2 < b:
        outs.append(jnp.concatenate([jnp.zeros((n, s2, f), x.dtype), x[:, :b - s2, :]], axis=1))
      else:
        outs.append(jnp.zeros_like(x))
  return jnp.stack(outs, axis=1)


def _im2col(x, kh, kw, sh, sw, ph, pw):
  """NHWC -> (N*Ho*Wo, kh*kw*C) bf16 patches (zero padding), tap order (dy, dx, cin)."""
  n, h, w, c = x.shape
  ho = (h + 2 * ph - kh) // sh + 1
  wo = (w + 2 * pw - kw) // sw + 1
  xp = jnp.pad(x.astype(jnp.bfloat16), ((0, 0), (ph, ph), (pw, pw), (0, 0)))
  cols = []
  for dy in range(kh):
    for dx in range(kw):
      cols.append(xp[:, dy:dy + sh * (ho - 1) + 1:sh, dx:dx + sw * (wo - 1) + 1:sw, :])
  patches = jnp.concatenate(cols, axis=-1).reshape(n * ho * wo, kh * kw * c)
  return patches, ho, wo


# ------------------------------ conv layers --------------------------------- #

def conv_bn_relu(x, p, kh, kw, sh=1, sw=1, ph=0, pw=0):
  """Conv2d -> BatchNorm2d (train-mode batch stats) -> ReLU, NHWC in/out.

  The conv bias is omitted: a per-channel constant is exactly cancelled by the BN mean
  subtraction (variance unchanged), so the forward output is identical to the PyTorch
  Conv2d(bias=True) + BatchNorm2d(training) sequence.
  """
  n = x.shape[0]
  cout = p["w"].shape[-1]
  patches, ho, wo = _im2col(x, kh, kw, sh, sw, ph, pw)
  m, k = patches.shape
  tm, mp = _row_tiling(m)

  w_p = jnp.pad(p["w"].reshape(k, cout).astype(jnp.bfloat16), ((0, 0), (0, CP - cout)))
  y, stats = _matmul_stats(patches, w_p, tm, mp)

  cnt = jnp.float32(m)                                    # N*Ho*Wo (padded rows add 0)
  mean = stats[0, :cout] / cnt
  var = jnp.maximum(stats[1, :cout] / cnt - mean * mean, 0.0)   # biased var (torch BN train)
  scale = p["gamma"] * jax.lax.rsqrt(var + BN_EPS)
  shift = p["beta"] - mean * scale
  scale_p = jnp.pad(scale, (0, CP - cout)).reshape(1, CP).astype(jnp.float32)
  shift_p = jnp.pad(shift, (0, CP - cout)).reshape(1, CP).astype(jnp.float32)

  act = _bn_relu(y, scale_p, shift_p, tm)
  return act[:m].reshape(n, ho, wo, CP)[..., :cout]


def conv_bias(x, p, kh, kw, sh=1, sw=1, ph=0, pw=0):
  """Plain Conv2d with bias (no BN), NHWC in / f32 NHWC out."""
  n = x.shape[0]
  cout = p["w"].shape[-1]
  patches, ho, wo = _im2col(x, kh, kw, sh, sw, ph, pw)
  m, k = patches.shape
  tm, mp = _row_tiling(m)
  w_p = jnp.pad(p["w"].reshape(k, cout).astype(jnp.bfloat16), ((0, 0), (0, CP - cout)))
  b_p = jnp.pad(p["b"], (0, CP - cout)).reshape(1, CP).astype(jnp.float32)
  y = _matmul_bias(patches, w_p, b_p, tm, mp)
  return y.reshape(n, ho, wo, CP)[..., :cout]


# ------------------------------ model forward -------------------------------- #

def cnn_model_forward(x, params, shifts):
  xh = harmonic_stack(x, shifts)                 # (N, n_harm, bins, frames)  NCHW-like
  xh = jnp.transpose(xh, (0, 2, 3, 1))           # -> NHWC

  # --- CNN_Note ---
  nt = params["note"]
  a = conv_bn_relu(xh, nt["c1"], 5, 5, sh=3, sw=1, ph=2, pw=2)     # 4  -> 32, stride (3,1)
  a = conv_bn_relu(a, nt["c2"], 3, 39, ph=1, pw=19)                # 32 -> 16
  a = conv_bn_relu(a, nt["c3"], 3, 3, ph=1, pw=1)                  # 16 -> 8
  note = conv_bias(a, nt["c4"], 3, 3, ph=1, pw=1)                  # 8  -> 1   (f32)

  # --- CNN_Onset ---
  on = params["onset"]
  b = conv_bn_relu(xh, on["c1"], 5, 5, sh=3, sw=1, ph=2, pw=2)     # 4  -> 64, stride (3,1)
  cat = jnp.concatenate([b, jax.nn.sigmoid(note).astype(b.dtype)], axis=-1)   # 64+1 = 65
  c = conv_bn_relu(cat, on["c2"], 3, 3, ph=1, pw=1)                # 65 -> 32
  onset = conv_bias(c, on["c3"], 3, 3, ph=1, pw=1)                 # 32 -> 1   (f32)

  note_nchw = jnp.transpose(note, (0, 3, 1, 2))
  onset_nchw = jnp.transpose(onset, (0, 3, 1, 2))
  return note_nchw, onset_nchw


# --------------------------- parameter construction ------------------------- #

def _init_conv(key, kh, kw, cin, cout, *, with_bias, with_bn):
  k1, k2 = jax.random.split(key)
  fan_in = kh * kw * cin
  p = {"w": jax.random.normal(k1, (kh, kw, cin, cout), jnp.float32) * (2.0 / fan_in) ** 0.5}
  if with_bias:
    p["b"] = jax.random.normal(k2, (cout,), jnp.float32) * 0.01
  if with_bn:
    p["gamma"] = jnp.ones((cout,), jnp.float32)
    p["beta"] = jnp.zeros((cout,), jnp.float32)
  return p


if __name__ == "__main__":
  harmonics = [1, 2, 3, 4]
  shifts = tuple(int(np.round(N_BINS_PER_OCTAVE * np.log2(h))) for h in harmonics)
  n_harm = len(harmonics)

  key = jax.random.PRNGKey(0)
  ks = jax.random.split(key, 8)
  params = {
      "note": {
          "c1": _init_conv(ks[0], 5, 5, n_harm, 32, with_bias=False, with_bn=True),
          "c2": _init_conv(ks[1], 3, 39, 32, 16, with_bias=False, with_bn=True),
          "c3": _init_conv(ks[2], 3, 3, 16, 8, with_bias=False, with_bn=True),
          "c4": _init_conv(ks[3], 3, 3, 8, 1, with_bias=True, with_bn=False),
      },
      "onset": {
          "c1": _init_conv(ks[4], 5, 5, n_harm, 64, with_bias=False, with_bn=True),
          "c2": _init_conv(ks[5], 3, 3, 65, 32, with_bias=False, with_bn=True),
          "c3": _init_conv(ks[6], 3, 3, 32, 1, with_bias=True, with_bn=False),
      },
  }

  # x is the raw spectrogram: (batch, n_bins, n_frames)
  n_batch, n_bins, n_frames = 2, 36, 16
  x = jax.random.normal(ks[7], (n_batch, n_bins, n_frames), jnp.float32)

  fwd = jax.jit(functools.partial(cnn_model_forward, shifts=shifts))
  note_out, onset_out = fwd(x, params)
  jax.block_until_ready((note_out, onset_out))

  h_out = (n_bins + 2 * 2 - 5) // 3 + 1      # stride (3,1) conv1 -> 12
  assert note_out.shape == (n_batch, 1, h_out, n_frames), note_out.shape
  assert onset_out.shape == (n_batch, 1, h_out, n_frames), onset_out.shape
  assert bool(jnp.all(jnp.isfinite(note_out)))
  assert bool(jnp.all(jnp.isfinite(onset_out)))
  print("KERNEL_OK")
</pallas_src>

<mosaic_0001>
module attributes {stable_mosaic.version = 11 : i64} {
  func.func @_conv_stats_kernel(%arg0: i32, %arg1: memref<256x100xbf16, #tpu.memory_space<vmem>>, %arg2: memref<100x128xbf16, #tpu.memory_space<vmem>>, %arg3: memref<256x128xf32, #tpu.memory_space<vmem>>, %arg4: memref<1x2x128xf32, #tpu.memory_space<vmem>>) attributes {dimension_semantics = [#tpu.dimension_semantics<parallel>], iteration_bounds = array<i64: 2>, scalar_prefetch = 0 : i64, scratch_operands = 0 : i64, tpu.core_type = #tpu.core_type<tc>, window_params = [{transform_indices = @transform_0, window_bounds = array<i64: 256, 100>}, {pipeline_mode = #tpu.pipeline_mode<synchronous>, transform_indices = @transform_1, window_bounds = array<i64: 100, 128>}, {transform_indices = @transform_2, window_bounds = array<i64: 256, 128>}, {transform_indices = @transform_3, window_bounds = array<i64: 1, 2, 128>}]} {
    %c0 = arith.constant 0 : index
    %c0_0 = arith.constant 0 : index
    %0 = vector.load %arg1[%c0, %c0_0] : memref<256x100xbf16, #tpu.memory_space<vmem>>, vector<256x100xbf16>
    %c0_1 = arith.constant 0 : index
    %c0_2 = arith.constant 0 : index
    %1 = vector.load %arg2[%c0_1, %c0_2] : memref<100x128xbf16, #tpu.memory_space<vmem>>, vector<100x128xbf16>
    %cst = arith.constant dense<0.000000e+00> : vector<256x128xf32>
    %2 = tpu.matmul %0, %1, %cst {dimension_numbers = #tpu.dot_dimension_numbers<[1], [0], [0], [1], [0, 0, 1, 1], [], []>} : vector<256x100xbf16>, vector<100x128xbf16>, vector<256x128xf32> -> vector<256x128xf32>
    %c0_3 = arith.constant 0 : index
    %c0_4 = arith.constant 0 : index
    %3 = vector.load %arg3[%c0_3, %c0_4] : memref<256x128xf32, #tpu.memory_space<vmem>>, vector<256x128xf32>
    tpu.vector_store %arg3[%c0_3, %c0_4], %2 {strides = array<i32>} : memref<256x128xf32, #tpu.memory_space<vmem>>, vector<256x128xf32>,
    %cst_5 = arith.constant dense<0.000000e+00> : vector<128xf32>
    %4 = vector.multi_reduction <add>, %2, %cst_5 [0] : vector<256x128xf32> to vector<128xf32>
    %5 = vector.shape_cast %4 : vector<128xf32> to vector<1x128xf32>
    %6 = arith.mulf %2, %2 : vector<256x128xf32>
    %cst_6 = arith.constant dense<0.000000e+00> : vector<128xf32>
    %7 = vector.multi_reduction <add>, %6, %cst_6 [0] : vector<256x128xf32> to vector<128xf32>
    %8 = vector.shape_cast %7 : vector<128xf32> to vector<1x128xf32>
    %9 = tpu.concatenate %5, %8 in 0 : vector<1x128xf32>, vector<1x128xf32> -> vector<2x128xf32>
    %10 = vector.shape_cast %9 : vector<2x128xf32> to vector<1x2x128xf32>
    %c0_7 = arith.constant 0 : index
    %c0_8 = arith.constant 0 : index
    %c0_9 = arith.constant 0 : index
    %11 = vector.load %arg4[%c0_7, %c0_8, %c0_9] : memref<1x2x128xf32, #tpu.memory_space<vmem>>, vector<1x2x128xf32>
    tpu.vector_store %arg4[%c0_7, %c0_8, %c0_9], %10 {strides = array<i32>} : memref<1x2x128xf32, #tpu.memory_space<vmem>>, vector<1x2x128xf32>,
    return
  }
  func.func @transform_0(%arg0: i32) -> (i32, i32) {
    %c0_i32 = arith.constant 0 : i32
    %c0_i32_0 = arith.constant 0 : i32
    return %arg0, %c0_i32 : i32, i32
  }
  func.func @transform_1(%arg0: i32) -> (i32, i32) {
    %c0_i32 = arith.constant 0 : i32
    %c0_i32_0 = arith.constant 0 : i32
    %c0_i32_1 = arith.constant 0 : i32
    return %c0_i32, %c0_i32_0 : i32, i32
  }
  func.func @transform_2(%arg0: i32) -> (i32, i32) {
    %c0_i32 = arith.constant 0 : i32
    %c0_i32_0 = arith.constant 0 : i32
    return %arg0, %c0_i32 : i32, i32
  }
  func.func @transform_3(%arg0: i32) -> (i32, i32, i32) {
    %c0_i32 = arith.constant 0 : i32
    %c0_i32_0 = arith.constant 0 : i32
    %c0_i32_1 = arith.constant 0 : i32
    return %arg0, %c0_i32, %c0_i32_0 : i32, i32, i32
  }
}

module attributes {stable_mosaic.version = 11 : i64} {
  func.func @_bn_relu_kernel(%arg0: i32, %arg1: memref<256x128xf32, #tpu.memory_space<vmem>>, %arg2: memref<1x128xf32, #tpu.memory_space<vmem>>, %arg3: memref<1x128xf32, #tpu.memory_space<vmem>>, %arg4: memref<256x128xbf16, #tpu.memory_space<vmem>>) attributes {dimension_semantics = [#tpu.dimension_semantics<parallel>], iteration_bounds = array<i64: 2>, scalar_prefetch = 0 : i64, scratch_operands = 0 : i64, tpu.core_type = #tpu.core_type<tc>, window_params = [{transform_indices = @transform_0, window_bounds = array<i64: 256, 128>}, {pipeline_mode = #tpu.pipeline_mode<synchronous>, transform_indices = @transform_1, window_bounds = array<i64: 1, 128>}, {pipeline_mode = #tpu.pipeline_mode<synchronous>, transform_indices = @transform_2, window_bounds = array<i64: 1, 128>}, {transform_indices = @transform_3, window_bounds = array<i64: 256, 128>}]} {
    %c0 = arith.constant 0 : index
    %c0_0 = arith.constant 0 : index
    %0 = vector.load %arg1[%c0, %c0_0] : memref<256x128xf32, #tpu.memory_space<vmem>>, vector<256x128xf32>
    %c0_1 = arith.constant 0 : index
    %c0_2 = arith.constant 0 : index
    %1 = vector.load %arg2[%c0_1, %c0_2] : memref<1x128xf32, #tpu.memory_space<vmem>>, vector<1x128xf32>
    %2 = vector.broadcast %1 : vector<1x128xf32> to vector<256x128xf32>
    %3 = arith.mulf %0, %2 : vector<256x128xf32>
    %c0_3 = arith.constant 0 : index
    %c0_4 = arith.constant 0 : index
    %4 = vector.load %arg3[%c0_3, %c0_4] : memref<1x128xf32, #tpu.memory_space<vmem>>, vector<1x128xf32>
    %5 = vector.broadcast %4 : vector<1x128xf32> to vector<256x128xf32>
    %6 = arith.addf %3, %5 : vector<256x128xf32>
    %cst = arith.constant 0.000000e+00 : f32
    %7 = vector.broadcast %cst : f32 to vector<256x128xf32>
    %8 = arith.maximumf %6, %7 : vector<256x128xf32>
    %9 = arith.truncf %8 : vector<256x128xf32> to vector<256x128xbf16>
    %c0_5 = arith.constant 0 : index
    %c0_6 = arith.constant 0 : index
    %10 = vector.load %arg4[%c0_5, %c0_6] : memref<256x128xbf16, #tpu.memory_space<vmem>>, vector<256x128xbf16>
    tpu.vector_store %arg4[%c0_5, %c0_6], %9 {strides = array<i32>} : memref<256x128xbf16, #tpu.memory_space<vmem>>, vector<256x128xbf16>,
    return
  }
  func.func @transform_0(%arg0: i32) -> (i32, i32) {
    %c0_i32 = arith.constant 0 : i32
    %c0_i32_0 = arith.constant 0 : i32
    return %arg0, %c0_i32 : i32, i32
  }
  func.func @transform_1(%arg0: i32) -> (i32, i32) {
    %c0_i32 = arith.constant 0 : i32
    %c0_i32_0 = arith.constant 0 : i32
    %c0_i32_1 = arith.constant 0 : i32
    return %c0_i32, %c0_i32_0 : i32, i32
  }
  func.func @transform_2(%arg0: i32) -> (i32, i32) {
    %c0_i32 = arith.constant 0 : i32
    %c0_i32_0 = arith.constant 0 : i32
    %c0_i32_1 = arith.constant 0 : i32
    return %c0_i32, %c0_i32_0 : i32, i32
  }
  func.func @transform_3(%arg0: i32) -> (i32, i32) {
    %c0_i32 = arith.constant 0 : i32
    %c0_i32_0 = arith.constant 0 : i32
    return %arg0, %c0_i32 : i32, i32
  }
}

module attributes {stable_mosaic.version = 11 : i64} {
  func.func @_conv_stats_kernel(%arg0: i32, %arg1: memref<256x3744xbf16, #tpu.memory_space<vmem>>, %arg2: memref<3744x128xbf16, #tpu.memory_space<vmem>>, %arg3: memref<256x128xf32, #tpu.memory_space<vmem>>, %arg4: memref<1x2x128xf32, #tpu.memory_space<vmem>>) attributes {dimension_semantics = [#tpu.dimension_semantics<parallel>], iteration_bounds = array<i64: 2>, scalar_prefetch = 0 : i64, scratch_operands = 0 : i64, tpu.core_type = #tpu.core_type<tc>, window_params = [{transform_indices = @transform_0, window_bounds = array<i64: 256, 3744>}, {pipeline_mode = #tpu.pipeline_mode<synchronous>, transform_indices = @transform_1, window_bounds = array<i64: 3744, 128>}, {transform_indices = @transform_2, window_bounds = array<i64: 256, 128>}, {transform_indices = @transform_3, window_bounds = array<i64: 1, 2, 128>}]} {
    %c0 = arith.constant 0 : index
    %c0_0 = arith.constant 0 : index
    %0 = vector.load %arg1[%c0, %c0_0] : memref<256x3744xbf16, #tpu.memory_space<vmem>>, vector<256x3744xbf16>
    %c0_1 = arith.constant 0 : index
    %c0_2 = arith.constant 0 : index
    %1 = vector.load %arg2[%c0_1, %c0_2] : memref<3744x128xbf16, #tpu.memory_space<vmem>>, vector<3744x128xbf16>
    %cst = arith.constant dense<0.000000e+00> : vector<256x128xf32>
    %2 = tpu.matmul %0, %1, %cst {dimension_numbers = #tpu.dot_dimension_numbers<[1], [0], [0], [1], [0, 0, 1, 1], [], []>} : vector<256x3744xbf16>, vector<3744x128xbf16>, vector<256x128xf32> -> vector<256x128xf32>
    %c0_3 = arith.constant 0 : index
    %c0_4 = arith.constant 0 : index
    %3 = vector.load %arg3[%c0_3, %c0_4] : memref<256x128xf32, #tpu.memory_space<vmem>>, vector<256x128xf32>
    tpu.vector_store %arg3[%c0_3, %c0_4], %2 {strides = array<i32>} : memref<256x128xf32, #tpu.memory_space<vmem>>, vector<256x128xf32>,
    %cst_5 = arith.constant dense<0.000000e+00> : vector<128xf32>
    %4 = vector.multi_reduction <add>, %2, %cst_5 [0] : vector<256x128xf32> to vector<128xf32>
    %5 = vector.shape_cast %4 : vector<128xf32> to vector<1x128xf32>
    %6 = arith.mulf %2, %2 : vector<256x128xf32>
    %cst_6 = arith.constant dense<0.000000e+00> : vector<128xf32>
    %7 = vector.multi_reduction <add>, %6, %cst_6 [0] : vector<256x128xf32> to vector<128xf32>
    %8 = vector.shape_cast %7 : vector<128xf32> to vector<1x128xf32>
    %9 = tpu.concatenate %5, %8 in 0 : vector<1x128xf32>, vector<1x128xf32> -> vector<2x128xf32>
    %10 = vector.shape_cast %9 : vector<2x128xf32> to vector<1x2x128xf32>
    %c0_7 = arith.constant 0 : index
    %c0_8 = arith.constant 0 : index
    %c0_9 = arith.constant 0 : index
    %11 = vector.load %arg4[%c0_7, %c0_8, %c0_9] : memref<1x2x128xf32, #tpu.memory_space<vmem>>, vector<1x2x128xf32>
    tpu.vector_store %arg4[%c0_7, %c0_8, %c0_9], %10 {strides = array<i32>} : memref<1x2x128xf32, #tpu.memory_space<vmem>>, vector<1x2x128xf32>,
    return
  }
  func.func @transform_0(%arg0: i32) -> (i32, i32) {
    %c0_i32 = arith.constant 0 : i32
    %c0_i32_0 = arith.constant 0 : i32
    return %arg0, %c0_i32 : i32, i32
  }
  func.func @transform_1(%arg0: i32) -> (i32, i32) {
    %c0_i32 = arith.constant 0 : i32
    %c0_i32_0 = arith.constant 0 : i32
    %c0_i32_1 = arith.constant 0 : i32
    return %c0_i32, %c0_i32_0 : i32, i32
  }
  func.func @transform_2(%arg0: i32) -> (i32, i32) {
    %c0_i32 = arith.constant 0 : i32
    %c0_i32_0 = arith.constant 0 : i32
    return %arg0, %c0_i32 : i32, i32
  }
  func.func @transform_3(%arg0: i32) -> (i32, i32, i32) {
    %c0_i32 = arith.constant 0 : i32
    %c0_i32_0 = arith.constant 0 : i32
    %c0_i32_1 = arith.constant 0 : i32
    return %arg0, %c0_i32, %c0_i32_0 : i32, i32, i32
  }
}

module attributes {stable_mosaic.version = 11 : i64} {
  func.func @_conv_stats_kernel(%arg0: i32, %arg1: memref<256x144xbf16, #tpu.memory_space<vmem>>, %arg2: memref<144x128xbf16, #tpu.memory_space<vmem>>, %arg3: memref<256x128xf32, #tpu.memory_space<vmem>>, %arg4: memref<1x2x128xf32, #tpu.memory_space<vmem>>) attributes {dimension_semantics = [#tpu.dimension_semantics<parallel>], iteration_bounds = array<i64: 2>, scalar_prefetch = 0 : i64, scratch_operands = 0 : i64, tpu.core_type = #tpu.core_type<tc>, window_params = [{transform_indices = @transform_0, window_bounds = array<i64: 256, 144>}, {pipeline_mode = #tpu.pipeline_mode<synchronous>, transform_indices = @transform_1, window_bounds = array<i64: 144, 128>}, {transform_indices = @transform_2, window_bounds = array<i64: 256, 128>}, {transform_indices = @transform_3, window_bounds = array<i64: 1, 2, 128>}]} {
    %c0 = arith.constant 0 : index
    %c0_0 = arith.constant 0 : index
    %0 = vector.load %arg1[%c0, %c0_0] : memref<256x144xbf16, #tpu.memory_space<vmem>>, vector<256x144xbf16>
    %c0_1 = arith.constant 0 : index
    %c0_2 = arith.constant 0 : index
    %1 = vector.load %arg2[%c0_1, %c0_2] : memref<144x128xbf16, #tpu.memory_space<vmem>>, vector<144x128xbf16>
    %cst = arith.constant dense<0.000000e+00> : vector<256x128xf32>
    %2 = tpu.matmul %0, %1, %cst {dimension_numbers = #tpu.dot_dimension_numbers<[1], [0], [0], [1], [0, 0, 1, 1], [], []>} : vector<256x144xbf16>, vector<144x128xbf16>, vector<256x128xf32> -> vector<256x128xf32>
    %c0_3 = arith.constant 0 : index
    %c0_4 = arith.constant 0 : index
    %3 = vector.load %arg3[%c0_3, %c0_4] : memref<256x128xf32, #tpu.memory_space<vmem>>, vector<256x128xf32>
    tpu.vector_store %arg3[%c0_3, %c0_4], %2 {strides = array<i32>} : memref<256x128xf32, #tpu.memory_space<vmem>>, vector<256x128xf32>,
    %cst_5 = arith.constant dense<0.000000e+00> : vector<128xf32>
    %4 = vector.multi_reduction <add>, %2, %cst_5 [0] : vector<256x128xf32> to vector<128xf32>
    %5 = vector.shape_cast %4 : vector<128xf32> to vector<1x128xf32>
    %6 = arith.mulf %2, %2 : vector<256x128xf32>
    %cst_6 = arith.constant dense<0.000000e+00> : vector<128xf32>
    %7 = vector.multi_reduction <add>, %6, %cst_6 [0] : vector<256x128xf32> to vector<128xf32>
    %8 = vector.shape_cast %7 : vector<128xf32> to vector<1x128xf32>
    %9 = tpu.concatenate %5, %8 in 0 : vector<1x128xf32>, vector<1x128xf32> -> vector<2x128xf32>
    %10 = vector.shape_cast %9 : vector<2x128xf32> to vector<1x2x128xf32>
    %c0_7 = arith.constant 0 : index
    %c0_8 = arith.constant 0 : index
    %c0_9 = arith.constant 0 : index
    %11 = vector.load %arg4[%c0_7, %c0_8, %c0_9] : memref<1x2x128xf32, #tpu.memory_space<vmem>>, vector<1x2x128xf32>
    tpu.vector_store %arg4[%c0_7, %c0_8, %c0_9], %10 {strides = array<i32>} : memref<1x2x128xf32, #tpu.memory_space<vmem>>, vector<1x2x128xf32>,
    return
  }
  func.func @transform_0(%arg0: i32) -> (i32, i32) {
    %c0_i32 = arith.constant 0 : i32
    %c0_i32_0 = arith.constant 0 : i32
    return %arg0, %c0_i32 : i32, i32
  }
  func.func @transform_1(%arg0: i32) -> (i32, i32) {
    %c0_i32 = arith.constant 0 : i32
    %c0_i32_0 = arith.constant 0 : i32
    %c0_i32_1 = arith.constant 0 : i32
    return %c0_i32, %c0_i32_0 : i32, i32
  }
  func.func @transform_2(%arg0: i32) -> (i32, i32) {
    %c0_i32 = arith.constant 0 : i32
    %c0_i32_0 = arith.constant 0 : i32
    return %arg0, %c0_i32 : i32, i32
  }
  func.func @transform_3(%arg0: i32) -> (i32, i32, i32) {
    %c0_i32 = arith.constant 0 : i32
    %c0_i32_0 = arith.constant 0 : i32
    %c0_i32_1 = arith.constant 0 : i32
    return %arg0, %c0_i32, %c0_i32_0 : i32, i32, i32
  }
}

module attributes {stable_mosaic.version = 11 : i64} {
  func.func @_conv_bias_kernel(%arg0: i32, %arg1: memref<256x72xbf16, #tpu.memory_space<vmem>>, %arg2: memref<72x128xbf16, #tpu.memory_space<vmem>>, %arg3: memref<1x128xf32, #tpu.memory_space<vmem>>, %arg4: memref<256x128xf32, #tpu.memory_space<vmem>>) attributes {dimension_semantics = [#tpu.dimension_semantics<parallel>], iteration_bounds = array<i64: 2>, scalar_prefetch = 0 : i64, scratch_operands = 0 : i64, tpu.core_type = #tpu.core_type<tc>, window_params = [{transform_indices = @transform_0, window_bounds = array<i64: 256, 72>}, {pipeline_mode = #tpu.pipeline_mode<synchronous>, transform_indices = @transform_1, window_bounds = array<i64: 72, 128>}, {pipeline_mode = #tpu.pipeline_mode<synchronous>, transform_indices = @transform_2, window_bounds = array<i64: 1, 128>}, {transform_indices = @transform_3, window_bounds = array<i64: 256, 128>}]} {
    %c0 = arith.constant 0 : index
    %c0_0 = arith.constant 0 : index
    %0 = vector.load %arg1[%c0, %c0_0] : memref<256x72xbf16, #tpu.memory_space<vmem>>, vector<256x72xbf16>
    %c0_1 = arith.constant 0 : index
    %c0_2 = arith.constant 0 : index
    %1 = vector.load %arg2[%c0_1, %c0_2] : memref<72x128xbf16, #tpu.memory_space<vmem>>, vector<72x128xbf16>
    %cst = arith.constant dense<0.000000e+00> : vector<256x128xf32>
    %2 = tpu.matmul %0, %1, %cst {dimension_numbers = #tpu.dot_dimension_numbers<[1], [0], [0], [1], [0, 0, 1, 1], [], []>} : vector<256x72xbf16>, vector<72x128xbf16>, vector<256x128xf32> -> vector<256x128xf32>
    %c0_3 = arith.constant 0 : index
    %c0_4 = arith.constant 0 : index
    %3 = vector.load %arg3[%c0_3, %c0_4] : memref<1x128xf32, #tpu.memory_space<vmem>>, vector<1x128xf32>
    %4 = vector.broadcast %3 : vector<1x128xf32> to vector<256x128xf32>
    %5 = arith.addf %2, %4 : vector<256x128xf32>
    %c0_5 = arith.constant 0 : index
    %c0_6 = arith.constant 0 : index
    %6 = vector.load %arg4[%c0_5, %c0_6] : memref<256x128xf32, #tpu.memory_space<vmem>>, vector<256x128xf32>
    tpu.vector_store %arg4[%c0_5, %c0_6], %5 {strides = array<i32>} : memref<256x128xf32, #tpu.memory_space<vmem>>, vector<256x128xf32>,
    return
  }
  func.func @transform_0(%arg0: i32) -> (i32, i32) {
    %c0_i32 = arith.constant 0 : i32
    %c0_i32_0 = arith.constant 0 : i32
    return %arg0, %c0_i32 : i32, i32
  }
  func.func @transform_1(%arg0: i32) -> (i32, i32) {
    %c0_i32 = arith.constant 0 : i32
    %c0_i32_0 = arith.constant 0 : i32
    %c0_i32_1 = arith.constant 0 : i32
    return %c0_i32, %c0_i32_0 : i32, i32
  }
  func.func @transform_2(%arg0: i32) -> (i32, i32) {
    %c0_i32 = arith.constant 0 : i32
    %c0_i32_0 = arith.constant 0 : i32
    %c0_i32_1 = arith.constant 0 : i32
    return %c0_i32, %c0_i32_0 : i32, i32
  }
  func.func @transform_3(%arg0: i32) -> (i32, i32) {
    %c0_i32 = arith.constant 0 : i32
    %c0_i32_0 = arith.constant 0 : i32
    return %arg0, %c0_i32 : i32, i32
  }
}

module attributes {stable_mosaic.version = 11 : i64} {
  func.func @_conv_stats_kernel(%arg0: i32, %arg1: memref<256x585xbf16, #tpu.memory_space<vmem>>, %arg2: memref<585x128xbf16, #tpu.memory_space<vmem>>, %arg3: memref<256x128xf32, #tpu.memory_space<vmem>>, %arg4: memref<1x2x128xf32, #tpu.memory_space<vmem>>) attributes {dimension_semantics = [#tpu.dimension_semantics<parallel>], iteration_bounds = array<i64: 2>, scalar_prefetch = 0 : i64, scratch_operands = 0 : i64, tpu.core_type = #tpu.core_type<tc>, window_params = [{transform_indices = @transform_0, window_bounds = array<i64: 256, 585>}, {pipeline_mode = #tpu.pipeline_mode<synchronous>, transform_indices = @transform_1, window_bounds = array<i64: 585, 128>}, {transform_indices = @transform_2, window_bounds = array<i64: 256, 128>}, {transform_indices = @transform_3, window_bounds = array<i64: 1, 2, 128>}]} {
    %c0 = arith.constant 0 : index
    %c0_0 = arith.constant 0 : index
    %0 = vector.load %arg1[%c0, %c0_0] : memref<256x585xbf16, #tpu.memory_space<vmem>>, vector<256x585xbf16>
    %c0_1 = arith.constant 0 : index
    %c0_2 = arith.constant 0 : index
    %1 = vector.load %arg2[%c0_1, %c0_2] : memref<585x128xbf16, #tpu.memory_space<vmem>>, vector<585x128xbf16>
    %cst = arith.constant dense<0.000000e+00> : vector<256x128xf32>
    %2 = tpu.matmul %0, %1, %cst {dimension_numbers = #tpu.dot_dimension_numbers<[1], [0], [0], [1], [0, 0, 1, 1], [], []>} : vector<256x585xbf16>, vector<585x128xbf16>, vector<256x128xf32> -> vector<256x128xf32>
    %c0_3 = arith.constant 0 : index
    %c0_4 = arith.constant 0 : index
    %3 = vector.load %arg3[%c0_3, %c0_4] : memref<256x128xf32, #tpu.memory_space<vmem>>, vector<256x128xf32>
    tpu.vector_store %arg3[%c0_3, %c0_4], %2 {strides = array<i32>} : memref<256x128xf32, #tpu.memory_space<vmem>>, vector<256x128xf32>,
    %cst_5 = arith.constant dense<0.000000e+00> : vector<128xf32>
    %4 = vector.multi_reduction <add>, %2, %cst_5 [0] : vector<256x128xf32> to vector<128xf32>
    %5 = vector.shape_cast %4 : vector<128xf32> to vector<1x128xf32>
    %6 = arith.mulf %2, %2 : vector<256x128xf32>
    %cst_6 = arith.constant dense<0.000000e+00> : vector<128xf32>
    %7 = vector.multi_reduction <add>, %6, %cst_6 [0] : vector<256x128xf32> to vector<128xf32>
    %8 = vector.shape_cast %7 : vector<128xf32> to vector<1x128xf32>
    %9 = tpu.concatenate %5, %8 in 0 : vector<1x128xf32>, vector<1x128xf32> -> vector<2x128xf32>
    %10 = vector.shape_cast %9 : vector<2x128xf32> to vector<1x2x128xf32>
    %c0_7 = arith.constant 0 : index
    %c0_8 = arith.constant 0 : index
    %c0_9 = arith.constant 0 : index
    %11 = vector.load %arg4[%c0_7, %c0_8, %c0_9] : memref<1x2x128xf32, #tpu.memory_space<vmem>>, vector<1x2x128xf32>
    tpu.vector_store %arg4[%c0_7, %c0_8, %c0_9], %10 {strides = array<i32>} : memref<1x2x128xf32, #tpu.memory_space<vmem>>, vector<1x2x128xf32>,
    return
  }
  func.func @transform_0(%arg0: i32) -> (i32, i32) {
    %c0_i32 = arith.constant 0 : i32
    %c0_i32_0 = arith.constant 0 : i32
    return %arg0, %c0_i32 : i32, i32
  }
  func.func @transform_1(%arg0: i32) -> (i32, i32) {
    %c0_i32 = arith.constant 0 : i32
    %c0_i32_0 = arith.constant 0 : i32
    %c0_i32_1 = arith.constant 0 : i32
    return %c0_i32, %c0_i32_0 : i32, i32
  }
  func.func @transform_2(%arg0: i32) -> (i32, i32) {
    %c0_i32 = arith.constant 0 : i32
    %c0_i32_0 = arith.constant 0 : i32
    return %arg0, %c0_i32 : i32, i32
  }
  func.func @transform_3(%arg0: i32) -> (i32, i32, i32) {
    %c0_i32 = arith.constant 0 : i32
    %c0_i32_0 = arith.constant 0 : i32
    %c0_i32_1 = arith.constant 0 : i32
    return %arg0, %c0_i32, %c0_i32_0 : i32, i32, i32
  }
}

module attributes {stable_mosaic.version = 11 : i64} {
  func.func @_conv_bias_kernel(%arg0: i32, %arg1: memref<256x288xbf16, #tpu.memory_space<vmem>>, %arg2: memref<288x128xbf16, #tpu.memory_space<vmem>>, %arg3: memref<1x128xf32, #tpu.memory_space<vmem>>, %arg4: memref<256x128xf32, #tpu.memory_space<vmem>>) attributes {dimension_semantics = [#tpu.dimension_semantics<parallel>], iteration_bounds = array<i64: 2>, scalar_prefetch = 0 : i64, scratch_operands = 0 : i64, tpu.core_type = #tpu.core_type<tc>, window_params = [{transform_indices = @transform_0, window_bounds = array<i64: 256, 288>}, {pipeline_mode = #tpu.pipeline_mode<synchronous>, transform_indices = @transform_1, window_bounds = array<i64: 288, 128>}, {pipeline_mode = #tpu.pipeline_mode<synchronous>, transform_indices = @transform_2, window_bounds = array<i64: 1, 128>}, {transform_indices = @transform_3, window_bounds = array<i64: 256, 128>}]} {
    %c0 = arith.constant 0 : index
    %c0_0 = arith.constant 0 : index
    %0 = vector.load %arg1[%c0, %c0_0] : memref<256x288xbf16, #tpu.memory_space<vmem>>, vector<256x288xbf16>
    %c0_1 = arith.constant 0 : index
    %c0_2 = arith.constant 0 : index
    %1 = vector.load %arg2[%c0_1, %c0_2] : memref<288x128xbf16, #tpu.memory_space<vmem>>, vector<288x128xbf16>
    %cst = arith.constant dense<0.000000e+00> : vector<256x128xf32>
    %2 = tpu.matmul %0, %1, %cst {dimension_numbers = #tpu.dot_dimension_numbers<[1], [0], [0], [1], [0, 0, 1, 1], [], []>} : vector<256x288xbf16>, vector<288x128xbf16>, vector<256x128xf32> -> vector<256x128xf32>
    %c0_3 = arith.constant 0 : index
    %c0_4 = arith.constant 0 : index
    %3 = vector.load %arg3[%c0_3, %c0_4] : memref<1x128xf32, #tpu.memory_space<vmem>>, vector<1x128xf32>
    %4 = vector.broadcast %3 : vector<1x128xf32> to vector<256x128xf32>
    %5 = arith.addf %2, %4 : vector<256x128xf32>
    %c0_5 = arith.constant 0 : index
    %c0_6 = arith.constant 0 : index
    %6 = vector.load %arg4[%c0_5, %c0_6] : memref<256x128xf32, #tpu.memory_space<vmem>>, vector<256x128xf32>
    tpu.vector_store %arg4[%c0_5, %c0_6], %5 {strides = array<i32>} : memref<256x128xf32, #tpu.memory_space<vmem>>, vector<256x128xf32>,
    return
  }
  func.func @transform_0(%arg0: i32) -> (i32, i32) {
    %c0_i32 = arith.constant 0 : i32
    %c0_i32_0 = arith.constant 0 : i32
    return %arg0, %c0_i32 : i32, i32
  }
  func.func @transform_1(%arg0: i32) -> (i32, i32) {
    %c0_i32 = arith.constant 0 : i32
    %c0_i32_0 = arith.constant 0 : i32
    %c0_i32_1 = arith.constant 0 : i32
    return %c0_i32, %c0_i32_0 : i32, i32
  }
  func.func @transform_2(%arg0: i32) -> (i32, i32) {
    %c0_i32 = arith.constant 0 : i32
    %c0_i32_0 = arith.constant 0 : i32
    %c0_i32_1 = arith.constant 0 : i32
    return %c0_i32, %c0_i32_0 : i32, i32
  }
  func.func @transform_3(%arg0: i32) -> (i32, i32) {
    %c0_i32 = arith.constant 0 : i32
    %c0_i32_0 = arith.constant 0 : i32
    return %arg0, %c0_i32 : i32, i32
  }
}

</mosaic_0001>

<bundles_post_ra>
// kernel: cnn_model_forward.13
= control target key start
LH: loop header
LB: loop body
LE: loop exit
PB: predicated region body
PF: predicated region fallthrough
CT: control target
= control target key end

     0   :  { %s574_s12 = smov 0   ;;  %s721_s0 = inlined_call_operand.vmem [shape: f32[512,128], index: 0, kind: input, shape index: {}]   ;;  %s722_s1 = inlined_call_operand.vmem [shape: f32[1,128], index: 1, kind: input, shape index: {}]   ;;  %s723_s2 = inlined_call_operand.vmem [shape: f32[1,128], index: 2, kind: input, shape index: {}]   ;;  %s724_s3 = inlined_call_operand.vmem [shape: bf16[512,128], index: 3, kind: output, shape index: {}]  }
   0x1 LB: > { %s430_s13 = sadd.s32 4294967295, %s552_s12   ;;  %p434_p0 = scmp.ge.s32.totalorder %s552_s12, 1  ;;  %s552_s12 = sphi %s574_s12, %s13_s12  }
   0x2   : > { %p138_p1 = scmp.lt.s32.totalorder %s552_s12, 3 }
   0x4   : > { %p139_p2 = pnand %p434_p0, %p138_p1 }
   0x5   : > { %s435_s14 = sshll.u32 (!%p139_p2), %s430_s13, 5 }
   0x6   : > { %142 = sbr.rel (%p139_p2) target bundleno = 49 (0x31), region = 32  ;;  %p163_p3 = scmp.lt.s32.totalorder (!%p139_p2), %s435_s14, 63 }
   0xb   : > { %s726_s14 = smov (!%p163_p3, %s435_s14), 63  ;;  %v587_v0 = vld [vmem:[%s722_s1] ss:$0 sm:$0xff] }
   0xc   : > { %s436_s17 = sshll.u32 %s726_s14, 3  ;;  %v598_v1 = vld [vmem:[%s723_s2] ss:$0 sm:$0xff]  ;;  %s438_s23 = sshll.u32 %s726_s14, 2 }
   0xd   : > { %s593_s20 = scalar_lea.vmem %s721_s0, %s436_s17  ;;  %s630_s26 = scalar_lea.vmem %s724_s3, %s438_s23 }
   0xe   : > { %v174_v2 = vld [vmem:[%s593_s20] sm:$0xff]  ;;  %v175_v3 = vld [vmem:[%s593_s20 + $0x8] sm:$0xff]  ;;  %v176_v4 = vld [vmem:[%s593_s20 + $0x10] sm:$0xff] }
   0xf   : > { %v210_v5 = vmul.f32 %v587_v0, %v174_v2  ;;  %v211_v6 = vmul.f32 %v587_v0, %v175_v3  ;;  %v177_v7 = vld [vmem:[%s593_s20 + $0x18] sm:$0xff]  ;;  %v212_v8 = vmul.f32 %v587_v0, %v176_v4  ;;  %v178_v9 = vld [vmem:[%s593_s20 + $0x20] sm:$0xff]  ;;  %v179_v10 = vld [vmem:[%s593_s20 + $0x28] sm:$0xff] }
  0x10   : > { %v213_v11 = vmul.f32 %v587_v0, %v177_v7  ;;  %v214_v12 = vmul.f32 %v587_v0, %v178_v9  ;;  %v215_v13 = vmul.f32 %v587_v0, %v179_v10  ;;  %v180_v14 = vld [vmem:[%s593_s20 + $0x30] sm:$0xff]  ;;  %v181_v15 = vld [vmem:[%s593_s20 + $0x38] sm:$0xff]  ;;  %v182_v24 = vld [vmem:[%s593_s20 + $0x40] sm:$0xff] }
  0x11   : > { %v246_v16 = vadd.f32 %v598_v1, %v210_v5  ;;  %v247_v17 = vadd.f32 %v598_v1, %v211_v6  ;;  %v248_v18 = vadd.f32 %v598_v1, %v212_v8  ;;  %v216_v19 = vmul.f32 %v587_v0, %v180_v14  ;;  %v183_v25 = vld [vmem:[%s593_s20 + $0x48] sm:$0xff]  ;;  %v184_v30 = vld [vmem:[%s593_s20 + $0x50] sm:$0xff]  ;;  %v185_v35 = vld [vmem:[%s593_s20 + $0x58] sm:$0xff] }
  0x12   : > { %v249_v20 = vadd.f32 %v598_v1, %v213_v11  ;;  %v250_v21 = vadd.f32 %v598_v1, %v214_v12  ;;  %v251_v22 = vadd.f32 %v598_v1, %v215_v13  ;;  %v217_v23 = vmul.f32 %v587_v0, %v181_v15  ;;  %v186_v36 = vld [vmem:[%s593_s20 + $0x60] sm:$0xff]  ;;  %v187_v41 = vld [vmem:[%s593_s20 + $0x68] sm:$0xff]  ;;  %v188_v42 = vld [vmem:[%s593_s20 + $0x70] sm:$0xff] }
  0x13   : > { %v278_v26 = vmax.f32 %v246_v16, 0.0  ;;  %v279_v27 = vmax.f32 %v247_v17, 0.0  ;;  %v280_v28 = vmax.f32 %v248_v18, 0.0  ;;  %v252_v29 = vadd.f32 %v598_v1, %v216_v19  ;;  %v189_v51 = vld [vmem:[%s593_s20 + $0x78] sm:$0xff]  ;;  %v190_v56 = vld [vmem:[%s593_s20 + $0x80] sm:$0xff]  ;;  %v191_v61 = vld [vmem:[%s593_s20 + $0x88] sm:$0xff] }
  0x14   : > { %v281_v31 = vmax.f32 %v249_v20, 0.0  ;;  %v282_v32 = vmax.f32 %v250_v21, 0.0  ;;  %v283_v33 = vmax.f32 %v251_v22, 0.0  ;;  %v253_v34 = vadd.f32 %v598_v1, %v217_v23  ;;  %v192_v4 = vld [vmem:[%s593_s20 + $0x90] sm:$0xff]  ;;  %v193_v5 = vld [vmem:[%s593_s20 + $0x98] sm:$0xff]  ;;  %v194_v10 = vld [vmem:[%s593_s20 + $0xa0] sm:$0xff] }
  0x15   : > { %v444_v37 = vpack.c.bf16 %v279_v27, %v278_v26  ;;  %v284_v38 = vmax.f32 %v252_v29, 0.0  ;;  %v218_v39 = vmul.f32 %v587_v0, %v182_v24  ;;  %v219_v40 = vmul.f32 %v587_v0, %v183_v25  ;;  %v195_v15 = vld [vmem:[%s593_s20 + $0xa8] sm:$0xff]  ;;  %v196_v20 = vld [vmem:[%s593_s20 + $0xb0] sm:$0xff]  ;;  %v197_v25 = vld [vmem:[%s593_s20 + $0xb8] sm:$0xff] }
  0x16   : > { %v449_v43 = vpack.c.bf16 %v281_v31, %v280_v28  ;;  %v454_v44 = vpack.c.bf16 %v283_v33, %v282_v32  ;;  %v285_v45 = vmax.f32 %v253_v34, 0.0  ;;  %v220_v46 = vmul.f32 %v587_v0, %v184_v30  ;;  %v198_v30 = vld [vmem:[%s593_s20 + $0xc0] sm:$0xff] }
  0x17   : > { %445 = vst [vmem:[%s630_s26] sm:$0xff] %v444_v37   ;;  %v254_v47 = vadd.f32 %v598_v1, %v218_v39  ;;  %v255_v48 = vadd.f32 %v598_v1, %v219_v40  ;;  %v221_v49 = vmul.f32 %v587_v0, %v185_v35  ;;  %v222_v50 = vmul.f32 %v587_v0, %v186_v36  ;;  %v199_v35 = vld [vmem:[%s593_s20 + $0xc8] sm:$0xff]  ;;  %v200_v40 = vld [vmem:[%s593_s20 + $0xd0] sm:$0xff] }
  0x18   : > { %521 = vst [vmem:[%s630_s26 + $0x8] sm:$0xff] %v449_v43   ;;  %v459_v52 = vpack.c.bf16 %v285_v45, %v284_v38  ;;  %v256_v53 = vadd.f32 %v598_v1, %v220_v46  ;;  %v223_v54 = vmul.f32 %v587_v0, %v187_v41  ;;  %v224_v55 = vmul.f32 %v587_v0, %v188_v42  ;;  %v201_v41 = vld [vmem:[%s593_s20 + $0xd8] sm:$0xff]  ;;  %v202_v46 = vld [vmem:[%s593_s20 + $0xe0] sm:$0xff] }
  0x19   : > { %522 = vst [vmem:[%s630_s26 + $0x10] sm:$0xff] %v454_v44   ;;  %v286_v57 = vmax.f32 %v254_v47, 0.0  ;;  %v287_v58 = vmax.f32 %v255_v48, 0.0  ;;  %v257_v59 = vadd.f32 %v598_v1, %v221_v49  ;;  %v258_v60 = vadd.f32 %v598_v1, %v222_v50 }
  0x1a   : > { %523 = vst [vmem:[%s630_s26 + $0x18] sm:$0xff] %v459_v52   ;;  %v288_v62 = vmax.f32 %v256_v53, 0.0  ;;  %v259_v63 = vadd.f32 %v598_v1, %v223_v54  ;;  %v225_v2 = vmul.f32 %v587_v0, %v189_v51  ;;  %v260_v3 = vadd.f32 %v598_v1, %v224_v55  ;;  %v203_v51 = vld [vmem:[%s593_s20 + $0xe8] sm:$0xff] }
  0x1b   : > { %v464_v6 = vpack.c.bf16 %v287_v58, %v286_v57  ;;  %v289_v7 = vmax.f32 %v257_v59, 0.0  ;;  %v290_v8 = vmax.f32 %v258_v60, 0.0  ;;  %v226_v9 = vmul.f32 %v587_v0, %v190_v56  ;;  %v204_v56 = vld [vmem:[%s593_s20 + $0xf0] sm:$0xff] }
  0x1c   : > { %v291_v11 = vmax.f32 %v259_v63, 0.0  ;;  %v261_v12 = vadd.f32 %v598_v1, %v225_v2  ;;  %v292_v13 = vmax.f32 %v260_v3, 0.0  ;;  %v227_v14 = vmul.f32 %v587_v0, %v191_v61  ;;  %v205_v61 = vld [vmem:[%s593_s20 + $0xf8] sm:$0xff] }
  0x1d   : > { %524 = vst [vmem:[%s630_s26 + $0x20] sm:$0xff] %v464_v6   ;;  %v469_v16 = vpack.c.bf16 %v289_v7, %v288_v62  ;;  %v262_v17 = vadd.f32 %v598_v1, %v226_v9  ;;  %v228_v18 = vmul.f32 %v587_v0, %v192_v4  ;;  %v229_v19 = vmul.f32 %v587_v0, %v193_v5 }
  0x1e   : > { %v474_v21 = vpack.c.bf16 %v291_v11, %v290_v8  ;;  %v293_v22 = vmax.f32 %v261_v12, 0.0  ;;  %v263_v23 = vadd.f32 %v598_v1, %v227_v14  ;;  %v230_v24 = vmul.f32 %v587_v0, %v194_v10 }
  0x1f   : > { %525 = vst [vmem:[%s630_s26 + $0x28] sm:$0xff] %v469_v16   ;;  %v294_v26 = vmax.f32 %v262_v17, 0.0  ;;  %v264_v27 = vadd.f32 %v598_v1, %v228_v18  ;;  %v265_v28 = vadd.f32 %v598_v1, %v229_v19  ;;  %v231_v29 = vmul.f32 %v587_v0, %v195_v15 }
  0x20   : > { %526 = vst [vmem:[%s630_s26 + $0x30] sm:$0xff] %v474_v21   ;;  %v479_v31 = vpack.c.bf16 %v293_v22, %v292_v13  ;;  %v295_v32 = vmax.f32 %v263_v23, 0.0  ;;  %v266_v33 = vadd.f32 %v598_v1, %v230_v24  ;;  %v232_v34 = vmul.f32 %v587_v0, %v196_v20 }
  0x21   : > { %v296_v36 = vmax.f32 %v264_v27, 0.0  ;;  %v297_v37 = vmax.f32 %v265_v28, 0.0  ;;  %v267_v38 = vadd.f32 %v598_v1, %v231_v29  ;;  %v233_v39 = vmul.f32 %v587_v0, %v197_v25 }
  0x22   : > { %527 = vst [vmem:[%s630_s26 + $0x38] sm:$0xff] %v479_v31   ;;  %v484_v42 = vpack.c.bf16 %v295_v32, %v294_v26  ;;  %v298_v43 = vmax.f32 %v266_v33, 0.0  ;;  %v268_v44 = vadd.f32 %v598_v1, %v232_v34  ;;  %v234_v45 = vmul.f32 %v587_v0, %v198_v30 }
  0x23   : > { %v489_v47 = vpack.c.bf16 %v297_v37, %v296_v36  ;;  %v299_v48 = vmax.f32 %v267_v38, 0.0  ;;  %v269_v49 = vadd.f32 %v598_v1, %v233_v39  ;;  %v235_v50 = vmul.f32 %v587_v0, %v199_v35 }
  0x24   : > { %528 = vst [vmem:[%s630_s26 + $0x40] sm:$0xff] %v484_v42   ;;  %v300_v52 = vmax.f32 %v268_v44, 0.0  ;;  %v270_v53 = vadd.f32 %v598_v1, %v234_v45  ;;  %v236_v54 = vmul.f32 %v587_v0, %v200_v40  ;;  %v237_v55 = vmul.f32 %v587_v0, %v201_v41 }
  0x25   : > { %529 = vst [vmem:[%s630_s26 + $0x48] sm:$0xff] %v489_v47   ;;  %v494_v57 = vpack.c.bf16 %v299_v48, %v298_v43  ;;  %v301_v58 = vmax.f32 %v269_v49, 0.0  ;;  %v271_v59 = vadd.f32 %v598_v1, %v235_v50  ;;  %v238_v60 = vmul.f32 %v587_v0, %v202_v46 }
  0x26   : > { %v302_v62 = vmax.f32 %v270_v53, 0.0  ;;  %v272_v63 = vadd.f32 %v598_v1, %v236_v54  ;;  %v273_v2 = vadd.f32 %v598_v1, %v237_v55  ;;  %v239_v3 = vmul.f32 %v587_v0, %v203_v51 }
  0x27   : > { %530 = vst [vmem:[%s630_s26 + $0x50] sm:$0xff] %v494_v57   ;;  %v499_v4 = vpack.c.bf16 %v301_v58, %v300_v52  ;;  %v303_v5 = vmax.f32 %v271_v59, 0.0  ;;  %v274_v6 = vadd.f32 %v598_v1, %v238_v60  ;;  %v240_v7 = vmul.f32 %v587_v0, %v204_v56 }
  0x28   : > { %v304_v8 = vmax.f32 %v272_v63, 0.0  ;;  %v305_v9 = vmax.f32 %v273_v2, 0.0  ;;  %v275_v10 = vadd.f32 %v598_v1, %v239_v3  ;;  %v241_v11 = vmul.f32 %v587_v0, %v205_v61 }
  0x29   : > { %531 = vst [vmem:[%s630_s26 + $0x58] sm:$0xff] %v499_v4   ;;  %v504_v12 = vpack.c.bf16 %v303_v5, %v302_v62  ;;  %v306_v13 = vmax.f32 %v274_v6, 0.0  ;;  %v276_v14 = vadd.f32 %v598_v1, %v240_v7 }
  0x2a   : > { %v509_v15 = vpack.c.bf16 %v305_v9, %v304_v8  ;;  %v307_v16 = vmax.f32 %v275_v10, 0.0  ;;  %v277_v17 = vadd.f32 %v598_v1, %v241_v11 }
  0x2b   : > { %532 = vst [vmem:[%s630_s26 + $0x60] sm:$0xff] %v504_v12   ;;  %v308_v18 = vmax.f32 %v276_v14, 0.0 }
  0x2c   : > { %533 = vst [vmem:[%s630_s26 + $0x68] sm:$0xff] %v509_v15   ;;  %v514_v19 = vpack.c.bf16 %v307_v16, %v306_v13  ;;  %v309_v20 = vmax.f32 %v277_v17, 0.0 }
  0x2e   : > { %534 = vst [vmem:[%s630_s26 + $0x70] sm:$0xff] %v514_v19   ;;  %v519_v21 = vpack.c.bf16 %v309_v20, %v308_v18 }
  0x30   : > { %535 = vst [vmem:[%s630_s26 + $0x78] sm:$0xff] %v519_v21  }
  0x31 PF: > { %s13_s12 = sadd.s32 1, %s552_s12  }
  0x32   : > { %p10_p4 = scmp.ge.s32.totalorder %s13_s12, 4  }
  0x34   :  { %12 = sbr.rel (!%p10_p4) target bundleno = 1 (0x1), region = 62 }

// kernel: cnn_model_forward.12
= control target key start
LH: loop header
LB: loop body
LE: loop exit
PB: predicated region body
PF: predicated region fallthrough
CT: control target
= control target key end

     0   :  { %s915_s12 = smov 0   ;;  %s1147_s0 = inlined_call_operand.vmem [shape: bf16[512,100], index: 0, kind: input, shape index: {}]   ;;  %s1148_s1 = inlined_call_operand.vmem [shape: bf16[100,128], index: 1, kind: input, shape index: {}]   ;;  %s1149_s2 = inlined_call_operand.vmem [shape: f32[512,128], index: 2, kind: output, shape index: {0}]   ;;  %s1150_s3 = inlined_call_operand.vmem [shape: f32[2,2,128], index: 3, kind: output, shape index: {1}]  }
   0x1 LB: > { %s921_s13 = sadd.s32 4294967295, %s893_s12   ;;  %p724_p0 = scmp.ge.s32.totalorder %s893_s12, 1  ;;  %s893_s12 = sphi %s915_s12, %s14_s12  }
   0x2   : > { %p141_p1 = scmp.lt.s32.totalorder %s893_s12, 3 }
   0x4   : > { %p142_p2 = pnand %p724_p0, %p141_p1 }
   0x5   : > { %s725_s20 = sshll.u32 (!%p142_p2), %s921_s13, 5  ;;  %p181_p4 = scmp.lt.s32.totalorder (!%p142_p2), %s921_s13, 1 }
   0x6   : > { %145 = sbr.rel (%p142_p2) target bundleno = 292 (0x124), region = 28  ;;  %p170_p3 = scmp.lt.s32.totalorder (!%p142_p2), %s725_s20, 63 }
   0xb   : > { %v230_v0 = vld [vmem:[%s1148_s1 + $0x30] sm:$0x3]  ;;  %vm399_vm0 = vcmask 1041408   ;;  %v857_v4 = vld [vmem:[%s1148_s1 + $0x28] sm:$0xff]  ;;  %v856_v5 = vld [vmem:[%s1148_s1 + $0x20] sm:$0xff]  ;;  %s1152_s20 = smov (!%p170_p3, %s725_s20), 63 }
   0xc   : > { %v336_v1 = vunpack.c.l.b16 %v230_v0  ;;  %v855_v6 = vld [vmem:[%s1148_s1 + $0x18] sm:$0xff]  ;;  %v854_v7 = vld [vmem:[%s1148_s1 + $0x10] sm:$0xff]  ;;  %v853_v8 = vld [vmem:[%s1148_s1 + $0x8] sm:$0xff]  ;;  %s726_s27 = sshll.u32 %s1152_s20, 2  ;;  %vm350_vm1 = vcmask 818176   ;;  %s728_s6 = sshll.u32 %s1152_s20, 3 }
   0xd   : > { %v852_v9 = vld [vmem:[%s1148_s1] sm:$0xff]  ;;  %s953_s5 = scalar_lea.vmem %s1147_s0, %s726_s27  ;;  %s991_s9 = scalar_lea.vmem %s1149_s2, %s728_s6  ;;  %vm630_vm2 = vcmask 1040384  }
   0xe   : > { %v343_v2 = vpack.c.b16 %v336_v1, %v336_v1  ;;  %v836_v10 = vld [vmem:[%s953_s5] sm:$0xff]  ;;  %v837_v14 = vld [vmem:[%s953_s5 + $0x8] sm:$0xff]  ;;  %v838_v18 = vld [vmem:[%s953_s5 + $0x10] sm:$0xff]  ;;  %s1154_s13 = smov (!%p181_p4, %s921_s13), 1 }
   0xf   : > { %v840_v11 = vld [vmem:[%s953_s5 + $0x20] sm:$0xff]  ;;  %v841_v15 = vld [vmem:[%s953_s5 + $0x28] sm:$0xff]  ;;  %v842_v19 = vld [vmem:[%s953_s5 + $0x30] sm:$0xff]  ;;  %s729_s10 = sshll.u32 %s1154_s13, 1 }
  0x10   : > { %v401_v3 = vsel %vm399_vm0, %v343_v2, 0  ;;  %v844_v12 = vld [vmem:[%s953_s5 + $0x40] sm:$0xff]  ;;  %v845_v16 = vld [vmem:[%s953_s5 + $0x48] sm:$0xff]  ;;  %v846_v20 = vld [vmem:[%s953_s5 + $0x50] sm:$0xff]  ;;  %s184_s15 = scalar_lea.vmem %s1150_s3, %s729_s10 }
  0x11   : > { %404 = vmatpush.bf16.msra.mxu0 %v401_v3  ;;  %858 = vmatpush.bf16.msra.mxu1 %v401_v3  ;;  %v848_v13 = vld [vmem:[%s953_s5 + $0x60] sm:$0xff]  ;;  %v849_v17 = vld [vmem:[%s953_s5 + $0x68] sm:$0xff]  ;;  %v850_v21 = vld [vmem:[%s953_s5 + $0x70] sm:$0xff] }
  0x12   : > { %859 = vmatpush.bf16.msra.mxu2 %v401_v3  ;;  %860 = vmatpush.bf16.msra.mxu3 %v401_v3  ;;  %v839_v22 = vld [vmem:[%s953_s5 + $0x18] sm:$0xff] }
  0x13   : > { %v843_v23 = vld [vmem:[%s953_s5 + $0x38] sm:$0xff] }
  0x14   : > { %v847_v24 = vld [vmem:[%s953_s5 + $0x58] sm:$0xff] }
  0x15   : > { %405 = vmatpush.bf16.msra.mxu0 %v857_v4  ;;  %861 = vmatpush.bf16.msra.mxu1 %v857_v4  ;;  %v851_v25 = vld [vmem:[%s953_s5 + $0x78] sm:$0xff] }
  0x16   : > { %862 = vmatpush.bf16.msra.mxu2 %v857_v4  ;;  %863 = vmatpush.bf16.msra.mxu3 %v857_v4 }
  0x19   : > { %406 = vmatpush.bf16.msra.mxu0 %v856_v5  ;;  %864 = vmatpush.bf16.msra.mxu1 %v856_v5 }
  0x1a   : > { %865 = vmatpush.bf16.msra.mxu2 %v856_v5  ;;  %866 = vmatpush.bf16.msra.mxu3 %v856_v5 }
  0x1d   : > { %407 = vmatpush.bf16.msra.mxu0 %v855_v6  ;;  %867 = vmatpush.bf16.msra.mxu1 %v855_v6 }
  0x1e   : > { %868 = vmatpush.bf16.msra.mxu2 %v855_v6  ;;  %869 = vmatpush.bf16.msra.mxu3 %v855_v6 }
  0x21   : > { %408 = vmatpush.bf16.msra.mxu0 %v854_v7  ;;  %870 = vmatpush.bf16.msra.mxu1 %v854_v7 }
  0x22   : > { %871 = vmatpush.bf16.msra.mxu2 %v854_v7  ;;  %872 = vmatpush.bf16.msra.mxu3 %v854_v7 }
  0x25   : > { %409 = vmatpush.bf16.msra.mxu0 %v853_v8  ;;  %873 = vmatpush.bf16.msra.mxu1 %v853_v8 }
  0x26   : > { %874 = vmatpush.bf16.msra.mxu2 %v853_v8  ;;  %875 = vmatpush.bf16.msra.mxu3 %v853_v8 }
  0x29   : > { %410 = vmatpush.bf16.msra.mxu0 %v852_v9  ;;  %876 = vmatpush.bf16.msra.mxu1 %v852_v9 }
  0x2a   : > { %877 = vmatpush.bf16.msra.mxu2 %v852_v9  ;;  %878 = vmatpush.bf16.msra.mxu3 %v852_v9 }
  0x2c   : > { %818 = vmatmul.msk.bf16.vlgmr.msra.gmra.mxu0 %vm350_vm1, %v836_v10  ;;  %822 = vmatmul.msk.bf16.vlgmr.msra.gmra.mxu1 %vm350_vm1, %v840_v11 }
  0x2d   : > { %826 = vmatmul.msk.bf16.vlgmr.msra.gmra.mxu2 %vm350_vm1, %v844_v12  ;;  %830 = vmatmul.msk.bf16.vlgmr.msra.gmra.mxu3 %vm350_vm1, %v848_v13 }
  0x3c   : > { %819 = vmatmul.msk.bf16.gmra.mxu0 %vm350_vm1, %v837_v14  ;;  %823 = vmatmul.msk.bf16.gmra.mxu1 %vm350_vm1, %v841_v15 }
  0x3d   : > { %827 = vmatmul.msk.bf16.gmra.mxu2 %vm350_vm1, %v845_v16  ;;  %831 = vmatmul.msk.bf16.gmra.mxu3 %vm350_vm1, %v849_v17 }
  0x4c   : > { %820 = vmatmul.msk.bf16.gmra.mxu0 %vm350_vm1, %v838_v18  ;;  %824 = vmatmul.msk.bf16.gmra.mxu1 %vm350_vm1, %v842_v19 }
  0x4d   : > { %828 = vmatmul.msk.bf16.gmra.mxu2 %vm350_vm1, %v846_v20  ;;  %832 = vmatmul.msk.bf16.gmra.mxu3 %vm350_vm1, %v850_v21 }
  0x5c   : > { %821 = vmatmul.msk.bf16.gmra.mxu0 %vm350_vm1, %v839_v22  ;;  %825 = vmatmul.msk.bf16.gmra.mxu1 %vm350_vm1, %v843_v23 }
  0x5d   : > { %829 = vmatmul.msk.bf16.gmra.mxu2 %vm350_vm1, %v847_v24  ;;  %833 = vmatmul.msk.bf16.gmra.mxu3 %vm350_vm1, %v851_v25 }
  0xa9   : > { %v412_v26 = vpop.f32.mrf.mxu0  ;;  %v993_v27 = vpop.f32.mrf.mxu1 }
  0xaa   : > { %492 = vst [vmem:[%s991_s9] sm:$0xff] %v412_v26  ;;  %v561_v49 = vmul.f32 %v412_v26, %v412_v26  ;;  %v569_v13 = vmul.f32 %v993_v27, %v993_v27 }
  0xab   : > { %500 = vst [vmem:[%s991_s9 + $0x40] sm:$0xff] %v993_v27 }
  0xb0   : > { %v998_v28 = vpop.f32.mrf.mxu2  ;;  %v1005_v31 = vpop.f32.mrf.mxu3 }
  0xb1   : > { %v414_v29 = vpop.f32.mrf.mxu0  ;;  %v1000_v30 = vpop.f32.mrf.mxu1  ;;  %508 = vst [vmem:[%s991_s9 + $0x80] sm:$0xff] %v998_v28 }
  0xb2   : > { %493 = vst [vmem:[%s991_s9 + $0x8] sm:$0xff] %v414_v29  ;;  %v562_v48 = vmul.f32 %v414_v29, %v414_v29  ;;  %v524_v50 = vadd.f32 %v414_v29, %v412_v26  ;;  %v570_v16 = vmul.f32 %v1000_v30, %v1000_v30 }
  0xb3   : > { %501 = vst [vmem:[%s991_s9 + $0x48] sm:$0xff] %v1000_v30 }
  0xb4   : > { %516 = vst [vmem:[%s991_s9 + $0xc0] sm:$0xff] %v1005_v31  ;;  %v593_v52 = vadd.f32 %v562_v48, %v561_v49 }
  0xb8   : > { %v1011_v32 = vpop.f32.mrf.mxu2  ;;  %v1018_v35 = vpop.f32.mrf.mxu3 }
  0xb9   : > { %v417_v33 = vpop.f32.mrf.mxu0  ;;  %v1013_v34 = vpop.f32.mrf.mxu1  ;;  %509 = vst [vmem:[%s991_s9 + $0x88] sm:$0xff] %v1011_v32 }
  0xba   : > { %494 = vst [vmem:[%s991_s9 + $0x10] sm:$0xff] %v417_v33  ;;  %v563_v51 = vmul.f32 %v417_v33, %v417_v33  ;;  %v525_v53 = vadd.f32 %v524_v50, %v417_v33  ;;  %v571_v19 = vmul.f32 %v1013_v34, %v1013_v34 }
  0xbb   : > { %502 = vst [vmem:[%s991_s9 + $0x50] sm:$0xff] %v1013_v34 }
  0xbc   : > { %517 = vst [vmem:[%s991_s9 + $0xc8] sm:$0xff] %v1018_v35  ;;  %v594_v58 = vadd.f32 %v593_v52, %v563_v51  ;;  %v577_v51 = vmul.f32 %v998_v28, %v998_v28 }
  0xc0   : > { %v1024_v36 = vpop.f32.mrf.mxu2  ;;  %v1031_v39 = vpop.f32.mrf.mxu3 }
  0xc1   : > { %v419_v37 = vpop.f32.mrf.mxu0  ;;  %v1026_v38 = vpop.f32.mrf.mxu1  ;;  %510 = vst [vmem:[%s991_s9 + $0x90] sm:$0xff] %v1024_v36 }
  0xc2   : > { %495 = vst [vmem:[%s991_s9 + $0x18] sm:$0xff] %v419_v37  ;;  %v564_v54 = vmul.f32 %v419_v37, %v419_v37  ;;  %v526_v59 = vadd.f32 %v525_v53, %v419_v37  ;;  %v572_v23 = vmul.f32 %v1026_v38, %v1026_v38 }
  0xc3   : > { %503 = vst [vmem:[%s991_s9 + $0x58] sm:$0xff] %v1026_v38 }
  0xc4   : > { %518 = vst [vmem:[%s991_s9 + $0xd0] sm:$0xff] %v1031_v39  ;;  %v595_v62 = vadd.f32 %v594_v58, %v564_v54 }
  0xc8   : > { %v1037_v40 = vpop.f32.mrf.mxu2  ;;  %v1044_v43 = vpop.f32.mrf.mxu3 }
  0xc9   : > { %v422_v41 = vpop.f32.mrf.mxu0  ;;  %v1039_v42 = vpop.f32.mrf.mxu1  ;;  %511 = vst [vmem:[%s991_s9 + $0x98] sm:$0xff] %v1037_v40 }
  0xca   : > { %496 = vst [vmem:[%s991_s9 + $0x20] sm:$0xff] %v422_v41  ;;  %v565_v60 = vmul.f32 %v422_v41, %v422_v41  ;;  %v527_v63 = vadd.f32 %v526_v59, %v422_v41  ;;  %v580_v59 = vmul.f32 %v1037_v40, %v1037_v40 }
  0xcb   : > { %504 = vst [vmem:[%s991_s9 + $0x60] sm:$0xff] %v1039_v42 }
  0xcc   : > { %519 = vst [vmem:[%s991_s9 + $0xd8] sm:$0xff] %v1044_v43  ;;  %v596_v1 = vadd.f32 %v595_v62, %v565_v60 }
  0xd0   : > { %v1050_v44 = vpop.f32.mrf.mxu2  ;;  %v1057_v47 = vpop.f32.mrf.mxu3 }
  0xd1   : > { %v424_v45 = vpop.f32.mrf.mxu0  ;;  %v1052_v46 = vpop.f32.mrf.mxu1  ;;  %512 = vst [vmem:[%s991_s9 + $0xa0] sm:$0xff] %v1050_v44 }
  0xd2   : > { %497 = vst [vmem:[%s991_s9 + $0x28] sm:$0xff] %v424_v45  ;;  %v566_v0 = vmul.f32 %v424_v45, %v424_v45  ;;  %v528_v2 = vadd.f32 %v527_v63, %v424_v45  ;;  %v574_v33 = vmul.f32 %v1052_v46, %v1052_v46 }
  0xd3   : > { %505 = vst [vmem:[%s991_s9 + $0x68] sm:$0xff] %v1052_v46 }
  0xd4   : > { %520 = vst [vmem:[%s991_s9 + $0xe0] sm:$0xff] %v1057_v47  ;;  %v597_v4 = vadd.f32 %v596_v1, %v566_v0 }
  0xd8   : > { %v1063_v55 = vpop.f32.mrf.mxu2  ;;  %v1068_v61 = vpop.f32.mrf.mxu3 }
  0xd9   : > { %v427_v56 = vpop.f32.mrf.mxu0  ;;  %v447_v57 = vpop.f32.mrf.mxu1  ;;  %513 = vst [vmem:[%s991_s9 + $0xa8] sm:$0xff] %v1063_v55  ;;  %v582_v1 = vmul.f32 %v1063_v55, %v1063_v55 }
  0xda   : > { %498 = vst [vmem:[%s991_s9 + $0x30] sm:$0xff] %v427_v56  ;;  %v567_v3 = vmul.f32 %v427_v56, %v427_v56  ;;  %v529_v5 = vadd.f32 %v528_v2, %v427_v56  ;;  %v575_v45 = vmul.f32 %v447_v57, %v447_v57 }
  0xdb   : > { %506 = vst [vmem:[%s991_s9 + $0x70] sm:$0xff] %v447_v57 }
  0xdc   : > { %521 = vst [vmem:[%s991_s9 + $0xe8] sm:$0xff] %v1068_v61  ;;  %v598_v9 = vadd.f32 %v597_v4, %v567_v3 }
  0xe0   : > { %v467_v6 = vpop.f32.mrf.mxu2  ;;  %v1075_v12 = vpop.f32.mrf.mxu3 }
  0xe1   : > { %v429_v7 = vpop.f32.mrf.mxu0  ;;  %v449_v8 = vpop.f32.mrf.mxu1  ;;  %514 = vst [vmem:[%s991_s9 + $0xb0] sm:$0xff] %v467_v6  ;;  %v583_v4 = vmul.f32 %v467_v6, %v467_v6 }
  0xe2   : > { %499 = vst [vmem:[%s991_s9 + $0x38] sm:$0xff] %v429_v7  ;;  %v530_v10 = vadd.f32 %v529_v5, %v429_v7  ;;  %v568_v11 = vmul.f32 %v429_v7, %v429_v7 }
  0xe3   : > { %507 = vst [vmem:[%s991_s9 + $0x78] sm:$0xff] %v449_v8 }
  0xe4   : > { %v531_v14 = vadd.f32 %v530_v10, %v993_v27  ;;  %v599_v15 = vadd.f32 %v598_v9, %v568_v11  ;;  %522 = vst [vmem:[%s991_s9 + $0xf0] sm:$0xff] %v1075_v12  ;;  %v573_v27 = vmul.f32 %v1039_v42, %v1039_v42 }
  0xe6   : > { %v532_v17 = vadd.f32 %v531_v14, %v1000_v30  ;;  %v600_v18 = vadd.f32 %v599_v15, %v569_v13  ;;  %v588_v15 = vmul.f32 %v1044_v43, %v1044_v43 }
  0xe8   : > { %v533_v20 = vadd.f32 %v532_v17, %v1013_v34  ;;  %v601_v21 = vadd.f32 %v600_v18, %v570_v16  ;;  %v469_v22 = vpop.f32.mrf.mxu2  ;;  %v489_v26 = vpop.f32.mrf.mxu3  ;;  %v589_v17 = vmul.f32 %v1057_v47, %v1057_v47 }
  0xe9   : > { %515 = vst [vmem:[%s991_s9 + $0xb8] sm:$0xff] %v469_v22 }
  0xea   : > { %v602_v24 = vadd.f32 %v601_v21, %v571_v19  ;;  %v534_v25 = vadd.f32 %v533_v20, %v1026_v38  ;;  %523 = vst [vmem:[%s991_s9 + $0xf8] sm:$0xff] %v489_v26  ;;  %v576_v38 = vmul.f32 %v449_v8, %v449_v8 }
  0xec   : > { %v535_v29 = vadd.f32 %v534_v25, %v1039_v42  ;;  %v603_v30 = vadd.f32 %v602_v24, %v572_v23  ;;  %v578_v42 = vmul.f32 %v1011_v32, %v1011_v32  ;;  %v591_v23 = vmul.f32 %v1075_v12, %v1075_v12 }
  0xed   : > { %v592_v25 = vmul.f32 %v489_v26, %v489_v26 }
  0xee   : > { %v536_v34 = vadd.f32 %v535_v29, %v1052_v46  ;;  %v604_v37 = vadd.f32 %v603_v30, %v573_v27  ;;  %v579_v46 = vmul.f32 %v1024_v36, %v1024_v36 }
  0xf0   : > { %v537_v41 = vadd.f32 %v536_v34, %v447_v57  ;;  %v605_v48 = vadd.f32 %v604_v37, %v574_v33 }
  0xf2   : > { %v606_v49 = vadd.f32 %v605_v48, %v575_v45  ;;  %v538_v50 = vadd.f32 %v537_v41, %v449_v8  ;;  %v584_v8 = vmul.f32 %v469_v22, %v469_v22 }
  0xf4   : > { %v539_v52 = vadd.f32 %v538_v50, %v998_v28  ;;  %v607_v53 = vadd.f32 %v606_v49, %v576_v38  ;;  %v581_v28 = vmul.f32 %v1050_v44, %v1050_v44 }
  0xf6   : > { %v540_v54 = vadd.f32 %v539_v52, %v1011_v32  ;;  %v608_v56 = vadd.f32 %v607_v53, %v577_v51 }
  0xf8   : > { %v541_v57 = vadd.f32 %v540_v54, %v1024_v36  ;;  %v609_v58 = vadd.f32 %v608_v56, %v578_v42 }
  0xfa   : > { %v610_v60 = vadd.f32 %v609_v58, %v579_v46  ;;  %v542_v62 = vadd.f32 %v541_v57, %v1037_v40  ;;  %v585_v40 = vmul.f32 %v1005_v31, %v1005_v31 }
  0xfc   : > { %v543_v63 = vadd.f32 %v542_v62, %v1050_v44  ;;  %v611_v0 = vadd.f32 %v610_v60, %v580_v59  ;;  %v586_v44 = vmul.f32 %v1018_v35, %v1018_v35 }
  0xfe   : > { %v544_v32 = vadd.f32 %v543_v63, %v1063_v55  ;;  %v612_v2 = vadd.f32 %v611_v0, %v581_v28  ;;  %v587_v55 = vmul.f32 %v1031_v39, %v1031_v39 }
 0x100   : > { %v613_v36 = vadd.f32 %v612_v2, %v582_v1  ;;  %v545_v3 = vadd.f32 %v544_v32, %v467_v6 }
 0x102   : > { %v614_v5 = vadd.f32 %v613_v36, %v583_v4  ;;  %v546_v7 = vadd.f32 %v545_v3, %v469_v22 }
 0x104   : > { %v547_v9 = vadd.f32 %v546_v7, %v1005_v31  ;;  %v615_v10 = vadd.f32 %v614_v5, %v584_v8 }
 0x106   : > { %v548_v11 = vadd.f32 %v547_v9, %v1018_v35  ;;  %v616_v13 = vadd.f32 %v615_v10, %v585_v40 }
 0x108   : > { %v549_v6 = vadd.f32 %v548_v11, %v1031_v39  ;;  %v617_v14 = vadd.f32 %v616_v13, %v586_v44  ;;  %v590_v39 = vmul.f32 %v1068_v61, %v1068_v61 }
 0x10a   : > { %v618_v16 = vadd.f32 %v617_v14, %v587_v55  ;;  %v550_v31 = vadd.f32 %v549_v6, %v1044_v43 }
 0x10c   : > { %v551_v18 = vadd.f32 %v550_v31, %v1057_v47  ;;  %v619_v35 = vadd.f32 %v618_v16, %v588_v15 }
 0x10e   : > { %v552_v19 = vadd.f32 %v551_v18, %v1068_v61  ;;  %v620_v20 = vadd.f32 %v619_v35, %v589_v17 }
 0x110   : > { %v621_v21 = vadd.f32 %v620_v20, %v590_v39  ;;  %v553_v22 = vadd.f32 %v552_v19, %v1075_v12 }
 0x112   : > { %v622_v43 = vadd.f32 %v621_v21, %v591_v23  ;;  %v554_v24 = vadd.f32 %v553_v22, %v489_v26 }
 0x114   : > { %v555_v27 = vrot.slane %v554_v24, 4  ;;  %v623_v29 = vadd.f32 %v622_v43, %v592_v25 }
 0x116   : > { %v556_v47 = vadd.f32 %v555_v27, %v554_v24  ;;  %v624_v30 = vrot.slane %v623_v29, 4 }
 0x118   : > { %v557_v33 = vrot.slane %v556_v47, 2  ;;  %v625_v34 = vadd.f32 %v624_v30, %v623_v29 }
 0x11a   : > { %v558_v37 = vadd.f32 %v557_v33, %v556_v47  ;;  %v626_v61 = vrot.slane %v625_v34, 2 }
 0x11c   : > { %v559_v41 = vrot.slane %v558_v37, 1  ;;  %v627_v45 = vadd.f32 %v626_v61, %v625_v34 }
 0x11e   : > { %v628_v48 = vrot.slane %v627_v45, 1  ;;  %v560_v12 = vadd.f32 %v559_v41, %v558_v37 }
 0x120   : > { %v629_v26 = vadd.f32 %v628_v48, %v627_v45 }
 0x122   : > { %v631_v49 = vsel %vm630_vm2, %v560_v12, %v629_v26 }
 0x123   : > { %632 = vst [vmem:[%s184_s15] sm:$0x3] %v631_v49 }
 0x124 PF: > { %s14_s12 = sadd.s32 1, %s893_s12  }
 0x125   : > { %p11_p5 = scmp.ge.s32.totalorder %s14_s12, 4  }
 0x127   :  { %13 = sbr.rel (!%p11_p5) target bundleno = 1 (0x1), region = 70 }

// kernel: cnn_model_forward.16
= control target key start
LH: loop header
LB: loop body
LE: loop exit
PB: predicated region body
PF: predicated region fallthrough
CT: control target
= control target key end

     0   :  { %s1172_s12 = smov 0   ;;  %s1431_s0 = inlined_call_operand.vmem [shape: bf16[512,144], index: 0, kind: input, shape index: {}]   ;;  %s1432_s1 = inlined_call_operand.vmem [shape: bf16[144,128], index: 1, kind: input, shape index: {}]   ;;  %s1433_s2 = inlined_call_operand.vmem [shape: f32[512,128], index: 2, kind: output, shape index: {0}]   ;;  %s1434_s3 = inlined_call_operand.vmem [shape: f32[2,2,128], index: 3, kind: output, shape index: {1}]  }
   0x1 LB: > { %s1178_s13 = sadd.s32 4294967295, %s1150_s12   ;;  %p896_p0 = scmp.ge.s32.totalorder %s1150_s12, 1  ;;  %s1150_s12 = sphi %s1172_s12, %s14_s12  }
   0x2   : > { %p142_p1 = scmp.lt.s32.totalorder %s1150_s12, 3 }
   0x4   : > { %p143_p2 = pnand %p896_p0, %p142_p1 }
   0x5   : > { %s897_s18 = sshll.u32 (!%p143_p2), %s1178_s13, 5  ;;  %p184_p4 = scmp.lt.s32.totalorder (!%p143_p2), %s1178_s13, 1 }
   0x6   : > { %146 = sbr.rel (%p143_p2) target bundleno = 341 (0x155), region = 28  ;;  %p172_p3 = scmp.lt.s32.totalorder (!%p143_p2), %s897_s18, 63 }
   0xb   : > { %v1125_v0 = vld [vmem:[%s1432_s1 + $0x38] sm:$0xff]  ;;  %v1126_v1 = vld [vmem:[%s1432_s1 + $0x40] sm:$0xff]  ;;  %v1124_v2 = vld [vmem:[%s1432_s1 + $0x30] sm:$0xff]  ;;  %s1436_s18 = smov (!%p172_p3, %s897_s18), 63  ;;  %vm437_vm0 = vcmask 130048   ;;  %s1438_s13 = smov (!%p184_p4, %s1178_s13), 1 }
   0xc   : > { %486 = vmatpush.bf16.msra.mxu0 %v1125_v0  ;;  %582 = vmatpush.bf16.msra.mxu1 %v1126_v1  ;;  %s1085_s21 = sshll.u32 %s1436_s18, 3  ;;  %v1123_v3 = vld [vmem:[%s1432_s1 + $0x28] sm:$0xff]  ;;  %v1122_v7 = vld [vmem:[%s1432_s1 + $0x20] sm:$0xff]  ;;  %v1121_v8 = vld [vmem:[%s1432_s1 + $0x18] sm:$0xff]  ;;  %s902_s15 = sshll.u32 %s1438_s13, 1  ;;  %vm802_vm1 = vcmask 1040384  }
   0xd   : > { %1127 = vmatpush.bf16.msra.mxu2 %v1125_v0  ;;  %1135 = vmatpush.bf16.msra.mxu3 %v1126_v1  ;;  %s1200_s24 = scalar_lea.vmem %s1431_s0, %s1085_s21  ;;  %v1120_v9 = vld [vmem:[%s1432_s1 + $0x10] sm:$0xff]  ;;  %v1119_v13 = vld [vmem:[%s1432_s1 + $0x8] sm:$0xff]  ;;  %v1118_v14 = vld [vmem:[%s1432_s1] sm:$0xff]  ;;  %s1305_s14 = scalar_lea.vmem %s1433_s2, %s1085_s21 }
   0xe   : > { %v1086_v4 = vld [vmem:[%s1200_s24 + $0x4] sm:$0xf]  ;;  %v907_v5 = vld [vmem:[%s1200_s24 + $0x8] sm:$0xf0]  ;;  %v1088_v10 = vld [vmem:[%s1200_s24 + $0x14] sm:$0xf]  ;;  %s187_s18 = scalar_lea.vmem %s1434_s3, %s902_s15 }
   0xf   : > { %v910_v6 = vor.u32 %v1086_v4, %v907_v5  ;;  %v915_v11 = vld [vmem:[%s1200_s24 + $0x18] sm:$0xf0]  ;;  %v905_v15 = vld [vmem:[%s1200_s24] sm:$0xf]  ;;  %v1087_v16 = vld [vmem:[%s1200_s24 + $0x4] sm:$0xf0] }
  0x10   : > { %487 = vmatpush.bf16.msra.mxu0 %v1124_v2  ;;  %v918_v12 = vor.u32 %v1088_v10, %v915_v11  ;;  %v969_v17 = vld [vmem:[%s1200_s24 + $0x80] sm:$0xf]  ;;  %v1103_v18 = vld [vmem:[%s1200_s24 + $0x84] sm:$0xf0]  ;;  %v906_v19 = vor.u32 %v1087_v16, %v905_v15  ;;  %v1104_v21 = vld [vmem:[%s1200_s24 + $0x94] sm:$0xf] }
  0x11   : > { %1128 = vmatpush.bf16.msra.mxu2 %v1124_v2  ;;  %1067 = vmatmul.msk.bf16.vlgmr.msra.gmra.mxu1 %vm437_vm0, %v910_v6  ;;  %v970_v20 = vor.u32 %v1103_v18, %v969_v17  ;;  %v979_v22 = vld [vmem:[%s1200_s24 + $0x98] sm:$0xf0]  ;;  %v1090_v24 = vld [vmem:[%s1200_s24 + $0x24] sm:$0xf]  ;;  %v923_v25 = vld [vmem:[%s1200_s24 + $0x28] sm:$0xf0] }
  0x12   : > { %v982_v23 = vor.u32 %v1104_v21, %v979_v22  ;;  %v926_v26 = vor.u32 %v1090_v24, %v923_v25  ;;  %v913_v27 = vld [vmem:[%s1200_s24 + $0x10] sm:$0xf]  ;;  %v1089_v28 = vld [vmem:[%s1200_s24 + $0x14] sm:$0xf0]  ;;  %v1106_v33 = vld [vmem:[%s1200_s24 + $0xa4] sm:$0xf] }
  0x13   : > { %v977_v29 = vld [vmem:[%s1200_s24 + $0x90] sm:$0xf]  ;;  %v1105_v30 = vld [vmem:[%s1200_s24 + $0x94] sm:$0xf0]  ;;  %v914_v31 = vor.u32 %v1089_v28, %v913_v27  ;;  %v987_v34 = vld [vmem:[%s1200_s24 + $0xa8] sm:$0xf0] }
  0x14   : > { %488 = vmatpush.bf16.msra.mxu0 %v1123_v3  ;;  %1076 = vmatmul.msk.bf16.vlgmr.msra.gmra.mxu3 %vm437_vm0, %v982_v23  ;;  %v978_v32 = vor.u32 %v1105_v30, %v977_v29  ;;  %v990_v35 = vor.u32 %v1106_v33, %v987_v34  ;;  %v1092_v36 = vld [vmem:[%s1200_s24 + $0x34] sm:$0xf]  ;;  %v931_v37 = vld [vmem:[%s1200_s24 + $0x38] sm:$0xf0]  ;;  %v921_v39 = vld [vmem:[%s1200_s24 + $0x20] sm:$0xf] }
  0x15   : > { %1129 = vmatpush.bf16.msra.mxu2 %v1123_v3  ;;  %v934_v38 = vor.u32 %v1092_v36, %v931_v37  ;;  %v1091_v40 = vld [vmem:[%s1200_s24 + $0x24] sm:$0xf0]  ;;  %v985_v41 = vld [vmem:[%s1200_s24 + $0xa0] sm:$0xf]  ;;  %v1108_v45 = vld [vmem:[%s1200_s24 + $0xb4] sm:$0xf] }
  0x16   : > { %v1107_v42 = vld [vmem:[%s1200_s24 + $0xa4] sm:$0xf0]  ;;  %v922_v43 = vor.u32 %v1091_v40, %v921_v39  ;;  %v995_v46 = vld [vmem:[%s1200_s24 + $0xb8] sm:$0xf0]  ;;  %v1094_v48 = vld [vmem:[%s1200_s24 + $0x44] sm:$0xf] }
  0x17   : > { %v986_v44 = vor.u32 %v1107_v42, %v985_v41  ;;  %v998_v47 = vor.u32 %v1108_v45, %v995_v46  ;;  %v939_v49 = vld [vmem:[%s1200_s24 + $0x48] sm:$0xf0]  ;;  %v929_v51 = vld [vmem:[%s1200_s24 + $0x30] sm:$0xf]  ;;  %v1093_v52 = vld [vmem:[%s1200_s24 + $0x34] sm:$0xf0] }
  0x18   : > { %489 = vmatpush.bf16.msra.mxu0 %v1122_v7  ;;  %v942_v50 = vor.u32 %v1094_v48, %v939_v49  ;;  %v993_v53 = vld [vmem:[%s1200_s24 + $0xb0] sm:$0xf]  ;;  %v1109_v54 = vld [vmem:[%s1200_s24 + $0xb4] sm:$0xf0]  ;;  %v930_v55 = vor.u32 %v1093_v52, %v929_v51  ;;  %v1110_v57 = vld [vmem:[%s1200_s24 + $0xc4] sm:$0xf] }
  0x19   : > { %1130 = vmatpush.bf16.msra.mxu2 %v1122_v7  ;;  %v994_v56 = vor.u32 %v1109_v54, %v993_v53  ;;  %v1003_v58 = vld [vmem:[%s1200_s24 + $0xc8] sm:$0xf0]  ;;  %v1096_v60 = vld [vmem:[%s1200_s24 + $0x54] sm:$0xf]  ;;  %v947_v61 = vld [vmem:[%s1200_s24 + $0x58] sm:$0xf0] }
  0x1a   : > { %v1006_v59 = vor.u32 %v1110_v57, %v1003_v58  ;;  %v950_v62 = vor.u32 %v1096_v60, %v947_v61  ;;  %v937_v63 = vld [vmem:[%s1200_s24 + $0x40] sm:$0xf]  ;;  %v1095_v0 = vld [vmem:[%s1200_s24 + $0x44] sm:$0xf0]  ;;  %v1112_v5 = vld [vmem:[%s1200_s24 + $0xd4] sm:$0xf] }
  0x1b   : > { %v1001_v1 = vld [vmem:[%s1200_s24 + $0xc0] sm:$0xf]  ;;  %v1111_v2 = vld [vmem:[%s1200_s24 + $0xc4] sm:$0xf0]  ;;  %v938_v3 = vor.u32 %v1095_v0, %v937_v63  ;;  %v1011_v6 = vld [vmem:[%s1200_s24 + $0xd8] sm:$0xf0] }
  0x1c   : > { %490 = vmatpush.bf16.msra.mxu0 %v1121_v8  ;;  %v1002_v4 = vor.u32 %v1111_v2, %v1001_v1  ;;  %v1014_v7 = vor.u32 %v1112_v5, %v1011_v6  ;;  %v945_v11 = vld [vmem:[%s1200_s24 + $0x50] sm:$0xf]  ;;  %v1114_v17 = vld [vmem:[%s1200_s24 + $0xe4] sm:$0xf]  ;;  %v1019_v18 = vld [vmem:[%s1200_s24 + $0xe8] sm:$0xf0] }
  0x1d   : > { %1131 = vmatpush.bf16.msra.mxu2 %v1121_v8  ;;  %v1098_v8 = vld [vmem:[%s1200_s24 + $0x64] sm:$0xf]  ;;  %v963_v21 = vld [vmem:[%s1200_s24 + $0x78] sm:$0xf0]  ;;  %v953_v23 = vld [vmem:[%s1200_s24 + $0x60] sm:$0xf] }
  0x1e   : > { %v1099_v24 = vld [vmem:[%s1200_s24 + $0x64] sm:$0xf0]  ;;  %v1017_v25 = vld [vmem:[%s1200_s24 + $0xe0] sm:$0xf]  ;;  %v1116_v29 = vld [vmem:[%s1200_s24 + $0xf4] sm:$0xf] }
  0x1f   : > { %v954_v27 = vor.u32 %v1099_v24, %v953_v23  ;;  %v1027_v30 = vld [vmem:[%s1200_s24 + $0xf8] sm:$0xf0]  ;;  %v971_v33 = vld [vmem:[%s1200_s24 + $0x88] sm:$0xf0]  ;;  %v961_v36 = vld [vmem:[%s1200_s24 + $0x70] sm:$0xf] }
  0x20   : > { %491 = vmatpush.bf16.msra.mxu0 %v1120_v9  ;;  %v1101_v37 = vld [vmem:[%s1200_s24 + $0x74] sm:$0xf0] }
  0x21   : > { %1132 = vmatpush.bf16.msra.mxu2 %v1120_v9  ;;  %1068 = vmatmul.msk.bf16.gmra.mxu1 %vm437_vm0, %v918_v12  ;;  %v955_v9 = vld [vmem:[%s1200_s24 + $0x68] sm:$0xf0]  ;;  %v1097_v12 = vld [vmem:[%s1200_s24 + $0x54] sm:$0xf0]  ;;  %v962_v40 = vor.u32 %v1101_v37, %v961_v36 }
  0x22   : > { %v958_v10 = vor.u32 %v1098_v8, %v955_v9  ;;  %v946_v15 = vor.u32 %v1097_v12, %v945_v11  ;;  %v1117_v39 = vld [vmem:[%s1200_s24 + $0xf4] sm:$0xf0] }
  0x24   : > { %492 = vmatpush.bf16.msra.mxu0 %v1119_v13  ;;  %1077 = vmatmul.msk.bf16.gmra.mxu3 %vm437_vm0, %v990_v35 }
  0x25   : > { %1133 = vmatpush.bf16.msra.mxu2 %v1119_v13  ;;  %v1009_v13 = vld [vmem:[%s1200_s24 + $0xd0] sm:$0xf] }
  0x28   : > { %493 = vmatpush.bf16.msra.mxu0 %v1118_v14 }
  0x29   : > { %1134 = vmatpush.bf16.msra.mxu2 %v1118_v14  ;;  %v1113_v14 = vld [vmem:[%s1200_s24 + $0xd4] sm:$0xf0] }
  0x2a   : > { %v1010_v16 = vor.u32 %v1113_v14, %v1009_v13 }
  0x2b   : > { %494 = vmatmul.bf16.vlgmr.msra.gmra.mxu0 %v906_v19  ;;  %v1022_v19 = vor.u32 %v1114_v17, %v1019_v18 }
  0x2c   : > { %534 = vmatmul.bf16.vlgmr.msra.gmra.mxu2 %v970_v20  ;;  %v1100_v20 = vld [vmem:[%s1200_s24 + $0x74] sm:$0xf] }
  0x2d   : > { %v966_v22 = vor.u32 %v1100_v20, %v963_v21 }
  0x31   : > { %1069 = vmatmul.msk.bf16.gmra.mxu1 %vm437_vm0, %v926_v26  ;;  %v1115_v26 = vld [vmem:[%s1200_s24 + $0xe4] sm:$0xf0] }
  0x32   : > { %v1018_v28 = vor.u32 %v1115_v26, %v1017_v25 }
  0x34   : > { %1078 = vmatmul.msk.bf16.gmra.mxu3 %vm437_vm0, %v998_v47 }
  0x3b   : > { %499 = vmatmul.bf16.gmra.mxu0 %v914_v31  ;;  %v1030_v31 = vor.u32 %v1116_v29, %v1027_v30 }
  0x3c   : > { %539 = vmatmul.bf16.gmra.mxu2 %v978_v32  ;;  %v1102_v32 = vld [vmem:[%s1200_s24 + $0x84] sm:$0xf] }
  0x3d   : > { %v974_v34 = vor.u32 %v1102_v32, %v971_v33 }
  0x41   : > { %1070 = vmatmul.msk.bf16.gmra.mxu1 %vm437_vm0, %v934_v38  ;;  %v1025_v38 = vld [vmem:[%s1200_s24 + $0xf0] sm:$0xf] }
  0x42   : > { %v1026_v41 = vor.u32 %v1117_v39, %v1025_v38 }
  0x44   : > { %1079 = vmatmul.msk.bf16.gmra.mxu3 %vm437_vm0, %v1006_v59 }
  0x4b   : > { %504 = vmatmul.bf16.gmra.mxu0 %v922_v43 }
  0x4c   : > { %544 = vmatmul.bf16.gmra.mxu2 %v986_v44 }
  0x51   : > { %1071 = vmatmul.msk.bf16.gmra.mxu1 %vm437_vm0, %v942_v50 }
  0x54   : > { %1080 = vmatmul.msk.bf16.gmra.mxu3 %vm437_vm0, %v1014_v7 }
  0x5b   : > { %509 = vmatmul.bf16.gmra.mxu0 %v930_v55 }
  0x5c   : > { %549 = vmatmul.bf16.gmra.mxu2 %v994_v56 }
  0x61   : > { %1072 = vmatmul.msk.bf16.gmra.mxu1 %vm437_vm0, %v950_v62 }
  0x64   : > { %1081 = vmatmul.msk.bf16.gmra.mxu3 %vm437_vm0, %v1022_v19 }
  0x6b   : > { %514 = vmatmul.bf16.gmra.mxu0 %v938_v3 }
  0x6c   : > { %554 = vmatmul.bf16.gmra.mxu2 %v1002_v4 }
  0x71   : > { %1073 = vmatmul.msk.bf16.gmra.mxu1 %vm437_vm0, %v958_v10 }
  0x74   : > { %1082 = vmatmul.msk.bf16.gmra.mxu3 %vm437_vm0, %v1030_v31 }
  0x7b   : > { %519 = vmatmul.bf16.gmra.mxu0 %v946_v15 }
  0x7c   : > { %559 = vmatmul.bf16.gmra.mxu2 %v1010_v16 }
  0x81   : > { %1074 = vmatmul.msk.bf16.gmra.mxu1 %vm437_vm0, %v966_v22 }
  0x8b   : > { %524 = vmatmul.bf16.gmra.mxu0 %v954_v27 }
  0x8c   : > { %564 = vmatmul.bf16.gmra.mxu2 %v1018_v28 }
  0x8e   : > { %v584_v35 = vpop.f32.mrf.mxu1 }
  0x91   : > { %1075 = vmatmul.msk.bf16.gmra.mxu1 %vm437_vm0, %v974_v34 }
  0x96   : > { %v586_v42 = vpop.f32.mrf.mxu1 }
  0x97   : > { %v629_v51 = vpop.f32.mrf.mxu3 }
  0x9b   : > { %529 = vmatmul.bf16.gmra.mxu0 %v962_v40 }
  0x9c   : > { %569 = vmatmul.bf16.gmra.mxu2 %v1026_v41 }
  0x9e   : > { %v589_v43 = vpop.f32.mrf.mxu1 }
  0x9f   : > { %v631_v60 = vpop.f32.mrf.mxu3 }
  0xa6   : > { %v591_v46 = vpop.f32.mrf.mxu1 }
  0xa7   : > { %v634_v5 = vpop.f32.mrf.mxu3 }
  0xa8   : > { %v495_v44 = vpop.f32.mrf.mxu0 }
  0xa9   : > { %v585_v45 = vadd.f32 %v584_v35, %v495_v44 }
  0xab   : > { %664 = vst [vmem:[%s1305_s14] sm:$0xff] %v585_v45  ;;  %v733_v52 = vmul.f32 %v585_v45, %v585_v45 }
  0xae   : > { %v594_v50 = vpop.f32.mrf.mxu1 }
  0xaf   : > { %v1308_v47 = vpop.f32.mrf.mxu2  ;;  %v636_v14 = vpop.f32.mrf.mxu3 }
  0xb0   : > { %v497_v48 = vpop.f32.mrf.mxu0 }
  0xb1   : > { %v587_v49 = vadd.f32 %v586_v42, %v497_v48 }
  0xb3   : > { %665 = vst [vmem:[%s1305_s14 + $0x8] sm:$0xff] %v587_v49  ;;  %v696_v53 = vadd.f32 %v587_v49, %v585_v45  ;;  %v734_v54 = vmul.f32 %v587_v49, %v587_v49 }
  0xb5   : > { %v765_v55 = vadd.f32 %v734_v54, %v733_v52 }
  0xb6   : > { %v596_v59 = vpop.f32.mrf.mxu1 }
  0xb7   : > { %v1311_v56 = vpop.f32.mrf.mxu2  ;;  %v639_v23 = vpop.f32.mrf.mxu3 }
  0xb8   : > { %v500_v57 = vpop.f32.mrf.mxu0 }
  0xb9   : > { %v590_v58 = vadd.f32 %v589_v43, %v500_v57 }
  0xbb   : > { %666 = vst [vmem:[%s1305_s14 + $0x10] sm:$0xff] %v590_v58  ;;  %v697_v61 = vadd.f32 %v696_v53, %v590_v58  ;;  %v735_v62 = vmul.f32 %v590_v58, %v590_v58 }
  0xbd   : > { %v766_v63 = vadd.f32 %v765_v55, %v735_v62 }
  0xbe   : > { %v599_v4 = vpop.f32.mrf.mxu1 }
  0xbf   : > { %v540_v0 = vpop.f32.mrf.mxu2  ;;  %v641_v29 = vpop.f32.mrf.mxu3 }
  0xc0   : > { %v502_v1 = vpop.f32.mrf.mxu0  ;;  %v1314_v2 = vadd.f32 %v629_v51, %v540_v0 }
  0xc1   : > { %v592_v3 = vadd.f32 %v591_v46, %v502_v1 }
  0xc2   : > { %682 = vst [vmem:[%s1305_s14 + $0x90] sm:$0xff] %v1314_v2 }
  0xc3   : > { %667 = vst [vmem:[%s1305_s14 + $0x18] sm:$0xff] %v592_v3  ;;  %v698_v6 = vadd.f32 %v697_v61, %v592_v3  ;;  %v736_v7 = vmul.f32 %v592_v3, %v592_v3 }
  0xc5   : > { %v767_v8 = vadd.f32 %v766_v63, %v736_v7 }
  0xc6   : > { %v601_v13 = vpop.f32.mrf.mxu1 }
  0xc7   : > { %v542_v9 = vpop.f32.mrf.mxu2  ;;  %v644_v35 = vpop.f32.mrf.mxu3 }
  0xc8   : > { %v505_v10 = vpop.f32.mrf.mxu0  ;;  %v1319_v11 = vadd.f32 %v631_v60, %v542_v9 }
  0xc9   : > { %v595_v12 = vadd.f32 %v594_v50, %v505_v10 }
  0xca   : > { %683 = vst [vmem:[%s1305_s14 + $0x98] sm:$0xff] %v1319_v11 }
  0xcb   : > { %668 = vst [vmem:[%s1305_s14 + $0x20] sm:$0xff] %v595_v12  ;;  %v1324_v15 = vadd.f32 %v698_v6, %v595_v12  ;;  %v737_v16 = vmul.f32 %v595_v12, %v595_v12 }
  0xcd   : > { %v1326_v17 = vadd.f32 %v767_v8, %v737_v16 }
  0xce   : > { %v604_v22 = vpop.f32.mrf.mxu1 }
  0xcf   : > { %v545_v18 = vpop.f32.mrf.mxu2  ;;  %v646_v41 = vpop.f32.mrf.mxu3 }
  0xd0   : > { %v507_v19 = vpop.f32.mrf.mxu0  ;;  %v1328_v20 = vadd.f32 %v634_v5, %v545_v18 }
  0xd1   : > { %v597_v21 = vadd.f32 %v596_v59, %v507_v19 }
  0xd2   : > { %684 = vst [vmem:[%s1305_s14 + $0xa0] sm:$0xff] %v1328_v20 }
  0xd3   : > { %669 = vst [vmem:[%s1305_s14 + $0x28] sm:$0xff] %v597_v21  ;;  %v700_v5 = vadd.f32 %v1324_v15, %v597_v21 }
  0xd6   : > { %v606_v28 = vpop.f32.mrf.mxu1 }
  0xd7   : > { %v547_v24 = vpop.f32.mrf.mxu2  ;;  %v649_v48 = vpop.f32.mrf.mxu3 }
  0xd8   : > { %v510_v25 = vpop.f32.mrf.mxu0  ;;  %v1333_v26 = vadd.f32 %v636_v14, %v547_v24 }
  0xd9   : > { %v600_v27 = vadd.f32 %v599_v4, %v510_v25  ;;  %v738_v4 = vmul.f32 %v597_v21, %v597_v21 }
  0xda   : > { %685 = vst [vmem:[%s1305_s14 + $0xa8] sm:$0xff] %v1333_v26 }
  0xdb   : > { %670 = vst [vmem:[%s1305_s14 + $0x30] sm:$0xff] %v600_v27  ;;  %v739_v6 = vmul.f32 %v600_v27, %v600_v27  ;;  %v769_v10 = vadd.f32 %v1326_v17, %v738_v4  ;;  %v701_v12 = vadd.f32 %v700_v5, %v600_v27 }
  0xde   : > { %v609_v34 = vpop.f32.mrf.mxu1 }
  0xdf   : > { %v550_v30 = vpop.f32.mrf.mxu2  ;;  %v651_v54 = vpop.f32.mrf.mxu3 }
  0xe0   : > { %v512_v31 = vpop.f32.mrf.mxu0  ;;  %v1338_v32 = vadd.f32 %v639_v23, %v550_v30 }
  0xe1   : > { %v602_v33 = vadd.f32 %v601_v13, %v512_v31 }
  0xe2   : > { %686 = vst [vmem:[%s1305_s14 + $0xb0] sm:$0xff] %v1338_v32 }
  0xe3   : > { %671 = vst [vmem:[%s1305_s14 + $0x38] sm:$0xff] %v602_v33  ;;  %v740_v13 = vmul.f32 %v602_v33, %v602_v33  ;;  %v702_v15 = vadd.f32 %v701_v12, %v602_v33  ;;  %v751_v12 = vmul.f32 %v1314_v2, %v1314_v2 }
  0xe6   : > { %v611_v40 = vpop.f32.mrf.mxu1 }
  0xe7   : > { %v552_v36 = vpop.f32.mrf.mxu2  ;;  %v654_v62 = vpop.f32.mrf.mxu3 }
  0xe8   : > { %v515_v37 = vpop.f32.mrf.mxu0  ;;  %v1343_v38 = vadd.f32 %v641_v29, %v552_v36 }
  0xe9   : > { %v605_v39 = vadd.f32 %v604_v22, %v515_v37  ;;  %v770_v22 = vadd.f32 %v769_v10, %v739_v6 }
  0xea   : > { %687 = vst [vmem:[%s1305_s14 + $0xb8] sm:$0xff] %v1343_v38 }
  0xeb   : > { %672 = vst [vmem:[%s1305_s14 + $0x40] sm:$0xff] %v605_v39  ;;  %v741_v21 = vmul.f32 %v605_v39, %v605_v39  ;;  %v771_v23 = vadd.f32 %v770_v22, %v740_v13  ;;  %v703_v24 = vadd.f32 %v702_v15, %v605_v39 }
  0xee   : > { %v614_v46 = vpop.f32.mrf.mxu1 }
  0xef   : > { %v555_v42 = vpop.f32.mrf.mxu2  ;;  %v656_v18 = vpop.f32.mrf.mxu3 }
  0xf0   : > { %v517_v43 = vpop.f32.mrf.mxu0  ;;  %v1348_v44 = vadd.f32 %v644_v35, %v555_v42 }
  0xf1   : > { %v607_v45 = vadd.f32 %v606_v28, %v517_v43  ;;  %v772_v28 = vadd.f32 %v771_v23, %v741_v21  ;;  %v754_v21 = vmul.f32 %v1333_v26, %v1333_v26 }
  0xf2   : > { %688 = vst [vmem:[%s1305_s14 + $0xc0] sm:$0xff] %v1348_v44 }
  0xf3   : > { %673 = vst [vmem:[%s1305_s14 + $0x48] sm:$0xff] %v607_v45  ;;  %v742_v25 = vmul.f32 %v607_v45, %v607_v45  ;;  %v704_v17 = vadd.f32 %v703_v24, %v607_v45  ;;  %v755_v24 = vmul.f32 %v1338_v32, %v1338_v32 }
  0xf6   : > { %v616_v53 = vpop.f32.mrf.mxu1 }
  0xf7   : > { %v557_v49 = vpop.f32.mrf.mxu2  ;;  %v659_v42 = vpop.f32.mrf.mxu3 }
  0xf8   : > { %v520_v50 = vpop.f32.mrf.mxu0  ;;  %v1353_v51 = vadd.f32 %v646_v41, %v557_v49 }
  0xf9   : > { %v610_v52 = vadd.f32 %v609_v34, %v520_v50 }
  0xfa   : > { %689 = vst [vmem:[%s1305_s14 + $0xc8] sm:$0xff] %v1353_v51 }
  0xfb   : > { %674 = vst [vmem:[%s1305_s14 + $0x50] sm:$0xff] %v610_v52  ;;  %v743_v27 = vmul.f32 %v610_v52, %v610_v52  ;;  %v705_v34 = vadd.f32 %v704_v17, %v610_v52 }
  0xfe   : > { %v619_v60 = vpop.f32.mrf.mxu1 }
  0xff   : > { %v560_v55 = vpop.f32.mrf.mxu2 }
 0x100   : > { %v522_v57 = vpop.f32.mrf.mxu0  ;;  %v1358_v58 = vadd.f32 %v649_v48, %v560_v55 }
 0x101   : > { %v612_v59 = vadd.f32 %v611_v40, %v522_v57 }
 0x102   : > { %690 = vst [vmem:[%s1305_s14 + $0xd0] sm:$0xff] %v1358_v58 }
 0x103   : > { %675 = vst [vmem:[%s1305_s14 + $0x58] sm:$0xff] %v612_v59  ;;  %v744_v35 = vmul.f32 %v612_v59, %v612_v59  ;;  %v706_v40 = vadd.f32 %v705_v34, %v612_v59 }
 0x106   : > { %v621_v3 = vpop.f32.mrf.mxu1 }
 0x107   : > { %v562_v61 = vpop.f32.mrf.mxu2 }
 0x108   : > { %v525_v63 = vpop.f32.mrf.mxu0  ;;  %v1363_v0 = vadd.f32 %v651_v54, %v562_v61 }
 0x109   : > { %v615_v1 = vadd.f32 %v614_v46, %v525_v63 }
 0x10a   : > { %691 = vst [vmem:[%s1305_s14 + $0xd8] sm:$0xff] %v1363_v0 }
 0x10b   : > { %676 = vst [vmem:[%s1305_s14 + $0x60] sm:$0xff] %v615_v1  ;;  %v745_v41 = vmul.f32 %v615_v1, %v615_v1  ;;  %v707_v45 = vadd.f32 %v706_v40, %v615_v1  ;;  %v661_v1 = vpop.f32.mrf.mxu3 }
 0x10e   : > { %v624_v16 = vpop.f32.mrf.mxu1 }
 0x10f   : > { %v565_v7 = vpop.f32.mrf.mxu2  ;;  %v625_v19 = vadd.f32 %v624_v16, %v1308_v47  ;;  %v773_v47 = vadd.f32 %v772_v28, %v742_v25 }
 0x110   : > { %v527_v8 = vpop.f32.mrf.mxu0  ;;  %v1369_v9 = vadd.f32 %v654_v62, %v565_v7 }
 0x111   : > { %v617_v14 = vadd.f32 %v616_v53, %v527_v8  ;;  %680 = vst [vmem:[%s1305_s14 + $0x80] sm:$0xff] %v625_v19  ;;  %v774_v39 = vadd.f32 %v773_v47, %v743_v27  ;;  %v749_v62 = vmul.f32 %v625_v19, %v625_v19 }
 0x112   : > { %692 = vst [vmem:[%s1305_s14 + $0xe0] sm:$0xff] %v1369_v9 }
 0x113   : > { %677 = vst [vmem:[%s1305_s14 + $0x68] sm:$0xff] %v617_v14  ;;  %v775_v43 = vadd.f32 %v774_v39, %v744_v35  ;;  %v746_v46 = vmul.f32 %v617_v14, %v617_v14  ;;  %v708_v49 = vadd.f32 %v707_v45, %v617_v14  ;;  %v752_v14 = vmul.f32 %v1319_v11, %v1319_v11 }
 0x114   : > { %v761_v39 = vmul.f32 %v1369_v9, %v1369_v9 }
 0x115   : > { %v776_v48 = vadd.f32 %v775_v43, %v745_v41 }
 0x116   : > { %v626_v36 = vpop.f32.mrf.mxu1 }
 0x117   : > { %v567_v29 = vpop.f32.mrf.mxu2  ;;  %v627_v37 = vadd.f32 %v626_v36, %v1311_v56  ;;  %v777_v56 = vadd.f32 %v776_v48, %v746_v46 }
 0x118   : > { %v530_v30 = vpop.f32.mrf.mxu0  ;;  %v1377_v31 = vadd.f32 %v656_v18, %v567_v29 }
 0x119   : > { %v620_v33 = vadd.f32 %v619_v60, %v530_v30  ;;  %681 = vst [vmem:[%s1305_s14 + $0x88] sm:$0xff] %v627_v37  ;;  %v750_v5 = vmul.f32 %v627_v37, %v627_v37 }
 0x11a   : > { %693 = vst [vmem:[%s1305_s14 + $0xe8] sm:$0xff] %v1377_v31 }
 0x11b   : > { %678 = vst [vmem:[%s1305_s14 + $0x70] sm:$0xff] %v620_v33  ;;  %v747_v50 = vmul.f32 %v620_v33, %v620_v33  ;;  %v709_v55 = vadd.f32 %v708_v49, %v620_v33 }
 0x11d   : > { %v778_v59 = vadd.f32 %v777_v56, %v747_v50 }
 0x11f   : > { %v570_v52 = vpop.f32.mrf.mxu2 }
 0x120   : > { %v532_v53 = vpop.f32.mrf.mxu0  ;;  %v660_v54 = vadd.f32 %v659_v42, %v570_v52 }
 0x121   : > { %v622_v57 = vadd.f32 %v621_v3, %v532_v53 }
 0x122   : > { %694 = vst [vmem:[%s1305_s14 + $0xf0] sm:$0xff] %v660_v54  ;;  %v763_v45 = vmul.f32 %v660_v54, %v660_v54 }
 0x123   : > { %679 = vst [vmem:[%s1305_s14 + $0x78] sm:$0xff] %v622_v57  ;;  %v710_v60 = vadd.f32 %v709_v55, %v622_v57  ;;  %v748_v61 = vmul.f32 %v622_v57, %v622_v57 }
 0x125   : > { %v711_v63 = vadd.f32 %v710_v60, %v625_v19  ;;  %v779_v4 = vadd.f32 %v778_v59, %v748_v61  ;;  %v753_v19 = vmul.f32 %v1328_v20, %v1328_v20 }
 0x127   : > { %v712_v6 = vadd.f32 %v711_v63, %v627_v37  ;;  %v780_v7 = vadd.f32 %v779_v4, %v749_v62  ;;  %v572_v8 = vpop.f32.mrf.mxu2 }
 0x128   : > { %v662_v10 = vadd.f32 %v661_v1, %v572_v8 }
 0x129   : > { %v713_v3 = vadd.f32 %v712_v6, %v1314_v2  ;;  %v781_v13 = vadd.f32 %v780_v7, %v750_v5 }
 0x12a   : > { %695 = vst [vmem:[%s1305_s14 + $0xf8] sm:$0xff] %v662_v10  ;;  %v764_v48 = vmul.f32 %v662_v10, %v662_v10 }
 0x12b   : > { %v714_v16 = vadd.f32 %v713_v3, %v1319_v11  ;;  %v782_v18 = vadd.f32 %v781_v13, %v751_v12  ;;  %v756_v11 = vmul.f32 %v1343_v38, %v1343_v38 }
 0x12d   : > { %v715_v22 = vadd.f32 %v714_v16, %v1328_v20  ;;  %v783_v15 = vadd.f32 %v782_v18, %v752_v14  ;;  %v757_v20 = vmul.f32 %v1348_v44, %v1348_v44 }
 0x12f   : > { %v716_v23 = vadd.f32 %v715_v22, %v1333_v26  ;;  %v784_v2 = vadd.f32 %v783_v15, %v753_v19  ;;  %v758_v26 = vmul.f32 %v1353_v51, %v1353_v51 }
 0x131   : > { %v785_v25 = vadd.f32 %v784_v2, %v754_v21  ;;  %v717_v28 = vadd.f32 %v716_v23, %v1338_v32  ;;  %v759_v32 = vmul.f32 %v1358_v58, %v1358_v58 }
 0x133   : > { %v718_v17 = vadd.f32 %v717_v28, %v1343_v38  ;;  %v786_v27 = vadd.f32 %v785_v25, %v755_v24  ;;  %v760_v38 = vmul.f32 %v1363_v0, %v1363_v0 }
 0x135   : > { %v719_v29 = vadd.f32 %v718_v17, %v1348_v44  ;;  %v787_v30 = vadd.f32 %v786_v27, %v756_v11 }
 0x137   : > { %v720_v47 = vadd.f32 %v719_v29, %v1353_v51  ;;  %v788_v34 = vadd.f32 %v787_v30, %v757_v20 }
 0x139   : > { %v721_v35 = vadd.f32 %v720_v47, %v1358_v58  ;;  %v789_v33 = vadd.f32 %v788_v34, %v758_v26  ;;  %v762_v58 = vmul.f32 %v1377_v31, %v1377_v31 }
 0x13b   : > { %v722_v36 = vadd.f32 %v721_v35, %v1363_v0  ;;  %v790_v44 = vadd.f32 %v789_v33, %v759_v32 }
 0x13d   : > { %v723_v37 = vadd.f32 %v722_v36, %v1369_v9  ;;  %v791_v51 = vadd.f32 %v790_v44, %v760_v38 }
 0x13f   : > { %v792_v40 = vadd.f32 %v791_v51, %v761_v39  ;;  %v724_v41 = vadd.f32 %v723_v37, %v1377_v31 }
 0x141   : > { %v793_v42 = vadd.f32 %v792_v40, %v762_v58  ;;  %v725_v43 = vadd.f32 %v724_v41, %v660_v54 }
 0x143   : > { %v794_v46 = vadd.f32 %v793_v42, %v763_v45  ;;  %v726_v0 = vadd.f32 %v725_v43, %v662_v10 }
 0x145   : > { %v727_v49 = vrot.slane %v726_v0, 4  ;;  %v795_v50 = vadd.f32 %v794_v46, %v764_v48 }
 0x147   : > { %v728_v52 = vadd.f32 %v727_v49, %v726_v0  ;;  %v796_v53 = vrot.slane %v795_v50, 4 }
 0x149   : > { %v729_v9 = vrot.slane %v728_v52, 2  ;;  %v797_v56 = vadd.f32 %v796_v53, %v795_v50 }
 0x14b   : > { %v730_v55 = vadd.f32 %v729_v9, %v728_v52  ;;  %v798_v57 = vrot.slane %v797_v56, 2 }
 0x14d   : > { %v731_v59 = vrot.slane %v730_v55, 1  ;;  %v799_v60 = vadd.f32 %v798_v57, %v797_v56 }
 0x14f   : > { %v800_v31 = vrot.slane %v799_v60, 1  ;;  %v732_v54 = vadd.f32 %v731_v59, %v730_v55 }
 0x151   : > { %v801_v61 = vadd.f32 %v800_v31, %v799_v60 }
 0x153   : > { %v803_v62 = vsel %vm802_vm1, %v732_v54, %v801_v61 }
 0x154   : > { %804 = vst [vmem:[%s187_s18] sm:$0x3] %v803_v62 }
 0x155 PF: > { %s14_s12 = sadd.s32 1, %s1150_s12  }
 0x156   : > { %p11_p5 = scmp.ge.s32.totalorder %s14_s12, 4  }
 0x158   :  { %13 = sbr.rel (!%p11_p5) target bundleno = 1 (0x1), region = 70 }

// kernel: cnn_model_forward.18
= control target key start
LH: loop header
LB: loop body
LE: loop exit
PB: predicated region body
PF: predicated region fallthrough
CT: control target
= control target key end

     0   :  { %s736_s12 = smov 0   ;;  %s877_s0 = inlined_call_operand.vmem [shape: bf16[512,72], index: 0, kind: input, shape index: {}]   ;;  %s878_s1 = inlined_call_operand.vmem [shape: bf16[72,128], index: 1, kind: input, shape index: {}]   ;;  %s879_s2 = inlined_call_operand.vmem [shape: f32[1,128], index: 2, kind: input, shape index: {}]   ;;  %s880_s3 = inlined_call_operand.vmem [shape: f32[512,128], index: 3, kind: output, shape index: {}]  }
   0x1 LB: > { %s557_s13 = sadd.s32 4294967295, %s714_s12   ;;  %p561_p0 = scmp.ge.s32.totalorder %s714_s12, 1  ;;  %s714_s12 = sphi %s736_s12, %s13_s12  }
   0x2   : > { %p138_p1 = scmp.lt.s32.totalorder %s714_s12, 3 }
   0x4   : > { %p139_p2 = pnand %p561_p0, %p138_p1 }
   0x5   : > { %s562_s16 = sshll.u32 (!%p139_p2), %s557_s13, 5 }
   0x6   : > { %142 = sbr.rel (%p139_p2) target bundleno = 229 (0xe5), region = 32  ;;  %p163_p3 = scmp.lt.s32.totalorder (!%p139_p2), %s562_s16, 63 }
   0xb   : > { %v215_v0 = vld [vmem:[%s878_s1 + $0x20] sm:$0xf]  ;;  %vm376_vm0 = vcmask 1043456   ;;  %v683_v4 = vld [vmem:[%s878_s1 + $0x18] sm:$0xff]  ;;  %v682_v5 = vld [vmem:[%s878_s1 + $0x10] sm:$0xff]  ;;  %s882_s16 = smov (!%p163_p3, %s562_s16), 63 }
   0xc   : > { %v317_v1 = vunpack.c.l.b16 %v215_v0  ;;  %v681_v6 = vld [vmem:[%s878_s1 + $0x8] sm:$0xff]  ;;  %s563_s23 = sshll.u32 %s882_s16, 2  ;;  %v680_v7 = vld [vmem:[%s878_s1] sm:$0xff]  ;;  %vm327_vm1 = vcmask 588800   ;;  %s565_s29 = sshll.u32 %s882_s16, 3 }
   0xd   : > { %s765_s28 = scalar_lea.vmem %s877_s0, %s563_s23  ;;  %v803_v24 = vld [vmem:[%s879_s2] ss:$0 sm:$0xff]  ;;  %s808_s7 = scalar_lea.vmem %s880_s3, %s565_s29 }
   0xe   : > { %v322_v2 = vpack.c.b16 %v317_v1, %v317_v1  ;;  %v664_v8 = vld [vmem:[%s765_s28] sm:$0xff]  ;;  %v665_v12 = vld [vmem:[%s765_s28 + $0x8] sm:$0xff]  ;;  %v666_v16 = vld [vmem:[%s765_s28 + $0x10] sm:$0xff] }
   0xf   : > { %v668_v9 = vld [vmem:[%s765_s28 + $0x20] sm:$0xff]  ;;  %v669_v13 = vld [vmem:[%s765_s28 + $0x28] sm:$0xff]  ;;  %v670_v17 = vld [vmem:[%s765_s28 + $0x30] sm:$0xff] }
  0x10   : > { %v378_v3 = vsel %vm376_vm0, %v322_v2, 0  ;;  %v672_v10 = vld [vmem:[%s765_s28 + $0x40] sm:$0xff]  ;;  %v673_v14 = vld [vmem:[%s765_s28 + $0x48] sm:$0xff]  ;;  %v674_v18 = vld [vmem:[%s765_s28 + $0x50] sm:$0xff] }
  0x11   : > { %383 = vmatpush.bf16.msra.mxu0 %v378_v3  ;;  %684 = vmatpush.bf16.msra.mxu1 %v378_v3  ;;  %v676_v11 = vld [vmem:[%s765_s28 + $0x60] sm:$0xff]  ;;  %v677_v15 = vld [vmem:[%s765_s28 + $0x68] sm:$0xff]  ;;  %v678_v19 = vld [vmem:[%s765_s28 + $0x70] sm:$0xff] }
  0x12   : > { %685 = vmatpush.bf16.msra.mxu2 %v378_v3  ;;  %686 = vmatpush.bf16.msra.mxu3 %v378_v3  ;;  %v667_v20 = vld [vmem:[%s765_s28 + $0x18] sm:$0xff] }
  0x13   : > { %v671_v21 = vld [vmem:[%s765_s28 + $0x38] sm:$0xff] }
  0x14   : > { %v675_v22 = vld [vmem:[%s765_s28 + $0x58] sm:$0xff] }
  0x15   : > { %384 = vmatpush.bf16.msra.mxu0 %v683_v4  ;;  %687 = vmatpush.bf16.msra.mxu1 %v683_v4  ;;  %v679_v23 = vld [vmem:[%s765_s28 + $0x78] sm:$0xff] }
  0x16   : > { %688 = vmatpush.bf16.msra.mxu2 %v683_v4  ;;  %689 = vmatpush.bf16.msra.mxu3 %v683_v4 }
  0x19   : > { %385 = vmatpush.bf16.msra.mxu0 %v682_v5  ;;  %690 = vmatpush.bf16.msra.mxu1 %v682_v5 }
  0x1a   : > { %691 = vmatpush.bf16.msra.mxu2 %v682_v5  ;;  %692 = vmatpush.bf16.msra.mxu3 %v682_v5 }
  0x1d   : > { %386 = vmatpush.bf16.msra.mxu0 %v681_v6  ;;  %693 = vmatpush.bf16.msra.mxu1 %v681_v6 }
  0x1e   : > { %694 = vmatpush.bf16.msra.mxu2 %v681_v6  ;;  %695 = vmatpush.bf16.msra.mxu3 %v681_v6 }
  0x21   : > { %387 = vmatpush.bf16.msra.mxu0 %v680_v7  ;;  %696 = vmatpush.bf16.msra.mxu1 %v680_v7 }
  0x22   : > { %697 = vmatpush.bf16.msra.mxu2 %v680_v7  ;;  %698 = vmatpush.bf16.msra.mxu3 %v680_v7 }
  0x24   : > { %646 = vmatmul.msk.bf16.vlgmr.msra.gmra.mxu0 %vm327_vm1, %v664_v8  ;;  %650 = vmatmul.msk.bf16.vlgmr.msra.gmra.mxu1 %vm327_vm1, %v668_v9 }
  0x25   : > { %654 = vmatmul.msk.bf16.vlgmr.msra.gmra.mxu2 %vm327_vm1, %v672_v10  ;;  %658 = vmatmul.msk.bf16.vlgmr.msra.gmra.mxu3 %vm327_vm1, %v676_v11 }
  0x34   : > { %647 = vmatmul.msk.bf16.gmra.mxu0 %vm327_vm1, %v665_v12  ;;  %651 = vmatmul.msk.bf16.gmra.mxu1 %vm327_vm1, %v669_v13 }
  0x35   : > { %655 = vmatmul.msk.bf16.gmra.mxu2 %vm327_vm1, %v673_v14  ;;  %659 = vmatmul.msk.bf16.gmra.mxu3 %vm327_vm1, %v677_v15 }
  0x44   : > { %648 = vmatmul.msk.bf16.gmra.mxu0 %vm327_vm1, %v666_v16  ;;  %652 = vmatmul.msk.bf16.gmra.mxu1 %vm327_vm1, %v670_v17 }
  0x45   : > { %656 = vmatmul.msk.bf16.gmra.mxu2 %vm327_vm1, %v674_v18  ;;  %660 = vmatmul.msk.bf16.gmra.mxu3 %vm327_vm1, %v678_v19 }
  0x54   : > { %649 = vmatmul.msk.bf16.gmra.mxu0 %vm327_vm1, %v667_v20  ;;  %653 = vmatmul.msk.bf16.gmra.mxu1 %vm327_vm1, %v671_v21 }
  0x55   : > { %657 = vmatmul.msk.bf16.gmra.mxu2 %vm327_vm1, %v675_v22  ;;  %661 = vmatmul.msk.bf16.gmra.mxu3 %vm327_vm1, %v679_v23 }
  0xa1   : > { %v389_v25 = vpop.f32.mrf.mxu0  ;;  %v409_v26 = vpop.f32.mrf.mxu1 }
  0xa2   : > { %v390_v27 = vadd.f32 %v803_v24, %v389_v25  ;;  %v410_v28 = vadd.f32 %v803_v24, %v409_v26 }
  0xa4   : > { %469 = vst [vmem:[%s808_s7] sm:$0xff] %v390_v27 }
  0xa5   : > { %477 = vst [vmem:[%s808_s7 + $0x40] sm:$0xff] %v410_v28 }
  0xa8   : > { %v429_v29 = vpop.f32.mrf.mxu2  ;;  %v449_v30 = vpop.f32.mrf.mxu3 }
  0xa9   : > { %v430_v31 = vadd.f32 %v803_v24, %v429_v29  ;;  %v450_v32 = vadd.f32 %v803_v24, %v449_v30  ;;  %v391_v33 = vpop.f32.mrf.mxu0  ;;  %v411_v34 = vpop.f32.mrf.mxu1 }
  0xaa   : > { %v392_v35 = vadd.f32 %v803_v24, %v391_v33  ;;  %v412_v36 = vadd.f32 %v803_v24, %v411_v34 }
  0xab   : > { %485 = vst [vmem:[%s808_s7 + $0x80] sm:$0xff] %v430_v31 }
  0xac   : > { %493 = vst [vmem:[%s808_s7 + $0xc0] sm:$0xff] %v450_v32 }
  0xad   : > { %470 = vst [vmem:[%s808_s7 + $0x8] sm:$0xff] %v392_v35 }
  0xae   : > { %478 = vst [vmem:[%s808_s7 + $0x48] sm:$0xff] %v412_v36 }
  0xb0   : > { %v431_v37 = vpop.f32.mrf.mxu2  ;;  %v451_v38 = vpop.f32.mrf.mxu3 }
  0xb1   : > { %v432_v39 = vadd.f32 %v803_v24, %v431_v37  ;;  %v452_v40 = vadd.f32 %v803_v24, %v451_v38  ;;  %v394_v41 = vpop.f32.mrf.mxu0  ;;  %v414_v42 = vpop.f32.mrf.mxu1 }
  0xb2   : > { %v395_v43 = vadd.f32 %v803_v24, %v394_v41  ;;  %v415_v44 = vadd.f32 %v803_v24, %v414_v42 }
  0xb3   : > { %486 = vst [vmem:[%s808_s7 + $0x88] sm:$0xff] %v432_v39 }
  0xb4   : > { %494 = vst [vmem:[%s808_s7 + $0xc8] sm:$0xff] %v452_v40 }
  0xb5   : > { %471 = vst [vmem:[%s808_s7 + $0x10] sm:$0xff] %v395_v43 }
  0xb6   : > { %479 = vst [vmem:[%s808_s7 + $0x50] sm:$0xff] %v415_v44 }
  0xb8   : > { %v434_v45 = vpop.f32.mrf.mxu2  ;;  %v454_v46 = vpop.f32.mrf.mxu3 }
  0xb9   : > { %v435_v47 = vadd.f32 %v803_v24, %v434_v45  ;;  %v455_v48 = vadd.f32 %v803_v24, %v454_v46  ;;  %v396_v49 = vpop.f32.mrf.mxu0  ;;  %v416_v50 = vpop.f32.mrf.mxu1 }
  0xba   : > { %v397_v51 = vadd.f32 %v803_v24, %v396_v49  ;;  %v417_v52 = vadd.f32 %v803_v24, %v416_v50 }
  0xbb   : > { %487 = vst [vmem:[%s808_s7 + $0x90] sm:$0xff] %v435_v47 }
  0xbc   : > { %495 = vst [vmem:[%s808_s7 + $0xd0] sm:$0xff] %v455_v48 }
  0xbd   : > { %472 = vst [vmem:[%s808_s7 + $0x18] sm:$0xff] %v397_v51 }
  0xbe   : > { %480 = vst [vmem:[%s808_s7 + $0x58] sm:$0xff] %v417_v52 }
  0xc0   : > { %v436_v53 = vpop.f32.mrf.mxu2  ;;  %v456_v54 = vpop.f32.mrf.mxu3 }
  0xc1   : > { %v437_v55 = vadd.f32 %v803_v24, %v436_v53  ;;  %v457_v56 = vadd.f32 %v803_v24, %v456_v54  ;;  %v399_v57 = vpop.f32.mrf.mxu0  ;;  %v419_v58 = vpop.f32.mrf.mxu1 }
  0xc2   : > { %v400_v59 = vadd.f32 %v803_v24, %v399_v57  ;;  %v420_v60 = vadd.f32 %v803_v24, %v419_v58 }
  0xc3   : > { %488 = vst [vmem:[%s808_s7 + $0x98] sm:$0xff] %v437_v55 }
  0xc4   : > { %496 = vst [vmem:[%s808_s7 + $0xd8] sm:$0xff] %v457_v56 }
  0xc5   : > { %473 = vst [vmem:[%s808_s7 + $0x20] sm:$0xff] %v400_v59 }
  0xc6   : > { %481 = vst [vmem:[%s808_s7 + $0x60] sm:$0xff] %v420_v60 }
  0xc8   : > { %v439_v61 = vpop.f32.mrf.mxu2  ;;  %v459_v62 = vpop.f32.mrf.mxu3 }
  0xc9   : > { %v440_v63 = vadd.f32 %v803_v24, %v439_v61  ;;  %v460_v0 = vadd.f32 %v803_v24, %v459_v62  ;;  %v401_v1 = vpop.f32.mrf.mxu0  ;;  %v421_v2 = vpop.f32.mrf.mxu1 }
  0xca   : > { %v402_v3 = vadd.f32 %v803_v24, %v401_v1  ;;  %v422_v4 = vadd.f32 %v803_v24, %v421_v2 }
  0xcb   : > { %489 = vst [vmem:[%s808_s7 + $0xa0] sm:$0xff] %v440_v63 }
  0xcc   : > { %497 = vst [vmem:[%s808_s7 + $0xe0] sm:$0xff] %v460_v0 }
  0xcd   : > { %474 = vst [vmem:[%s808_s7 + $0x28] sm:$0xff] %v402_v3 }
  0xce   : > { %482 = vst [vmem:[%s808_s7 + $0x68] sm:$0xff] %v422_v4 }
  0xd0   : > { %v441_v5 = vpop.f32.mrf.mxu2  ;;  %v461_v6 = vpop.f32.mrf.mxu3 }
  0xd1   : > { %v442_v7 = vadd.f32 %v803_v24, %v441_v5  ;;  %v462_v8 = vadd.f32 %v803_v24, %v461_v6  ;;  %v404_v9 = vpop.f32.mrf.mxu0  ;;  %v424_v10 = vpop.f32.mrf.mxu1 }
  0xd2   : > { %v405_v11 = vadd.f32 %v803_v24, %v404_v9  ;;  %v425_v12 = vadd.f32 %v803_v24, %v424_v10 }
  0xd3   : > { %490 = vst [vmem:[%s808_s7 + $0xa8] sm:$0xff] %v442_v7 }
  0xd4   : > { %498 = vst [vmem:[%s808_s7 + $0xe8] sm:$0xff] %v462_v8 }
  0xd5   : > { %475 = vst [vmem:[%s808_s7 + $0x30] sm:$0xff] %v405_v11 }
  0xd6   : > { %483 = vst [vmem:[%s808_s7 + $0x70] sm:$0xff] %v425_v12 }
  0xd8   : > { %v444_v13 = vpop.f32.mrf.mxu2  ;;  %v464_v14 = vpop.f32.mrf.mxu3 }
  0xd9   : > { %v445_v15 = vadd.f32 %v803_v24, %v444_v13  ;;  %v465_v16 = vadd.f32 %v803_v24, %v464_v14  ;;  %v406_v17 = vpop.f32.mrf.mxu0  ;;  %v426_v18 = vpop.f32.mrf.mxu1 }
  0xda   : > { %v407_v19 = vadd.f32 %v803_v24, %v406_v17  ;;  %v427_v20 = vadd.f32 %v803_v24, %v426_v18 }
  0xdb   : > { %491 = vst [vmem:[%s808_s7 + $0xb0] sm:$0xff] %v445_v15 }
  0xdc   : > { %499 = vst [vmem:[%s808_s7 + $0xf0] sm:$0xff] %v465_v16 }
  0xdd   : > { %476 = vst [vmem:[%s808_s7 + $0x38] sm:$0xff] %v407_v19 }
  0xde   : > { %484 = vst [vmem:[%s808_s7 + $0x78] sm:$0xff] %v427_v20 }
  0xe0   : > { %v446_v21 = vpop.f32.mrf.mxu2  ;;  %v466_v22 = vpop.f32.mrf.mxu3 }
  0xe1   : > { %v447_v23 = vadd.f32 %v803_v24, %v446_v21  ;;  %v467_v25 = vadd.f32 %v803_v24, %v466_v22 }
  0xe3   : > { %492 = vst [vmem:[%s808_s7 + $0xb8] sm:$0xff] %v447_v23 }
  0xe4   : > { %500 = vst [vmem:[%s808_s7 + $0xf8] sm:$0xff] %v467_v25 }
  0xe5 PF: > { %s13_s12 = sadd.s32 1, %s714_s12  }
  0xe6   : > { %p10_p4 = scmp.ge.s32.totalorder %s13_s12, 4  }
  0xe8   :  { %12 = sbr.rel (!%p10_p4) target bundleno = 1 (0x1), region = 62 }

// kernel: cnn_model_forward.14
= control target key start
LH: loop header
LB: loop body
LE: loop exit
PB: predicated region body
PF: predicated region fallthrough
CT: control target
= control target key end

     0   :  { %s11523_s12 = smov 0   ;;  %s13938_s0 = inlined_call_operand.vmem [shape: bf16[512,3744], index: 0, kind: input, shape index: {}]   ;;  %s13939_s1 = inlined_call_operand.vmem [shape: bf16[3744,128], index: 1, kind: input, shape index: {}]   ;;  %s13940_s2 = inlined_call_operand.vmem [shape: f32[512,128], index: 2, kind: output, shape index: {0}]   ;;  %s13941_s3 = inlined_call_operand.vmem [shape: f32[2,2,128], index: 3, kind: output, shape index: {1}]  }
   0x1 LB: > { %s11529_s13 = sadd.s32 4294967295, %s11501_s12   ;;  %p7876_p0 = scmp.ge.s32.totalorder %s11501_s12, 1  ;;  %s11501_s12 = sphi %s11523_s12, %s14_s12  }
   0x2   : > { %p142_p1 = scmp.lt.s32.totalorder %s11501_s12, 3 }
   0x4   : > { %p143_p2 = pnand %p7876_p0, %p142_p1 }
   0x5   : > { %s7877_s26 = sshll.u32 (!%p143_p2), %s11529_s13, 5  ;;  %p184_p4 = scmp.lt.s32.totalorder (!%p143_p2), %s11529_s13, 1 }
   0x6   : > { %146 = sbr.rel (%p143_p2) target bundleno = 2113 (0x841), region = 28  ;;  %p172_p3 = scmp.lt.s32.totalorder (!%p143_p2), %s7877_s26, 63 }
   0xb   : > { %v11243_v0 = vld [vmem:[%s13939_s1 + $0x38] sm:$0xff]  ;;  %v11242_v2 = vld [vmem:[%s13939_s1 + $0x30] sm:$0xff]  ;;  %v11241_v4 = vld [vmem:[%s13939_s1 + $0x28] sm:$0xff]  ;;  %s13943_s26 = smov (!%p172_p3, %s7877_s26), 63  ;;  %vm4925_vm0 = vcmask 261120   ;;  %s13945_s13 = smov (!%p184_p4, %s11529_s13), 1 }
   0xc   : > { %v11251_v1 = vld [vmem:[%s13939_s1 + $0x78] sm:$0xff]  ;;  %11470 = vmatpush.bf16.msra.mxu2 %v11243_v0  ;;  %v11250_v3 = vld [vmem:[%s13939_s1 + $0x70] sm:$0xff]  ;;  %4974 = vmatpush.bf16.msra.mxu0 %v11243_v0  ;;  %v11249_v5 = vld [vmem:[%s13939_s1 + $0x68] sm:$0xff]  ;;  %s11486_s14 = smul.u32 120, %s13943_s26  ;;  %s7880_s25 = sshll.u32 %s13943_s26, 3  ;;  %vm7782_vm1 = vcmask 1040384  }
   0xd   : > { %11478 = vmatpush.bf16.msra.mxu3 %v11251_v1  ;;  %5063 = vmatpush.bf16.msra.mxu1 %v11251_v1  ;;  %v11240_v6 = vld [vmem:[%s13939_s1 + $0x20] sm:$0xff]  ;;  %v11239_v8 = vld [vmem:[%s13939_s1 + $0x18] sm:$0xff]  ;;  %v11238_v10 = vld [vmem:[%s13939_s1 + $0x10] sm:$0xff]  ;;  %s13804_s29 = scalar_lea.vmem %s13940_s2, %s7880_s25  ;;  %s7881_s26 = sshll.u32 %s13945_s13, 1 }
   0xe   : > { %v11248_v7 = vld [vmem:[%s13939_s1 + $0x60] sm:$0xff]  ;;  %v11247_v9 = vld [vmem:[%s13939_s1 + $0x58] sm:$0xff]  ;;  %v11246_v11 = vld [vmem:[%s13939_s1 + $0x50] sm:$0xff]  ;;  %s11582_s21 = scalar_lea.vmem %s13938_s0, %s11486_s14  ;;  %s187_s4 = scalar_lea.vmem %s13941_s3, %s7881_s26 }
   0xf   : > { %v11237_v12 = vld [vmem:[%s13939_s1 + $0x8] sm:$0xff]  ;;  %v11236_v14 = vld [vmem:[%s13939_s1] sm:$0xff]  ;;  %v11011_v17 = vld [vmem:[%s11582_s21 + $0x7f4] sm:$0xf0] }
  0x10   : > { %11471 = vmatpush.bf16.msra.mxu2 %v11242_v2  ;;  %4975 = vmatpush.bf16.msra.mxu0 %v11242_v2  ;;  %v11245_v13 = vld [vmem:[%s13939_s1 + $0x48] sm:$0xff]  ;;  %v11244_v15 = vld [vmem:[%s13939_s1 + $0x40] sm:$0xff]  ;;  %v8846_v19 = vld [vmem:[%s11582_s21 + $0x7f8] sm:$0xf0] }
  0x11   : > { %11479 = vmatpush.bf16.msra.mxu3 %v11250_v3  ;;  %5064 = vmatpush.bf16.msra.mxu1 %v11250_v3  ;;  %v8844_v16 = vld [vmem:[%s11582_s21 + $0x780] sm:$0xf]  ;;  %v10996_v18 = vld [vmem:[%s11582_s21 + $0x784] sm:$0xf]  ;;  %v10771_v21 = vld [vmem:[%s11582_s21 + $0x74] sm:$0xf0] }
  0x12   : > { %v7884_v20 = vld [vmem:[%s11582_s21] sm:$0xf]  ;;  %v10756_v22 = vld [vmem:[%s11582_s21 + $0x4] sm:$0xf]  ;;  %v7886_v23 = vld [vmem:[%s11582_s21 + $0x78] sm:$0xf0]  ;;  %v8845_v26 = vor.u32 %v11011_v17, %v8844_v16  ;;  %v8849_v27 = vor.u32 %v10996_v18, %v8846_v19 }
  0x13   : > { %v11259_v24 = vld [vmem:[%s13939_s1 + $0xb8] sm:$0xff]  ;;  %v7885_v28 = vor.u32 %v10771_v21, %v7884_v20  ;;  %v7889_v29 = vor.u32 %v10756_v22, %v7886_v23  ;;  %v11258_v32 = vld [vmem:[%s13939_s1 + $0xb0] sm:$0xff]  ;;  %v11257_v36 = vld [vmem:[%s13939_s1 + $0xa8] sm:$0xff] }
  0x14   : > { %11472 = vmatpush.bf16.msra.mxu2 %v11241_v4  ;;  %4976 = vmatpush.bf16.msra.mxu0 %v11241_v4  ;;  %v11267_v25 = vld [vmem:[%s13939_s1 + $0xf8] sm:$0xff]  ;;  %v11266_v33 = vld [vmem:[%s13939_s1 + $0xf0] sm:$0xff]  ;;  %v11265_v37 = vld [vmem:[%s13939_s1 + $0xe8] sm:$0xff] }
  0x15   : > { %11480 = vmatpush.bf16.msra.mxu3 %v11249_v5  ;;  %5065 = vmatpush.bf16.msra.mxu1 %v11249_v5  ;;  %v11275_v30 = vld [vmem:[%s13939_s1 + $0x138] sm:$0xff]  ;;  %v11274_v34 = vld [vmem:[%s13939_s1 + $0x130] sm:$0xff]  ;;  %v11273_v38 = vld [vmem:[%s13939_s1 + $0x128] sm:$0xff] }
  0x16   : > { %v11283_v31 = vld [vmem:[%s13939_s1 + $0x178] sm:$0xff]  ;;  %v11282_v35 = vld [vmem:[%s13939_s1 + $0x170] sm:$0xff]  ;;  %v11281_v39 = vld [vmem:[%s13939_s1 + $0x168] sm:$0xff] }
  0x17   : > { %v8964_v40 = vld [vmem:[%s11582_s21 + $0x870] sm:$0xf]  ;;  %v11041_v41 = vld [vmem:[%s11582_s21 + $0x8e4] sm:$0xf0]  ;;  %v11026_v42 = vld [vmem:[%s11582_s21 + $0x874] sm:$0xf] }
  0x18   : > { %11473 = vmatpush.bf16.msra.mxu2 %v11240_v6  ;;  %4977 = vmatpush.bf16.msra.mxu0 %v11240_v6  ;;  %v8966_v43 = vld [vmem:[%s11582_s21 + $0x8e8] sm:$0xf0]  ;;  %v8004_v44 = vld [vmem:[%s11582_s21 + $0xf0] sm:$0xf]  ;;  %v10801_v45 = vld [vmem:[%s11582_s21 + $0x164] sm:$0xf0]  ;;  %v8965_v48 = vor.u32 %v11041_v41, %v8964_v40 }
  0x19   : > { %11481 = vmatpush.bf16.msra.mxu3 %v11248_v7  ;;  %5066 = vmatpush.bf16.msra.mxu1 %v11248_v7  ;;  %v10786_v46 = vld [vmem:[%s11582_s21 + $0xf4] sm:$0xf]  ;;  %v8006_v47 = vld [vmem:[%s11582_s21 + $0x168] sm:$0xf0]  ;;  %v8969_v49 = vor.u32 %v11026_v42, %v8966_v43  ;;  %v8005_v50 = vor.u32 %v10801_v45, %v8004_v44  ;;  %v11256_v52 = vld [vmem:[%s13939_s1 + $0xa0] sm:$0xff] }
  0x1a   : > { %v8009_v51 = vor.u32 %v10786_v46, %v8006_v47  ;;  %v11264_v53 = vld [vmem:[%s13939_s1 + $0xe0] sm:$0xff]  ;;  %v11071_v57 = vld [vmem:[%s11582_s21 + $0x9d4] sm:$0xf0]  ;;  %v9086_v59 = vld [vmem:[%s11582_s21 + $0x9d8] sm:$0xf0] }
  0x1b   : > { %v11272_v54 = vld [vmem:[%s13939_s1 + $0x120] sm:$0xff]  ;;  %v10831_v61 = vld [vmem:[%s11582_s21 + $0x254] sm:$0xf0]  ;;  %v8126_v63 = vld [vmem:[%s11582_s21 + $0x258] sm:$0xf0] }
  0x1c   : > { %11474 = vmatpush.bf16.msra.mxu2 %v11239_v8  ;;  %4978 = vmatpush.bf16.msra.mxu0 %v11239_v8  ;;  %v11280_v55 = vld [vmem:[%s13939_s1 + $0x160] sm:$0xff]  ;;  %v11255_v4 = vld [vmem:[%s13939_s1 + $0x98] sm:$0xff]  ;;  %v9204_v8 = vld [vmem:[%s11582_s21 + $0xa50] sm:$0xf] }
  0x1d   : > { %11482 = vmatpush.bf16.msra.mxu3 %v11247_v9  ;;  %5067 = vmatpush.bf16.msra.mxu1 %v11247_v9  ;;  %v9084_v56 = vld [vmem:[%s11582_s21 + $0x960] sm:$0xf]  ;;  %v11056_v58 = vld [vmem:[%s11582_s21 + $0x964] sm:$0xf]  ;;  %v11263_v5 = vld [vmem:[%s13939_s1 + $0xd8] sm:$0xff] }
  0x1e   : > { %v8124_v60 = vld [vmem:[%s11582_s21 + $0x1e0] sm:$0xf]  ;;  %v10816_v62 = vld [vmem:[%s11582_s21 + $0x1e4] sm:$0xf]  ;;  %v9085_v0 = vor.u32 %v11071_v57, %v9084_v56  ;;  %v9089_v1 = vor.u32 %v11056_v58, %v9086_v59  ;;  %v11271_v6 = vld [vmem:[%s13939_s1 + $0x118] sm:$0xff] }
  0x1f   : > { %v8125_v2 = vor.u32 %v10831_v61, %v8124_v60  ;;  %v8129_v3 = vor.u32 %v10816_v62, %v8126_v63  ;;  %v11279_v7 = vld [vmem:[%s13939_s1 + $0x158] sm:$0xff]  ;;  %v11101_v9 = vld [vmem:[%s11582_s21 + $0xac4] sm:$0xf0]  ;;  %v11254_v20 = vld [vmem:[%s13939_s1 + $0x90] sm:$0xff] }
  0x20   : > { %11475 = vmatpush.bf16.msra.mxu2 %v11238_v10  ;;  %4979 = vmatpush.bf16.msra.mxu0 %v11238_v10  ;;  %v11086_v10 = vld [vmem:[%s11582_s21 + $0xa54] sm:$0xf]  ;;  %v9205_v16 = vor.u32 %v11101_v9, %v9204_v8  ;;  %v9444_v40 = vld [vmem:[%s11582_s21 + $0xc30] sm:$0xf]  ;;  %v11161_v41 = vld [vmem:[%s11582_s21 + $0xca4] sm:$0xf0] }
  0x21   : > { %11483 = vmatpush.bf16.msra.mxu3 %v11246_v11  ;;  %5068 = vmatpush.bf16.msra.mxu1 %v11246_v11  ;;  %v9206_v11 = vld [vmem:[%s11582_s21 + $0xac8] sm:$0xf0]  ;;  %v11262_v21 = vld [vmem:[%s13939_s1 + $0xd0] sm:$0xff]  ;;  %v10921_v45 = vld [vmem:[%s11582_s21 + $0x524] sm:$0xf0] }
  0x22   : > { %v9209_v17 = vor.u32 %v11086_v10, %v9206_v11  ;;  %v11270_v22 = vld [vmem:[%s13939_s1 + $0x110] sm:$0xff]  ;;  %v9446_v43 = vld [vmem:[%s11582_s21 + $0xca8] sm:$0xf0]  ;;  %v9564_v56 = vld [vmem:[%s11582_s21 + $0xd20] sm:$0xf] }
  0x23   : > { %v11278_v23 = vld [vmem:[%s13939_s1 + $0x150] sm:$0xff]  ;;  %v8486_v47 = vld [vmem:[%s11582_s21 + $0x528] sm:$0xf0]  ;;  %v11191_v57 = vld [vmem:[%s11582_s21 + $0xd94] sm:$0xf0] }
  0x24   : > { %11476 = vmatpush.bf16.msra.mxu2 %v11237_v12  ;;  %4980 = vmatpush.bf16.msra.mxu0 %v11237_v12  ;;  %v8244_v12 = vld [vmem:[%s11582_s21 + $0x2d0] sm:$0xf]  ;;  %v11146_v42 = vld [vmem:[%s11582_s21 + $0xc34] sm:$0xf]  ;;  %v11176_v58 = vld [vmem:[%s11582_s21 + $0xd24] sm:$0xf] }
  0x25   : > { %11484 = vmatpush.bf16.msra.mxu3 %v11245_v13  ;;  %5069 = vmatpush.bf16.msra.mxu1 %v11245_v13  ;;  %v10861_v13 = vld [vmem:[%s11582_s21 + $0x344] sm:$0xf0]  ;;  %v8484_v44 = vld [vmem:[%s11582_s21 + $0x4b0] sm:$0xf]  ;;  %v10906_v46 = vld [vmem:[%s11582_s21 + $0x4b4] sm:$0xf] }
  0x26   : > { %v8245_v18 = vor.u32 %v10861_v13, %v8244_v12  ;;  %v9566_v59 = vld [vmem:[%s11582_s21 + $0xd98] sm:$0xf0]  ;;  %v8604_v60 = vld [vmem:[%s11582_s21 + $0x5a0] sm:$0xf]  ;;  %v10951_v61 = vld [vmem:[%s11582_s21 + $0x614] sm:$0xf0] }
  0x27   : > { %v10936_v62 = vld [vmem:[%s11582_s21 + $0x5a4] sm:$0xf]  ;;  %v8606_v63 = vld [vmem:[%s11582_s21 + $0x618] sm:$0xf0]  ;;  %v11221_v8 = vld [vmem:[%s11582_s21 + $0xe84] sm:$0xf0] }
  0x28   : > { %11477 = vmatpush.bf16.msra.mxu2 %v11236_v14  ;;  %4981 = vmatpush.bf16.msra.mxu0 %v11236_v14  ;;  %v10846_v14 = vld [vmem:[%s11582_s21 + $0x2d4] sm:$0xf]  ;;  %v9686_v10 = vld [vmem:[%s11582_s21 + $0xe88] sm:$0xf0]  ;;  %v8724_v11 = vld [vmem:[%s11582_s21 + $0x690] sm:$0xf] }
  0x29   : > { %11485 = vmatpush.bf16.msra.mxu3 %v11244_v15  ;;  %5070 = vmatpush.bf16.msra.mxu1 %v11244_v15  ;;  %v8246_v15 = vld [vmem:[%s11582_s21 + $0x348] sm:$0xf0]  ;;  %v11206_v9 = vld [vmem:[%s11582_s21 + $0xe14] sm:$0xf]  ;;  %v10981_v12 = vld [vmem:[%s11582_s21 + $0x704] sm:$0xf0] }
  0x2a   : > { %v8249_v19 = vor.u32 %v10846_v14, %v8246_v15  ;;  %v10966_v13 = vld [vmem:[%s11582_s21 + $0x694] sm:$0xf]  ;;  %v8726_v14 = vld [vmem:[%s11582_s21 + $0x708] sm:$0xf0] }
  0x2b   : > { %5022 = vmatmul.bf16.vlgmr.msra.gmra.mxu2 %v8845_v26  ;;  %4982 = vmatmul.bf16.vlgmr.msra.gmra.mxu0 %v7885_v28  ;;  %v11116_v26 = vld [vmem:[%s11582_s21 + $0xb44] sm:$0xf]  ;;  %v8364_v28 = vld [vmem:[%s11582_s21 + $0x3c0] sm:$0xf] }
  0x2c   : > { %5152 = vmatpush.bf16.msrb.mxu2 %v11259_v24  ;;  %5111 = vmatmul.bf16.vlgmr.msra.gmra.mxu3 %v8849_v27  ;;  %v9324_v24 = vld [vmem:[%s11582_s21 + $0xb40] sm:$0xf]  ;;  %v9326_v27 = vld [vmem:[%s11582_s21 + $0xbb8] sm:$0xf0] }
  0x2d   : > { %5241 = vmatpush.bf16.msrb.mxu3 %v11267_v25  ;;  %5071 = vmatmul.bf16.vlgmr.msra.gmra.mxu1 %v7889_v29  ;;  %v11131_v25 = vld [vmem:[%s11582_s21 + $0xbb4] sm:$0xf0] }
  0x2e   : > { %5330 = vmatpush.bf16.msrb.mxu0 %v11275_v30  ;;  %5419 = vmatpush.bf16.msrb.mxu1 %v11283_v31  ;;  %v10891_v29 = vld [vmem:[%s11582_s21 + $0x434] sm:$0xf0]  ;;  %v10876_v30 = vld [vmem:[%s11582_s21 + $0x3c4] sm:$0xf]  ;;  %v8366_v31 = vld [vmem:[%s11582_s21 + $0x438] sm:$0xf0] }
  0x30   : > { %5153 = vmatpush.bf16.msrb.mxu2 %v11258_v32  ;;  %v9325_v32 = vor.u32 %v11131_v25, %v9324_v24  ;;  %v7900_v24 = vld [vmem:[%s11582_s21 + $0x10] sm:$0xf]  ;;  %v10773_v25 = vld [vmem:[%s11582_s21 + $0x84] sm:$0xf0] }
  0x31   : > { %5242 = vmatpush.bf16.msrb.mxu3 %v11266_v33  ;;  %v9329_v33 = vor.u32 %v11116_v26, %v9326_v27  ;;  %v10758_v26 = vld [vmem:[%s11582_s21 + $0x14] sm:$0xf]  ;;  %v7902_v27 = vld [vmem:[%s11582_s21 + $0x88] sm:$0xf0] }
  0x32   : > { %5331 = vmatpush.bf16.msrb.mxu0 %v11274_v34  ;;  %5420 = vmatpush.bf16.msrb.mxu1 %v11282_v35  ;;  %v8365_v34 = vor.u32 %v10891_v29, %v8364_v28  ;;  %v8369_v35 = vor.u32 %v10876_v30, %v8366_v31  ;;  %v7901_v30 = vor.u32 %v10773_v25, %v7900_v24  ;;  %v11297_v24 = vld [vmem:[%s13939_s1 + $0x1e8] sm:$0xff] }
  0x33   : > { %v7905_v31 = vor.u32 %v10758_v26, %v7902_v27 }
  0x34   : > { %5154 = vmatpush.bf16.msrb.mxu2 %v11257_v36  ;;  %v11253_v36 = vld [vmem:[%s13939_s1 + $0x88] sm:$0xff] }
  0x35   : > { %5243 = vmatpush.bf16.msrb.mxu3 %v11265_v37  ;;  %v11261_v37 = vld [vmem:[%s13939_s1 + $0xc8] sm:$0xff] }
  0x36   : > { %5332 = vmatpush.bf16.msrb.mxu0 %v11273_v38  ;;  %5421 = vmatpush.bf16.msrb.mxu1 %v11281_v39  ;;  %v11269_v38 = vld [vmem:[%s13939_s1 + $0x108] sm:$0xff] }
  0x37   : > { %v11277_v39 = vld [vmem:[%s13939_s1 + $0x148] sm:$0xff] }
  0x38   : > { %5155 = vmatpush.bf16.msrb.mxu2 %v11256_v52  ;;  %v11252_v52 = vld [vmem:[%s13939_s1 + $0x80] sm:$0xff] }
  0x39   : > { %5244 = vmatpush.bf16.msrb.mxu3 %v11264_v53  ;;  %v11260_v53 = vld [vmem:[%s13939_s1 + $0xc0] sm:$0xff] }
  0x3a   : > { %5333 = vmatpush.bf16.msrb.mxu0 %v11272_v54  ;;  %5422 = vmatpush.bf16.msrb.mxu1 %v11280_v55  ;;  %v11268_v54 = vld [vmem:[%s13939_s1 + $0x100] sm:$0xff] }
  0x3b   : > { %5027 = vmatmul.bf16.gmra.mxu2 %v8965_v48  ;;  %4987 = vmatmul.bf16.gmra.mxu0 %v8005_v50  ;;  %v9445_v48 = vor.u32 %v11161_v41, %v9444_v40  ;;  %v8485_v50 = vor.u32 %v10921_v45, %v8484_v44  ;;  %v11276_v55 = vld [vmem:[%s13939_s1 + $0x140] sm:$0xff]  ;;  %v8012_v44 = vld [vmem:[%s11582_s21 + $0xf8] sm:$0xf]  ;;  %v10802_v45 = vld [vmem:[%s11582_s21 + $0x16c] sm:$0xf0] }
  0x3c   : > { %5116 = vmatmul.bf16.gmra.mxu3 %v8969_v49  ;;  %5156 = vmatpush.bf16.msrb.mxu2 %v11255_v4  ;;  %v9449_v49 = vor.u32 %v11146_v42, %v9446_v43  ;;  %v11291_v4 = vld [vmem:[%s13939_s1 + $0x1b8] sm:$0xff]  ;;  %v11306_v43 = vld [vmem:[%s13939_s1 + $0x230] sm:$0xff] }
  0x3d   : > { %5076 = vmatmul.bf16.gmra.mxu1 %v8009_v51  ;;  %5245 = vmatpush.bf16.msrb.mxu3 %v11263_v5  ;;  %v8489_v51 = vor.u32 %v10906_v46, %v8486_v47  ;;  %v11299_v5 = vld [vmem:[%s13939_s1 + $0x1f8] sm:$0xff]  ;;  %v8014_v47 = vld [vmem:[%s11582_s21 + $0x170] sm:$0xf0] }
  0x3e   : > { %5334 = vmatpush.bf16.msrb.mxu0 %v11271_v6  ;;  %5423 = vmatpush.bf16.msrb.mxu1 %v11279_v7  ;;  %v11307_v6 = vld [vmem:[%s13939_s1 + $0x238] sm:$0xff]  ;;  %v9684_v7 = vld [vmem:[%s11582_s21 + $0xe10] sm:$0xf] }
  0x3f   : > { %v9685_v15 = vor.u32 %v11221_v8, %v9684_v7  ;;  %v10787_v46 = vld [vmem:[%s11582_s21 + $0xfc] sm:$0xf]  ;;  %v10817_v7 = vld [vmem:[%s11582_s21 + $0x1ec] sm:$0xf]  ;;  %v8134_v8 = vld [vmem:[%s11582_s21 + $0x260] sm:$0xf0] }
  0x40   : > { %5157 = vmatpush.bf16.msrb.mxu2 %v11254_v20  ;;  %v7892_v20 = vld [vmem:[%s11582_s21 + $0x8] sm:$0xf] }
  0x41   : > { %5246 = vmatpush.bf16.msrb.mxu3 %v11262_v21  ;;  %v10772_v21 = vld [vmem:[%s11582_s21 + $0x7c] sm:$0xf0] }
  0x42   : > { %5335 = vmatpush.bf16.msrb.mxu0 %v11270_v22  ;;  %5424 = vmatpush.bf16.msrb.mxu1 %v11278_v23  ;;  %v10757_v22 = vld [vmem:[%s11582_s21 + $0xc] sm:$0xf]  ;;  %v7894_v23 = vld [vmem:[%s11582_s21 + $0x80] sm:$0xf0]  ;;  %v7893_v28 = vor.u32 %v10772_v21, %v7892_v20 }
  0x43   : > { %v7897_v29 = vor.u32 %v10757_v22, %v7894_v23  ;;  %v11289_v23 = vld [vmem:[%s13939_s1 + $0x1a8] sm:$0xff] }
  0x44   : > { %5158 = vmatpush.bf16.msrb.mxu2 %v11253_v36  ;;  %v11298_v36 = vld [vmem:[%s13939_s1 + $0x1f0] sm:$0xff] }
  0x45   : > { %5247 = vmatpush.bf16.msrb.mxu3 %v11261_v37 }
  0x46   : > { %5336 = vmatpush.bf16.msrb.mxu0 %v11269_v38  ;;  %5425 = vmatpush.bf16.msrb.mxu1 %v11277_v39 }
  0x48   : > { %5159 = vmatpush.bf16.msrb.mxu2 %v11252_v52 }
  0x49   : > { %5248 = vmatpush.bf16.msrb.mxu3 %v11260_v53 }
  0x4a   : > { %5337 = vmatpush.bf16.msrb.mxu0 %v11268_v54  ;;  %5426 = vmatpush.bf16.msrb.mxu1 %v11276_v55  ;;  %v8013_v55 = vor.u32 %v10802_v45, %v8012_v44 }
  0x4b   : > { %5032 = vmatmul.bf16.gmra.mxu2 %v9085_v0  ;;  %4992 = vmatmul.bf16.gmra.mxu0 %v8125_v2  ;;  %v9565_v0 = vor.u32 %v11191_v57, %v9564_v56  ;;  %v8605_v2 = vor.u32 %v10951_v61, %v8604_v60  ;;  %v8017_v56 = vor.u32 %v10787_v46, %v8014_v47  ;;  %v11314_v57 = vld [vmem:[%s13939_s1 + $0x270] sm:$0xff] }
  0x4c   : > { %5121 = vmatmul.bf16.gmra.mxu3 %v9089_v1  ;;  %v9569_v1 = vor.u32 %v11176_v58, %v9566_v59  ;;  %5508 = vmatpush.bf16.msra.mxu2 %v11291_v4 }
  0x4d   : > { %5081 = vmatmul.bf16.gmra.mxu1 %v8129_v3  ;;  %v8609_v3 = vor.u32 %v10936_v62, %v8606_v63  ;;  %5597 = vmatpush.bf16.msra.mxu3 %v11299_v5  ;;  %v8132_v5 = vld [vmem:[%s11582_s21 + $0x1e8] sm:$0xf] }
  0x4e   : > { %5686 = vmatpush.bf16.msra.mxu0 %v11307_v6  ;;  %v10832_v6 = vld [vmem:[%s11582_s21 + $0x25c] sm:$0xf0] }
  0x51   : > { %5598 = vmatpush.bf16.msra.mxu3 %v11298_v36  ;;  %v8254_v36 = vld [vmem:[%s11582_s21 + $0x350] sm:$0xf0] }
  0x52   : > { %5687 = vmatpush.bf16.msra.mxu0 %v11306_v43 }
  0x55   : > { %5599 = vmatpush.bf16.msra.mxu3 %v11297_v24 }
  0x5b   : > { %5037 = vmatmul.bf16.gmra.mxu2 %v9205_v16  ;;  %4997 = vmatmul.bf16.gmra.mxu0 %v8245_v18  ;;  %v9689_v16 = vor.u32 %v11206_v9, %v9686_v10  ;;  %v8725_v18 = vor.u32 %v10981_v12, %v8724_v11  ;;  %v8140_v9 = vld [vmem:[%s11582_s21 + $0x1f0] sm:$0xf]  ;;  %v10833_v10 = vld [vmem:[%s11582_s21 + $0x264] sm:$0xf0]  ;;  %v10818_v11 = vld [vmem:[%s11582_s21 + $0x1f4] sm:$0xf] }
  0x5c   : > { %5126 = vmatmul.bf16.gmra.mxu3 %v9209_v17  ;;  %v11315_v17 = vld [vmem:[%s13939_s1 + $0x278] sm:$0xff]  ;;  %v8142_v12 = vld [vmem:[%s11582_s21 + $0x268] sm:$0xf0] }
  0x5d   : > { %5086 = vmatmul.bf16.gmra.mxu1 %v8249_v19  ;;  %v8729_v19 = vor.u32 %v10966_v13, %v8726_v14 }
  0x5e   : > { %5775 = vmatpush.bf16.msra.mxu1 %v11315_v17  ;;  %v8137_v17 = vor.u32 %v10817_v7, %v8134_v8  ;;  %v8382_v7 = vld [vmem:[%s11582_s21 + $0x448] sm:$0xf0] }
  0x62   : > { %5776 = vmatpush.bf16.msra.mxu1 %v11314_v57 }
  0x6b   : > { %5042 = vmatmul.bf16.gmra.mxu2 %v9325_v32  ;;  %5002 = vmatmul.bf16.gmra.mxu0 %v8365_v34 }
  0x6c   : > { %5131 = vmatmul.bf16.gmra.mxu3 %v9329_v33 }
  0x6d   : > { %5091 = vmatmul.bf16.gmra.mxu1 %v8369_v35  ;;  %v11290_v35 = vld [vmem:[%s13939_s1 + $0x1b0] sm:$0xff] }
  0x6e   : > { %5509 = vmatpush.bf16.msra.mxu2 %v11290_v35  ;;  %v10847_v35 = vld [vmem:[%s11582_s21 + $0x2dc] sm:$0xf] }
  0x6f   : > { %v8257_v47 = vor.u32 %v10847_v35, %v8254_v36  ;;  %v8494_v35 = vld [vmem:[%s11582_s21 + $0x530] sm:$0xf0]  ;;  %v8500_v36 = vld [vmem:[%s11582_s21 + $0x4c0] sm:$0xf] }
  0x72   : > { %5510 = vmatpush.bf16.msra.mxu2 %v11289_v23 }
  0x7b   : > { %5047 = vmatmul.bf16.gmra.mxu2 %v9445_v48  ;;  %5007 = vmatmul.bf16.gmra.mxu0 %v8485_v50  ;;  %v8020_v48 = vld [vmem:[%s11582_s21 + $0x100] sm:$0xf]  ;;  %v10788_v50 = vld [vmem:[%s11582_s21 + $0x104] sm:$0xf] }
  0x7c   : > { %5136 = vmatmul.bf16.gmra.mxu3 %v9449_v49  ;;  %v10803_v49 = vld [vmem:[%s11582_s21 + $0x174] sm:$0xf0] }
  0x7d   : > { %5096 = vmatmul.bf16.gmra.mxu1 %v8489_v51  ;;  %v8022_v51 = vld [vmem:[%s11582_s21 + $0x178] sm:$0xf0]  ;;  %v8021_v58 = vor.u32 %v10803_v49, %v8020_v48  ;;  %v11313_v48 = vld [vmem:[%s13939_s1 + $0x268] sm:$0xff] }
  0x7e   : > { %v8025_v59 = vor.u32 %v10788_v50, %v8022_v51  ;;  %5777 = vmatpush.bf16.msra.mxu1 %v11313_v48  ;;  %v11312_v48 = vld [vmem:[%s13939_s1 + $0x260] sm:$0xff] }
  0x82   : > { %5778 = vmatpush.bf16.msra.mxu1 %v11312_v48  ;;  %v10983_v48 = vld [vmem:[%s11582_s21 + $0x714] sm:$0xf0] }
  0x8b   : > { %5052 = vmatmul.bf16.gmra.mxu2 %v9565_v0  ;;  %5012 = vmatmul.bf16.gmra.mxu0 %v8605_v2 }
  0x8c   : > { %5141 = vmatmul.bf16.gmra.mxu3 %v9569_v1 }
  0x8d   : > { %5101 = vmatmul.bf16.gmra.mxu1 %v8609_v3 }
  0x9b   : > { %5057 = vmatmul.bf16.gmra.mxu2 %v9685_v15  ;;  %5017 = vmatmul.bf16.gmra.mxu0 %v8725_v18  ;;  %v8141_v18 = vor.u32 %v10833_v10, %v8140_v9 }
  0x9c   : > { %5146 = vmatmul.bf16.gmra.mxu3 %v9689_v16  ;;  %v8133_v16 = vor.u32 %v10832_v6, %v8132_v5  ;;  %v10893_v5 = vld [vmem:[%s11582_s21 + $0x444] sm:$0xf0]  ;;  %v10878_v6 = vld [vmem:[%s11582_s21 + $0x3d4] sm:$0xf] }
  0x9d   : > { %5106 = vmatmul.bf16.gmra.mxu1 %v8729_v19  ;;  %v8145_v19 = vor.u32 %v10818_v11, %v8142_v12 }
  0xa8   : > { %v4983_v32 = vpop.f32.mrf.mxu0 }
  0xaa   : > { %v5072_v33 = vpop.f32.mrf.mxu1 }
  0xab   : > { %v11770_v34 = vadd.f32 %v5072_v33, %v4983_v32  ;;  %5160 = vmatmul.bf16.vlgmr.msrb.gmra.mxu2 %v7893_v28  ;;  %5338 = vmatmul.bf16.vlgmr.msrb.gmra.mxu0 %v7901_v30  ;;  %v8252_v32 = vld [vmem:[%s11582_s21 + $0x2d8] sm:$0xf]  ;;  %v10862_v33 = vld [vmem:[%s11582_s21 + $0x34c] sm:$0xf0] }
  0xac   : > { %5249 = vmatmul.bf16.vlgmr.msrb.gmra.mxu3 %v7897_v29  ;;  %v8253_v46 = vor.u32 %v10862_v33, %v8252_v32  ;;  %v10922_v32 = vld [vmem:[%s11582_s21 + $0x52c] sm:$0xf0]  ;;  %v10907_v33 = vld [vmem:[%s11582_s21 + $0x4bc] sm:$0xf] }
  0xad   : > { %5427 = vmatmul.bf16.vlgmr.msrb.gmra.mxu1 %v7905_v31  ;;  %v11305_v31 = vld [vmem:[%s13939_s1 + $0x228] sm:$0xff] }
  0xae   : > { %v5023_v37 = vpop.f32.mrf.mxu2  ;;  %5688 = vmatpush.bf16.msra.mxu0 %v11305_v31  ;;  %v8492_v31 = vld [vmem:[%s11582_s21 + $0x4b8] sm:$0xf] }
  0xaf   : > { %v5112_v38 = vpop.f32.mrf.mxu3 }
  0xb0   : > { %v11778_v39 = vadd.f32 %v5112_v38, %v5023_v37  ;;  %v4985_v40 = vpop.f32.mrf.mxu0  ;;  %v8260_v37 = vld [vmem:[%s11582_s21 + $0x2e0] sm:$0xf]  ;;  %v10863_v38 = vld [vmem:[%s11582_s21 + $0x354] sm:$0xf0] }
  0xb1   : > { %v8261_v49 = vor.u32 %v10863_v38, %v8260_v37  ;;  %v10923_v37 = vld [vmem:[%s11582_s21 + $0x534] sm:$0xf0]  ;;  %v10908_v38 = vld [vmem:[%s11582_s21 + $0x4c4] sm:$0xf] }
  0xb2   : > { %v5074_v41 = vpop.f32.mrf.mxu1 }
  0xb3   : > { %v11780_v42 = vadd.f32 %v5074_v41, %v4985_v40  ;;  %v10848_v40 = vld [vmem:[%s11582_s21 + $0x2e4] sm:$0xf]  ;;  %v8262_v41 = vld [vmem:[%s11582_s21 + $0x358] sm:$0xf0] }
  0xb4   : > { %v8265_v50 = vor.u32 %v10848_v40, %v8262_v41  ;;  %v8502_v40 = vld [vmem:[%s11582_s21 + $0x538] sm:$0xf0] }
  0xb6   : > { %v5025_v52 = vpop.f32.mrf.mxu2 }
  0xb7   : > { %v5114_v53 = vpop.f32.mrf.mxu3 }
  0xb8   : > { %v11793_v54 = vadd.f32 %v5114_v53, %v5025_v52  ;;  %v4988_v60 = vpop.f32.mrf.mxu0 }
  0xba   : > { %v5077_v61 = vpop.f32.mrf.mxu1 }
  0xbb   : > { %v11798_v62 = vadd.f32 %v5077_v61, %v4988_v60  ;;  %5165 = vmatmul.bf16.gmra.mxu2 %v8013_v55  ;;  %5343 = vmatmul.bf16.gmra.mxu0 %v8021_v58  ;;  %v8372_v61 = vld [vmem:[%s11582_s21 + $0x3c8] sm:$0xf] }
  0xbc   : > { %5254 = vmatmul.bf16.gmra.mxu3 %v8017_v56 }
  0xbd   : > { %5432 = vmatmul.bf16.gmra.mxu1 %v8025_v59 }
  0xbe   : > { %v5028_v63 = vpop.f32.mrf.mxu2 }
  0xbf   : > { %v5117_v0 = vpop.f32.mrf.mxu3 }
  0xc0   : > { %v11800_v1 = vadd.f32 %v5117_v0, %v5028_v63  ;;  %v4990_v2 = vpop.f32.mrf.mxu0  ;;  %v10892_v63 = vld [vmem:[%s11582_s21 + $0x43c] sm:$0xf0]  ;;  %v10877_v0 = vld [vmem:[%s11582_s21 + $0x3cc] sm:$0xf] }
  0xc1   : > { %v8373_v11 = vor.u32 %v10892_v63, %v8372_v61 }
  0xc2   : > { %v5079_v3 = vpop.f32.mrf.mxu1 }
  0xc3   : > { %v11802_v4 = vadd.f32 %v5079_v3, %v4990_v2  ;;  %v8374_v2 = vld [vmem:[%s11582_s21 + $0x440] sm:$0xf0]  ;;  %v8380_v3 = vld [vmem:[%s11582_s21 + $0x3d0] sm:$0xf] }
  0xc4   : > { %v8377_v12 = vor.u32 %v10877_v0, %v8374_v2  ;;  %v8612_v2 = vld [vmem:[%s11582_s21 + $0x5a8] sm:$0xf] }
  0xc6   : > { %v5030_v13 = vpop.f32.mrf.mxu2 }
  0xc7   : > { %v5119_v14 = vpop.f32.mrf.mxu3 }
  0xc8   : > { %v11812_v15 = vadd.f32 %v5119_v14, %v5030_v13  ;;  %v4993_v20 = vpop.f32.mrf.mxu0  ;;  %v8381_v13 = vor.u32 %v10893_v5, %v8380_v3  ;;  %v8385_v14 = vor.u32 %v10878_v6, %v8382_v7  ;;  %v10952_v3 = vld [vmem:[%s11582_s21 + $0x61c] sm:$0xf0]  ;;  %v10937_v5 = vld [vmem:[%s11582_s21 + $0x5ac] sm:$0xf]  ;;  %v8614_v6 = vld [vmem:[%s11582_s21 + $0x620] sm:$0xf0] }
  0xc9   : > { %v8620_v7 = vld [vmem:[%s11582_s21 + $0x5b0] sm:$0xf] }
  0xca   : > { %v5082_v21 = vpop.f32.mrf.mxu1 }
  0xcb   : > { %v11814_v22 = vadd.f32 %v5082_v21, %v4993_v20  ;;  %5170 = vmatmul.bf16.gmra.mxu2 %v8133_v16  ;;  %5348 = vmatmul.bf16.gmra.mxu0 %v8141_v18  ;;  %v11296_v20 = vld [vmem:[%s13939_s1 + $0x1e0] sm:$0xff] }
  0xcc   : > { %5259 = vmatmul.bf16.gmra.mxu3 %v8137_v17 }
  0xcd   : > { %5437 = vmatmul.bf16.gmra.mxu1 %v8145_v19  ;;  %v11288_v19 = vld [vmem:[%s13939_s1 + $0x1a0] sm:$0xff]  ;;  %5600 = vmatpush.bf16.msra.mxu3 %v11296_v20 }
  0xce   : > { %v5033_v25 = vpop.f32.mrf.mxu2  ;;  %5511 = vmatpush.bf16.msra.mxu2 %v11288_v19 }
  0xcf   : > { %v5122_v26 = vpop.f32.mrf.mxu3 }
  0xd0   : > { %v11822_v27 = vadd.f32 %v5122_v26, %v5033_v25  ;;  %v4995_v28 = vpop.f32.mrf.mxu0 }
  0xd2   : > { %v5084_v29 = vpop.f32.mrf.mxu1 }
  0xd3   : > { %v11824_v30 = vadd.f32 %v5084_v29, %v4995_v28  ;;  %v11304_v29 = vld [vmem:[%s13939_s1 + $0x220] sm:$0xff] }
  0xd4   : > { %5689 = vmatpush.bf16.msra.mxu0 %v11304_v29  ;;  %v11295_v29 = vld [vmem:[%s13939_s1 + $0x1d8] sm:$0xff] }
  0xd5   : > { %5601 = vmatpush.bf16.msra.mxu3 %v11295_v29  ;;  %v10998_v29 = vld [vmem:[%s11582_s21 + $0x794] sm:$0xf] }
  0xd6   : > { %v5035_v43 = vpop.f32.mrf.mxu2 }
  0xd7   : > { %v5124_v44 = vpop.f32.mrf.mxu3 }
  0xd8   : > { %v11837_v45 = vadd.f32 %v5124_v44, %v5035_v43  ;;  %v4998_v51 = vpop.f32.mrf.mxu0 }
  0xda   : > { %v5087_v52 = vpop.f32.mrf.mxu1 }
  0xdb   : > { %v11842_v53 = vadd.f32 %v5087_v52, %v4998_v51  ;;  %5175 = vmatmul.bf16.gmra.mxu2 %v8253_v46  ;;  %5353 = vmatmul.bf16.gmra.mxu0 %v8261_v49  ;;  %v8493_v46 = vor.u32 %v10922_v32, %v8492_v31  ;;  %v8501_v49 = vor.u32 %v10923_v37, %v8500_v36 }
  0xdc   : > { %5264 = vmatmul.bf16.gmra.mxu3 %v8257_v47  ;;  %v8497_v47 = vor.u32 %v10907_v33, %v8494_v35 }
  0xdd   : > { %5442 = vmatmul.bf16.gmra.mxu1 %v8265_v50  ;;  %v8505_v50 = vor.u32 %v10908_v38, %v8502_v40  ;;  %v8732_v38 = vld [vmem:[%s11582_s21 + $0x698] sm:$0xf]  ;;  %v10982_v40 = vld [vmem:[%s11582_s21 + $0x70c] sm:$0xf0] }
  0xde   : > { %v5038_v55 = vpop.f32.mrf.mxu2 }
  0xdf   : > { %v5127_v56 = vpop.f32.mrf.mxu3 }
  0xe0   : > { %v11844_v57 = vadd.f32 %v5127_v56, %v5038_v55  ;;  %v5000_v58 = vpop.f32.mrf.mxu0 }
  0xe2   : > { %v5089_v59 = vpop.f32.mrf.mxu1 }
  0xe3   : > { %v11846_v60 = vadd.f32 %v5089_v59, %v5000_v58 }
  0xe6   : > { %v5040_v8 = vpop.f32.mrf.mxu2 }
  0xe7   : > { %v5129_v9 = vpop.f32.mrf.mxu3 }
  0xe8   : > { %v11856_v10 = vadd.f32 %v5129_v9, %v5040_v8  ;;  %v5003_v16 = vpop.f32.mrf.mxu0  ;;  %v10953_v8 = vld [vmem:[%s11582_s21 + $0x624] sm:$0xf0]  ;;  %v10938_v9 = vld [vmem:[%s11582_s21 + $0x5b4] sm:$0xf] }
  0xe9   : > { %v8621_v19 = vor.u32 %v10953_v8, %v8620_v7  ;;  %v11311_v7 = vld [vmem:[%s13939_s1 + $0x258] sm:$0xff] }
  0xea   : > { %v5092_v17 = vpop.f32.mrf.mxu1  ;;  %5779 = vmatpush.bf16.msra.mxu1 %v11311_v7  ;;  %v11302_v7 = vld [vmem:[%s13939_s1 + $0x210] sm:$0xff] }
  0xeb   : > { %v11858_v18 = vadd.f32 %v5092_v17, %v5003_v16  ;;  %5180 = vmatmul.bf16.gmra.mxu2 %v8373_v11  ;;  %5358 = vmatmul.bf16.gmra.mxu0 %v8381_v13  ;;  %v8622_v11 = vld [vmem:[%s11582_s21 + $0x628] sm:$0xf0]  ;;  %v8613_v16 = vor.u32 %v10952_v3, %v8612_v2  ;;  %v8617_v17 = vor.u32 %v10937_v5, %v8614_v6 }
  0xec   : > { %5269 = vmatmul.bf16.gmra.mxu3 %v8377_v12  ;;  %v8625_v20 = vor.u32 %v10938_v9, %v8622_v11 }
  0xed   : > { %5447 = vmatmul.bf16.gmra.mxu1 %v8385_v14 }
  0xee   : > { %v5043_v21 = vpop.f32.mrf.mxu2 }
  0xef   : > { %v5132_v23 = vpop.f32.mrf.mxu3 }
  0xf0   : > { %v11866_v24 = vadd.f32 %v5132_v23, %v5043_v21  ;;  %v5005_v25 = vpop.f32.mrf.mxu0 }
  0xf2   : > { %v5094_v26 = vpop.f32.mrf.mxu1 }
  0xf3   : > { %v11868_v28 = vadd.f32 %v5094_v26, %v5005_v25  ;;  %v11287_v26 = vld [vmem:[%s13939_s1 + $0x198] sm:$0xff] }
  0xf4   : > { %5512 = vmatpush.bf16.msra.mxu2 %v11287_v26  ;;  %v11013_v26 = vld [vmem:[%s11582_s21 + $0x804] sm:$0xf0] }
  0xf6   : > { %v5045_v41 = vpop.f32.mrf.mxu2 }
  0xf7   : > { %v5134_v43 = vpop.f32.mrf.mxu3 }
  0xf8   : > { %v11881_v44 = vadd.f32 %v5134_v43, %v5045_v41  ;;  %v5008_v51 = vpop.f32.mrf.mxu0  ;;  %v11303_v41 = vld [vmem:[%s13939_s1 + $0x218] sm:$0xff] }
  0xf9   : > { %v10967_v43 = vld [vmem:[%s11582_s21 + $0x69c] sm:$0xf]  ;;  %5690 = vmatpush.bf16.msra.mxu0 %v11303_v41 }
  0xfa   : > { %v5097_v52 = vpop.f32.mrf.mxu1 }
  0xfb   : > { %v11886_v55 = vadd.f32 %v5097_v52, %v5008_v51  ;;  %5185 = vmatmul.bf16.gmra.mxu2 %v8493_v46  ;;  %5363 = vmatmul.bf16.gmra.mxu0 %v8501_v49  ;;  %v8734_v46 = vld [vmem:[%s11582_s21 + $0x710] sm:$0xf0]  ;;  %v10968_v49 = vld [vmem:[%s11582_s21 + $0x6a4] sm:$0xf] }
  0xfc   : > { %5274 = vmatmul.bf16.gmra.mxu3 %v8497_v47  ;;  %v8740_v47 = vld [vmem:[%s11582_s21 + $0x6a0] sm:$0xf] }
  0xfd   : > { %5452 = vmatmul.bf16.gmra.mxu1 %v8505_v50  ;;  %v8742_v50 = vld [vmem:[%s11582_s21 + $0x718] sm:$0xf0]  ;;  %5691 = vmatpush.bf16.msra.mxu0 %v11302_v7  ;;  %v11073_v7 = vld [vmem:[%s11582_s21 + $0x9e4] sm:$0xf0] }
  0xfe   : > { %v5048_v56 = vpop.f32.mrf.mxu2  ;;  %v8745_v2 = vor.u32 %v10968_v49, %v8742_v50  ;;  %v11294_v49 = vld [vmem:[%s13939_s1 + $0x1d0] sm:$0xff] }
  0xff   : > { %v5137_v58 = vpop.f32.mrf.mxu3  ;;  %5602 = vmatpush.bf16.msra.mxu3 %v11294_v49 }
 0x100   : > { %v11888_v59 = vadd.f32 %v5137_v58, %v5048_v56  ;;  %v5010_v61 = vpop.f32.mrf.mxu0  ;;  %v8733_v58 = vor.u32 %v10982_v40, %v8732_v38 }
 0x102   : > { %v5099_v63 = vpop.f32.mrf.mxu1 }
 0x103   : > { %v11890_v0 = vadd.f32 %v5099_v63, %v5010_v61  ;;  %v8737_v61 = vor.u32 %v10967_v43, %v8734_v46  ;;  %v8741_v63 = vor.u32 %v10983_v48, %v8740_v47  ;;  %v11286_v48 = vld [vmem:[%s13939_s1 + $0x190] sm:$0xff] }
 0x104   : > { %5513 = vmatpush.bf16.msra.mxu2 %v11286_v48 }
 0x106   : > { %v5050_v12 = vpop.f32.mrf.mxu2 }
 0x107   : > { %v5139_v13 = vpop.f32.mrf.mxu3 }
 0x108   : > { %v11900_v14 = vadd.f32 %v5139_v13, %v5050_v12  ;;  %v5013_v21 = vpop.f32.mrf.mxu0 }
 0x10a   : > { %v5102_v23 = vpop.f32.mrf.mxu1 }
 0x10b   : > { %v11902_v25 = vadd.f32 %v5102_v23, %v5013_v21  ;;  %5190 = vmatmul.bf16.gmra.mxu2 %v8613_v16  ;;  %5368 = vmatmul.bf16.gmra.mxu0 %v8621_v19  ;;  %v11012_v19 = vld [vmem:[%s11582_s21 + $0x7fc] sm:$0xf0]  ;;  %v8854_v21 = vld [vmem:[%s11582_s21 + $0x800] sm:$0xf0]  ;;  %v8860_v23 = vld [vmem:[%s11582_s21 + $0x790] sm:$0xf] }
 0x10c   : > { %5279 = vmatmul.bf16.gmra.mxu3 %v8617_v17  ;;  %v8852_v17 = vld [vmem:[%s11582_s21 + $0x788] sm:$0xf]  ;;  %v8861_v41 = vor.u32 %v11013_v26, %v8860_v23 }
 0x10d   : > { %5457 = vmatmul.bf16.gmra.mxu1 %v8625_v20  ;;  %v10997_v20 = vld [vmem:[%s11582_s21 + $0x78c] sm:$0xf]  ;;  %v8853_v38 = vor.u32 %v11012_v19, %v8852_v17  ;;  %v11028_v17 = vld [vmem:[%s11582_s21 + $0x884] sm:$0xf]  ;;  %v8982_v19 = vld [vmem:[%s11582_s21 + $0x8f8] sm:$0xf0] }
 0x10e   : > { %v5053_v31 = vpop.f32.mrf.mxu2  ;;  %v8857_v40 = vor.u32 %v10997_v20, %v8854_v21 }
 0x10f   : > { %v5142_v32 = vpop.f32.mrf.mxu3 }
 0x110   : > { %v11910_v33 = vadd.f32 %v5142_v32, %v5053_v31  ;;  %v5015_v35 = vpop.f32.mrf.mxu0  ;;  %v8862_v31 = vld [vmem:[%s11582_s21 + $0x808] sm:$0xf0] }
 0x111   : > { %v8865_v43 = vor.u32 %v10998_v29, %v8862_v31 }
 0x112   : > { %v5104_v36 = vpop.f32.mrf.mxu1 }
 0x113   : > { %v11912_v37 = vadd.f32 %v5104_v36, %v5015_v35 }
 0x116   : > { %v5055_v51 = vpop.f32.mrf.mxu2 }
 0x117   : > { %v5144_v52 = vpop.f32.mrf.mxu3 }
 0x118   : > { %v11925_v56 = vadd.f32 %v5144_v52, %v5055_v51  ;;  %v5018_v3 = vpop.f32.mrf.mxu0 }
 0x11a   : > { %v5107_v5 = vpop.f32.mrf.mxu1 }
 0x11b   : > { %v11927_v6 = vadd.f32 %v5107_v5, %v5018_v3  ;;  %5195 = vmatmul.bf16.gmra.mxu2 %v8733_v58  ;;  %5373 = vmatmul.bf16.gmra.mxu0 %v8741_v63  ;;  %v8972_v3 = vld [vmem:[%s11582_s21 + $0x878] sm:$0xf]  ;;  %v11042_v5 = vld [vmem:[%s11582_s21 + $0x8ec] sm:$0xf0] }
 0x11c   : > { %5284 = vmatmul.bf16.gmra.mxu3 %v8737_v61  ;;  %v8973_v26 = vor.u32 %v11042_v5, %v8972_v3  ;;  %v9094_v3 = vld [vmem:[%s11582_s21 + $0x9e0] sm:$0xf0]  ;;  %v9100_v5 = vld [vmem:[%s11582_s21 + $0x970] sm:$0xf] }
 0x11d   : > { %5462 = vmatmul.bf16.gmra.mxu1 %v8745_v2 }
 0x11e   : > { %v5058_v8 = vpop.f32.mrf.mxu2 }
 0x11f   : > { %v5147_v9 = vpop.f32.mrf.mxu3 }
 0x120   : > { %v11932_v11 = vadd.f32 %v5147_v9, %v5058_v8  ;;  %v5020_v12 = vpop.f32.mrf.mxu0  ;;  %v11027_v8 = vld [vmem:[%s11582_s21 + $0x87c] sm:$0xf]  ;;  %v8974_v9 = vld [vmem:[%s11582_s21 + $0x8f0] sm:$0xf0] }
 0x121   : > { %v8977_v29 = vor.u32 %v11027_v8, %v8974_v9  ;;  %v11058_v8 = vld [vmem:[%s11582_s21 + $0x974] sm:$0xf]  ;;  %v9102_v9 = vld [vmem:[%s11582_s21 + $0x9e8] sm:$0xf0] }
 0x122   : > { %v5109_v13 = vpop.f32.mrf.mxu1 }
 0x123   : > { %v11934_v16 = vadd.f32 %v5109_v13, %v5020_v12  ;;  %v8980_v12 = vld [vmem:[%s11582_s21 + $0x880] sm:$0xf]  ;;  %v11043_v13 = vld [vmem:[%s11582_s21 + $0x8f4] sm:$0xf0] }
 0x124   : > { %v8981_v31 = vor.u32 %v11043_v13, %v8980_v12 }
 0x126   : > { %v5060_v32 = vpop.f32.mrf.mxu2 }
 0x127   : > { %v5149_v35 = vpop.f32.mrf.mxu3 }
 0x128   : > { %v11944_v36 = vadd.f32 %v5149_v35, %v5060_v32  ;;  %v5339_v46 = vpop.f32.mrf.mxu0  ;;  %v8985_v32 = vor.u32 %v11028_v17, %v8982_v19 }
 0x12a   : > { %v5428_v47 = vpop.f32.mrf.mxu1 }
 0x12b   : > { %5200 = vmatmul.bf16.gmra.mxu2 %v8853_v38  ;;  %5378 = vmatmul.bf16.gmra.mxu0 %v8861_v41 }
 0x12c   : > { %5289 = vmatmul.bf16.gmra.mxu3 %v8857_v40 }
 0x12d   : > { %5467 = vmatmul.bf16.gmra.mxu1 %v8865_v43  ;;  %v11310_v43 = vld [vmem:[%s13939_s1 + $0x250] sm:$0xff] }
 0x12e   : > { %v5161_v50 = vpop.f32.mrf.mxu2  ;;  %5780 = vmatpush.bf16.msra.mxu1 %v11310_v43 }
 0x12f   : > { %v5250_v51 = vpop.f32.mrf.mxu3  ;;  %v5162_v52 = vadd.f32 %v5161_v50, %v11770_v34 }
 0x130   : > { %v5341_v61 = vpop.f32.mrf.mxu0 }
 0x131   : > { %v5251_v58 = vadd.f32 %v5250_v51, %v5162_v52 }
 0x132   : > { %v5430_v63 = vpop.f32.mrf.mxu1 }
 0x133   : > { %v5340_v2 = vadd.f32 %v5339_v46, %v5251_v58  ;;  %v9092_v58 = vld [vmem:[%s11582_s21 + $0x968] sm:$0xf] }
 0x135   : > { %v11964_v20 = vadd.f32 %v5428_v47, %v5340_v2  ;;  %v11057_v2 = vld [vmem:[%s11582_s21 + $0x96c] sm:$0xf] }
 0x136   : > { %v5163_v34 = vpop.f32.mrf.mxu2 }
 0x137   : > { %v5252_v21 = vpop.f32.mrf.mxu3  ;;  %v5164_v23 = vadd.f32 %v5163_v34, %v11780_v42  ;;  %v9101_v34 = vor.u32 %v11073_v7, %v9100_v5  ;;  %v9222_v5 = vld [vmem:[%s11582_s21 + $0xad8] sm:$0xf0] }
 0x138   : > { %v5344_v38 = vpop.f32.mrf.mxu0 }
 0x139   : > { %v5253_v35 = vadd.f32 %v5252_v21, %v5164_v23  ;;  %v9105_v21 = vor.u32 %v11058_v8, %v9102_v9 }
 0x13a   : > { %v5433_v40 = vpop.f32.mrf.mxu1 }
 0x13b   : > { %v5342_v41 = vadd.f32 %v5341_v61, %v5253_v35  ;;  %5205 = vmatmul.bf16.gmra.mxu2 %v8973_v26  ;;  %5383 = vmatmul.bf16.gmra.mxu0 %v8981_v31  ;;  %v11072_v61 = vld [vmem:[%s11582_s21 + $0x9dc] sm:$0xf0] }
 0x13c   : > { %5294 = vmatmul.bf16.gmra.mxu3 %v8977_v29  ;;  %v9093_v19 = vor.u32 %v11072_v61, %v9092_v58  ;;  %v11087_v58 = vld [vmem:[%s11582_s21 + $0xa5c] sm:$0xf]  ;;  %v9220_v61 = vld [vmem:[%s11582_s21 + $0xa60] sm:$0xf] }
 0x13d   : > { %5472 = vmatmul.bf16.gmra.mxu1 %v8985_v32  ;;  %v11970_v42 = vadd.f32 %v5430_v63, %v5342_v41  ;;  %v11285_v32 = vld [vmem:[%s13939_s1 + $0x188] sm:$0xff] }
 0x13e   : > { %v5166_v46 = vpop.f32.mrf.mxu2  ;;  %5514 = vmatpush.bf16.msra.mxu2 %v11285_v32 }
 0x13f   : > { %v5255_v47 = vpop.f32.mrf.mxu3  ;;  %v5167_v48 = vadd.f32 %v5166_v46, %v11798_v62  ;;  %v9097_v62 = vor.u32 %v11057_v2, %v9094_v3  ;;  %v11103_v2 = vld [vmem:[%s11582_s21 + $0xad4] sm:$0xf0]  ;;  %v11088_v3 = vld [vmem:[%s11582_s21 + $0xa64] sm:$0xf] }
 0x140   : > { %v5346_v50 = vpop.f32.mrf.mxu0 }
 0x141   : > { %v5256_v49 = vadd.f32 %v5255_v47, %v5167_v48 }
 0x142   : > { %v5435_v51 = vpop.f32.mrf.mxu1 }
 0x143   : > { %v5345_v52 = vadd.f32 %v5344_v38, %v5256_v49  ;;  %v9212_v49 = vld [vmem:[%s11582_s21 + $0xa58] sm:$0xf] }
 0x145   : > { %v11981_v12 = vadd.f32 %v5433_v40, %v5345_v52  ;;  %v11301_v52 = vld [vmem:[%s13939_s1 + $0x208] sm:$0xff] }
 0x146   : > { %v5168_v63 = vpop.f32.mrf.mxu2  ;;  %5692 = vmatpush.bf16.msra.mxu0 %v11301_v52  ;;  %v11133_v52 = vld [vmem:[%s11582_s21 + $0xbc4] sm:$0xf0] }
 0x147   : > { %v5257_v13 = vpop.f32.mrf.mxu3  ;;  %v5169_v17 = vadd.f32 %v5168_v63, %v11802_v4  ;;  %v11293_v4 = vld [vmem:[%s13939_s1 + $0x1c8] sm:$0xff] }
 0x148   : > { %v5349_v26 = vpop.f32.mrf.mxu0  ;;  %5603 = vmatpush.bf16.msra.mxu3 %v11293_v4 }
 0x149   : > { %v5258_v23 = vadd.f32 %v5257_v13, %v5169_v17  ;;  %v9221_v17 = vor.u32 %v11103_v2, %v9220_v61 }
 0x14a   : > { %v5438_v29 = vpop.f32.mrf.mxu1 }
 0x14b   : > { %v5347_v31 = vadd.f32 %v5346_v50, %v5258_v23  ;;  %5210 = vmatmul.bf16.gmra.mxu2 %v9093_v19  ;;  %5388 = vmatmul.bf16.gmra.mxu0 %v9101_v34  ;;  %v11102_v50 = vld [vmem:[%s11582_s21 + $0xacc] sm:$0xf0]  ;;  %v9225_v19 = vor.u32 %v11088_v3, %v9222_v5 }
 0x14c   : > { %5299 = vmatmul.bf16.gmra.mxu3 %v9097_v62  ;;  %v9213_v63 = vor.u32 %v11102_v50, %v9212_v49  ;;  %v9334_v49 = vld [vmem:[%s11582_s21 + $0xbc0] sm:$0xf0]  ;;  %v9340_v50 = vld [vmem:[%s11582_s21 + $0xb50] sm:$0xf] }
 0x14d   : > { %5477 = vmatmul.bf16.gmra.mxu1 %v9105_v21  ;;  %v11990_v35 = vadd.f32 %v5435_v51, %v5347_v31  ;;  %v9214_v51 = vld [vmem:[%s11582_s21 + $0xad0] sm:$0xf0] }
 0x14e   : > { %v5171_v38 = vpop.f32.mrf.mxu2  ;;  %v9217_v13 = vor.u32 %v11087_v58, %v9214_v51  ;;  %v11118_v58 = vld [vmem:[%s11582_s21 + $0xb54] sm:$0xf]  ;;  %v9342_v51 = vld [vmem:[%s11582_s21 + $0xbc8] sm:$0xf0] }
 0x14f   : > { %v5260_v40 = vpop.f32.mrf.mxu3  ;;  %v5172_v41 = vadd.f32 %v5171_v38, %v11814_v22 }
 0x150   : > { %v5351_v46 = vpop.f32.mrf.mxu0 }
 0x151   : > { %v5261_v43 = vadd.f32 %v5260_v40, %v5172_v41 }
 0x152   : > { %v5440_v47 = vpop.f32.mrf.mxu1 }
 0x153   : > { %v5350_v48 = vadd.f32 %v5349_v26, %v5261_v43  ;;  %v11309_v26 = vld [vmem:[%s13939_s1 + $0x248] sm:$0xff] }
 0x154   : > { %5781 = vmatpush.bf16.msra.mxu1 %v11309_v26  ;;  %v9332_v43 = vld [vmem:[%s11582_s21 + $0xb48] sm:$0xf] }
 0x155   : > { %v12004_v7 = vadd.f32 %v5438_v29, %v5350_v48  ;;  %v11117_v48 = vld [vmem:[%s11582_s21 + $0xb4c] sm:$0xf] }
 0x156   : > { %v5173_v22 = vpop.f32.mrf.mxu2 }
 0x157   : > { %v5262_v8 = vpop.f32.mrf.mxu3  ;;  %v5174_v9 = vadd.f32 %v5173_v22, %v11824_v30  ;;  %v9341_v22 = vor.u32 %v11133_v52, %v9340_v50  ;;  %v9462_v50 = vld [vmem:[%s11582_s21 + $0xcb8] sm:$0xf0] }
 0x158   : > { %v5354_v34 = vpop.f32.mrf.mxu0 }
 0x159   : > { %v5263_v62 = vadd.f32 %v5262_v8, %v5174_v9  ;;  %v9345_v8 = vor.u32 %v11118_v58, %v9342_v51 }
 0x15a   : > { %v5443_v21 = vpop.f32.mrf.mxu1 }
 0x15b   : > { %v5352_v23 = vadd.f32 %v5351_v46, %v5263_v62  ;;  %5215 = vmatmul.bf16.gmra.mxu2 %v9213_v63  ;;  %5393 = vmatmul.bf16.gmra.mxu0 %v9221_v17  ;;  %v11132_v46 = vld [vmem:[%s11582_s21 + $0xbbc] sm:$0xf0] }
 0x15c   : > { %5304 = vmatmul.bf16.gmra.mxu3 %v9217_v13  ;;  %v9333_v5 = vor.u32 %v11132_v46, %v9332_v43  ;;  %v11147_v43 = vld [vmem:[%s11582_s21 + $0xc3c] sm:$0xf]  ;;  %v9460_v46 = vld [vmem:[%s11582_s21 + $0xc40] sm:$0xf] }
 0x15d   : > { %5482 = vmatmul.bf16.gmra.mxu1 %v9225_v19  ;;  %v12010_v30 = vadd.f32 %v5440_v47, %v5352_v23  ;;  %v11284_v19 = vld [vmem:[%s13939_s1 + $0x180] sm:$0xff] }
 0x15e   : > { %v5176_v29 = vpop.f32.mrf.mxu2  ;;  %5515 = vmatpush.bf16.msra.mxu2 %v11284_v19 }
 0x15f   : > { %v5265_v31 = vpop.f32.mrf.mxu3  ;;  %v5177_v32 = vadd.f32 %v5176_v29, %v11842_v53  ;;  %v9337_v53 = vor.u32 %v11117_v48, %v9334_v49  ;;  %v11163_v48 = vld [vmem:[%s11582_s21 + $0xcb4] sm:$0xf0]  ;;  %v11148_v49 = vld [vmem:[%s11582_s21 + $0xc44] sm:$0xf] }
 0x160   : > { %v5356_v38 = vpop.f32.mrf.mxu0 }
 0x161   : > { %v5266_v4 = vadd.f32 %v5265_v31, %v5177_v32 }
 0x162   : > { %v5445_v40 = vpop.f32.mrf.mxu1 }
 0x163   : > { %v5355_v41 = vadd.f32 %v5354_v34, %v5266_v4  ;;  %v9452_v4 = vld [vmem:[%s11582_s21 + $0xc38] sm:$0xf] }
 0x165   : > { %v12021_v61 = vadd.f32 %v5443_v21, %v5355_v41  ;;  %v11300_v41 = vld [vmem:[%s13939_s1 + $0x200] sm:$0xff] }
 0x166   : > { %v5178_v47 = vpop.f32.mrf.mxu2  ;;  %5693 = vmatpush.bf16.msra.mxu0 %v11300_v41  ;;  %v11193_v41 = vld [vmem:[%s11582_s21 + $0xda4] sm:$0xf0] }
 0x167   : > { %v5267_v2 = vpop.f32.mrf.mxu3  ;;  %v5179_v3 = vadd.f32 %v5178_v47, %v11846_v60  ;;  %v11292_v60 = vld [vmem:[%s13939_s1 + $0x1c0] sm:$0xff] }
 0x168   : > { %v5359_v63 = vpop.f32.mrf.mxu0  ;;  %5604 = vmatpush.bf16.msra.mxu3 %v11292_v60 }
 0x169   : > { %v5268_v9 = vadd.f32 %v5267_v2, %v5179_v3  ;;  %v9461_v3 = vor.u32 %v11163_v48, %v9460_v46 }
 0x16a   : > { %v5448_v13 = vpop.f32.mrf.mxu1 }
 0x16b   : > { %v5357_v17 = vadd.f32 %v5356_v38, %v5268_v9  ;;  %5220 = vmatmul.bf16.gmra.mxu2 %v9333_v5  ;;  %5398 = vmatmul.bf16.gmra.mxu0 %v9341_v22  ;;  %v11162_v38 = vld [vmem:[%s11582_s21 + $0xcac] sm:$0xf0]  ;;  %v9465_v5 = vor.u32 %v11148_v49, %v9462_v50 }
 0x16c   : > { %5309 = vmatmul.bf16.gmra.mxu3 %v9337_v53  ;;  %v9453_v47 = vor.u32 %v11162_v38, %v9452_v4  ;;  %v9574_v4 = vld [vmem:[%s11582_s21 + $0xda0] sm:$0xf0]  ;;  %v9580_v38 = vld [vmem:[%s11582_s21 + $0xd30] sm:$0xf] }
 0x16d   : > { %5487 = vmatmul.bf16.gmra.mxu1 %v9345_v8  ;;  %v12030_v62 = vadd.f32 %v5445_v40, %v5357_v17  ;;  %v9454_v40 = vld [vmem:[%s11582_s21 + $0xcb0] sm:$0xf0] }
 0x16e   : > { %v5181_v34 = vpop.f32.mrf.mxu2  ;;  %v9457_v2 = vor.u32 %v11147_v43, %v9454_v40  ;;  %v11178_v43 = vld [vmem:[%s11582_s21 + $0xd34] sm:$0xf]  ;;  %v9582_v40 = vld [vmem:[%s11582_s21 + $0xda8] sm:$0xf0] }
 0x16f   : > { %v5270_v21 = vpop.f32.mrf.mxu3  ;;  %v5182_v23 = vadd.f32 %v5181_v34, %v11858_v18 }
 0x170   : > { %v5361_v29 = vpop.f32.mrf.mxu0 }
 0x171   : > { %v5271_v26 = vadd.f32 %v5270_v21, %v5182_v23 }
 0x172   : > { %v5450_v31 = vpop.f32.mrf.mxu1 }
 0x173   : > { %v5360_v32 = vadd.f32 %v5359_v63, %v5271_v26  ;;  %v11308_v63 = vld [vmem:[%s13939_s1 + $0x240] sm:$0xff]  ;;  %v9572_v26 = vld [vmem:[%s11582_s21 + $0xd28] sm:$0xf] }
 0x174   : > { %5782 = vmatpush.bf16.msra.mxu1 %v11308_v63 }
 0x175   : > { %v12044_v52 = vadd.f32 %v5448_v13, %v5360_v32  ;;  %v11177_v32 = vld [vmem:[%s11582_s21 + $0xd2c] sm:$0xf] }
 0x176   : > { %v5183_v18 = vpop.f32.mrf.mxu2 }
 0x177   : > { %v5272_v58 = vpop.f32.mrf.mxu3  ;;  %v5184_v51 = vadd.f32 %v5183_v18, %v11868_v28  ;;  %v9581_v18 = vor.u32 %v11193_v41, %v9580_v38  ;;  %v9702_v38 = vld [vmem:[%s11582_s21 + $0xe98] sm:$0xf0] }
 0x178   : > { %v5364_v22 = vpop.f32.mrf.mxu0 }
 0x179   : > { %v5273_v53 = vadd.f32 %v5272_v58, %v5184_v51  ;;  %v9585_v58 = vor.u32 %v11178_v43, %v9582_v40 }
 0x17a   : > { %v5453_v8 = vpop.f32.mrf.mxu1 }
 0x17b   : > { %v5362_v9 = vadd.f32 %v5361_v29, %v5273_v53  ;;  %5225 = vmatmul.bf16.gmra.mxu2 %v9453_v47  ;;  %5403 = vmatmul.bf16.gmra.mxu0 %v9461_v3  ;;  %v11192_v29 = vld [vmem:[%s11582_s21 + $0xd9c] sm:$0xf0] }
 0x17c   : > { %5314 = vmatmul.bf16.gmra.mxu3 %v9457_v2  ;;  %v9573_v50 = vor.u32 %v11192_v29, %v9572_v26  ;;  %v11207_v26 = vld [vmem:[%s11582_s21 + $0xe1c] sm:$0xf]  ;;  %v9700_v29 = vld [vmem:[%s11582_s21 + $0xe20] sm:$0xf] }
 0x17d   : > { %5492 = vmatmul.bf16.gmra.mxu1 %v9465_v5  ;;  %v12050_v28 = vadd.f32 %v5450_v31, %v5362_v9  ;;  %v11323_v5 = vld [vmem:[%s13939_s1 + $0x2b8] sm:$0xff] }
 0x17e   : > { %v5186_v13 = vpop.f32.mrf.mxu2  ;;  %5864 = vmatpush.bf16.msrb.mxu2 %v11323_v5 }
 0x17f   : > { %v5275_v17 = vpop.f32.mrf.mxu3  ;;  %v5187_v19 = vadd.f32 %v5186_v13, %v11886_v55  ;;  %v9577_v55 = vor.u32 %v11177_v32, %v9574_v4  ;;  %v11223_v32 = vld [vmem:[%s11582_s21 + $0xe94] sm:$0xf0]  ;;  %v11208_v4 = vld [vmem:[%s11582_s21 + $0xe24] sm:$0xf] }
 0x180   : > { %v5366_v34 = vpop.f32.mrf.mxu0 }
 0x181   : > { %v5276_v60 = vadd.f32 %v5275_v17, %v5187_v19 }
 0x182   : > { %v5455_v21 = vpop.f32.mrf.mxu1 }
 0x183   : > { %v5365_v23 = vadd.f32 %v5364_v22, %v5276_v60  ;;  %v9692_v60 = vld [vmem:[%s11582_s21 + $0xe18] sm:$0xf] }
 0x185   : > { %v12061_v46 = vadd.f32 %v5453_v8, %v5365_v23  ;;  %v11339_v23 = vld [vmem:[%s13939_s1 + $0x338] sm:$0xff] }
 0x186   : > { %v5188_v31 = vpop.f32.mrf.mxu2  ;;  %6042 = vmatpush.bf16.msrb.mxu0 %v11339_v23  ;;  %v10775_v23 = vld [vmem:[%s11582_s21 + $0x94] sm:$0xf0] }
 0x187   : > { %v5277_v48 = vpop.f32.mrf.mxu3  ;;  %v5189_v49 = vadd.f32 %v5188_v31, %v11890_v0  ;;  %v11331_v0 = vld [vmem:[%s13939_s1 + $0x2f8] sm:$0xff] }
 0x188   : > { %v5369_v47 = vpop.f32.mrf.mxu0  ;;  %5953 = vmatpush.bf16.msrb.mxu3 %v11331_v0 }
 0x189   : > { %v5278_v51 = vadd.f32 %v5277_v48, %v5189_v49  ;;  %v9701_v49 = vor.u32 %v11223_v32, %v9700_v29 }
 0x18a   : > { %v5458_v2 = vpop.f32.mrf.mxu1 }
 0x18b   : > { %v5367_v3 = vadd.f32 %v5366_v34, %v5278_v51  ;;  %5230 = vmatmul.bf16.gmra.mxu2 %v9573_v50  ;;  %5408 = vmatmul.bf16.gmra.mxu0 %v9581_v18  ;;  %v11222_v34 = vld [vmem:[%s11582_s21 + $0xe8c] sm:$0xf0]  ;;  %v9705_v50 = vor.u32 %v11208_v4, %v9702_v38 }
 0x18c   : > { %5319 = vmatmul.bf16.gmra.mxu3 %v9577_v55  ;;  %v9693_v31 = vor.u32 %v11222_v34, %v9692_v60  ;;  %v7910_v60 = vld [vmem:[%s11582_s21 + $0x90] sm:$0xf0]  ;;  %v7916_v34 = vld [vmem:[%s11582_s21 + $0x20] sm:$0xf] }
 0x18d   : > { %5497 = vmatmul.bf16.gmra.mxu1 %v9585_v58  ;;  %v12070_v53 = vadd.f32 %v5455_v21, %v5367_v3  ;;  %v9694_v21 = vld [vmem:[%s11582_s21 + $0xe90] sm:$0xf0] }
 0x18e   : > { %v5191_v22 = vpop.f32.mrf.mxu2  ;;  %v9697_v48 = vor.u32 %v11207_v26, %v9694_v21  ;;  %v10760_v26 = vld [vmem:[%s11582_s21 + $0x24] sm:$0xf]  ;;  %v7918_v21 = vld [vmem:[%s11582_s21 + $0x98] sm:$0xf0] }
 0x18f   : > { %v5280_v8 = vpop.f32.mrf.mxu3  ;;  %v5192_v9 = vadd.f32 %v5191_v22, %v11902_v25 }
 0x190   : > { %v5371_v13 = vpop.f32.mrf.mxu0 }
 0x191   : > { %v5281_v63 = vadd.f32 %v5280_v8, %v5192_v9 }
 0x192   : > { %v5460_v17 = vpop.f32.mrf.mxu1 }
 0x193   : > { %v5370_v19 = vadd.f32 %v5369_v47, %v5281_v63  ;;  %v11347_v47 = vld [vmem:[%s13939_s1 + $0x378] sm:$0xff] }
 0x194   : > { %6131 = vmatpush.bf16.msrb.mxu1 %v11347_v47  ;;  %v7908_v63 = vld [vmem:[%s11582_s21 + $0x18] sm:$0xf] }
 0x195   : > { %v12084_v41 = vadd.f32 %v5458_v2, %v5370_v19  ;;  %v10759_v19 = vld [vmem:[%s11582_s21 + $0x1c] sm:$0xf] }
 0x196   : > { %v5193_v25 = vpop.f32.mrf.mxu2 }
 0x197   : > { %v5282_v43 = vpop.f32.mrf.mxu3  ;;  %v5194_v40 = vadd.f32 %v5193_v25, %v11912_v37  ;;  %v7917_v25 = vor.u32 %v10775_v23, %v7916_v34  ;;  %v8038_v34 = vld [vmem:[%s11582_s21 + $0x188] sm:$0xf0] }
 0x198   : > { %v5374_v18 = vpop.f32.mrf.mxu0 }
 0x199   : > { %v5283_v55 = vadd.f32 %v5282_v43, %v5194_v40  ;;  %v7921_v43 = vor.u32 %v10760_v26, %v7918_v21 }
 0x19a   : > { %v5463_v58 = vpop.f32.mrf.mxu1 }
 0x19b   : > { %v5372_v51 = vadd.f32 %v5371_v13, %v5283_v55  ;;  %5235 = vmatmul.bf16.gmra.mxu2 %v9693_v31  ;;  %5413 = vmatmul.bf16.gmra.mxu0 %v9701_v49  ;;  %v10774_v13 = vld [vmem:[%s11582_s21 + $0x8c] sm:$0xf0] }
 0x19c   : > { %5324 = vmatmul.bf16.gmra.mxu3 %v9697_v48  ;;  %v7909_v38 = vor.u32 %v10774_v13, %v7908_v63  ;;  %v10789_v63 = vld [vmem:[%s11582_s21 + $0x10c] sm:$0xf]  ;;  %v8036_v13 = vld [vmem:[%s11582_s21 + $0x110] sm:$0xf] }
 0x19d   : > { %5502 = vmatmul.bf16.gmra.mxu1 %v9705_v50  ;;  %v12090_v37 = vadd.f32 %v5460_v17, %v5372_v51  ;;  %v11322_v50 = vld [vmem:[%s13939_s1 + $0x2b0] sm:$0xff] }
 0x19e   : > { %v5196_v2 = vpop.f32.mrf.mxu2  ;;  %5865 = vmatpush.bf16.msrb.mxu2 %v11322_v50 }
 0x19f   : > { %v5285_v3 = vpop.f32.mrf.mxu3  ;;  %v5197_v5 = vadd.f32 %v5196_v2, %v11927_v6  ;;  %v7913_v6 = vor.u32 %v10759_v19, %v7910_v60  ;;  %v10805_v19 = vld [vmem:[%s11582_s21 + $0x184] sm:$0xf0]  ;;  %v10790_v60 = vld [vmem:[%s11582_s21 + $0x114] sm:$0xf] }
 0x1a0   : > { %v5376_v22 = vpop.f32.mrf.mxu0 }
 0x1a1   : > { %v5286_v0 = vadd.f32 %v5285_v3, %v5197_v5 }
 0x1a2   : > { %v5465_v8 = vpop.f32.mrf.mxu1 }
 0x1a3   : > { %v5375_v9 = vadd.f32 %v5374_v18, %v5286_v0  ;;  %v8028_v0 = vld [vmem:[%s11582_s21 + $0x108] sm:$0xf] }
 0x1a5   : > { %v12101_v29 = vadd.f32 %v5463_v58, %v5375_v9  ;;  %v11338_v9 = vld [vmem:[%s13939_s1 + $0x330] sm:$0xff] }
 0x1a6   : > { %v5198_v17 = vpop.f32.mrf.mxu2  ;;  %6043 = vmatpush.bf16.msrb.mxu0 %v11338_v9  ;;  %v10835_v9 = vld [vmem:[%s11582_s21 + $0x274] sm:$0xf0] }
 0x1a7   : > { %v5287_v32 = vpop.f32.mrf.mxu3  ;;  %v5199_v4 = vadd.f32 %v5198_v17, %v11934_v16  ;;  %v11330_v16 = vld [vmem:[%s13939_s1 + $0x2f0] sm:$0xff] }
 0x1a8   : > { %v5379_v31 = vpop.f32.mrf.mxu0  ;;  %5954 = vmatpush.bf16.msrb.mxu3 %v11330_v16 }
 0x1a9   : > { %v5288_v40 = vadd.f32 %v5287_v32, %v5199_v4  ;;  %v8037_v4 = vor.u32 %v10805_v19, %v8036_v13 }
 0x1aa   : > { %v5468_v48 = vpop.f32.mrf.mxu1 }
 0x1ab   : > { %v5377_v49 = vadd.f32 %v5376_v22, %v5288_v40  ;;  %5516 = vmatmul.bf16.vlgmr.msra.gmra.mxu2 %v7909_v38  ;;  %5694 = vmatmul.bf16.vlgmr.msra.gmra.mxu0 %v7917_v25  ;;  %v10804_v22 = vld [vmem:[%s11582_s21 + $0x17c] sm:$0xf0]  ;;  %v8041_v38 = vor.u32 %v10790_v60, %v8038_v34 }
 0x1ac   : > { %5605 = vmatmul.bf16.vlgmr.msra.gmra.mxu3 %v7913_v6  ;;  %v8029_v17 = vor.u32 %v10804_v22, %v8028_v0  ;;  %v8150_v0 = vld [vmem:[%s11582_s21 + $0x270] sm:$0xf0]  ;;  %v8156_v22 = vld [vmem:[%s11582_s21 + $0x200] sm:$0xf] }
 0x1ad   : > { %5783 = vmatmul.bf16.vlgmr.msra.gmra.mxu1 %v7921_v43  ;;  %v12110_v55 = vadd.f32 %v5465_v8, %v5377_v49  ;;  %v8030_v8 = vld [vmem:[%s11582_s21 + $0x180] sm:$0xf0] }
 0x1ae   : > { %v5201_v18 = vpop.f32.mrf.mxu2  ;;  %v8033_v32 = vor.u32 %v10789_v63, %v8030_v8  ;;  %v10820_v63 = vld [vmem:[%s11582_s21 + $0x204] sm:$0xf]  ;;  %v8158_v8 = vld [vmem:[%s11582_s21 + $0x278] sm:$0xf0] }
 0x1af   : > { %v5290_v58 = vpop.f32.mrf.mxu3  ;;  %v5202_v51 = vadd.f32 %v5201_v18, %v11778_v39 }
 0x1b0   : > { %v5381_v2 = vpop.f32.mrf.mxu0 }
 0x1b1   : > { %v5291_v47 = vadd.f32 %v5290_v58, %v5202_v51 }
 0x1b2   : > { %v5470_v3 = vpop.f32.mrf.mxu1 }
 0x1b3   : > { %v5380_v5 = vadd.f32 %v5379_v31, %v5291_v47  ;;  %v11346_v31 = vld [vmem:[%s13939_s1 + $0x370] sm:$0xff]  ;;  %v8148_v47 = vld [vmem:[%s11582_s21 + $0x1f8] sm:$0xf] }
 0x1b4   : > { %6132 = vmatpush.bf16.msrb.mxu1 %v11346_v31 }
 0x1b5   : > { %v12124_v23 = vadd.f32 %v5468_v48, %v5380_v5  ;;  %v10819_v5 = vld [vmem:[%s11582_s21 + $0x1fc] sm:$0xf] }
 0x1b6   : > { %v5203_v39 = vpop.f32.mrf.mxu2 }
 0x1b7   : > { %v5292_v26 = vpop.f32.mrf.mxu3  ;;  %v5204_v21 = vadd.f32 %v5203_v39, %v11793_v54  ;;  %v8157_v39 = vor.u32 %v10835_v9, %v8156_v22  ;;  %v8278_v22 = vld [vmem:[%s11582_s21 + $0x368] sm:$0xf0] }
 0x1b8   : > { %v5384_v25 = vpop.f32.mrf.mxu0 }
 0x1b9   : > { %v5293_v6 = vadd.f32 %v5292_v26, %v5204_v21  ;;  %v8161_v26 = vor.u32 %v10820_v63, %v8158_v8 }
 0x1ba   : > { %v5473_v43 = vpop.f32.mrf.mxu1 }
 0x1bb   : > { %v5382_v40 = vadd.f32 %v5381_v2, %v5293_v6  ;;  %5521 = vmatmul.bf16.gmra.mxu2 %v8029_v17  ;;  %5699 = vmatmul.bf16.gmra.mxu0 %v8037_v4  ;;  %v10834_v2 = vld [vmem:[%s11582_s21 + $0x26c] sm:$0xf0] }
 0x1bc   : > { %5610 = vmatmul.bf16.gmra.mxu3 %v8033_v32  ;;  %v8149_v34 = vor.u32 %v10834_v2, %v8148_v47  ;;  %v10849_v47 = vld [vmem:[%s11582_s21 + $0x2ec] sm:$0xf]  ;;  %v8276_v2 = vld [vmem:[%s11582_s21 + $0x2f0] sm:$0xf] }
 0x1bd   : > { %5788 = vmatmul.bf16.gmra.mxu1 %v8041_v38  ;;  %v12130_v54 = vadd.f32 %v5470_v3, %v5382_v40  ;;  %v11321_v38 = vld [vmem:[%s13939_s1 + $0x2a8] sm:$0xff] }
 0x1be   : > { %v5206_v48 = vpop.f32.mrf.mxu2  ;;  %5866 = vmatpush.bf16.msrb.mxu2 %v11321_v38 }
 0x1bf   : > { %v5295_v49 = vpop.f32.mrf.mxu3  ;;  %v5207_v50 = vadd.f32 %v5206_v48, %v11800_v1  ;;  %v8153_v1 = vor.u32 %v10819_v5, %v8150_v0  ;;  %v10865_v5 = vld [vmem:[%s11582_s21 + $0x364] sm:$0xf0]  ;;  %v10850_v0 = vld [vmem:[%s11582_s21 + $0x2f4] sm:$0xf] }
 0x1c0   : > { %v5386_v18 = vpop.f32.mrf.mxu0 }
 0x1c1   : > { %v5296_v16 = vadd.f32 %v5295_v49, %v5207_v50 }
 0x1c2   : > { %v5475_v58 = vpop.f32.mrf.mxu1 }
 0x1c3   : > { %v5385_v51 = vadd.f32 %v5384_v25, %v5296_v16  ;;  %v8268_v16 = vld [vmem:[%s11582_s21 + $0x2e8] sm:$0xf] }
 0x1c5   : > { %v12141_v13 = vadd.f32 %v5473_v43, %v5385_v51  ;;  %v11337_v51 = vld [vmem:[%s13939_s1 + $0x328] sm:$0xff] }
 0x1c6   : > { %v5208_v3 = vpop.f32.mrf.mxu2  ;;  %6044 = vmatpush.bf16.msrb.mxu0 %v11337_v51  ;;  %v10895_v51 = vld [vmem:[%s11582_s21 + $0x454] sm:$0xf0] }
 0x1c7   : > { %v5297_v19 = vpop.f32.mrf.mxu3  ;;  %v5209_v60 = vadd.f32 %v5208_v3, %v11812_v15  ;;  %v11329_v15 = vld [vmem:[%s13939_s1 + $0x2e8] sm:$0xff] }
 0x1c8   : > { %v5389_v17 = vpop.f32.mrf.mxu0  ;;  %5955 = vmatpush.bf16.msrb.mxu3 %v11329_v15 }
 0x1c9   : > { %v5298_v21 = vadd.f32 %v5297_v19, %v5209_v60  ;;  %v8277_v60 = vor.u32 %v10865_v5, %v8276_v2 }
 0x1ca   : > { %v5478_v32 = vpop.f32.mrf.mxu1 }
 0x1cb   : > { %v5387_v4 = vadd.f32 %v5386_v18, %v5298_v21  ;;  %5526 = vmatmul.bf16.gmra.mxu2 %v8149_v34  ;;  %5704 = vmatmul.bf16.gmra.mxu0 %v8157_v39  ;;  %v10864_v18 = vld [vmem:[%s11582_s21 + $0x35c] sm:$0xf0]  ;;  %v8281_v34 = vor.u32 %v10850_v0, %v8278_v22 }
 0x1cc   : > { %5615 = vmatmul.bf16.gmra.mxu3 %v8153_v1  ;;  %v8269_v3 = vor.u32 %v10864_v18, %v8268_v16  ;;  %v8390_v16 = vld [vmem:[%s11582_s21 + $0x450] sm:$0xf0]  ;;  %v8396_v18 = vld [vmem:[%s11582_s21 + $0x3e0] sm:$0xf] }
 0x1cd   : > { %5793 = vmatmul.bf16.gmra.mxu1 %v8161_v26  ;;  %v12150_v6 = vadd.f32 %v5475_v58, %v5387_v4  ;;  %v8270_v58 = vld [vmem:[%s11582_s21 + $0x360] sm:$0xf0] }
 0x1ce   : > { %v5211_v25 = vpop.f32.mrf.mxu2  ;;  %v8273_v19 = vor.u32 %v10849_v47, %v8270_v58  ;;  %v10880_v47 = vld [vmem:[%s11582_s21 + $0x3e4] sm:$0xf]  ;;  %v8398_v58 = vld [vmem:[%s11582_s21 + $0x458] sm:$0xf0] }
 0x1cf   : > { %v5300_v43 = vpop.f32.mrf.mxu3  ;;  %v5212_v40 = vadd.f32 %v5211_v25, %v11822_v27 }
 0x1d0   : > { %v5391_v48 = vpop.f32.mrf.mxu0 }
 0x1d1   : > { %v5301_v31 = vadd.f32 %v5300_v43, %v5212_v40 }
 0x1d2   : > { %v5480_v49 = vpop.f32.mrf.mxu1 }
 0x1d3   : > { %v5390_v50 = vadd.f32 %v5389_v17, %v5301_v31  ;;  %v11345_v17 = vld [vmem:[%s13939_s1 + $0x368] sm:$0xff]  ;;  %v8388_v31 = vld [vmem:[%s11582_s21 + $0x3d8] sm:$0xf] }
 0x1d4   : > { %6133 = vmatpush.bf16.msrb.mxu1 %v11345_v17 }
 0x1d5   : > { %v12164_v9 = vadd.f32 %v5478_v32, %v5390_v50  ;;  %v10879_v50 = vld [vmem:[%s11582_s21 + $0x3dc] sm:$0xf] }
 0x1d6   : > { %v5213_v27 = vpop.f32.mrf.mxu2 }
 0x1d7   : > { %v5302_v63 = vpop.f32.mrf.mxu3  ;;  %v5214_v8 = vadd.f32 %v5213_v27, %v11837_v45  ;;  %v8397_v27 = vor.u32 %v10895_v51, %v8396_v18  ;;  %v8518_v18 = vld [vmem:[%s11582_s21 + $0x548] sm:$0xf0] }
 0x1d8   : > { %v5394_v39 = vpop.f32.mrf.mxu0 }
 0x1d9   : > { %v5303_v1 = vadd.f32 %v5302_v63, %v5214_v8  ;;  %v8401_v63 = vor.u32 %v10880_v47, %v8398_v58 }
 0x1da   : > { %v5483_v26 = vpop.f32.mrf.mxu1 }
 0x1db   : > { %v5392_v21 = vadd.f32 %v5391_v48, %v5303_v1  ;;  %5531 = vmatmul.bf16.gmra.mxu2 %v8269_v3  ;;  %5709 = vmatmul.bf16.gmra.mxu0 %v8277_v60  ;;  %v10894_v48 = vld [vmem:[%s11582_s21 + $0x44c] sm:$0xf0] }
 0x1dc   : > { %5620 = vmatmul.bf16.gmra.mxu3 %v8273_v19  ;;  %v8389_v22 = vor.u32 %v10894_v48, %v8388_v31  ;;  %v10909_v31 = vld [vmem:[%s11582_s21 + $0x4cc] sm:$0xf]  ;;  %v8516_v48 = vld [vmem:[%s11582_s21 + $0x4d0] sm:$0xf] }
 0x1dd   : > { %5798 = vmatmul.bf16.gmra.mxu1 %v8281_v34  ;;  %v12170_v45 = vadd.f32 %v5480_v49, %v5392_v21  ;;  %v11320_v34 = vld [vmem:[%s13939_s1 + $0x2a0] sm:$0xff] }
 0x1de   : > { %v5216_v32 = vpop.f32.mrf.mxu2  ;;  %5867 = vmatpush.bf16.msrb.mxu2 %v11320_v34 }
 0x1df   : > { %v5305_v4 = vpop.f32.mrf.mxu3  ;;  %v5217_v38 = vadd.f32 %v5216_v32, %v11844_v57  ;;  %v8393_v57 = vor.u32 %v10879_v50, %v8390_v16  ;;  %v10925_v50 = vld [vmem:[%s11582_s21 + $0x544] sm:$0xf0]  ;;  %v10910_v16 = vld [vmem:[%s11582_s21 + $0x4d4] sm:$0xf] }
 0x1e0   : > { %v5396_v25 = vpop.f32.mrf.mxu0 }
 0x1e1   : > { %v5306_v15 = vadd.f32 %v5305_v4, %v5217_v38 }
 0x1e2   : > { %v5485_v43 = vpop.f32.mrf.mxu1 }
 0x1e3   : > { %v5395_v40 = vadd.f32 %v5394_v39, %v5306_v15  ;;  %v8508_v15 = vld [vmem:[%s11582_s21 + $0x4c8] sm:$0xf] }
 0x1e5   : > { %v12181_v2 = vadd.f32 %v5483_v26, %v5395_v40  ;;  %v11336_v40 = vld [vmem:[%s13939_s1 + $0x320] sm:$0xff] }
 0x1e6   : > { %v5218_v49 = vpop.f32.mrf.mxu2  ;;  %6045 = vmatpush.bf16.msrb.mxu0 %v11336_v40  ;;  %v10955_v40 = vld [vmem:[%s11582_s21 + $0x634] sm:$0xf0] }
 0x1e7   : > { %v5307_v5 = vpop.f32.mrf.mxu3  ;;  %v5219_v0 = vadd.f32 %v5218_v49, %v11856_v10  ;;  %v11328_v10 = vld [vmem:[%s13939_s1 + $0x2e0] sm:$0xff] }
 0x1e8   : > { %v5399_v3 = vpop.f32.mrf.mxu0  ;;  %5956 = vmatpush.bf16.msrb.mxu3 %v11328_v10 }
 0x1e9   : > { %v5308_v8 = vadd.f32 %v5307_v5, %v5219_v0  ;;  %v8517_v0 = vor.u32 %v10925_v50, %v8516_v48 }
 0x1ea   : > { %v5488_v19 = vpop.f32.mrf.mxu1 }
 0x1eb   : > { %v5397_v60 = vadd.f32 %v5396_v25, %v5308_v8  ;;  %5536 = vmatmul.bf16.gmra.mxu2 %v8389_v22  ;;  %5714 = vmatmul.bf16.gmra.mxu0 %v8397_v27  ;;  %v10924_v25 = vld [vmem:[%s11582_s21 + $0x53c] sm:$0xf0]  ;;  %v8521_v22 = vor.u32 %v10910_v16, %v8518_v18 }
 0x1ec   : > { %5625 = vmatmul.bf16.gmra.mxu3 %v8393_v57  ;;  %v8509_v49 = vor.u32 %v10924_v25, %v8508_v15  ;;  %v8630_v15 = vld [vmem:[%s11582_s21 + $0x630] sm:$0xf0]  ;;  %v8636_v25 = vld [vmem:[%s11582_s21 + $0x5c0] sm:$0xf] }
 0x1ed   : > { %5803 = vmatmul.bf16.gmra.mxu1 %v8401_v63  ;;  %v12190_v1 = vadd.f32 %v5485_v43, %v5397_v60  ;;  %v8510_v43 = vld [vmem:[%s11582_s21 + $0x540] sm:$0xf0] }
 0x1ee   : > { %v5221_v39 = vpop.f32.mrf.mxu2  ;;  %v8513_v5 = vor.u32 %v10909_v31, %v8510_v43  ;;  %v10940_v31 = vld [vmem:[%s11582_s21 + $0x5c4] sm:$0xf]  ;;  %v8638_v43 = vld [vmem:[%s11582_s21 + $0x638] sm:$0xf0] }
 0x1ef   : > { %v5310_v26 = vpop.f32.mrf.mxu3  ;;  %v5222_v21 = vadd.f32 %v5221_v39, %v11866_v24 }
 0x1f0   : > { %v5401_v32 = vpop.f32.mrf.mxu0 }
 0x1f1   : > { %v5311_v17 = vadd.f32 %v5310_v26, %v5222_v21 }
 0x1f2   : > { %v5490_v4 = vpop.f32.mrf.mxu1 }
 0x1f3   : > { %v5400_v38 = vadd.f32 %v5399_v3, %v5311_v17  ;;  %v11344_v3 = vld [vmem:[%s13939_s1 + $0x360] sm:$0xff]  ;;  %v8628_v17 = vld [vmem:[%s11582_s21 + $0x5b8] sm:$0xf] }
 0x1f4   : > { %6134 = vmatpush.bf16.msrb.mxu1 %v11344_v3 }
 0x1f5   : > { %v12204_v51 = vadd.f32 %v5488_v19, %v5400_v38  ;;  %v10939_v38 = vld [vmem:[%s11582_s21 + $0x5bc] sm:$0xf] }
 0x1f6   : > { %v5223_v24 = vpop.f32.mrf.mxu2 }
 0x1f7   : > { %v5312_v47 = vpop.f32.mrf.mxu3  ;;  %v5224_v58 = vadd.f32 %v5223_v24, %v11881_v44  ;;  %v8637_v24 = vor.u32 %v10955_v40, %v8636_v25  ;;  %v8758_v25 = vld [vmem:[%s11582_s21 + $0x728] sm:$0xf0] }
 0x1f8   : > { %v5404_v27 = vpop.f32.mrf.mxu0 }
 0x1f9   : > { %v5313_v57 = vadd.f32 %v5312_v47, %v5224_v58  ;;  %v8641_v47 = vor.u32 %v10940_v31, %v8638_v43 }
 0x1fa   : > { %v5493_v63 = vpop.f32.mrf.mxu1 }
 0x1fb   : > { %v5402_v8 = vadd.f32 %v5401_v32, %v5313_v57  ;;  %5541 = vmatmul.bf16.gmra.mxu2 %v8509_v49  ;;  %5719 = vmatmul.bf16.gmra.mxu0 %v8517_v0  ;;  %v10954_v32 = vld [vmem:[%s11582_s21 + $0x62c] sm:$0xf0] }
 0x1fc   : > { %5630 = vmatmul.bf16.gmra.mxu3 %v8513_v5  ;;  %v8629_v18 = vor.u32 %v10954_v32, %v8628_v17  ;;  %v10969_v17 = vld [vmem:[%s11582_s21 + $0x6ac] sm:$0xf]  ;;  %v8756_v32 = vld [vmem:[%s11582_s21 + $0x6b0] sm:$0xf] }
 0x1fd   : > { %5808 = vmatmul.bf16.gmra.mxu1 %v8521_v22  ;;  %v12210_v44 = vadd.f32 %v5490_v4, %v5402_v8  ;;  %v11319_v22 = vld [vmem:[%s13939_s1 + $0x298] sm:$0xff] }
 0x1fe   : > { %v5226_v19 = vpop.f32.mrf.mxu2  ;;  %5868 = vmatpush.bf16.msrb.mxu2 %v11319_v22 }
 0x1ff   : > { %v5315_v60 = vpop.f32.mrf.mxu3  ;;  %v5227_v34 = vadd.f32 %v5226_v19, %v11888_v59  ;;  %v8633_v59 = vor.u32 %v10939_v38, %v8630_v15  ;;  %v10985_v38 = vld [vmem:[%s11582_s21 + $0x724] sm:$0xf0]  ;;  %v10970_v15 = vld [vmem:[%s11582_s21 + $0x6b4] sm:$0xf] }
 0x200   : > { %v5406_v39 = vpop.f32.mrf.mxu0 }
 0x201   : > { %v5316_v10 = vadd.f32 %v5315_v60, %v5227_v34 }
 0x202   : > { %v5495_v26 = vpop.f32.mrf.mxu1 }
 0x203   : > { %v5405_v21 = vadd.f32 %v5404_v27, %v5316_v10  ;;  %v8748_v10 = vld [vmem:[%s11582_s21 + $0x6a8] sm:$0xf] }
 0x205   : > { %v12221_v48 = vadd.f32 %v5493_v63, %v5405_v21  ;;  %v11335_v21 = vld [vmem:[%s13939_s1 + $0x318] sm:$0xff] }
 0x206   : > { %v5228_v4 = vpop.f32.mrf.mxu2  ;;  %6046 = vmatpush.bf16.msrb.mxu0 %v11335_v21  ;;  %v11015_v21 = vld [vmem:[%s11582_s21 + $0x814] sm:$0xf0] }
 0x207   : > { %v5317_v50 = vpop.f32.mrf.mxu3  ;;  %v5229_v16 = vadd.f32 %v5228_v4, %v11900_v14  ;;  %v11327_v14 = vld [vmem:[%s13939_s1 + $0x2d8] sm:$0xff] }
 0x208   : > { %v5409_v49 = vpop.f32.mrf.mxu0  ;;  %5957 = vmatpush.bf16.msrb.mxu3 %v11327_v14 }
 0x209   : > { %v5318_v58 = vadd.f32 %v5317_v50, %v5229_v16  ;;  %v8757_v16 = vor.u32 %v10985_v38, %v8756_v32 }
 0x20a   : > { %v5498_v5 = vpop.f32.mrf.mxu1 }
 0x20b   : > { %v5407_v0 = vadd.f32 %v5406_v39, %v5318_v58  ;;  %5546 = vmatmul.bf16.gmra.mxu2 %v8629_v18  ;;  %5724 = vmatmul.bf16.gmra.mxu0 %v8637_v24  ;;  %v10984_v39 = vld [vmem:[%s11582_s21 + $0x71c] sm:$0xf0]  ;;  %v8761_v18 = vor.u32 %v10970_v15, %v8758_v25 }
 0x20c   : > { %5635 = vmatmul.bf16.gmra.mxu3 %v8633_v59  ;;  %v8749_v4 = vor.u32 %v10984_v39, %v8748_v10  ;;  %v8870_v10 = vld [vmem:[%s11582_s21 + $0x810] sm:$0xf0]  ;;  %v8876_v39 = vld [vmem:[%s11582_s21 + $0x7a0] sm:$0xf] }
 0x20d   : > { %5813 = vmatmul.bf16.gmra.mxu1 %v8641_v47  ;;  %v12230_v57 = vadd.f32 %v5495_v26, %v5407_v0  ;;  %v8750_v26 = vld [vmem:[%s11582_s21 + $0x720] sm:$0xf0] }
 0x20e   : > { %v5231_v27 = vpop.f32.mrf.mxu2  ;;  %v8753_v50 = vor.u32 %v10969_v17, %v8750_v26  ;;  %v11000_v17 = vld [vmem:[%s11582_s21 + $0x7a4] sm:$0xf]  ;;  %v8878_v26 = vld [vmem:[%s11582_s21 + $0x818] sm:$0xf0] }
 0x20f   : > { %v5320_v63 = vpop.f32.mrf.mxu3  ;;  %v5232_v8 = vadd.f32 %v5231_v27, %v11910_v33 }
 0x210   : > { %v5411_v19 = vpop.f32.mrf.mxu0 }
 0x211   : > { %v5321_v3 = vadd.f32 %v5320_v63, %v5232_v8 }
 0x212   : > { %v5500_v60 = vpop.f32.mrf.mxu1 }
 0x213   : > { %v5410_v34 = vadd.f32 %v5409_v49, %v5321_v3  ;;  %v11343_v49 = vld [vmem:[%s13939_s1 + $0x358] sm:$0xff] }
 0x214   : > { %6135 = vmatpush.bf16.msrb.mxu1 %v11343_v49  ;;  %v8868_v3 = vld [vmem:[%s11582_s21 + $0x798] sm:$0xf] }
 0x215   : > { %v12244_v40 = vadd.f32 %v5498_v5, %v5410_v34  ;;  %v10999_v34 = vld [vmem:[%s11582_s21 + $0x79c] sm:$0xf] }
 0x216   : > { %v5233_v33 = vpop.f32.mrf.mxu2 }
 0x217   : > { %v5322_v31 = vpop.f32.mrf.mxu3  ;;  %v5234_v43 = vadd.f32 %v5233_v33, %v11925_v56  ;;  %v8877_v33 = vor.u32 %v11015_v21, %v8876_v39  ;;  %v8998_v39 = vld [vmem:[%s11582_s21 + $0x908] sm:$0xf0] }
 0x218   : > { %v5414_v24 = vpop.f32.mrf.mxu0 }
 0x219   : > { %v5323_v59 = vadd.f32 %v5322_v31, %v5234_v43  ;;  %v8881_v31 = vor.u32 %v11000_v17, %v8878_v26 }
 0x21a   : > { %v5503_v47 = vpop.f32.mrf.mxu1 }
 0x21b   : > { %v5412_v58 = vadd.f32 %v5411_v19, %v5323_v59  ;;  %5551 = vmatmul.bf16.gmra.mxu2 %v8749_v4  ;;  %5729 = vmatmul.bf16.gmra.mxu0 %v8757_v16  ;;  %v11014_v19 = vld [vmem:[%s11582_s21 + $0x80c] sm:$0xf0] }
 0x21c   : > { %5640 = vmatmul.bf16.gmra.mxu3 %v8753_v50  ;;  %v8869_v25 = vor.u32 %v11014_v19, %v8868_v3  ;;  %v11029_v3 = vld [vmem:[%s11582_s21 + $0x88c] sm:$0xf]  ;;  %v8996_v19 = vld [vmem:[%s11582_s21 + $0x890] sm:$0xf] }
 0x21d   : > { %5818 = vmatmul.bf16.gmra.mxu1 %v8761_v18  ;;  %v12250_v56 = vadd.f32 %v5500_v60, %v5412_v58  ;;  %v11318_v18 = vld [vmem:[%s13939_s1 + $0x290] sm:$0xff] }
 0x21e   : > { %v5236_v5 = vpop.f32.mrf.mxu2  ;;  %5869 = vmatpush.bf16.msrb.mxu2 %v11318_v18 }
 0x21f   : > { %v5325_v0 = vpop.f32.mrf.mxu3  ;;  %v5237_v22 = vadd.f32 %v5236_v5, %v11932_v11  ;;  %v8873_v11 = vor.u32 %v10999_v34, %v8870_v10  ;;  %v11045_v34 = vld [vmem:[%s11582_s21 + $0x904] sm:$0xf0]  ;;  %v11030_v10 = vld [vmem:[%s11582_s21 + $0x894] sm:$0xf] }
 0x220   : > { %v5416_v27 = vpop.f32.mrf.mxu0 }
 0x221   : > { %v5326_v14 = vadd.f32 %v5325_v0, %v5237_v22 }
 0x222   : > { %v5505_v63 = vpop.f32.mrf.mxu1 }
 0x223   : > { %v5415_v8 = vadd.f32 %v5414_v24, %v5326_v14  ;;  %v8988_v14 = vld [vmem:[%s11582_s21 + $0x888] sm:$0xf] }
 0x225   : > { %v12261_v32 = vadd.f32 %v5503_v47, %v5415_v8  ;;  %v11334_v8 = vld [vmem:[%s13939_s1 + $0x310] sm:$0xff] }
 0x226   : > { %v5238_v60 = vpop.f32.mrf.mxu2  ;;  %6047 = vmatpush.bf16.msrb.mxu0 %v11334_v8  ;;  %v11075_v8 = vld [vmem:[%s11582_s21 + $0x9f4] sm:$0xf0] }
 0x227   : > { %v5327_v38 = vpop.f32.mrf.mxu3  ;;  %v5239_v15 = vadd.f32 %v5238_v60, %v11944_v36  ;;  %v11326_v36 = vld [vmem:[%s13939_s1 + $0x2d0] sm:$0xff] }
 0x228   : > { %v5695_v4 = vpop.f32.mrf.mxu0  ;;  %5958 = vmatpush.bf16.msrb.mxu3 %v11326_v36 }
 0x229   : > { %v5328_v43 = vadd.f32 %v5327_v38, %v5239_v15  ;;  %v8997_v15 = vor.u32 %v11045_v34, %v8996_v19 }
 0x22a   : > { %v5784_v50 = vpop.f32.mrf.mxu1 }
 0x22b   : > { %v5417_v16 = vadd.f32 %v5416_v27, %v5328_v43  ;;  %5556 = vmatmul.bf16.gmra.mxu2 %v8869_v25  ;;  %5734 = vmatmul.bf16.gmra.mxu0 %v8877_v33  ;;  %v11044_v27 = vld [vmem:[%s11582_s21 + $0x8fc] sm:$0xf0]  ;;  %v9001_v25 = vor.u32 %v11030_v10, %v8998_v39 }
 0x22c   : > { %5645 = vmatmul.bf16.gmra.mxu3 %v8873_v11  ;;  %v8989_v60 = vor.u32 %v11044_v27, %v8988_v14  ;;  %v9110_v14 = vld [vmem:[%s11582_s21 + $0x9f0] sm:$0xf0]  ;;  %v9116_v27 = vld [vmem:[%s11582_s21 + $0x980] sm:$0xf] }
 0x22d   : > { %5823 = vmatmul.bf16.gmra.mxu1 %v8881_v31  ;;  %v12270_v59 = vadd.f32 %v5505_v63, %v5417_v16  ;;  %v8990_v63 = vld [vmem:[%s11582_s21 + $0x900] sm:$0xf0] }
 0x22e   : > { %v5517_v24 = vpop.f32.mrf.mxu2  ;;  %v8993_v38 = vor.u32 %v11029_v3, %v8990_v63  ;;  %v11060_v3 = vld [vmem:[%s11582_s21 + $0x984] sm:$0xf]  ;;  %v9118_v63 = vld [vmem:[%s11582_s21 + $0x9f8] sm:$0xf0] }
 0x22f   : > { %v5606_v47 = vpop.f32.mrf.mxu3  ;;  %v5518_v58 = vadd.f32 %v5517_v24, %v11964_v20 }
 0x230   : > { %v5697_v5 = vpop.f32.mrf.mxu0 }
 0x231   : > { %v5607_v49 = vadd.f32 %v5606_v47, %v5518_v58 }
 0x232   : > { %v5786_v0 = vpop.f32.mrf.mxu1 }
 0x233   : > { %v5696_v22 = vadd.f32 %v5695_v4, %v5607_v49  ;;  %v11342_v4 = vld [vmem:[%s13939_s1 + $0x350] sm:$0xff]  ;;  %v9108_v49 = vld [vmem:[%s11582_s21 + $0x978] sm:$0xf] }
 0x234   : > { %6136 = vmatpush.bf16.msrb.mxu1 %v11342_v4 }
 0x235   : > { %v12284_v21 = vadd.f32 %v5784_v50, %v5696_v22  ;;  %v11059_v22 = vld [vmem:[%s11582_s21 + $0x97c] sm:$0xf] }
 0x236   : > { %v5519_v20 = vpop.f32.mrf.mxu2 }
 0x237   : > { %v5608_v17 = vpop.f32.mrf.mxu3  ;;  %v5520_v26 = vadd.f32 %v5519_v20, %v11970_v42  ;;  %v9117_v20 = vor.u32 %v11075_v8, %v9116_v27  ;;  %v9238_v27 = vld [vmem:[%s11582_s21 + $0xae8] sm:$0xf0] }
 0x238   : > { %v5700_v33 = vpop.f32.mrf.mxu0 }
 0x239   : > { %v5609_v11 = vadd.f32 %v5608_v17, %v5520_v26  ;;  %v9121_v17 = vor.u32 %v11060_v3, %v9118_v63 }
 0x23a   : > { %v5789_v31 = vpop.f32.mrf.mxu1 }
 0x23b   : > { %v5698_v43 = vadd.f32 %v5697_v5, %v5609_v11  ;;  %5561 = vmatmul.bf16.gmra.mxu2 %v8989_v60  ;;  %5739 = vmatmul.bf16.gmra.mxu0 %v8997_v15  ;;  %v11074_v5 = vld [vmem:[%s11582_s21 + $0x9ec] sm:$0xf0] }
 0x23c   : > { %5650 = vmatmul.bf16.gmra.mxu3 %v8993_v38  ;;  %v9109_v39 = vor.u32 %v11074_v5, %v9108_v49  ;;  %v11089_v49 = vld [vmem:[%s11582_s21 + $0xa6c] sm:$0xf]  ;;  %v9236_v5 = vld [vmem:[%s11582_s21 + $0xa70] sm:$0xf] }
 0x23d   : > { %5828 = vmatmul.bf16.gmra.mxu1 %v9001_v25  ;;  %v12290_v42 = vadd.f32 %v5786_v0, %v5698_v43  ;;  %v11317_v25 = vld [vmem:[%s13939_s1 + $0x288] sm:$0xff] }
 0x23e   : > { %v5522_v50 = vpop.f32.mrf.mxu2  ;;  %5870 = vmatpush.bf16.msrb.mxu2 %v11317_v25 }
 0x23f   : > { %v5611_v16 = vpop.f32.mrf.mxu3  ;;  %v5523_v18 = vadd.f32 %v5522_v50, %v11981_v12  ;;  %v9113_v12 = vor.u32 %v11059_v22, %v9110_v14  ;;  %v11105_v22 = vld [vmem:[%s11582_s21 + $0xae4] sm:$0xf0]  ;;  %v11090_v14 = vld [vmem:[%s11582_s21 + $0xa74] sm:$0xf] }
 0x240   : > { %v5702_v24 = vpop.f32.mrf.mxu0 }
 0x241   : > { %v5612_v36 = vadd.f32 %v5611_v16, %v5523_v18 }
 0x242   : > { %v5791_v47 = vpop.f32.mrf.mxu1 }
 0x243   : > { %v5701_v58 = vadd.f32 %v5700_v33, %v5612_v36  ;;  %v9228_v36 = vld [vmem:[%s11582_s21 + $0xa68] sm:$0xf] }
 0x245   : > { %v12301_v19 = vadd.f32 %v5789_v31, %v5701_v58  ;;  %v11333_v58 = vld [vmem:[%s13939_s1 + $0x308] sm:$0xff] }
 0x246   : > { %v5524_v0 = vpop.f32.mrf.mxu2  ;;  %6048 = vmatpush.bf16.msrb.mxu0 %v11333_v58  ;;  %v11135_v58 = vld [vmem:[%s11582_s21 + $0xbd4] sm:$0xf0] }
 0x247   : > { %v5613_v34 = vpop.f32.mrf.mxu3  ;;  %v5525_v10 = vadd.f32 %v5524_v0, %v11990_v35  ;;  %v11325_v35 = vld [vmem:[%s13939_s1 + $0x2c8] sm:$0xff] }
 0x248   : > { %v5705_v60 = vpop.f32.mrf.mxu0  ;;  %5959 = vmatpush.bf16.msrb.mxu3 %v11325_v35 }
 0x249   : > { %v5614_v26 = vadd.f32 %v5613_v34, %v5525_v10  ;;  %v9237_v10 = vor.u32 %v11105_v22, %v9236_v5 }
 0x24a   : > { %v5794_v38 = vpop.f32.mrf.mxu1 }
 0x24b   : > { %v5703_v15 = vadd.f32 %v5702_v24, %v5614_v26  ;;  %5566 = vmatmul.bf16.gmra.mxu2 %v9109_v39  ;;  %5744 = vmatmul.bf16.gmra.mxu0 %v9117_v20  ;;  %v11104_v24 = vld [vmem:[%s11582_s21 + $0xadc] sm:$0xf0]  ;;  %v9241_v39 = vor.u32 %v11090_v14, %v9238_v27 }
 0x24c   : > { %5655 = vmatmul.bf16.gmra.mxu3 %v9113_v12  ;;  %v9229_v0 = vor.u32 %v11104_v24, %v9228_v36  ;;  %v9350_v36 = vld [vmem:[%s11582_s21 + $0xbd0] sm:$0xf0]  ;;  %v9356_v24 = vld [vmem:[%s11582_s21 + $0xb60] sm:$0xf] }
 0x24d   : > { %5833 = vmatmul.bf16.gmra.mxu1 %v9121_v17  ;;  %v12310_v11 = vadd.f32 %v5791_v47, %v5703_v15  ;;  %v9230_v47 = vld [vmem:[%s11582_s21 + $0xae0] sm:$0xf0] }
 0x24e   : > { %v5527_v33 = vpop.f32.mrf.mxu2  ;;  %v9233_v34 = vor.u32 %v11089_v49, %v9230_v47  ;;  %v11120_v49 = vld [vmem:[%s11582_s21 + $0xb64] sm:$0xf]  ;;  %v9358_v47 = vld [vmem:[%s11582_s21 + $0xbd8] sm:$0xf0] }
 0x24f   : > { %v5616_v31 = vpop.f32.mrf.mxu3  ;;  %v5528_v43 = vadd.f32 %v5527_v33, %v12004_v7 }
 0x250   : > { %v5707_v50 = vpop.f32.mrf.mxu0 }
 0x251   : > { %v5617_v4 = vadd.f32 %v5616_v31, %v5528_v43 }
 0x252   : > { %v5796_v16 = vpop.f32.mrf.mxu1 }
 0x253   : > { %v5706_v18 = vadd.f32 %v5705_v60, %v5617_v4  ;;  %v11341_v60 = vld [vmem:[%s13939_s1 + $0x348] sm:$0xff]  ;;  %v9348_v4 = vld [vmem:[%s11582_s21 + $0xb58] sm:$0xf] }
 0x254   : > { %6137 = vmatpush.bf16.msrb.mxu1 %v11341_v60 }
 0x255   : > { %v12324_v8 = vadd.f32 %v5794_v38, %v5706_v18  ;;  %v11119_v18 = vld [vmem:[%s11582_s21 + $0xb5c] sm:$0xf] }
 0x256   : > { %v5529_v7 = vpop.f32.mrf.mxu2 }
 0x257   : > { %v5618_v3 = vpop.f32.mrf.mxu3  ;;  %v5530_v63 = vadd.f32 %v5529_v7, %v12010_v30  ;;  %v9357_v7 = vor.u32 %v11135_v58, %v9356_v24  ;;  %v9478_v24 = vld [vmem:[%s11582_s21 + $0xcc8] sm:$0xf0] }
 0x258   : > { %v5710_v20 = vpop.f32.mrf.mxu0 }
 0x259   : > { %v5619_v12 = vadd.f32 %v5618_v3, %v5530_v63  ;;  %v9361_v3 = vor.u32 %v11120_v49, %v9358_v47 }
 0x25a   : > { %v5799_v17 = vpop.f32.mrf.mxu1 }
 0x25b   : > { %v5708_v26 = vadd.f32 %v5707_v50, %v5619_v12  ;;  %5571 = vmatmul.bf16.gmra.mxu2 %v9229_v0  ;;  %5749 = vmatmul.bf16.gmra.mxu0 %v9237_v10  ;;  %v11134_v50 = vld [vmem:[%s11582_s21 + $0xbcc] sm:$0xf0] }
 0x25c   : > { %5660 = vmatmul.bf16.gmra.mxu3 %v9233_v34  ;;  %v9349_v27 = vor.u32 %v11134_v50, %v9348_v4  ;;  %v11149_v4 = vld [vmem:[%s11582_s21 + $0xc4c] sm:$0xf]  ;;  %v9476_v50 = vld [vmem:[%s11582_s21 + $0xc50] sm:$0xf] }
 0x25d   : > { %5838 = vmatmul.bf16.gmra.mxu1 %v9241_v39  ;;  %v12330_v30 = vadd.f32 %v5796_v16, %v5708_v26  ;;  %v11316_v39 = vld [vmem:[%s13939_s1 + $0x280] sm:$0xff] }
 0x25e   : > { %v5532_v38 = vpop.f32.mrf.mxu2  ;;  %5871 = vmatpush.bf16.msrb.mxu2 %v11316_v39 }
 0x25f   : > { %v5621_v15 = vpop.f32.mrf.mxu3  ;;  %v5533_v25 = vadd.f32 %v5532_v38, %v12021_v61  ;;  %v9353_v61 = vor.u32 %v11119_v18, %v9350_v36  ;;  %v11165_v18 = vld [vmem:[%s11582_s21 + $0xcc4] sm:$0xf0]  ;;  %v11150_v36 = vld [vmem:[%s11582_s21 + $0xc54] sm:$0xf] }
 0x260   : > { %v5712_v33 = vpop.f32.mrf.mxu0 }
 0x261   : > { %v5622_v35 = vadd.f32 %v5621_v15, %v5533_v25 }
 0x262   : > { %v5801_v31 = vpop.f32.mrf.mxu1 }
 0x263   : > { %v5711_v43 = vadd.f32 %v5710_v20, %v5622_v35  ;;  %v9468_v35 = vld [vmem:[%s11582_s21 + $0xc48] sm:$0xf] }
 0x265   : > { %v12341_v5 = vadd.f32 %v5799_v17, %v5711_v43  ;;  %v11332_v43 = vld [vmem:[%s13939_s1 + $0x300] sm:$0xff] }
 0x266   : > { %v5534_v16 = vpop.f32.mrf.mxu2  ;;  %6049 = vmatpush.bf16.msrb.mxu0 %v11332_v43  ;;  %v11195_v43 = vld [vmem:[%s11582_s21 + $0xdb4] sm:$0xf0] }
 0x267   : > { %v5623_v22 = vpop.f32.mrf.mxu3  ;;  %v5535_v14 = vadd.f32 %v5534_v16, %v12030_v62  ;;  %v11324_v62 = vld [vmem:[%s13939_s1 + $0x2c0] sm:$0xff] }
 0x268   : > { %v5715_v0 = vpop.f32.mrf.mxu0  ;;  %5960 = vmatpush.bf16.msrb.mxu3 %v11324_v62 }
 0x269   : > { %v5624_v63 = vadd.f32 %v5623_v22, %v5535_v14  ;;  %v9477_v14 = vor.u32 %v11165_v18, %v9476_v50 }
 0x26a   : > { %v5804_v34 = vpop.f32.mrf.mxu1 }
 0x26b   : > { %v5713_v10 = vadd.f32 %v5712_v33, %v5624_v63  ;;  %5576 = vmatmul.bf16.gmra.mxu2 %v9349_v27  ;;  %5754 = vmatmul.bf16.gmra.mxu0 %v9357_v7  ;;  %v11164_v33 = vld [vmem:[%s11582_s21 + $0xcbc] sm:$0xf0]  ;;  %v9481_v27 = vor.u32 %v11150_v36, %v9478_v24 }
 0x26c   : > { %5665 = vmatmul.bf16.gmra.mxu3 %v9353_v61  ;;  %v9469_v16 = vor.u32 %v11164_v33, %v9468_v35  ;;  %v9590_v35 = vld [vmem:[%s11582_s21 + $0xdb0] sm:$0xf0]  ;;  %v9596_v33 = vld [vmem:[%s11582_s21 + $0xd40] sm:$0xf] }
 0x26d   : > { %5843 = vmatmul.bf16.gmra.mxu1 %v9361_v3  ;;  %v12350_v12 = vadd.f32 %v5801_v31, %v5713_v10  ;;  %v9470_v31 = vld [vmem:[%s11582_s21 + $0xcc0] sm:$0xf0] }
 0x26e   : > { %v5537_v20 = vpop.f32.mrf.mxu2  ;;  %v9473_v22 = vor.u32 %v11149_v4, %v9470_v31  ;;  %v11180_v4 = vld [vmem:[%s11582_s21 + $0xd44] sm:$0xf]  ;;  %v9598_v31 = vld [vmem:[%s11582_s21 + $0xdb8] sm:$0xf0] }
 0x26f   : > { %v5626_v17 = vpop.f32.mrf.mxu3  ;;  %v5538_v26 = vadd.f32 %v5537_v20, %v12044_v52 }
 0x270   : > { %v5717_v38 = vpop.f32.mrf.mxu0 }
 0x271   : > { %v5627_v60 = vadd.f32 %v5626_v17, %v5538_v26 }
 0x272   : > { %v5806_v15 = vpop.f32.mrf.mxu1 }
 0x273   : > { %v5716_v25 = vadd.f32 %v5715_v0, %v5627_v60  ;;  %v11340_v0 = vld [vmem:[%s13939_s1 + $0x340] sm:$0xff]  ;;  %v9588_v60 = vld [vmem:[%s11582_s21 + $0xd38] sm:$0xf] }
 0x274   : > { %6138 = vmatpush.bf16.msrb.mxu1 %v11340_v0 }
 0x275   : > { %v12364_v58 = vadd.f32 %v5804_v34, %v5716_v25  ;;  %v11179_v25 = vld [vmem:[%s11582_s21 + $0xd3c] sm:$0xf] }
 0x276   : > { %v5539_v52 = vpop.f32.mrf.mxu2 }
 0x277   : > { %v5628_v49 = vpop.f32.mrf.mxu3  ;;  %v5540_v47 = vadd.f32 %v5539_v52, %v12050_v28  ;;  %v9597_v52 = vor.u32 %v11195_v43, %v9596_v33  ;;  %v9718_v33 = vld [vmem:[%s11582_s21 + $0xea8] sm:$0xf0] }
 0x278   : > { %v5720_v7 = vpop.f32.mrf.mxu0 }
 0x279   : > { %v5629_v61 = vadd.f32 %v5628_v49, %v5540_v47  ;;  %v9601_v49 = vor.u32 %v11180_v4, %v9598_v31 }
 0x27a   : > { %v5809_v3 = vpop.f32.mrf.mxu1 }
 0x27b   : > { %v5718_v63 = vadd.f32 %v5717_v38, %v5629_v61  ;;  %5581 = vmatmul.bf16.gmra.mxu2 %v9469_v16  ;;  %5759 = vmatmul.bf16.gmra.mxu0 %v9477_v14  ;;  %v11194_v38 = vld [vmem:[%s11582_s21 + $0xdac] sm:$0xf0] }
 0x27c   : > { %5670 = vmatmul.bf16.gmra.mxu3 %v9473_v22  ;;  %v9589_v24 = vor.u32 %v11194_v38, %v9588_v60  ;;  %v11209_v60 = vld [vmem:[%s11582_s21 + $0xe2c] sm:$0xf]  ;;  %v9716_v38 = vld [vmem:[%s11582_s21 + $0xe30] sm:$0xf] }
 0x27d   : > { %5848 = vmatmul.bf16.gmra.mxu1 %v9481_v27  ;;  %v12370_v28 = vadd.f32 %v5806_v15, %v5718_v63  ;;  %v11355_v27 = vld [vmem:[%s13939_s1 + $0x3b8] sm:$0xff] }
 0x27e   : > { %v5542_v34 = vpop.f32.mrf.mxu2  ;;  %6220 = vmatpush.bf16.msra.mxu2 %v11355_v27 }
 0x27f   : > { %v5631_v10 = vpop.f32.mrf.mxu3  ;;  %v5543_v39 = vadd.f32 %v5542_v34, %v12061_v46  ;;  %v9593_v46 = vor.u32 %v11179_v25, %v9590_v35  ;;  %v11225_v25 = vld [vmem:[%s11582_s21 + $0xea4] sm:$0xf0]  ;;  %v11210_v35 = vld [vmem:[%s11582_s21 + $0xe34] sm:$0xf] }
 0x280   : > { %v5722_v20 = vpop.f32.mrf.mxu0 }
 0x281   : > { %v5632_v62 = vadd.f32 %v5631_v10, %v5543_v39 }
 0x282   : > { %v5811_v17 = vpop.f32.mrf.mxu1 }
 0x283   : > { %v5721_v26 = vadd.f32 %v5720_v7, %v5632_v62  ;;  %v9708_v62 = vld [vmem:[%s11582_s21 + $0xe28] sm:$0xf] }
 0x285   : > { %v12381_v50 = vadd.f32 %v5809_v3, %v5721_v26  ;;  %v11371_v26 = vld [vmem:[%s13939_s1 + $0x438] sm:$0xff] }
 0x286   : > { %v5544_v15 = vpop.f32.mrf.mxu2  ;;  %6398 = vmatpush.bf16.msra.mxu0 %v11371_v26  ;;  %v10777_v26 = vld [vmem:[%s11582_s21 + $0xa4] sm:$0xf0] }
 0x287   : > { %v5633_v18 = vpop.f32.mrf.mxu3  ;;  %v5545_v36 = vadd.f32 %v5544_v15, %v12070_v53  ;;  %v11363_v53 = vld [vmem:[%s13939_s1 + $0x3f8] sm:$0xff] }
 0x288   : > { %v5725_v16 = vpop.f32.mrf.mxu0  ;;  %6309 = vmatpush.bf16.msra.mxu3 %v11363_v53 }
 0x289   : > { %v5634_v47 = vadd.f32 %v5633_v18, %v5545_v36  ;;  %v9717_v36 = vor.u32 %v11225_v25, %v9716_v38 }
 0x28a   : > { %v5814_v22 = vpop.f32.mrf.mxu1 }
 0x28b   : > { %v5723_v14 = vadd.f32 %v5722_v20, %v5634_v47  ;;  %5586 = vmatmul.bf16.gmra.mxu2 %v9589_v24  ;;  %5764 = vmatmul.bf16.gmra.mxu0 %v9597_v52  ;;  %v11224_v20 = vld [vmem:[%s11582_s21 + $0xe9c] sm:$0xf0]  ;;  %v9721_v24 = vor.u32 %v11210_v35, %v9718_v33 }
 0x28c   : > { %5675 = vmatmul.bf16.gmra.mxu3 %v9593_v46  ;;  %v9709_v15 = vor.u32 %v11224_v20, %v9708_v62  ;;  %v7926_v62 = vld [vmem:[%s11582_s21 + $0xa0] sm:$0xf0]  ;;  %v7932_v20 = vld [vmem:[%s11582_s21 + $0x30] sm:$0xf] }
 0x28d   : > { %5853 = vmatmul.bf16.gmra.mxu1 %v9601_v49  ;;  %v12390_v61 = vadd.f32 %v5811_v17, %v5723_v14  ;;  %v9710_v17 = vld [vmem:[%s11582_s21 + $0xea0] sm:$0xf0] }
 0x28e   : > { %v5547_v7 = vpop.f32.mrf.mxu2  ;;  %v9713_v18 = vor.u32 %v11209_v60, %v9710_v17  ;;  %v10762_v60 = vld [vmem:[%s11582_s21 + $0x34] sm:$0xf]  ;;  %v7934_v17 = vld [vmem:[%s11582_s21 + $0xa8] sm:$0xf0] }
 0x28f   : > { %v5636_v3 = vpop.f32.mrf.mxu3  ;;  %v5548_v63 = vadd.f32 %v5547_v7, %v12084_v41 }
 0x290   : > { %v5727_v34 = vpop.f32.mrf.mxu0 }
 0x291   : > { %v5637_v0 = vadd.f32 %v5636_v3, %v5548_v63 }
 0x292   : > { %v5816_v10 = vpop.f32.mrf.mxu1 }
 0x293   : > { %v5726_v39 = vadd.f32 %v5725_v16, %v5637_v0  ;;  %v11379_v16 = vld [vmem:[%s13939_s1 + $0x478] sm:$0xff]  ;;  %v7924_v0 = vld [vmem:[%s11582_s21 + $0x28] sm:$0xf] }
 0x294   : > { %6487 = vmatpush.bf16.msra.mxu1 %v11379_v16 }
 0x295   : > { %v12404_v43 = vadd.f32 %v5814_v22, %v5726_v39  ;;  %v10761_v39 = vld [vmem:[%s11582_s21 + $0x2c] sm:$0xf] }
 0x296   : > { %v5549_v41 = vpop.f32.mrf.mxu2 }
 0x297   : > { %v5638_v4 = vpop.f32.mrf.mxu3  ;;  %v5550_v31 = vadd.f32 %v5549_v41, %v12090_v37  ;;  %v7933_v41 = vor.u32 %v10777_v26, %v7932_v20  ;;  %v8054_v20 = vld [vmem:[%s11582_s21 + $0x198] sm:$0xf0] }
 0x298   : > { %v5730_v52 = vpop.f32.mrf.mxu0 }
 0x299   : > { %v5639_v46 = vadd.f32 %v5638_v4, %v5550_v31  ;;  %v7937_v4 = vor.u32 %v10762_v60, %v7934_v17 }
 0x29a   : > { %v5819_v49 = vpop.f32.mrf.mxu1 }
 0x29b   : > { %v5728_v47 = vadd.f32 %v5727_v34, %v5639_v46  ;;  %5591 = vmatmul.bf16.gmra.mxu2 %v9709_v15  ;;  %5769 = vmatmul.bf16.gmra.mxu0 %v9717_v36  ;;  %v10776_v34 = vld [vmem:[%s11582_s21 + $0x9c] sm:$0xf0] }
 0x29c   : > { %5680 = vmatmul.bf16.gmra.mxu3 %v9713_v18  ;;  %v7925_v33 = vor.u32 %v10776_v34, %v7924_v0  ;;  %v10791_v0 = vld [vmem:[%s11582_s21 + $0x11c] sm:$0xf]  ;;  %v8052_v34 = vld [vmem:[%s11582_s21 + $0x120] sm:$0xf] }
 0x29d   : > { %5858 = vmatmul.bf16.gmra.mxu1 %v9721_v24  ;;  %v12410_v37 = vadd.f32 %v5816_v10, %v5728_v47  ;;  %v11354_v24 = vld [vmem:[%s13939_s1 + $0x3b0] sm:$0xff] }
 0x29e   : > { %v5552_v22 = vpop.f32.mrf.mxu2  ;;  %6221 = vmatpush.bf16.msra.mxu2 %v11354_v24 }
 0x29f   : > { %v5641_v14 = vpop.f32.mrf.mxu3  ;;  %v5553_v27 = vadd.f32 %v5552_v22, %v12101_v29  ;;  %v7929_v29 = vor.u32 %v10761_v39, %v7926_v62  ;;  %v10807_v39 = vld [vmem:[%s11582_s21 + $0x194] sm:$0xf0]  ;;  %v10792_v62 = vld [vmem:[%s11582_s21 + $0x124] sm:$0xf] }
 0x2a0   : > { %v5732_v7 = vpop.f32.mrf.mxu0 }
 0x2a1   : > { %v5642_v53 = vadd.f32 %v5641_v14, %v5553_v27 }
 0x2a2   : > { %v5821_v3 = vpop.f32.mrf.mxu1 }
 0x2a3   : > { %v5731_v63 = vadd.f32 %v5730_v52, %v5642_v53  ;;  %v8044_v53 = vld [vmem:[%s11582_s21 + $0x118] sm:$0xf] }
 0x2a5   : > { %v12421_v38 = vadd.f32 %v5819_v49, %v5731_v63  ;;  %v11370_v63 = vld [vmem:[%s13939_s1 + $0x430] sm:$0xff] }
 0x2a6   : > { %v5554_v10 = vpop.f32.mrf.mxu2  ;;  %6399 = vmatpush.bf16.msra.mxu0 %v11370_v63  ;;  %v10837_v63 = vld [vmem:[%s11582_s21 + $0x284] sm:$0xf0] }
 0x2a7   : > { %v5643_v25 = vpop.f32.mrf.mxu3  ;;  %v5555_v35 = vadd.f32 %v5554_v10, %v12110_v55  ;;  %v11362_v55 = vld [vmem:[%s13939_s1 + $0x3f0] sm:$0xff] }
 0x2a8   : > { %v5735_v15 = vpop.f32.mrf.mxu0  ;;  %6310 = vmatpush.bf16.msra.mxu3 %v11362_v55 }
 0x2a9   : > { %v5644_v31 = vadd.f32 %v5643_v25, %v5555_v35  ;;  %v8053_v35 = vor.u32 %v10807_v39, %v8052_v34 }
 0x2aa   : > { %v5824_v18 = vpop.f32.mrf.mxu1 }
 0x2ab   : > { %v5733_v36 = vadd.f32 %v5732_v7, %v5644_v31  ;;  %5872 = vmatmul.bf16.vlgmr.msrb.gmra.mxu2 %v7925_v33  ;;  %6050 = vmatmul.bf16.vlgmr.msrb.gmra.mxu0 %v7933_v41  ;;  %v10806_v7 = vld [vmem:[%s11582_s21 + $0x18c] sm:$0xf0]  ;;  %v8057_v33 = vor.u32 %v10792_v62, %v8054_v20 }
 0x2ac   : > { %5961 = vmatmul.bf16.vlgmr.msrb.gmra.mxu3 %v7929_v29  ;;  %v8045_v10 = vor.u32 %v10806_v7, %v8044_v53  ;;  %v8166_v53 = vld [vmem:[%s11582_s21 + $0x280] sm:$0xf0]  ;;  %v8172_v7 = vld [vmem:[%s11582_s21 + $0x210] sm:$0xf] }
 0x2ad   : > { %6139 = vmatmul.bf16.vlgmr.msrb.gmra.mxu1 %v7937_v4  ;;  %v12430_v46 = vadd.f32 %v5821_v3, %v5733_v36  ;;  %v8046_v3 = vld [vmem:[%s11582_s21 + $0x190] sm:$0xf0] }
 0x2ae   : > { %v5557_v52 = vpop.f32.mrf.mxu2  ;;  %v8049_v25 = vor.u32 %v10791_v0, %v8046_v3  ;;  %v10822_v0 = vld [vmem:[%s11582_s21 + $0x214] sm:$0xf]  ;;  %v8174_v3 = vld [vmem:[%s11582_s21 + $0x288] sm:$0xf0] }
 0x2af   : > { %v5646_v49 = vpop.f32.mrf.mxu3  ;;  %v5558_v47 = vadd.f32 %v5557_v52, %v12124_v23 }
 0x2b0   : > { %v5737_v22 = vpop.f32.mrf.mxu0 }
 0x2b1   : > { %v5647_v16 = vadd.f32 %v5646_v49, %v5558_v47 }
 0x2b2   : > { %v5826_v14 = vpop.f32.mrf.mxu1 }
 0x2b3   : > { %v5736_v27 = vadd.f32 %v5735_v15, %v5647_v16  ;;  %v11378_v15 = vld [vmem:[%s13939_s1 + $0x470] sm:$0xff]  ;;  %v8164_v16 = vld [vmem:[%s11582_s21 + $0x208] sm:$0xf] }
 0x2b4   : > { %6488 = vmatpush.bf16.msra.mxu1 %v11378_v15 }
 0x2b5   : > { %v12444_v26 = vadd.f32 %v5824_v18, %v5736_v27  ;;  %v10821_v27 = vld [vmem:[%s11582_s21 + $0x20c] sm:$0xf] }
 0x2b6   : > { %v5559_v23 = vpop.f32.mrf.mxu2 }
 0x2b7   : > { %v5648_v60 = vpop.f32.mrf.mxu3  ;;  %v5560_v17 = vadd.f32 %v5559_v23, %v12130_v54  ;;  %v8173_v23 = vor.u32 %v10837_v63, %v8172_v7  ;;  %v8294_v7 = vld [vmem:[%s11582_s21 + $0x378] sm:$0xf0] }
 0x2b8   : > { %v5740_v41 = vpop.f32.mrf.mxu0 }
 0x2b9   : > { %v5649_v29 = vadd.f32 %v5648_v60, %v5560_v17  ;;  %v8177_v60 = vor.u32 %v10822_v0, %v8174_v3 }
 0x2ba   : > { %v5829_v4 = vpop.f32.mrf.mxu1 }
 0x2bb   : > { %v5738_v31 = vadd.f32 %v5737_v22, %v5649_v29  ;;  %5877 = vmatmul.bf16.gmra.mxu2 %v8045_v10  ;;  %6055 = vmatmul.bf16.gmra.mxu0 %v8053_v35  ;;  %v10836_v22 = vld [vmem:[%s11582_s21 + $0x27c] sm:$0xf0] }
 0x2bc   : > { %5966 = vmatmul.bf16.gmra.mxu3 %v8049_v25  ;;  %v8165_v20 = vor.u32 %v10836_v22, %v8164_v16  ;;  %v10851_v16 = vld [vmem:[%s11582_s21 + $0x2fc] sm:$0xf]  ;;  %v8292_v22 = vld [vmem:[%s11582_s21 + $0x300] sm:$0xf] }
 0x2bd   : > { %6144 = vmatmul.bf16.gmra.mxu1 %v8057_v33  ;;  %v12450_v54 = vadd.f32 %v5826_v14, %v5738_v31  ;;  %v11353_v33 = vld [vmem:[%s13939_s1 + $0x3a8] sm:$0xff] }
 0x2be   : > { %v5562_v18 = vpop.f32.mrf.mxu2  ;;  %6222 = vmatpush.bf16.msra.mxu2 %v11353_v33 }
 0x2bf   : > { %v5651_v36 = vpop.f32.mrf.mxu3  ;;  %v5563_v24 = vadd.f32 %v5562_v18, %v12141_v13  ;;  %v8169_v13 = vor.u32 %v10821_v27, %v8166_v53  ;;  %v10867_v27 = vld [vmem:[%s11582_s21 + $0x374] sm:$0xf0]  ;;  %v10852_v53 = vld [vmem:[%s11582_s21 + $0x304] sm:$0xf] }
 0x2c0   : > { %v5742_v52 = vpop.f32.mrf.mxu0 }
 0x2c1   : > { %v5652_v55 = vadd.f32 %v5651_v36, %v5563_v24 }
 0x2c2   : > { %v5831_v49 = vpop.f32.mrf.mxu1 }
 0x2c3   : > { %v5741_v47 = vadd.f32 %v5740_v41, %v5652_v55  ;;  %v8284_v55 = vld [vmem:[%s11582_s21 + $0x2f8] sm:$0xf] }
 0x2c5   : > { %v12461_v34 = vadd.f32 %v5829_v4, %v5741_v47  ;;  %v11369_v47 = vld [vmem:[%s13939_s1 + $0x428] sm:$0xff] }
 0x2c6   : > { %v5564_v14 = vpop.f32.mrf.mxu2  ;;  %6400 = vmatpush.bf16.msra.mxu0 %v11369_v47  ;;  %v10897_v47 = vld [vmem:[%s11582_s21 + $0x464] sm:$0xf0] }
 0x2c7   : > { %v5653_v39 = vpop.f32.mrf.mxu3  ;;  %v5565_v62 = vadd.f32 %v5564_v14, %v12150_v6  ;;  %v11361_v6 = vld [vmem:[%s13939_s1 + $0x3e8] sm:$0xff] }
 0x2c8   : > { %v5745_v10 = vpop.f32.mrf.mxu0  ;;  %6311 = vmatpush.bf16.msra.mxu3 %v11361_v6 }
 0x2c9   : > { %v5654_v17 = vadd.f32 %v5653_v39, %v5565_v62  ;;  %v8293_v62 = vor.u32 %v10867_v27, %v8292_v22 }
 0x2ca   : > { %v5834_v25 = vpop.f32.mrf.mxu1 }
 0x2cb   : > { %v5743_v35 = vadd.f32 %v5742_v52, %v5654_v17  ;;  %5882 = vmatmul.bf16.gmra.mxu2 %v8165_v20  ;;  %6060 = vmatmul.bf16.gmra.mxu0 %v8173_v23  ;;  %v10866_v52 = vld [vmem:[%s11582_s21 + $0x36c] sm:$0xf0]  ;;  %v8297_v20 = vor.u32 %v10852_v53, %v8294_v7 }
 0x2cc   : > { %5971 = vmatmul.bf16.gmra.mxu3 %v8169_v13  ;;  %v8285_v14 = vor.u32 %v10866_v52, %v8284_v55  ;;  %v8406_v55 = vld [vmem:[%s11582_s21 + $0x460] sm:$0xf0]  ;;  %v8412_v52 = vld [vmem:[%s11582_s21 + $0x3f0] sm:$0xf] }
 0x2cd   : > { %6149 = vmatmul.bf16.gmra.mxu1 %v8177_v60  ;;  %v12470_v29 = vadd.f32 %v5831_v49, %v5743_v35  ;;  %v8286_v49 = vld [vmem:[%s11582_s21 + $0x370] sm:$0xf0] }
 0x2ce   : > { %v5567_v41 = vpop.f32.mrf.mxu2  ;;  %v8289_v39 = vor.u32 %v10851_v16, %v8286_v49  ;;  %v10882_v16 = vld [vmem:[%s11582_s21 + $0x3f4] sm:$0xf]  ;;  %v8414_v49 = vld [vmem:[%s11582_s21 + $0x468] sm:$0xf0] }
 0x2cf   : > { %v5656_v4 = vpop.f32.mrf.mxu3  ;;  %v5568_v31 = vadd.f32 %v5567_v41, %v12164_v9 }
 0x2d0   : > { %v5747_v18 = vpop.f32.mrf.mxu0 }
 0x2d1   : > { %v5657_v15 = vadd.f32 %v5656_v4, %v5568_v31 }
 0x2d2   : > { %v5836_v36 = vpop.f32.mrf.mxu1 }
 0x2d3   : > { %v5746_v24 = vadd.f32 %v5745_v10, %v5657_v15  ;;  %v11377_v10 = vld [vmem:[%s13939_s1 + $0x468] sm:$0xff] }
 0x2d4   : > { %6489 = vmatpush.bf16.msra.mxu1 %v11377_v10  ;;  %v8404_v15 = vld [vmem:[%s11582_s21 + $0x3e8] sm:$0xf] }
 0x2d5   : > { %v12484_v63 = vadd.f32 %v5834_v25, %v5746_v24  ;;  %v10881_v24 = vld [vmem:[%s11582_s21 + $0x3ec] sm:$0xf] }
 0x2d6   : > { %v5569_v9 = vpop.f32.mrf.mxu2 }
 0x2d7   : > { %v5658_v0 = vpop.f32.mrf.mxu3  ;;  %v5570_v3 = vadd.f32 %v5569_v9, %v12170_v45  ;;  %v8413_v9 = vor.u32 %v10897_v47, %v8412_v52  ;;  %v8534_v52 = vld [vmem:[%s11582_s21 + $0x558] sm:$0xf0] }
 0x2d8   : > { %v5750_v23 = vpop.f32.mrf.mxu0 }
 0x2d9   : > { %v5659_v13 = vadd.f32 %v5658_v0, %v5570_v3  ;;  %v8417_v0 = vor.u32 %v10882_v16, %v8414_v49 }
 0x2da   : > { %v5839_v60 = vpop.f32.mrf.mxu1 }
 0x2db   : > { %v5748_v17 = vadd.f32 %v5747_v18, %v5659_v13  ;;  %5887 = vmatmul.bf16.gmra.mxu2 %v8285_v14  ;;  %6065 = vmatmul.bf16.gmra.mxu0 %v8293_v62  ;;  %v10896_v18 = vld [vmem:[%s11582_s21 + $0x45c] sm:$0xf0] }
 0x2dc   : > { %5976 = vmatmul.bf16.gmra.mxu3 %v8289_v39  ;;  %v8405_v7 = vor.u32 %v10896_v18, %v8404_v15  ;;  %v10911_v15 = vld [vmem:[%s11582_s21 + $0x4dc] sm:$0xf]  ;;  %v8532_v18 = vld [vmem:[%s11582_s21 + $0x4e0] sm:$0xf] }
 0x2dd   : > { %6154 = vmatmul.bf16.gmra.mxu1 %v8297_v20  ;;  %v12490_v45 = vadd.f32 %v5836_v36, %v5748_v17  ;;  %v11352_v20 = vld [vmem:[%s13939_s1 + $0x3a0] sm:$0xff] }
 0x2de   : > { %v5572_v25 = vpop.f32.mrf.mxu2  ;;  %6223 = vmatpush.bf16.msra.mxu2 %v11352_v20 }
 0x2df   : > { %v5661_v35 = vpop.f32.mrf.mxu3  ;;  %v5573_v33 = vadd.f32 %v5572_v25, %v12181_v2  ;;  %v8409_v2 = vor.u32 %v10881_v24, %v8406_v55  ;;  %v10927_v24 = vld [vmem:[%s11582_s21 + $0x554] sm:$0xf0]  ;;  %v10912_v55 = vld [vmem:[%s11582_s21 + $0x4e4] sm:$0xf] }
 0x2e0   : > { %v5752_v41 = vpop.f32.mrf.mxu0 }
 0x2e1   : > { %v5662_v6 = vadd.f32 %v5661_v35, %v5573_v33 }
 0x2e2   : > { %v5841_v4 = vpop.f32.mrf.mxu1 }
 0x2e3   : > { %v5751_v31 = vadd.f32 %v5750_v23, %v5662_v6  ;;  %v8524_v6 = vld [vmem:[%s11582_s21 + $0x4d8] sm:$0xf] }
 0x2e5   : > { %v12501_v22 = vadd.f32 %v5839_v60, %v5751_v31  ;;  %v11368_v31 = vld [vmem:[%s13939_s1 + $0x420] sm:$0xff] }
 0x2e6   : > { %v5574_v36 = vpop.f32.mrf.mxu2  ;;  %6401 = vmatpush.bf16.msra.mxu0 %v11368_v31  ;;  %v10957_v31 = vld [vmem:[%s11582_s21 + $0x644] sm:$0xf0] }
 0x2e7   : > { %v5663_v27 = vpop.f32.mrf.mxu3  ;;  %v5575_v53 = vadd.f32 %v5574_v36, %v12190_v1  ;;  %v11360_v1 = vld [vmem:[%s13939_s1 + $0x3e0] sm:$0xff] }
 0x2e8   : > { %v5755_v14 = vpop.f32.mrf.mxu0  ;;  %6312 = vmatpush.bf16.msra.mxu3 %v11360_v1 }
 0x2e9   : > { %v5664_v3 = vadd.f32 %v5663_v27, %v5575_v53  ;;  %v8533_v53 = vor.u32 %v10927_v24, %v8532_v18 }
 0x2ea   : > { %v5844_v39 = vpop.f32.mrf.mxu1 }
 0x2eb   : > { %v5753_v62 = vadd.f32 %v5752_v41, %v5664_v3  ;;  %5892 = vmatmul.bf16.gmra.mxu2 %v8405_v7  ;;  %6070 = vmatmul.bf16.gmra.mxu0 %v8413_v9  ;;  %v10926_v41 = vld [vmem:[%s11582_s21 + $0x54c] sm:$0xf0]  ;;  %v8537_v7 = vor.u32 %v10912_v55, %v8534_v52 }
 0x2ec   : > { %5981 = vmatmul.bf16.gmra.mxu3 %v8409_v2  ;;  %v8525_v36 = vor.u32 %v10926_v41, %v8524_v6  ;;  %v8646_v6 = vld [vmem:[%s11582_s21 + $0x640] sm:$0xf0]  ;;  %v8652_v41 = vld [vmem:[%s11582_s21 + $0x5d0] sm:$0xf] }
 0x2ed   : > { %6159 = vmatmul.bf16.gmra.mxu1 %v8417_v0  ;;  %v12510_v13 = vadd.f32 %v5841_v4, %v5753_v62  ;;  %v8526_v4 = vld [vmem:[%s11582_s21 + $0x550] sm:$0xf0] }
 0x2ee   : > { %v5577_v23 = vpop.f32.mrf.mxu2  ;;  %v8529_v27 = vor.u32 %v10911_v15, %v8526_v4  ;;  %v10942_v15 = vld [vmem:[%s11582_s21 + $0x5d4] sm:$0xf]  ;;  %v8654_v4 = vld [vmem:[%s11582_s21 + $0x648] sm:$0xf0] }
 0x2ef   : > { %v5666_v60 = vpop.f32.mrf.mxu3  ;;  %v5578_v17 = vadd.f32 %v5577_v23, %v12204_v51 }
 0x2f0   : > { %v5757_v25 = vpop.f32.mrf.mxu0 }
 0x2f1   : > { %v5667_v10 = vadd.f32 %v5666_v60, %v5578_v17 }
 0x2f2   : > { %v5846_v35 = vpop.f32.mrf.mxu1 }
 0x2f3   : > { %v5756_v33 = vadd.f32 %v5755_v14, %v5667_v10  ;;  %v11376_v14 = vld [vmem:[%s13939_s1 + $0x460] sm:$0xff]  ;;  %v8644_v10 = vld [vmem:[%s11582_s21 + $0x5c8] sm:$0xf] }
 0x2f4   : > { %6490 = vmatpush.bf16.msra.mxu1 %v11376_v14 }
 0x2f5   : > { %v12524_v47 = vadd.f32 %v5844_v39, %v5756_v33  ;;  %v10941_v33 = vld [vmem:[%s11582_s21 + $0x5cc] sm:$0xf] }
 0x2f6   : > { %v5579_v51 = vpop.f32.mrf.mxu2 }
 0x2f7   : > { %v5668_v16 = vpop.f32.mrf.mxu3  ;;  %v5580_v49 = vadd.f32 %v5579_v51, %v12210_v44  ;;  %v8653_v51 = vor.u32 %v10957_v31, %v8652_v41  ;;  %v8774_v41 = vld [vmem:[%s11582_s21 + $0x738] sm:$0xf0] }
 0x2f8   : > { %v5760_v9 = vpop.f32.mrf.mxu0 }
 0x2f9   : > { %v5669_v2 = vadd.f32 %v5668_v16, %v5580_v49  ;;  %v8657_v16 = vor.u32 %v10942_v15, %v8654_v4 }
 0x2fa   : > { %v5849_v0 = vpop.f32.mrf.mxu1 }
 0x2fb   : > { %v5758_v3 = vadd.f32 %v5757_v25, %v5669_v2  ;;  %5897 = vmatmul.bf16.gmra.mxu2 %v8525_v36  ;;  %6075 = vmatmul.bf16.gmra.mxu0 %v8533_v53  ;;  %v10956_v25 = vld [vmem:[%s11582_s21 + $0x63c] sm:$0xf0] }
 0x2fc   : > { %5986 = vmatmul.bf16.gmra.mxu3 %v8529_v27  ;;  %v8645_v52 = vor.u32 %v10956_v25, %v8644_v10  ;;  %v10971_v10 = vld [vmem:[%s11582_s21 + $0x6bc] sm:$0xf]  ;;  %v8772_v25 = vld [vmem:[%s11582_s21 + $0x6c0] sm:$0xf] }
 0x2fd   : > { %6164 = vmatmul.bf16.gmra.mxu1 %v8537_v7  ;;  %v12530_v44 = vadd.f32 %v5846_v35, %v5758_v3  ;;  %v11351_v7 = vld [vmem:[%s13939_s1 + $0x398] sm:$0xff] }
 0x2fe   : > { %v5582_v39 = vpop.f32.mrf.mxu2  ;;  %6224 = vmatpush.bf16.msra.mxu2 %v11351_v7 }
 0x2ff   : > { %v5671_v62 = vpop.f32.mrf.mxu3  ;;  %v5583_v20 = vadd.f32 %v5582_v39, %v12221_v48  ;;  %v8649_v48 = vor.u32 %v10941_v33, %v8646_v6  ;;  %v10987_v33 = vld [vmem:[%s11582_s21 + $0x734] sm:$0xf0]  ;;  %v10972_v6 = vld [vmem:[%s11582_s21 + $0x6c4] sm:$0xf] }
 0x300   : > { %v5762_v23 = vpop.f32.mrf.mxu0 }
 0x301   : > { %v5672_v1 = vadd.f32 %v5671_v62, %v5583_v20 }
 0x302   : > { %v5851_v60 = vpop.f32.mrf.mxu1 }
 0x303   : > { %v5761_v17 = vadd.f32 %v5760_v9, %v5672_v1  ;;  %v8764_v1 = vld [vmem:[%s11582_s21 + $0x6b8] sm:$0xf] }
 0x305   : > { %v12541_v18 = vadd.f32 %v5849_v0, %v5761_v17  ;;  %v11367_v17 = vld [vmem:[%s13939_s1 + $0x418] sm:$0xff] }
 0x306   : > { %v5584_v35 = vpop.f32.mrf.mxu2  ;;  %6402 = vmatpush.bf16.msra.mxu0 %v11367_v17  ;;  %v11017_v17 = vld [vmem:[%s11582_s21 + $0x824] sm:$0xf0] }
 0x307   : > { %v5673_v24 = vpop.f32.mrf.mxu3  ;;  %v5585_v55 = vadd.f32 %v5584_v35, %v12230_v57  ;;  %v11359_v57 = vld [vmem:[%s13939_s1 + $0x3d8] sm:$0xff] }
 0x308   : > { %v5765_v36 = vpop.f32.mrf.mxu0  ;;  %6313 = vmatpush.bf16.msra.mxu3 %v11359_v57 }
 0x309   : > { %v5674_v49 = vadd.f32 %v5673_v24, %v5585_v55  ;;  %v8773_v55 = vor.u32 %v10987_v33, %v8772_v25 }
 0x30a   : > { %v5854_v27 = vpop.f32.mrf.mxu1 }
 0x30b   : > { %v5763_v53 = vadd.f32 %v5762_v23, %v5674_v49  ;;  %5902 = vmatmul.bf16.gmra.mxu2 %v8645_v52  ;;  %6080 = vmatmul.bf16.gmra.mxu0 %v8653_v51  ;;  %v10986_v23 = vld [vmem:[%s11582_s21 + $0x72c] sm:$0xf0]  ;;  %v8777_v52 = vor.u32 %v10972_v6, %v8774_v41 }
 0x30c   : > { %5991 = vmatmul.bf16.gmra.mxu3 %v8649_v48  ;;  %v8765_v35 = vor.u32 %v10986_v23, %v8764_v1  ;;  %v8886_v1 = vld [vmem:[%s11582_s21 + $0x820] sm:$0xf0]  ;;  %v8892_v23 = vld [vmem:[%s11582_s21 + $0x7b0] sm:$0xf] }
 0x30d   : > { %6169 = vmatmul.bf16.gmra.mxu1 %v8657_v16  ;;  %v12550_v2 = vadd.f32 %v5851_v60, %v5763_v53  ;;  %v8766_v60 = vld [vmem:[%s11582_s21 + $0x730] sm:$0xf0] }
 0x30e   : > { %v5587_v9 = vpop.f32.mrf.mxu2  ;;  %v8769_v24 = vor.u32 %v10971_v10, %v8766_v60  ;;  %v11002_v10 = vld [vmem:[%s11582_s21 + $0x7b4] sm:$0xf]  ;;  %v8894_v60 = vld [vmem:[%s11582_s21 + $0x828] sm:$0xf0] }
 0x30f   : > { %v5676_v0 = vpop.f32.mrf.mxu3  ;;  %v5588_v3 = vadd.f32 %v5587_v9, %v12244_v40 }
 0x310   : > { %v5767_v39 = vpop.f32.mrf.mxu0 }
 0x311   : > { %v5677_v14 = vadd.f32 %v5676_v0, %v5588_v3 }
 0x312   : > { %v5856_v62 = vpop.f32.mrf.mxu1 }
 0x313   : > { %v5766_v20 = vadd.f32 %v5765_v36, %v5677_v14  ;;  %v11375_v36 = vld [vmem:[%s13939_s1 + $0x458] sm:$0xff]  ;;  %v8884_v14 = vld [vmem:[%s11582_s21 + $0x7a8] sm:$0xf] }
 0x314   : > { %6491 = vmatpush.bf16.msra.mxu1 %v11375_v36 }
 0x315   : > { %v12564_v31 = vadd.f32 %v5854_v27, %v5766_v20  ;;  %v11001_v20 = vld [vmem:[%s11582_s21 + $0x7ac] sm:$0xf] }
 0x316   : > { %v5589_v40 = vpop.f32.mrf.mxu2 }
 0x317   : > { %v5678_v15 = vpop.f32.mrf.mxu3  ;;  %v5590_v4 = vadd.f32 %v5589_v40, %v12250_v56  ;;  %v8893_v40 = vor.u32 %v11017_v17, %v8892_v23  ;;  %v9014_v23 = vld [vmem:[%s11582_s21 + $0x918] sm:$0xf0] }
 0x318   : > { %v5770_v51 = vpop.f32.mrf.mxu0 }
 0x319   : > { %v5679_v48 = vadd.f32 %v5678_v15, %v5590_v4  ;;  %v8897_v15 = vor.u32 %v11002_v10, %v8894_v60 }
 0x31a   : > { %v5859_v16 = vpop.f32.mrf.mxu1 }
 0x31b   : > { %v5768_v49 = vadd.f32 %v5767_v39, %v5679_v48  ;;  %5907 = vmatmul.bf16.gmra.mxu2 %v8765_v35  ;;  %6085 = vmatmul.bf16.gmra.mxu0 %v8773_v55  ;;  %v11016_v39 = vld [vmem:[%s11582_s21 + $0x81c] sm:$0xf0] }
 0x31c   : > { %5996 = vmatmul.bf16.gmra.mxu3 %v8769_v24  ;;  %v8885_v41 = vor.u32 %v11016_v39, %v8884_v14  ;;  %v11031_v14 = vld [vmem:[%s11582_s21 + $0x89c] sm:$0xf]  ;;  %v9012_v39 = vld [vmem:[%s11582_s21 + $0x8a0] sm:$0xf] }
 0x31d   : > { %6174 = vmatmul.bf16.gmra.mxu1 %v8777_v52  ;;  %v12570_v56 = vadd.f32 %v5856_v62, %v5768_v49  ;;  %v11350_v52 = vld [vmem:[%s13939_s1 + $0x390] sm:$0xff] }
 0x31e   : > { %v5592_v27 = vpop.f32.mrf.mxu2  ;;  %6225 = vmatpush.bf16.msra.mxu2 %v11350_v52 }
 0x31f   : > { %v5681_v53 = vpop.f32.mrf.mxu3  ;;  %v5593_v7 = vadd.f32 %v5592_v27, %v12261_v32  ;;  %v8889_v32 = vor.u32 %v11001_v20, %v8886_v1  ;;  %v11047_v20 = vld [vmem:[%s11582_s21 + $0x914] sm:$0xf0]  ;;  %v11032_v1 = vld [vmem:[%s11582_s21 + $0x8a4] sm:$0xf] }
 0x320   : > { %v5772_v9 = vpop.f32.mrf.mxu0 }
 0x321   : > { %v5682_v57 = vadd.f32 %v5681_v53, %v5593_v7 }
 0x322   : > { %v5861_v0 = vpop.f32.mrf.mxu1 }
 0x323   : > { %v5771_v3 = vadd.f32 %v5770_v51, %v5682_v57  ;;  %v9004_v57 = vld [vmem:[%s11582_s21 + $0x898] sm:$0xf] }
 0x325   : > { %v12581_v25 = vadd.f32 %v5859_v16, %v5771_v3  ;;  %v11366_v3 = vld [vmem:[%s13939_s1 + $0x410] sm:$0xff] }
 0x326   : > { %v5594_v62 = vpop.f32.mrf.mxu2  ;;  %6403 = vmatpush.bf16.msra.mxu0 %v11366_v3  ;;  %v11077_v3 = vld [vmem:[%s11582_s21 + $0xa04] sm:$0xf0] }
 0x327   : > { %v5683_v33 = vpop.f32.mrf.mxu3  ;;  %v5595_v6 = vadd.f32 %v5594_v62, %v12270_v59  ;;  %v11358_v59 = vld [vmem:[%s13939_s1 + $0x3d0] sm:$0xff] }
 0x328   : > { %v6051_v35 = vpop.f32.mrf.mxu0  ;;  %6314 = vmatpush.bf16.msra.mxu3 %v11358_v59 }
 0x329   : > { %v5684_v4 = vadd.f32 %v5683_v33, %v5595_v6  ;;  %v9013_v6 = vor.u32 %v11047_v20, %v9012_v39 }
 0x32a   : > { %v6140_v24 = vpop.f32.mrf.mxu1 }
 0x32b   : > { %v5773_v55 = vadd.f32 %v5772_v9, %v5684_v4  ;;  %5912 = vmatmul.bf16.gmra.mxu2 %v8885_v41  ;;  %6090 = vmatmul.bf16.gmra.mxu0 %v8893_v40  ;;  %v11046_v9 = vld [vmem:[%s11582_s21 + $0x90c] sm:$0xf0]  ;;  %v9017_v41 = vor.u32 %v11032_v1, %v9014_v23 }
 0x32c   : > { %6001 = vmatmul.bf16.gmra.mxu3 %v8889_v32  ;;  %v9005_v62 = vor.u32 %v11046_v9, %v9004_v57  ;;  %v9126_v57 = vld [vmem:[%s11582_s21 + $0xa00] sm:$0xf0]  ;;  %v9132_v9 = vld [vmem:[%s11582_s21 + $0x990] sm:$0xf] }
 0x32d   : > { %6179 = vmatmul.bf16.gmra.mxu1 %v8897_v15  ;;  %v12590_v48 = vadd.f32 %v5861_v0, %v5773_v55  ;;  %v9006_v0 = vld [vmem:[%s11582_s21 + $0x910] sm:$0xf0] }
 0x32e   : > { %v5873_v51 = vpop.f32.mrf.mxu2  ;;  %v9009_v33 = vor.u32 %v11031_v14, %v9006_v0  ;;  %v11062_v14 = vld [vmem:[%s11582_s21 + $0x994] sm:$0xf]  ;;  %v9134_v0 = vld [vmem:[%s11582_s21 + $0xa08] sm:$0xf0] }
 0x32f   : > { %v5962_v16 = vpop.f32.mrf.mxu3  ;;  %v5874_v49 = vadd.f32 %v5873_v51, %v12284_v21 }
 0x330   : > { %v6053_v27 = vpop.f32.mrf.mxu0 }
 0x331   : > { %v5963_v36 = vadd.f32 %v5962_v16, %v5874_v49 }
 0x332   : > { %v6142_v53 = vpop.f32.mrf.mxu1 }
 0x333   : > { %v6052_v7 = vadd.f32 %v6051_v35, %v5963_v36  ;;  %v11374_v35 = vld [vmem:[%s13939_s1 + $0x450] sm:$0xff]  ;;  %v9124_v36 = vld [vmem:[%s11582_s21 + $0x988] sm:$0xf] }
 0x334   : > { %6492 = vmatpush.bf16.msra.mxu1 %v11374_v35 }
 0x335   : > { %v12604_v17 = vadd.f32 %v6140_v24, %v6052_v7  ;;  %v11061_v7 = vld [vmem:[%s11582_s21 + $0x98c] sm:$0xf] }
 0x336   : > { %v5875_v21 = vpop.f32.mrf.mxu2 }
 0x337   : > { %v5964_v10 = vpop.f32.mrf.mxu3  ;;  %v5876_v60 = vadd.f32 %v5875_v21, %v12290_v42  ;;  %v9133_v21 = vor.u32 %v11077_v3, %v9132_v9  ;;  %v9254_v9 = vld [vmem:[%s11582_s21 + $0xaf8] sm:$0xf0] }
 0x338   : > { %v6056_v40 = vpop.f32.mrf.mxu0 }
 0x339   : > { %v5965_v32 = vadd.f32 %v5964_v10, %v5876_v60  ;;  %v9137_v10 = vor.u32 %v11062_v14, %v9134_v0 }
 0x33a   : > { %v6145_v15 = vpop.f32.mrf.mxu1 }
 0x33b   : > { %v6054_v4 = vadd.f32 %v6053_v27, %v5965_v32  ;;  %5917 = vmatmul.bf16.gmra.mxu2 %v9005_v62  ;;  %6095 = vmatmul.bf16.gmra.mxu0 %v9013_v6  ;;  %v11076_v27 = vld [vmem:[%s11582_s21 + $0x9fc] sm:$0xf0] }
 0x33c   : > { %6006 = vmatmul.bf16.gmra.mxu3 %v9009_v33  ;;  %v9125_v23 = vor.u32 %v11076_v27, %v9124_v36  ;;  %v11091_v36 = vld [vmem:[%s11582_s21 + $0xa7c] sm:$0xf]  ;;  %v9252_v27 = vld [vmem:[%s11582_s21 + $0xa80] sm:$0xf] }
 0x33d   : > { %6184 = vmatmul.bf16.gmra.mxu1 %v9017_v41  ;;  %v12610_v42 = vadd.f32 %v6142_v53, %v6054_v4  ;;  %v11349_v41 = vld [vmem:[%s13939_s1 + $0x388] sm:$0xff] }
 0x33e   : > { %v5878_v24 = vpop.f32.mrf.mxu2  ;;  %6226 = vmatpush.bf16.msra.mxu2 %v11349_v41 }
 0x33f   : > { %v5967_v55 = vpop.f32.mrf.mxu3  ;;  %v5879_v52 = vadd.f32 %v5878_v24, %v12301_v19  ;;  %v9129_v19 = vor.u32 %v11061_v7, %v9126_v57  ;;  %v11107_v7 = vld [vmem:[%s11582_s21 + $0xaf4] sm:$0xf0]  ;;  %v11092_v57 = vld [vmem:[%s11582_s21 + $0xa84] sm:$0xf] }
 0x340   : > { %v6058_v51 = vpop.f32.mrf.mxu0 }
 0x341   : > { %v5968_v59 = vadd.f32 %v5967_v55, %v5879_v52 }
 0x342   : > { %v6147_v16 = vpop.f32.mrf.mxu1 }
 0x343   : > { %v6057_v49 = vadd.f32 %v6056_v40, %v5968_v59  ;;  %v9244_v59 = vld [vmem:[%s11582_s21 + $0xa78] sm:$0xf] }
 0x345   : > { %v12621_v39 = vadd.f32 %v6145_v15, %v6057_v49  ;;  %v11365_v49 = vld [vmem:[%s13939_s1 + $0x408] sm:$0xff] }
 0x346   : > { %v5880_v53 = vpop.f32.mrf.mxu2  ;;  %6404 = vmatpush.bf16.msra.mxu0 %v11365_v49  ;;  %v11137_v49 = vld [vmem:[%s11582_s21 + $0xbe4] sm:$0xf0] }
 0x347   : > { %v5969_v20 = vpop.f32.mrf.mxu3  ;;  %v5881_v1 = vadd.f32 %v5880_v53, %v12310_v11  ;;  %v11357_v11 = vld [vmem:[%s13939_s1 + $0x3c8] sm:$0xff] }
 0x348   : > { %v6061_v62 = vpop.f32.mrf.mxu0  ;;  %6315 = vmatpush.bf16.msra.mxu3 %v11357_v11 }
 0x349   : > { %v5970_v60 = vadd.f32 %v5969_v20, %v5881_v1  ;;  %v9253_v1 = vor.u32 %v11107_v7, %v9252_v27 }
 0x34a   : > { %v6150_v33 = vpop.f32.mrf.mxu1 }
 0x34b   : > { %v6059_v6 = vadd.f32 %v6058_v51, %v5970_v60  ;;  %5922 = vmatmul.bf16.gmra.mxu2 %v9125_v23  ;;  %6100 = vmatmul.bf16.gmra.mxu0 %v9133_v21  ;;  %v11106_v51 = vld [vmem:[%s11582_s21 + $0xaec] sm:$0xf0]  ;;  %v9257_v23 = vor.u32 %v11092_v57, %v9254_v9 }
 0x34c   : > { %6011 = vmatmul.bf16.gmra.mxu3 %v9129_v19  ;;  %v9245_v53 = vor.u32 %v11106_v51, %v9244_v59  ;;  %v9366_v59 = vld [vmem:[%s11582_s21 + $0xbe0] sm:$0xf0]  ;;  %v9372_v51 = vld [vmem:[%s11582_s21 + $0xb70] sm:$0xf] }
 0x34d   : > { %6189 = vmatmul.bf16.gmra.mxu1 %v9137_v10  ;;  %v12630_v32 = vadd.f32 %v6147_v16, %v6059_v6  ;;  %v9246_v16 = vld [vmem:[%s11582_s21 + $0xaf0] sm:$0xf0] }
 0x34e   : > { %v5883_v40 = vpop.f32.mrf.mxu2  ;;  %v9249_v20 = vor.u32 %v11091_v36, %v9246_v16  ;;  %v11122_v36 = vld [vmem:[%s11582_s21 + $0xb74] sm:$0xf]  ;;  %v9374_v16 = vld [vmem:[%s11582_s21 + $0xbe8] sm:$0xf0] }
 0x34f   : > { %v5972_v15 = vpop.f32.mrf.mxu3  ;;  %v5884_v4 = vadd.f32 %v5883_v40, %v12324_v8 }
 0x350   : > { %v6063_v24 = vpop.f32.mrf.mxu0 }
 0x351   : > { %v5973_v35 = vadd.f32 %v5972_v15, %v5884_v4 }
 0x352   : > { %v6152_v55 = vpop.f32.mrf.mxu1 }
 0x353   : > { %v6062_v52 = vadd.f32 %v6061_v62, %v5973_v35  ;;  %v11373_v62 = vld [vmem:[%s13939_s1 + $0x448] sm:$0xff] }
 0x354   : > { %6493 = vmatpush.bf16.msra.mxu1 %v11373_v62  ;;  %v9364_v35 = vld [vmem:[%s11582_s21 + $0xb68] sm:$0xf] }
 0x355   : > { %v12644_v3 = vadd.f32 %v6150_v33, %v6062_v52  ;;  %v11121_v52 = vld [vmem:[%s11582_s21 + $0xb6c] sm:$0xf] }
 0x356   : > { %v5885_v8 = vpop.f32.mrf.mxu2 }
 0x357   : > { %v5974_v14 = vpop.f32.mrf.mxu3  ;;  %v5886_v0 = vadd.f32 %v5885_v8, %v12330_v30  ;;  %v9373_v8 = vor.u32 %v11137_v49, %v9372_v51  ;;  %v9494_v51 = vld [vmem:[%s11582_s21 + $0xcd8] sm:$0xf0] }
 0x358   : > { %v6066_v21 = vpop.f32.mrf.mxu0 }
 0x359   : > { %v5975_v19 = vadd.f32 %v5974_v14, %v5886_v0  ;;  %v9377_v14 = vor.u32 %v11122_v36, %v9374_v16 }
 0x35a   : > { %v6155_v10 = vpop.f32.mrf.mxu1 }
 0x35b   : > { %v6064_v60 = vadd.f32 %v6063_v24, %v5975_v19  ;;  %5927 = vmatmul.bf16.gmra.mxu2 %v9245_v53  ;;  %6105 = vmatmul.bf16.gmra.mxu0 %v9253_v1  ;;  %v11136_v24 = vld [vmem:[%s11582_s21 + $0xbdc] sm:$0xf0] }
 0x35c   : > { %6016 = vmatmul.bf16.gmra.mxu3 %v9249_v20  ;;  %v9365_v9 = vor.u32 %v11136_v24, %v9364_v35  ;;  %v11151_v35 = vld [vmem:[%s11582_s21 + $0xc5c] sm:$0xf]  ;;  %v9492_v24 = vld [vmem:[%s11582_s21 + $0xc60] sm:$0xf] }
 0x35d   : > { %6194 = vmatmul.bf16.gmra.mxu1 %v9257_v23  ;;  %v12650_v30 = vadd.f32 %v6152_v55, %v6064_v60  ;;  %v11348_v23 = vld [vmem:[%s13939_s1 + $0x380] sm:$0xff] }
 0x35e   : > { %v5888_v33 = vpop.f32.mrf.mxu2  ;;  %6227 = vmatpush.bf16.msra.mxu2 %v11348_v23 }
 0x35f   : > { %v5977_v6 = vpop.f32.mrf.mxu3  ;;  %v5889_v41 = vadd.f32 %v5888_v33, %v12341_v5  ;;  %v9369_v5 = vor.u32 %v11121_v52, %v9366_v59  ;;  %v11167_v52 = vld [vmem:[%s11582_s21 + $0xcd4] sm:$0xf0]  ;;  %v11152_v59 = vld [vmem:[%s11582_s21 + $0xc64] sm:$0xf] }
 0x360   : > { %v6068_v40 = vpop.f32.mrf.mxu0 }
 0x361   : > { %v5978_v11 = vadd.f32 %v5977_v6, %v5889_v41 }
 0x362   : > { %v6157_v15 = vpop.f32.mrf.mxu1 }
 0x363   : > { %v6067_v4 = vadd.f32 %v6066_v21, %v5978_v11  ;;  %v9484_v11 = vld [vmem:[%s11582_s21 + $0xc58] sm:$0xf] }
 0x365   : > { %v12661_v27 = vadd.f32 %v6155_v10, %v6067_v4  ;;  %v11364_v4 = vld [vmem:[%s13939_s1 + $0x400] sm:$0xff] }
 0x366   : > { %v5890_v55 = vpop.f32.mrf.mxu2  ;;  %6405 = vmatpush.bf16.msra.mxu0 %v11364_v4  ;;  %v11197_v4 = vld [vmem:[%s11582_s21 + $0xdc4] sm:$0xf0] }
 0x367   : > { %v5979_v7 = vpop.f32.mrf.mxu3  ;;  %v5891_v57 = vadd.f32 %v5890_v55, %v12350_v12  ;;  %v11356_v12 = vld [vmem:[%s13939_s1 + $0x3c0] sm:$0xff] }
 0x368   : > { %v6071_v53 = vpop.f32.mrf.mxu0  ;;  %6316 = vmatpush.bf16.msra.mxu3 %v11356_v12 }
 0x369   : > { %v5980_v0 = vadd.f32 %v5979_v7, %v5891_v57  ;;  %v9493_v57 = vor.u32 %v11167_v52, %v9492_v24 }
 0x36a   : > { %v6160_v20 = vpop.f32.mrf.mxu1 }
 0x36b   : > { %v6069_v1 = vadd.f32 %v6068_v40, %v5980_v0  ;;  %5932 = vmatmul.bf16.gmra.mxu2 %v9365_v9  ;;  %6110 = vmatmul.bf16.gmra.mxu0 %v9373_v8  ;;  %v11166_v40 = vld [vmem:[%s11582_s21 + $0xccc] sm:$0xf0]  ;;  %v9497_v9 = vor.u32 %v11152_v59, %v9494_v51 }
 0x36c   : > { %6021 = vmatmul.bf16.gmra.mxu3 %v9369_v5  ;;  %v9485_v55 = vor.u32 %v11166_v40, %v9484_v11  ;;  %v9606_v11 = vld [vmem:[%s11582_s21 + $0xdc0] sm:$0xf0]  ;;  %v9612_v40 = vld [vmem:[%s11582_s21 + $0xd50] sm:$0xf] }
 0x36d   : > { %6199 = vmatmul.bf16.gmra.mxu1 %v9377_v14  ;;  %v12670_v19 = vadd.f32 %v6157_v15, %v6069_v1  ;;  %v9486_v15 = vld [vmem:[%s11582_s21 + $0xcd0] sm:$0xf0] }
 0x36e   : > { %v5893_v21 = vpop.f32.mrf.mxu2  ;;  %v9489_v7 = vor.u32 %v11151_v35, %v9486_v15  ;;  %v11182_v35 = vld [vmem:[%s11582_s21 + $0xd54] sm:$0xf]  ;;  %v9614_v15 = vld [vmem:[%s11582_s21 + $0xdc8] sm:$0xf0] }
 0x36f   : > { %v5982_v10 = vpop.f32.mrf.mxu3  ;;  %v5894_v60 = vadd.f32 %v5893_v21, %v12364_v58 }
 0x370   : > { %v6073_v33 = vpop.f32.mrf.mxu0 }
 0x371   : > { %v5983_v62 = vadd.f32 %v5982_v10, %v5894_v60 }
 0x372   : > { %v6162_v6 = vpop.f32.mrf.mxu1 }
 0x373   : > { %v6072_v41 = vadd.f32 %v6071_v53, %v5983_v62  ;;  %v11372_v53 = vld [vmem:[%s13939_s1 + $0x440] sm:$0xff]  ;;  %v9604_v62 = vld [vmem:[%s11582_s21 + $0xd48] sm:$0xf] }
 0x374   : > { %6494 = vmatpush.bf16.msra.mxu1 %v11372_v53 }
 0x375   : > { %v12684_v49 = vadd.f32 %v6160_v20, %v6072_v41  ;;  %v11181_v41 = vld [vmem:[%s11582_s21 + $0xd4c] sm:$0xf] }
 0x376   : > { %v5895_v58 = vpop.f32.mrf.mxu2 }
 0x377   : > { %v5984_v36 = vpop.f32.mrf.mxu3  ;;  %v5896_v16 = vadd.f32 %v5895_v58, %v12370_v28  ;;  %v9613_v58 = vor.u32 %v11197_v4, %v9612_v40  ;;  %v9734_v40 = vld [vmem:[%s11582_s21 + $0xeb8] sm:$0xf0] }
 0x378   : > { %v6076_v8 = vpop.f32.mrf.mxu0 }
 0x379   : > { %v5985_v5 = vadd.f32 %v5984_v36, %v5896_v16  ;;  %v9617_v36 = vor.u32 %v11182_v35, %v9614_v15 }
 0x37a   : > { %v6165_v14 = vpop.f32.mrf.mxu1 }
 0x37b   : > { %v6074_v0 = vadd.f32 %v6073_v33, %v5985_v5  ;;  %5937 = vmatmul.bf16.gmra.mxu2 %v9485_v55  ;;  %6115 = vmatmul.bf16.gmra.mxu0 %v9493_v57  ;;  %v11196_v33 = vld [vmem:[%s11582_s21 + $0xdbc] sm:$0xf0] }
 0x37c   : > { %6026 = vmatmul.bf16.gmra.mxu3 %v9489_v7  ;;  %v9605_v51 = vor.u32 %v11196_v33, %v9604_v62  ;;  %v11211_v62 = vld [vmem:[%s11582_s21 + $0xe3c] sm:$0xf]  ;;  %v9732_v33 = vld [vmem:[%s11582_s21 + $0xe40] sm:$0xf] }
 0x37d   : > { %6204 = vmatmul.bf16.gmra.mxu1 %v9497_v9  ;;  %v12690_v28 = vadd.f32 %v6162_v6, %v6074_v0  ;;  %v11387_v9 = vld [vmem:[%s13939_s1 + $0x4b8] sm:$0xff] }
 0x37e   : > { %v5898_v20 = vpop.f32.mrf.mxu2  ;;  %6576 = vmatpush.bf16.msrb.mxu2 %v11387_v9 }
 0x37f   : > { %v5987_v1 = vpop.f32.mrf.mxu3  ;;  %v5899_v23 = vadd.f32 %v5898_v20, %v12381_v50  ;;  %v9609_v50 = vor.u32 %v11181_v41, %v9606_v11  ;;  %v11227_v41 = vld [vmem:[%s11582_s21 + $0xeb4] sm:$0xf0]  ;;  %v11212_v11 = vld [vmem:[%s11582_s21 + $0xe44] sm:$0xf] }
 0x380   : > { %v6078_v21 = vpop.f32.mrf.mxu0 }
 0x381   : > { %v5988_v12 = vadd.f32 %v5987_v1, %v5899_v23 }
 0x382   : > { %v6167_v10 = vpop.f32.mrf.mxu1 }
 0x383   : > { %v6077_v60 = vadd.f32 %v6076_v8, %v5988_v12  ;;  %v9724_v12 = vld [vmem:[%s11582_s21 + $0xe38] sm:$0xf] }
 0x385   : > { %v12701_v24 = vadd.f32 %v6165_v14, %v6077_v60  ;;  %v11403_v60 = vld [vmem:[%s13939_s1 + $0x538] sm:$0xff] }
 0x386   : > { %v5900_v6 = vpop.f32.mrf.mxu2  ;;  %6754 = vmatpush.bf16.msrb.mxu0 %v11403_v60  ;;  %v10779_v60 = vld [vmem:[%s11582_s21 + $0xb4] sm:$0xf0] }
 0x387   : > { %v5989_v52 = vpop.f32.mrf.mxu3  ;;  %v5901_v59 = vadd.f32 %v5900_v6, %v12390_v61  ;;  %v11395_v61 = vld [vmem:[%s13939_s1 + $0x4f8] sm:$0xff] }
 0x388   : > { %v6081_v55 = vpop.f32.mrf.mxu0  ;;  %6665 = vmatpush.bf16.msrb.mxu3 %v11395_v61 }
 0x389   : > { %v5990_v16 = vadd.f32 %v5989_v52, %v5901_v59  ;;  %v9733_v59 = vor.u32 %v11227_v41, %v9732_v33 }
 0x38a   : > { %v6170_v7 = vpop.f32.mrf.mxu1 }
 0x38b   : > { %v6079_v57 = vadd.f32 %v6078_v21, %v5990_v16  ;;  %5942 = vmatmul.bf16.gmra.mxu2 %v9605_v51  ;;  %6120 = vmatmul.bf16.gmra.mxu0 %v9613_v58  ;;  %v11226_v21 = vld [vmem:[%s11582_s21 + $0xeac] sm:$0xf0]  ;;  %v9737_v51 = vor.u32 %v11212_v11, %v9734_v40 }
 0x38c   : > { %6031 = vmatmul.bf16.gmra.mxu3 %v9609_v50  ;;  %v9725_v6 = vor.u32 %v11226_v21, %v9724_v12  ;;  %v7942_v12 = vld [vmem:[%s11582_s21 + $0xb0] sm:$0xf0]  ;;  %v7948_v21 = vld [vmem:[%s11582_s21 + $0x40] sm:$0xf] }
 0x38d   : > { %6209 = vmatmul.bf16.gmra.mxu1 %v9617_v36  ;;  %v12710_v5 = vadd.f32 %v6167_v10, %v6079_v57  ;;  %v9726_v10 = vld [vmem:[%s11582_s21 + $0xeb0] sm:$0xf0] }
 0x38e   : > { %v5903_v8 = vpop.f32.mrf.mxu2  ;;  %v9729_v52 = vor.u32 %v11211_v62, %v9726_v10  ;;  %v10764_v62 = vld [vmem:[%s11582_s21 + $0x44] sm:$0xf]  ;;  %v7950_v10 = vld [vmem:[%s11582_s21 + $0xb8] sm:$0xf0] }
 0x38f   : > { %v5992_v14 = vpop.f32.mrf.mxu3  ;;  %v5904_v0 = vadd.f32 %v5903_v8, %v12404_v43 }
 0x390   : > { %v6083_v20 = vpop.f32.mrf.mxu0 }
 0x391   : > { %v5993_v53 = vadd.f32 %v5992_v14, %v5904_v0 }
 0x392   : > { %v6172_v1 = vpop.f32.mrf.mxu1 }
 0x393   : > { %v6082_v23 = vadd.f32 %v6081_v55, %v5993_v53  ;;  %v11411_v55 = vld [vmem:[%s13939_s1 + $0x578] sm:$0xff] }
 0x394   : > { %6843 = vmatpush.bf16.msrb.mxu1 %v11411_v55  ;;  %v7940_v53 = vld [vmem:[%s11582_s21 + $0x38] sm:$0xf] }
 0x395   : > { %v12724_v4 = vadd.f32 %v6170_v7, %v6082_v23  ;;  %v10763_v23 = vld [vmem:[%s11582_s21 + $0x3c] sm:$0xf] }
 0x396   : > { %v5905_v43 = vpop.f32.mrf.mxu2 }
 0x397   : > { %v5994_v35 = vpop.f32.mrf.mxu3  ;;  %v5906_v15 = vadd.f32 %v5905_v43, %v12410_v37  ;;  %v7949_v43 = vor.u32 %v10779_v60, %v7948_v21  ;;  %v8070_v21 = vld [vmem:[%s11582_s21 + $0x1a8] sm:$0xf0] }
 0x398   : > { %v6086_v58 = vpop.f32.mrf.mxu0 }
 0x399   : > { %v5995_v50 = vadd.f32 %v5994_v35, %v5906_v15  ;;  %v7953_v35 = vor.u32 %v10764_v62, %v7950_v10 }
 0x39a   : > { %v6175_v36 = vpop.f32.mrf.mxu1 }
 0x39b   : > { %v6084_v16 = vadd.f32 %v6083_v20, %v5995_v50  ;;  %5947 = vmatmul.bf16.gmra.mxu2 %v9725_v6  ;;  %6125 = vmatmul.bf16.gmra.mxu0 %v9733_v59  ;;  %v10778_v20 = vld [vmem:[%s11582_s21 + $0xac] sm:$0xf0] }
 0x39c   : > { %6036 = vmatmul.bf16.gmra.mxu3 %v9729_v52  ;;  %v7941_v40 = vor.u32 %v10778_v20, %v7940_v53  ;;  %v10793_v53 = vld [vmem:[%s11582_s21 + $0x12c] sm:$0xf]  ;;  %v8068_v20 = vld [vmem:[%s11582_s21 + $0x130] sm:$0xf] }
 0x39d   : > { %6214 = vmatmul.bf16.gmra.mxu1 %v9737_v51  ;;  %v12730_v37 = vadd.f32 %v6172_v1, %v6084_v16  ;;  %v11386_v51 = vld [vmem:[%s13939_s1 + $0x4b0] sm:$0xff] }
 0x39e   : > { %v5908_v7 = vpop.f32.mrf.mxu2  ;;  %6577 = vmatpush.bf16.msrb.mxu2 %v11386_v51 }
 0x39f   : > { %v5997_v57 = vpop.f32.mrf.mxu3  ;;  %v5909_v9 = vadd.f32 %v5908_v7, %v12421_v38  ;;  %v7945_v38 = vor.u32 %v10763_v23, %v7942_v12  ;;  %v10809_v23 = vld [vmem:[%s11582_s21 + $0x1a4] sm:$0xf0]  ;;  %v10794_v12 = vld [vmem:[%s11582_s21 + $0x134] sm:$0xf] }
 0x3a0   : > { %v6088_v8 = vpop.f32.mrf.mxu0 }
 0x3a1   : > { %v5998_v61 = vadd.f32 %v5997_v57, %v5909_v9 }
 0x3a2   : > { %v6177_v14 = vpop.f32.mrf.mxu1 }
 0x3a3   : > { %v6087_v0 = vadd.f32 %v6086_v58, %v5998_v61  ;;  %v8060_v61 = vld [vmem:[%s11582_s21 + $0x128] sm:$0xf] }
 0x3a5   : > { %v12741_v33 = vadd.f32 %v6175_v36, %v6087_v0  ;;  %v11402_v0 = vld [vmem:[%s13939_s1 + $0x530] sm:$0xff] }
 0x3a6   : > { %v5910_v1 = vpop.f32.mrf.mxu2  ;;  %6755 = vmatpush.bf16.msrb.mxu0 %v11402_v0  ;;  %v10839_v0 = vld [vmem:[%s11582_s21 + $0x294] sm:$0xf0] }
 0x3a7   : > { %v5999_v41 = vpop.f32.mrf.mxu3  ;;  %v5911_v11 = vadd.f32 %v5910_v1, %v12430_v46  ;;  %v11394_v46 = vld [vmem:[%s13939_s1 + $0x4f0] sm:$0xff] }
 0x3a8   : > { %v6091_v6 = vpop.f32.mrf.mxu0  ;;  %6666 = vmatpush.bf16.msrb.mxu3 %v11394_v46 }
 0x3a9   : > { %v6000_v15 = vadd.f32 %v5999_v41, %v5911_v11  ;;  %v8069_v11 = vor.u32 %v10809_v23, %v8068_v20 }
 0x3aa   : > { %v6180_v52 = vpop.f32.mrf.mxu1 }
 0x3ab   : > { %v6089_v59 = vadd.f32 %v6088_v8, %v6000_v15  ;;  %6228 = vmatmul.bf16.vlgmr.msra.gmra.mxu2 %v7941_v40  ;;  %6406 = vmatmul.bf16.vlgmr.msra.gmra.mxu0 %v7949_v43  ;;  %v10808_v8 = vld [vmem:[%s11582_s21 + $0x19c] sm:$0xf0]  ;;  %v8073_v40 = vor.u32 %v10794_v12, %v8070_v21 }
 0x3ac   : > { %6317 = vmatmul.bf16.vlgmr.msra.gmra.mxu3 %v7945_v38  ;;  %v8061_v1 = vor.u32 %v10808_v8, %v8060_v61  ;;  %v8182_v61 = vld [vmem:[%s11582_s21 + $0x290] sm:$0xf0]  ;;  %v8188_v8 = vld [vmem:[%s11582_s21 + $0x220] sm:$0xf] }
 0x3ad   : > { %6495 = vmatmul.bf16.vlgmr.msra.gmra.mxu1 %v7953_v35  ;;  %v12750_v50 = vadd.f32 %v6177_v14, %v6089_v59  ;;  %v8062_v14 = vld [vmem:[%s11582_s21 + $0x1a0] sm:$0xf0] }
 0x3ae   : > { %v5913_v58 = vpop.f32.mrf.mxu2  ;;  %v8065_v41 = vor.u32 %v10793_v53, %v8062_v14  ;;  %v10824_v53 = vld [vmem:[%s11582_s21 + $0x224] sm:$0xf]  ;;  %v8190_v14 = vld [vmem:[%s11582_s21 + $0x298] sm:$0xf0] }
 0x3af   : > { %v6002_v36 = vpop.f32.mrf.mxu3  ;;  %v5914_v16 = vadd.f32 %v5913_v58, %v12444_v26 }
 0x3b0   : > { %v6093_v7 = vpop.f32.mrf.mxu0 }
 0x3b1   : > { %v6003_v55 = vadd.f32 %v6002_v36, %v5914_v16 }
 0x3b2   : > { %v6182_v57 = vpop.f32.mrf.mxu1 }
 0x3b3   : > { %v6092_v9 = vadd.f32 %v6091_v6, %v6003_v55  ;;  %v11410_v6 = vld [vmem:[%s13939_s1 + $0x570] sm:$0xff]  ;;  %v8180_v55 = vld [vmem:[%s11582_s21 + $0x218] sm:$0xf] }
 0x3b4   : > { %6844 = vmatpush.bf16.msrb.mxu1 %v11410_v6 }
 0x3b5   : > { %v12764_v60 = vadd.f32 %v6180_v52, %v6092_v9  ;;  %v10823_v9 = vld [vmem:[%s11582_s21 + $0x21c] sm:$0xf] }
 0x3b6   : > { %v5915_v26 = vpop.f32.mrf.mxu2 }
 0x3b7   : > { %v6004_v62 = vpop.f32.mrf.mxu3  ;;  %v5916_v10 = vadd.f32 %v5915_v26, %v12450_v54  ;;  %v8189_v26 = vor.u32 %v10839_v0, %v8188_v8  ;;  %v8310_v8 = vld [vmem:[%s11582_s21 + $0x388] sm:$0xf0] }
 0x3b8   : > { %v6096_v43 = vpop.f32.mrf.mxu0 }
 0x3b9   : > { %v6005_v38 = vadd.f32 %v6004_v62, %v5916_v10  ;;  %v8193_v62 = vor.u32 %v10824_v53, %v8190_v14 }
 0x3ba   : > { %v6185_v35 = vpop.f32.mrf.mxu1 }
 0x3bb   : > { %v6094_v15 = vadd.f32 %v6093_v7, %v6005_v38  ;;  %6233 = vmatmul.bf16.gmra.mxu2 %v8061_v1  ;;  %6411 = vmatmul.bf16.gmra.mxu0 %v8069_v11  ;;  %v10838_v7 = vld [vmem:[%s11582_s21 + $0x28c] sm:$0xf0] }
 0x3bc   : > { %6322 = vmatmul.bf16.gmra.mxu3 %v8065_v41  ;;  %v8181_v21 = vor.u32 %v10838_v7, %v8180_v55  ;;  %v10853_v55 = vld [vmem:[%s11582_s21 + $0x30c] sm:$0xf]  ;;  %v8308_v7 = vld [vmem:[%s11582_s21 + $0x310] sm:$0xf] }
 0x3bd   : > { %6500 = vmatmul.bf16.gmra.mxu1 %v8073_v40  ;;  %v12770_v54 = vadd.f32 %v6182_v57, %v6094_v15  ;;  %v11385_v40 = vld [vmem:[%s13939_s1 + $0x4a8] sm:$0xff] }
 0x3be   : > { %v5918_v52 = vpop.f32.mrf.mxu2  ;;  %6578 = vmatpush.bf16.msrb.mxu2 %v11385_v40 }
 0x3bf   : > { %v6007_v59 = vpop.f32.mrf.mxu3  ;;  %v5919_v51 = vadd.f32 %v5918_v52, %v12461_v34  ;;  %v8185_v34 = vor.u32 %v10823_v9, %v8182_v61  ;;  %v10869_v9 = vld [vmem:[%s11582_s21 + $0x384] sm:$0xf0]  ;;  %v10854_v61 = vld [vmem:[%s11582_s21 + $0x314] sm:$0xf] }
 0x3c0   : > { %v6098_v58 = vpop.f32.mrf.mxu0 }
 0x3c1   : > { %v6008_v46 = vadd.f32 %v6007_v59, %v5919_v51 }
 0x3c2   : > { %v6187_v36 = vpop.f32.mrf.mxu1 }
 0x3c3   : > { %v6097_v16 = vadd.f32 %v6096_v43, %v6008_v46  ;;  %v8300_v46 = vld [vmem:[%s11582_s21 + $0x308] sm:$0xf] }
 0x3c5   : > { %v12781_v20 = vadd.f32 %v6185_v35, %v6097_v16  ;;  %v11401_v16 = vld [vmem:[%s13939_s1 + $0x528] sm:$0xff] }
 0x3c6   : > { %v5920_v57 = vpop.f32.mrf.mxu2  ;;  %6756 = vmatpush.bf16.msrb.mxu0 %v11401_v16  ;;  %v10899_v16 = vld [vmem:[%s11582_s21 + $0x474] sm:$0xf0] }
 0x3c7   : > { %v6009_v23 = vpop.f32.mrf.mxu3  ;;  %v5921_v12 = vadd.f32 %v5920_v57, %v12470_v29  ;;  %v11393_v29 = vld [vmem:[%s13939_s1 + $0x4e8] sm:$0xff] }
 0x3c8   : > { %v6101_v1 = vpop.f32.mrf.mxu0  ;;  %6667 = vmatpush.bf16.msrb.mxu3 %v11393_v29 }
 0x3c9   : > { %v6010_v10 = vadd.f32 %v6009_v23, %v5921_v12  ;;  %v8309_v12 = vor.u32 %v10869_v9, %v8308_v7 }
 0x3ca   : > { %v6190_v41 = vpop.f32.mrf.mxu1 }
 0x3cb   : > { %v6099_v11 = vadd.f32 %v6098_v58, %v6010_v10  ;;  %6238 = vmatmul.bf16.gmra.mxu2 %v8181_v21  ;;  %6416 = vmatmul.bf16.gmra.mxu0 %v8189_v26  ;;  %v10868_v58 = vld [vmem:[%s11582_s21 + $0x37c] sm:$0xf0]  ;;  %v8313_v21 = vor.u32 %v10854_v61, %v8310_v8 }
 0x3cc   : > { %6327 = vmatmul.bf16.gmra.mxu3 %v8185_v34  ;;  %v8301_v57 = vor.u32 %v10868_v58, %v8300_v46  ;;  %v8422_v46 = vld [vmem:[%s11582_s21 + $0x470] sm:$0xf0]  ;;  %v8428_v58 = vld [vmem:[%s11582_s21 + $0x400] sm:$0xf] }
 0x3cd   : > { %6505 = vmatmul.bf16.gmra.mxu1 %v8193_v62  ;;  %v12790_v38 = vadd.f32 %v6187_v36, %v6099_v11  ;;  %v8302_v36 = vld [vmem:[%s11582_s21 + $0x380] sm:$0xf0] }
 0x3ce   : > { %v5923_v43 = vpop.f32.mrf.mxu2  ;;  %v8305_v23 = vor.u32 %v10853_v55, %v8302_v36  ;;  %v10884_v55 = vld [vmem:[%s11582_s21 + $0x404] sm:$0xf]  ;;  %v8430_v36 = vld [vmem:[%s11582_s21 + $0x478] sm:$0xf0] }
 0x3cf   : > { %v6012_v35 = vpop.f32.mrf.mxu3  ;;  %v5924_v15 = vadd.f32 %v5923_v43, %v12484_v63 }
 0x3d0   : > { %v6103_v52 = vpop.f32.mrf.mxu0 }
 0x3d1   : > { %v6013_v6 = vadd.f32 %v6012_v35, %v5924_v15 }
 0x3d2   : > { %v6192_v59 = vpop.f32.mrf.mxu1 }
 0x3d3   : > { %v6102_v51 = vadd.f32 %v6101_v1, %v6013_v6  ;;  %v11409_v1 = vld [vmem:[%s13939_s1 + $0x568] sm:$0xff]  ;;  %v8420_v6 = vld [vmem:[%s11582_s21 + $0x3f8] sm:$0xf] }
 0x3d4   : > { %6845 = vmatpush.bf16.msrb.mxu1 %v11409_v1 }
 0x3d5   : > { %v12804_v0 = vadd.f32 %v6190_v41, %v6102_v51  ;;  %v10883_v51 = vld [vmem:[%s11582_s21 + $0x3fc] sm:$0xf] }
 0x3d6   : > { %v5925_v63 = vpop.f32.mrf.mxu2 }
 0x3d7   : > { %v6014_v53 = vpop.f32.mrf.mxu3  ;;  %v5926_v14 = vadd.f32 %v5925_v63, %v12490_v45  ;;  %v8429_v63 = vor.u32 %v10899_v16, %v8428_v58  ;;  %v8550_v58 = vld [vmem:[%s11582_s21 + $0x568] sm:$0xf0] }
 0x3d8   : > { %v6106_v26 = vpop.f32.mrf.mxu0 }
 0x3d9   : > { %v6015_v34 = vadd.f32 %v6014_v53, %v5926_v14  ;;  %v8433_v53 = vor.u32 %v10884_v55, %v8430_v36 }
 0x3da   : > { %v6195_v62 = vpop.f32.mrf.mxu1 }
 0x3db   : > { %v6104_v10 = vadd.f32 %v6103_v52, %v6015_v34  ;;  %6243 = vmatmul.bf16.gmra.mxu2 %v8301_v57  ;;  %6421 = vmatmul.bf16.gmra.mxu0 %v8309_v12  ;;  %v10898_v52 = vld [vmem:[%s11582_s21 + $0x46c] sm:$0xf0] }
 0x3dc   : > { %6332 = vmatmul.bf16.gmra.mxu3 %v8305_v23  ;;  %v8421_v8 = vor.u32 %v10898_v52, %v8420_v6  ;;  %v10913_v6 = vld [vmem:[%s11582_s21 + $0x4ec] sm:$0xf]  ;;  %v8548_v52 = vld [vmem:[%s11582_s21 + $0x4f0] sm:$0xf] }
 0x3dd   : > { %6510 = vmatmul.bf16.gmra.mxu1 %v8313_v21  ;;  %v12810_v45 = vadd.f32 %v6192_v59, %v6104_v10  ;;  %v11384_v21 = vld [vmem:[%s13939_s1 + $0x4a0] sm:$0xff] }
 0x3de   : > { %v5928_v41 = vpop.f32.mrf.mxu2  ;;  %6579 = vmatpush.bf16.msrb.mxu2 %v11384_v21 }
 0x3df   : > { %v6017_v11 = vpop.f32.mrf.mxu3  ;;  %v5929_v40 = vadd.f32 %v5928_v41, %v12501_v22  ;;  %v8425_v22 = vor.u32 %v10883_v51, %v8422_v46  ;;  %v10929_v51 = vld [vmem:[%s11582_s21 + $0x564] sm:$0xf0]  ;;  %v10914_v46 = vld [vmem:[%s11582_s21 + $0x4f4] sm:$0xf] }
 0x3e0   : > { %v6108_v43 = vpop.f32.mrf.mxu0 }
 0x3e1   : > { %v6018_v29 = vadd.f32 %v6017_v11, %v5929_v40 }
 0x3e2   : > { %v6197_v35 = vpop.f32.mrf.mxu1 }
 0x3e3   : > { %v6107_v15 = vadd.f32 %v6106_v26, %v6018_v29  ;;  %v8540_v29 = vld [vmem:[%s11582_s21 + $0x4e8] sm:$0xf] }
 0x3e5   : > { %v12821_v7 = vadd.f32 %v6195_v62, %v6107_v15  ;;  %v11400_v15 = vld [vmem:[%s13939_s1 + $0x520] sm:$0xff] }
 0x3e6   : > { %v5930_v59 = vpop.f32.mrf.mxu2  ;;  %6757 = vmatpush.bf16.msrb.mxu0 %v11400_v15  ;;  %v10959_v15 = vld [vmem:[%s11582_s21 + $0x654] sm:$0xf0] }
 0x3e7   : > { %v6019_v9 = vpop.f32.mrf.mxu3  ;;  %v5931_v61 = vadd.f32 %v5930_v59, %v12510_v13  ;;  %v11392_v13 = vld [vmem:[%s13939_s1 + $0x4e0] sm:$0xff] }
 0x3e8   : > { %v6111_v57 = vpop.f32.mrf.mxu0  ;;  %6668 = vmatpush.bf16.msrb.mxu3 %v11392_v13 }
 0x3e9   : > { %v6020_v14 = vadd.f32 %v6019_v9, %v5931_v61  ;;  %v8549_v61 = vor.u32 %v10929_v51, %v8548_v52 }
 0x3ea   : > { %v6200_v23 = vpop.f32.mrf.mxu1 }
 0x3eb   : > { %v6109_v12 = vadd.f32 %v6108_v43, %v6020_v14  ;;  %6248 = vmatmul.bf16.gmra.mxu2 %v8421_v8  ;;  %6426 = vmatmul.bf16.gmra.mxu0 %v8429_v63  ;;  %v10928_v43 = vld [vmem:[%s11582_s21 + $0x55c] sm:$0xf0]  ;;  %v8553_v8 = vor.u32 %v10914_v46, %v8550_v58 }
 0x3ec   : > { %6337 = vmatmul.bf16.gmra.mxu3 %v8425_v22  ;;  %v8541_v59 = vor.u32 %v10928_v43, %v8540_v29  ;;  %v8662_v29 = vld [vmem:[%s11582_s21 + $0x650] sm:$0xf0]  ;;  %v8668_v43 = vld [vmem:[%s11582_s21 + $0x5e0] sm:$0xf] }
 0x3ed   : > { %6515 = vmatmul.bf16.gmra.mxu1 %v8433_v53  ;;  %v12830_v34 = vadd.f32 %v6197_v35, %v6109_v12  ;;  %v8542_v35 = vld [vmem:[%s11582_s21 + $0x560] sm:$0xf0] }
 0x3ee   : > { %v5933_v26 = vpop.f32.mrf.mxu2  ;;  %v8545_v9 = vor.u32 %v10913_v6, %v8542_v35  ;;  %v10944_v6 = vld [vmem:[%s11582_s21 + $0x5e4] sm:$0xf]  ;;  %v8670_v35 = vld [vmem:[%s11582_s21 + $0x658] sm:$0xf0] }
 0x3ef   : > { %v6022_v62 = vpop.f32.mrf.mxu3  ;;  %v5934_v10 = vadd.f32 %v5933_v26, %v12524_v47 }
 0x3f0   : > { %v6113_v41 = vpop.f32.mrf.mxu0 }
 0x3f1   : > { %v6023_v1 = vadd.f32 %v6022_v62, %v5934_v10 }
 0x3f2   : > { %v6202_v11 = vpop.f32.mrf.mxu1 }
 0x3f3   : > { %v6112_v40 = vadd.f32 %v6111_v57, %v6023_v1  ;;  %v11408_v57 = vld [vmem:[%s13939_s1 + $0x560] sm:$0xff]  ;;  %v8660_v1 = vld [vmem:[%s11582_s21 + $0x5d8] sm:$0xf] }
 0x3f4   : > { %6846 = vmatpush.bf16.msrb.mxu1 %v11408_v57 }
 0x3f5   : > { %v12844_v16 = vadd.f32 %v6200_v23, %v6112_v40  ;;  %v10943_v40 = vld [vmem:[%s11582_s21 + $0x5dc] sm:$0xf] }
 0x3f6   : > { %v5935_v47 = vpop.f32.mrf.mxu2 }
 0x3f7   : > { %v6024_v55 = vpop.f32.mrf.mxu3  ;;  %v5936_v36 = vadd.f32 %v5935_v47, %v12530_v44  ;;  %v8669_v47 = vor.u32 %v10959_v15, %v8668_v43  ;;  %v8790_v43 = vld [vmem:[%s11582_s21 + $0x748] sm:$0xf0] }
 0x3f8   : > { %v6116_v63 = vpop.f32.mrf.mxu0 }
 0x3f9   : > { %v6025_v22 = vadd.f32 %v6024_v55, %v5936_v36  ;;  %v8673_v55 = vor.u32 %v10944_v6, %v8670_v35 }
 0x3fa   : > { %v6205_v53 = vpop.f32.mrf.mxu1 }
 0x3fb   : > { %v6114_v14 = vadd.f32 %v6113_v41, %v6025_v22  ;;  %6253 = vmatmul.bf16.gmra.mxu2 %v8541_v59  ;;  %6431 = vmatmul.bf16.gmra.mxu0 %v8549_v61  ;;  %v10958_v41 = vld [vmem:[%s11582_s21 + $0x64c] sm:$0xf0] }
 0x3fc   : > { %6342 = vmatmul.bf16.gmra.mxu3 %v8545_v9  ;;  %v8661_v58 = vor.u32 %v10958_v41, %v8660_v1  ;;  %v10973_v1 = vld [vmem:[%s11582_s21 + $0x6cc] sm:$0xf]  ;;  %v8788_v41 = vld [vmem:[%s11582_s21 + $0x6d0] sm:$0xf] }
 0x3fd   : > { %6520 = vmatmul.bf16.gmra.mxu1 %v8553_v8  ;;  %v12850_v44 = vadd.f32 %v6202_v11, %v6114_v14  ;;  %v11383_v8 = vld [vmem:[%s13939_s1 + $0x498] sm:$0xff] }
 0x3fe   : > { %v5938_v23 = vpop.f32.mrf.mxu2  ;;  %6580 = vmatpush.bf16.msrb.mxu2 %v11383_v8 }
 0x3ff   : > { %v6027_v12 = vpop.f32.mrf.mxu3  ;;  %v5939_v21 = vadd.f32 %v5938_v23, %v12541_v18  ;;  %v8665_v18 = vor.u32 %v10943_v40, %v8662_v29  ;;  %v10989_v40 = vld [vmem:[%s11582_s21 + $0x744] sm:$0xf0]  ;;  %v10974_v29 = vld [vmem:[%s11582_s21 + $0x6d4] sm:$0xf] }
 0x400   : > { %v6118_v26 = vpop.f32.mrf.mxu0 }
 0x401   : > { %v6028_v13 = vadd.f32 %v6027_v12, %v5939_v21 }
 0x402   : > { %v6207_v62 = vpop.f32.mrf.mxu1 }
 0x403   : > { %v6117_v10 = vadd.f32 %v6116_v63, %v6028_v13  ;;  %v8780_v13 = vld [vmem:[%s11582_s21 + $0x6c8] sm:$0xf] }
 0x405   : > { %v12861_v52 = vadd.f32 %v6205_v53, %v6117_v10  ;;  %v11399_v10 = vld [vmem:[%s13939_s1 + $0x518] sm:$0xff] }
 0x406   : > { %v5940_v11 = vpop.f32.mrf.mxu2  ;;  %6758 = vmatpush.bf16.msrb.mxu0 %v11399_v10  ;;  %v11019_v10 = vld [vmem:[%s11582_s21 + $0x834] sm:$0xf0] }
 0x407   : > { %v6029_v51 = vpop.f32.mrf.mxu3  ;;  %v5941_v46 = vadd.f32 %v5940_v11, %v12550_v2  ;;  %v11391_v2 = vld [vmem:[%s13939_s1 + $0x4d8] sm:$0xff] }
 0x408   : > { %v6121_v59 = vpop.f32.mrf.mxu0  ;;  %6669 = vmatpush.bf16.msrb.mxu3 %v11391_v2 }
 0x409   : > { %v6030_v36 = vadd.f32 %v6029_v51, %v5941_v46  ;;  %v8789_v46 = vor.u32 %v10989_v40, %v8788_v41 }
 0x40a   : > { %v6210_v9 = vpop.f32.mrf.mxu1 }
 0x40b   : > { %v6119_v61 = vadd.f32 %v6118_v26, %v6030_v36  ;;  %6258 = vmatmul.bf16.gmra.mxu2 %v8661_v58  ;;  %6436 = vmatmul.bf16.gmra.mxu0 %v8669_v47  ;;  %v10988_v26 = vld [vmem:[%s11582_s21 + $0x73c] sm:$0xf0]  ;;  %v8793_v58 = vor.u32 %v10974_v29, %v8790_v43 }
 0x40c   : > { %6347 = vmatmul.bf16.gmra.mxu3 %v8665_v18  ;;  %v8781_v11 = vor.u32 %v10988_v26, %v8780_v13  ;;  %v8902_v13 = vld [vmem:[%s11582_s21 + $0x830] sm:$0xf0]  ;;  %v8908_v26 = vld [vmem:[%s11582_s21 + $0x7c0] sm:$0xf] }
 0x40d   : > { %6525 = vmatmul.bf16.gmra.mxu1 %v8673_v55  ;;  %v12870_v22 = vadd.f32 %v6207_v62, %v6119_v61  ;;  %v8782_v62 = vld [vmem:[%s11582_s21 + $0x740] sm:$0xf0] }
 0x40e   : > { %v5943_v63 = vpop.f32.mrf.mxu2  ;;  %v8785_v51 = vor.u32 %v10973_v1, %v8782_v62  ;;  %v11004_v1 = vld [vmem:[%s11582_s21 + $0x7c4] sm:$0xf]  ;;  %v8910_v62 = vld [vmem:[%s11582_s21 + $0x838] sm:$0xf0] }
 0x40f   : > { %v6032_v53 = vpop.f32.mrf.mxu3  ;;  %v5944_v14 = vadd.f32 %v5943_v63, %v12564_v31 }
 0x410   : > { %v6123_v23 = vpop.f32.mrf.mxu0 }
 0x411   : > { %v6033_v57 = vadd.f32 %v6032_v53, %v5944_v14 }
 0x412   : > { %v6212_v12 = vpop.f32.mrf.mxu1 }
 0x413   : > { %v6122_v21 = vadd.f32 %v6121_v59, %v6033_v57  ;;  %v11407_v59 = vld [vmem:[%s13939_s1 + $0x558] sm:$0xff] }
 0x414   : > { %6847 = vmatpush.bf16.msrb.mxu1 %v11407_v59  ;;  %v8900_v57 = vld [vmem:[%s11582_s21 + $0x7b8] sm:$0xf] }
 0x415   : > { %v12884_v15 = vadd.f32 %v6210_v9, %v6122_v21  ;;  %v11003_v21 = vld [vmem:[%s11582_s21 + $0x7bc] sm:$0xf] }
 0x416   : > { %v5945_v31 = vpop.f32.mrf.mxu2 }
 0x417   : > { %v6034_v6 = vpop.f32.mrf.mxu3  ;;  %v5946_v35 = vadd.f32 %v5945_v31, %v12570_v56  ;;  %v8909_v31 = vor.u32 %v11019_v10, %v8908_v26  ;;  %v9030_v26 = vld [vmem:[%s11582_s21 + $0x928] sm:$0xf0] }
 0x418   : > { %v6126_v47 = vpop.f32.mrf.mxu0 }
 0x419   : > { %v6035_v18 = vadd.f32 %v6034_v6, %v5946_v35  ;;  %v8913_v6 = vor.u32 %v11004_v1, %v8910_v62 }
 0x41a   : > { %v6215_v55 = vpop.f32.mrf.mxu1 }
 0x41b   : > { %v6124_v36 = vadd.f32 %v6123_v23, %v6035_v18  ;;  %6263 = vmatmul.bf16.gmra.mxu2 %v8781_v11  ;;  %6441 = vmatmul.bf16.gmra.mxu0 %v8789_v46  ;;  %v11018_v23 = vld [vmem:[%s11582_s21 + $0x82c] sm:$0xf0] }
 0x41c   : > { %6352 = vmatmul.bf16.gmra.mxu3 %v8785_v51  ;;  %v8901_v43 = vor.u32 %v11018_v23, %v8900_v57  ;;  %v11033_v57 = vld [vmem:[%s11582_s21 + $0x8ac] sm:$0xf]  ;;  %v9028_v23 = vld [vmem:[%s11582_s21 + $0x8b0] sm:$0xf] }
 0x41d   : > { %6530 = vmatmul.bf16.gmra.mxu1 %v8793_v58  ;;  %v12890_v56 = vadd.f32 %v6212_v12, %v6124_v36  ;;  %v11382_v58 = vld [vmem:[%s13939_s1 + $0x490] sm:$0xff] }
 0x41e   : > { %v5948_v9 = vpop.f32.mrf.mxu2  ;;  %6581 = vmatpush.bf16.msrb.mxu2 %v11382_v58 }
 0x41f   : > { %v6037_v61 = vpop.f32.mrf.mxu3  ;;  %v5949_v8 = vadd.f32 %v5948_v9, %v12581_v25  ;;  %v8905_v25 = vor.u32 %v11003_v21, %v8902_v13  ;;  %v11049_v21 = vld [vmem:[%s11582_s21 + $0x924] sm:$0xf0]  ;;  %v11034_v13 = vld [vmem:[%s11582_s21 + $0x8b4] sm:$0xf] }
 0x420   : > { %v6128_v63 = vpop.f32.mrf.mxu0 }
 0x421   : > { %v6038_v2 = vadd.f32 %v6037_v61, %v5949_v8 }
 0x422   : > { %v6217_v53 = vpop.f32.mrf.mxu1 }
 0x423   : > { %v6127_v14 = vadd.f32 %v6126_v47, %v6038_v2  ;;  %v9020_v2 = vld [vmem:[%s11582_s21 + $0x8a8] sm:$0xf] }
 0x425   : > { %v12901_v41 = vadd.f32 %v6215_v55, %v6127_v14  ;;  %v11398_v14 = vld [vmem:[%s13939_s1 + $0x510] sm:$0xff] }
 0x426   : > { %v5950_v12 = vpop.f32.mrf.mxu2  ;;  %6759 = vmatpush.bf16.msrb.mxu0 %v11398_v14  ;;  %v11079_v14 = vld [vmem:[%s11582_s21 + $0xa14] sm:$0xf0] }
 0x427   : > { %v6039_v40 = vpop.f32.mrf.mxu3  ;;  %v5951_v29 = vadd.f32 %v5950_v12, %v12590_v48  ;;  %v11390_v48 = vld [vmem:[%s13939_s1 + $0x4d0] sm:$0xff] }
 0x428   : > { %v6407_v11 = vpop.f32.mrf.mxu0  ;;  %6670 = vmatpush.bf16.msrb.mxu3 %v11390_v48 }
 0x429   : > { %v6040_v35 = vadd.f32 %v6039_v40, %v5951_v29  ;;  %v9029_v29 = vor.u32 %v11049_v21, %v9028_v23 }
 0x42a   : > { %v6496_v51 = vpop.f32.mrf.mxu1 }
 0x42b   : > { %v6129_v46 = vadd.f32 %v6128_v63, %v6040_v35  ;;  %6268 = vmatmul.bf16.gmra.mxu2 %v8901_v43  ;;  %6446 = vmatmul.bf16.gmra.mxu0 %v8909_v31  ;;  %v11048_v63 = vld [vmem:[%s11582_s21 + $0x91c] sm:$0xf0]  ;;  %v9033_v43 = vor.u32 %v11034_v13, %v9030_v26 }
 0x42c   : > { %6357 = vmatmul.bf16.gmra.mxu3 %v8905_v25  ;;  %v9021_v12 = vor.u32 %v11048_v63, %v9020_v2  ;;  %v9142_v2 = vld [vmem:[%s11582_s21 + $0xa10] sm:$0xf0]  ;;  %v9148_v63 = vld [vmem:[%s11582_s21 + $0x9a0] sm:$0xf] }
 0x42d   : > { %6535 = vmatmul.bf16.gmra.mxu1 %v8913_v6  ;;  %v12910_v18 = vadd.f32 %v6217_v53, %v6129_v46  ;;  %v9022_v53 = vld [vmem:[%s11582_s21 + $0x920] sm:$0xf0] }
 0x42e   : > { %v6229_v47 = vpop.f32.mrf.mxu2  ;;  %v9025_v40 = vor.u32 %v11033_v57, %v9022_v53  ;;  %v11064_v57 = vld [vmem:[%s11582_s21 + $0x9a4] sm:$0xf]  ;;  %v9150_v53 = vld [vmem:[%s11582_s21 + $0xa18] sm:$0xf0] }
 0x42f   : > { %v6318_v55 = vpop.f32.mrf.mxu3  ;;  %v6230_v36 = vadd.f32 %v6229_v47, %v12604_v17 }
 0x430   : > { %v6409_v9 = vpop.f32.mrf.mxu0 }
 0x431   : > { %v6319_v59 = vadd.f32 %v6318_v55, %v6230_v36 }
 0x432   : > { %v6498_v61 = vpop.f32.mrf.mxu1 }
 0x433   : > { %v6408_v8 = vadd.f32 %v6407_v11, %v6319_v59  ;;  %v11406_v11 = vld [vmem:[%s13939_s1 + $0x550] sm:$0xff]  ;;  %v9140_v59 = vld [vmem:[%s11582_s21 + $0x998] sm:$0xf] }
 0x434   : > { %6848 = vmatpush.bf16.msrb.mxu1 %v11406_v11 }
 0x435   : > { %v12924_v10 = vadd.f32 %v6496_v51, %v6408_v8  ;;  %v11063_v8 = vld [vmem:[%s11582_s21 + $0x99c] sm:$0xf] }
 0x436   : > { %v6231_v17 = vpop.f32.mrf.mxu2 }
 0x437   : > { %v6320_v1 = vpop.f32.mrf.mxu3  ;;  %v6232_v62 = vadd.f32 %v6231_v17, %v12610_v42  ;;  %v9149_v17 = vor.u32 %v11079_v14, %v9148_v63  ;;  %v9270_v63 = vld [vmem:[%s11582_s21 + $0xb08] sm:$0xf0] }
 0x438   : > { %v6412_v31 = vpop.f32.mrf.mxu0 }
 0x439   : > { %v6321_v25 = vadd.f32 %v6320_v1, %v6232_v62  ;;  %v9153_v1 = vor.u32 %v11064_v57, %v9150_v53 }
 0x43a   : > { %v6501_v6 = vpop.f32.mrf.mxu1 }
 0x43b   : > { %v6410_v35 = vadd.f32 %v6409_v9, %v6321_v25  ;;  %6273 = vmatmul.bf16.gmra.mxu2 %v9021_v12  ;;  %6451 = vmatmul.bf16.gmra.mxu0 %v9029_v29  ;;  %v11078_v9 = vld [vmem:[%s11582_s21 + $0xa0c] sm:$0xf0] }
 0x43c   : > { %6362 = vmatmul.bf16.gmra.mxu3 %v9025_v40  ;;  %v9141_v26 = vor.u32 %v11078_v9, %v9140_v59  ;;  %v11093_v59 = vld [vmem:[%s11582_s21 + $0xa8c] sm:$0xf]  ;;  %v9268_v9 = vld [vmem:[%s11582_s21 + $0xa90] sm:$0xf] }
 0x43d   : > { %6540 = vmatmul.bf16.gmra.mxu1 %v9033_v43  ;;  %v12930_v42 = vadd.f32 %v6498_v61, %v6410_v35  ;;  %v11381_v43 = vld [vmem:[%s13939_s1 + $0x488] sm:$0xff] }
 0x43e   : > { %v6234_v51 = vpop.f32.mrf.mxu2  ;;  %6582 = vmatpush.bf16.msrb.mxu2 %v11381_v43 }
 0x43f   : > { %v6323_v46 = vpop.f32.mrf.mxu3  ;;  %v6235_v58 = vadd.f32 %v6234_v51, %v12621_v39  ;;  %v9145_v39 = vor.u32 %v11063_v8, %v9142_v2  ;;  %v11109_v8 = vld [vmem:[%s11582_s21 + $0xb04] sm:$0xf0]  ;;  %v11094_v2 = vld [vmem:[%s11582_s21 + $0xa94] sm:$0xf] }
 0x440   : > { %v6414_v47 = vpop.f32.mrf.mxu0 }
 0x441   : > { %v6324_v48 = vadd.f32 %v6323_v46, %v6235_v58 }
 0x442   : > { %v6503_v55 = vpop.f32.mrf.mxu1 }
 0x443   : > { %v6413_v36 = vadd.f32 %v6412_v31, %v6324_v48  ;;  %v9260_v48 = vld [vmem:[%s11582_s21 + $0xa88] sm:$0xf] }
 0x445   : > { %v12941_v23 = vadd.f32 %v6501_v6, %v6413_v36  ;;  %v11397_v36 = vld [vmem:[%s13939_s1 + $0x508] sm:$0xff] }
 0x446   : > { %v6236_v61 = vpop.f32.mrf.mxu2  ;;  %6760 = vmatpush.bf16.msrb.mxu0 %v11397_v36  ;;  %v11139_v36 = vld [vmem:[%s11582_s21 + $0xbf4] sm:$0xf0] }
 0x447   : > { %v6325_v21 = vpop.f32.mrf.mxu3  ;;  %v6237_v13 = vadd.f32 %v6236_v61, %v12630_v32  ;;  %v11389_v32 = vld [vmem:[%s13939_s1 + $0x4c8] sm:$0xff] }
 0x448   : > { %v6417_v12 = vpop.f32.mrf.mxu0  ;;  %6671 = vmatpush.bf16.msrb.mxu3 %v11389_v32 }
 0x449   : > { %v6326_v62 = vadd.f32 %v6325_v21, %v6237_v13  ;;  %v9269_v13 = vor.u32 %v11109_v8, %v9268_v9 }
 0x44a   : > { %v6506_v40 = vpop.f32.mrf.mxu1 }
 0x44b   : > { %v6415_v29 = vadd.f32 %v6414_v47, %v6326_v62  ;;  %6278 = vmatmul.bf16.gmra.mxu2 %v9141_v26  ;;  %6456 = vmatmul.bf16.gmra.mxu0 %v9149_v17  ;;  %v11108_v47 = vld [vmem:[%s11582_s21 + $0xafc] sm:$0xf0]  ;;  %v9273_v26 = vor.u32 %v11094_v2, %v9270_v63 }
 0x44c   : > { %6367 = vmatmul.bf16.gmra.mxu3 %v9145_v39  ;;  %v9261_v61 = vor.u32 %v11108_v47, %v9260_v48  ;;  %v9382_v48 = vld [vmem:[%s11582_s21 + $0xbf0] sm:$0xf0]  ;;  %v9388_v47 = vld [vmem:[%s11582_s21 + $0xb80] sm:$0xf] }
 0x44d   : > { %6545 = vmatmul.bf16.gmra.mxu1 %v9153_v1  ;;  %v12950_v25 = vadd.f32 %v6503_v55, %v6415_v29  ;;  %v9262_v55 = vld [vmem:[%s11582_s21 + $0xb00] sm:$0xf0] }
 0x44e   : > { %v6239_v31 = vpop.f32.mrf.mxu2  ;;  %v9265_v21 = vor.u32 %v11093_v59, %v9262_v55  ;;  %v11124_v59 = vld [vmem:[%s11582_s21 + $0xb84] sm:$0xf]  ;;  %v9390_v55 = vld [vmem:[%s11582_s21 + $0xbf8] sm:$0xf0] }
 0x44f   : > { %v6328_v6 = vpop.f32.mrf.mxu3  ;;  %v6240_v35 = vadd.f32 %v6239_v31, %v12644_v3 }
 0x450   : > { %v6419_v51 = vpop.f32.mrf.mxu0 }
 0x451   : > { %v6329_v11 = vadd.f32 %v6328_v6, %v6240_v35 }
 0x452   : > { %v6508_v46 = vpop.f32.mrf.mxu1 }
 0x453   : > { %v6418_v58 = vadd.f32 %v6417_v12, %v6329_v11  ;;  %v11405_v12 = vld [vmem:[%s13939_s1 + $0x548] sm:$0xff]  ;;  %v9380_v11 = vld [vmem:[%s11582_s21 + $0xb78] sm:$0xf] }
 0x454   : > { %6849 = vmatpush.bf16.msrb.mxu1 %v11405_v12 }
 0x455   : > { %v12964_v14 = vadd.f32 %v6506_v40, %v6418_v58  ;;  %v11123_v58 = vld [vmem:[%s11582_s21 + $0xb7c] sm:$0xf] }
 0x456   : > { %v6241_v3 = vpop.f32.mrf.mxu2 }
 0x457   : > { %v6330_v57 = vpop.f32.mrf.mxu3  ;;  %v6242_v53 = vadd.f32 %v6241_v3, %v12650_v30  ;;  %v9389_v3 = vor.u32 %v11139_v36, %v9388_v47  ;;  %v9510_v47 = vld [vmem:[%s11582_s21 + $0xce8] sm:$0xf0] }
 0x458   : > { %v6422_v17 = vpop.f32.mrf.mxu0 }
 0x459   : > { %v6331_v39 = vadd.f32 %v6330_v57, %v6242_v53  ;;  %v9393_v57 = vor.u32 %v11124_v59, %v9390_v55 }
 0x45a   : > { %v6511_v1 = vpop.f32.mrf.mxu1 }
 0x45b   : > { %v6420_v62 = vadd.f32 %v6419_v51, %v6331_v39  ;;  %6283 = vmatmul.bf16.gmra.mxu2 %v9261_v61  ;;  %6461 = vmatmul.bf16.gmra.mxu0 %v9269_v13  ;;  %v11138_v51 = vld [vmem:[%s11582_s21 + $0xbec] sm:$0xf0] }
 0x45c   : > { %6372 = vmatmul.bf16.gmra.mxu3 %v9265_v21  ;;  %v9381_v63 = vor.u32 %v11138_v51, %v9380_v11  ;;  %v11153_v11 = vld [vmem:[%s11582_s21 + $0xc6c] sm:$0xf]  ;;  %v9508_v51 = vld [vmem:[%s11582_s21 + $0xc70] sm:$0xf] }
 0x45d   : > { %6550 = vmatmul.bf16.gmra.mxu1 %v9273_v26  ;;  %v12970_v30 = vadd.f32 %v6508_v46, %v6420_v62  ;;  %v11380_v26 = vld [vmem:[%s13939_s1 + $0x480] sm:$0xff] }
 0x45e   : > { %v6244_v40 = vpop.f32.mrf.mxu2  ;;  %6583 = vmatpush.bf16.msrb.mxu2 %v11380_v26 }
 0x45f   : > { %v6333_v29 = vpop.f32.mrf.mxu3  ;;  %v6245_v43 = vadd.f32 %v6244_v40, %v12661_v27  ;;  %v9385_v27 = vor.u32 %v11123_v58, %v9382_v48  ;;  %v11169_v58 = vld [vmem:[%s11582_s21 + $0xce4] sm:$0xf0]  ;;  %v11154_v48 = vld [vmem:[%s11582_s21 + $0xc74] sm:$0xf] }
 0x460   : > { %v6424_v31 = vpop.f32.mrf.mxu0 }
 0x461   : > { %v6334_v32 = vadd.f32 %v6333_v29, %v6245_v43 }
 0x462   : > { %v6513_v6 = vpop.f32.mrf.mxu1 }
 0x463   : > { %v6423_v35 = vadd.f32 %v6422_v17, %v6334_v32  ;;  %v9500_v32 = vld [vmem:[%s11582_s21 + $0xc68] sm:$0xf] }
 0x465   : > { %v12981_v9 = vadd.f32 %v6511_v1, %v6423_v35  ;;  %v11396_v35 = vld [vmem:[%s13939_s1 + $0x500] sm:$0xff] }
 0x466   : > { %v6246_v46 = vpop.f32.mrf.mxu2  ;;  %6761 = vmatpush.bf16.msrb.mxu0 %v11396_v35  ;;  %v11199_v35 = vld [vmem:[%s11582_s21 + $0xdd4] sm:$0xf0] }
 0x467   : > { %v6335_v8 = vpop.f32.mrf.mxu3  ;;  %v6247_v2 = vadd.f32 %v6246_v46, %v12670_v19  ;;  %v11388_v19 = vld [vmem:[%s13939_s1 + $0x4c0] sm:$0xff] }
 0x468   : > { %v6427_v61 = vpop.f32.mrf.mxu0  ;;  %6672 = vmatpush.bf16.msrb.mxu3 %v11388_v19 }
 0x469   : > { %v6336_v53 = vadd.f32 %v6335_v8, %v6247_v2  ;;  %v9509_v2 = vor.u32 %v11169_v58, %v9508_v51 }
 0x46a   : > { %v6516_v21 = vpop.f32.mrf.mxu1 }
 0x46b   : > { %v6425_v13 = vadd.f32 %v6424_v31, %v6336_v53  ;;  %6288 = vmatmul.bf16.gmra.mxu2 %v9381_v63  ;;  %6466 = vmatmul.bf16.gmra.mxu0 %v9389_v3  ;;  %v11168_v31 = vld [vmem:[%s11582_s21 + $0xcdc] sm:$0xf0]  ;;  %v9513_v63 = vor.u32 %v11154_v48, %v9510_v47 }
 0x46c   : > { %6377 = vmatmul.bf16.gmra.mxu3 %v9385_v27  ;;  %v9501_v46 = vor.u32 %v11168_v31, %v9500_v32  ;;  %v9622_v32 = vld [vmem:[%s11582_s21 + $0xdd0] sm:$0xf0]  ;;  %v9628_v31 = vld [vmem:[%s11582_s21 + $0xd60] sm:$0xf] }
 0x46d   : > { %6555 = vmatmul.bf16.gmra.mxu1 %v9393_v57  ;;  %v12990_v39 = vadd.f32 %v6513_v6, %v6425_v13  ;;  %v9502_v6 = vld [vmem:[%s11582_s21 + $0xce0] sm:$0xf0] }
 0x46e   : > { %v6249_v17 = vpop.f32.mrf.mxu2  ;;  %v9505_v8 = vor.u32 %v11153_v11, %v9502_v6  ;;  %v11184_v11 = vld [vmem:[%s11582_s21 + $0xd64] sm:$0xf]  ;;  %v9630_v6 = vld [vmem:[%s11582_s21 + $0xdd8] sm:$0xf0] }
 0x46f   : > { %v6338_v1 = vpop.f32.mrf.mxu3  ;;  %v6250_v62 = vadd.f32 %v6249_v17, %v12684_v49 }
 0x470   : > { %v6429_v40 = vpop.f32.mrf.mxu0 }
 0x471   : > { %v6339_v12 = vadd.f32 %v6338_v1, %v6250_v62 }
 0x472   : > { %v6518_v29 = vpop.f32.mrf.mxu1 }
 0x473   : > { %v6428_v43 = vadd.f32 %v6427_v61, %v6339_v12  ;;  %v11404_v61 = vld [vmem:[%s13939_s1 + $0x540] sm:$0xff]  ;;  %v9620_v12 = vld [vmem:[%s11582_s21 + $0xd58] sm:$0xf] }
 0x474   : > { %6850 = vmatpush.bf16.msrb.mxu1 %v11404_v61 }
 0x475   : > { %v13004_v36 = vadd.f32 %v6516_v21, %v6428_v43  ;;  %v11183_v43 = vld [vmem:[%s11582_s21 + $0xd5c] sm:$0xf] }
 0x476   : > { %v6251_v49 = vpop.f32.mrf.mxu2 }
 0x477   : > { %v6340_v59 = vpop.f32.mrf.mxu3  ;;  %v6252_v55 = vadd.f32 %v6251_v49, %v12690_v28  ;;  %v9629_v49 = vor.u32 %v11199_v35, %v9628_v31  ;;  %v9750_v31 = vld [vmem:[%s11582_s21 + $0xec8] sm:$0xf0] }
 0x478   : > { %v6432_v3 = vpop.f32.mrf.mxu0 }
 0x479   : > { %v6341_v27 = vadd.f32 %v6340_v59, %v6252_v55  ;;  %v9633_v59 = vor.u32 %v11184_v11, %v9630_v6 }
 0x47a   : > { %v6521_v57 = vpop.f32.mrf.mxu1 }
 0x47b   : > { %v6430_v53 = vadd.f32 %v6429_v40, %v6341_v27  ;;  %6293 = vmatmul.bf16.gmra.mxu2 %v9501_v46  ;;  %6471 = vmatmul.bf16.gmra.mxu0 %v9509_v2  ;;  %v11198_v40 = vld [vmem:[%s11582_s21 + $0xdcc] sm:$0xf0] }
 0x47c   : > { %6382 = vmatmul.bf16.gmra.mxu3 %v9505_v8  ;;  %v9621_v47 = vor.u32 %v11198_v40, %v9620_v12  ;;  %v11213_v12 = vld [vmem:[%s11582_s21 + $0xe4c] sm:$0xf]  ;;  %v9748_v40 = vld [vmem:[%s11582_s21 + $0xe50] sm:$0xf] }
 0x47d   : > { %6560 = vmatmul.bf16.gmra.mxu1 %v9513_v63  ;;  %v13010_v28 = vadd.f32 %v6518_v29, %v6430_v53  ;;  %v11419_v63 = vld [vmem:[%s13939_s1 + $0x5b8] sm:$0xff] }
 0x47e   : > { %v6254_v21 = vpop.f32.mrf.mxu2  ;;  %6932 = vmatpush.bf16.msra.mxu2 %v11419_v63 }
 0x47f   : > { %v6343_v13 = vpop.f32.mrf.mxu3  ;;  %v6255_v26 = vadd.f32 %v6254_v21, %v12701_v24  ;;  %v9625_v24 = vor.u32 %v11183_v43, %v9622_v32  ;;  %v11229_v43 = vld [vmem:[%s11582_s21 + $0xec4] sm:$0xf0]  ;;  %v11214_v32 = vld [vmem:[%s11582_s21 + $0xe54] sm:$0xf] }
 0x480   : > { %v6434_v17 = vpop.f32.mrf.mxu0 }
 0x481   : > { %v6344_v19 = vadd.f32 %v6343_v13, %v6255_v26 }
 0x482   : > { %v6523_v1 = vpop.f32.mrf.mxu1 }
 0x483   : > { %v6433_v62 = vadd.f32 %v6432_v3, %v6344_v19  ;;  %v9740_v19 = vld [vmem:[%s11582_s21 + $0xe48] sm:$0xf] }
 0x485   : > { %v13021_v51 = vadd.f32 %v6521_v57, %v6433_v62  ;;  %v11435_v62 = vld [vmem:[%s13939_s1 + $0x638] sm:$0xff] }
 0x486   : > { %v6256_v29 = vpop.f32.mrf.mxu2  ;;  %7110 = vmatpush.bf16.msra.mxu0 %v11435_v62  ;;  %v10781_v62 = vld [vmem:[%s11582_s21 + $0xc4] sm:$0xf0] }
 0x487   : > { %v6345_v58 = vpop.f32.mrf.mxu3  ;;  %v6257_v48 = vadd.f32 %v6256_v29, %v12710_v5  ;;  %v11427_v5 = vld [vmem:[%s13939_s1 + $0x5f8] sm:$0xff] }
 0x488   : > { %v6437_v46 = vpop.f32.mrf.mxu0  ;;  %7021 = vmatpush.bf16.msra.mxu3 %v11427_v5 }
 0x489   : > { %v6346_v55 = vadd.f32 %v6345_v58, %v6257_v48  ;;  %v9749_v48 = vor.u32 %v11229_v43, %v9748_v40 }
 0x48a   : > { %v6526_v8 = vpop.f32.mrf.mxu1 }
 0x48b   : > { %v6435_v2 = vadd.f32 %v6434_v17, %v6346_v55  ;;  %6298 = vmatmul.bf16.gmra.mxu2 %v9621_v47  ;;  %6476 = vmatmul.bf16.gmra.mxu0 %v9629_v49  ;;  %v11228_v17 = vld [vmem:[%s11582_s21 + $0xebc] sm:$0xf0]  ;;  %v9753_v47 = vor.u32 %v11214_v32, %v9750_v31 }
 0x48c   : > { %6387 = vmatmul.bf16.gmra.mxu3 %v9625_v24  ;;  %v9741_v29 = vor.u32 %v11228_v17, %v9740_v19  ;;  %v7958_v19 = vld [vmem:[%s11582_s21 + $0xc0] sm:$0xf0]  ;;  %v7964_v17 = vld [vmem:[%s11582_s21 + $0x50] sm:$0xf] }
 0x48d   : > { %6565 = vmatmul.bf16.gmra.mxu1 %v9633_v59  ;;  %v13030_v27 = vadd.f32 %v6523_v1, %v6435_v2  ;;  %v9742_v1 = vld [vmem:[%s11582_s21 + $0xec0] sm:$0xf0] }
 0x48e   : > { %v6259_v3 = vpop.f32.mrf.mxu2  ;;  %v9745_v58 = vor.u32 %v11213_v12, %v9742_v1  ;;  %v10766_v12 = vld [vmem:[%s11582_s21 + $0x54] sm:$0xf]  ;;  %v7966_v1 = vld [vmem:[%s11582_s21 + $0xc8] sm:$0xf0] }
 0x48f   : > { %v6348_v57 = vpop.f32.mrf.mxu3  ;;  %v6260_v53 = vadd.f32 %v6259_v3, %v12724_v4 }
 0x490   : > { %v6439_v21 = vpop.f32.mrf.mxu0 }
 0x491   : > { %v6349_v61 = vadd.f32 %v6348_v57, %v6260_v53 }
 0x492   : > { %v6528_v13 = vpop.f32.mrf.mxu1 }
 0x493   : > { %v6438_v26 = vadd.f32 %v6437_v46, %v6349_v61  ;;  %v11443_v46 = vld [vmem:[%s13939_s1 + $0x678] sm:$0xff]  ;;  %v7956_v61 = vld [vmem:[%s11582_s21 + $0x48] sm:$0xf] }
 0x494   : > { %7199 = vmatpush.bf16.msra.mxu1 %v11443_v46 }
 0x495   : > { %v13044_v35 = vadd.f32 %v6526_v8, %v6438_v26  ;;  %v10765_v26 = vld [vmem:[%s11582_s21 + $0x4c] sm:$0xf] }
 0x496   : > { %v6261_v4 = vpop.f32.mrf.mxu2 }
 0x497   : > { %v6350_v11 = vpop.f32.mrf.mxu3  ;;  %v6262_v6 = vadd.f32 %v6261_v4, %v12730_v37  ;;  %v7965_v4 = vor.u32 %v10781_v62, %v7964_v17  ;;  %v8086_v17 = vld [vmem:[%s11582_s21 + $0x1b8] sm:$0xf0] }
 0x498   : > { %v6442_v49 = vpop.f32.mrf.mxu0 }
 0x499   : > { %v6351_v24 = vadd.f32 %v6350_v11, %v6262_v6  ;;  %v7969_v11 = vor.u32 %v10766_v12, %v7966_v1 }
 0x49a   : > { %v6531_v59 = vpop.f32.mrf.mxu1 }
 0x49b   : > { %v6440_v55 = vadd.f32 %v6439_v21, %v6351_v24  ;;  %6303 = vmatmul.bf16.gmra.mxu2 %v9741_v29  ;;  %6481 = vmatmul.bf16.gmra.mxu0 %v9749_v48  ;;  %v10780_v21 = vld [vmem:[%s11582_s21 + $0xbc] sm:$0xf0] }
 0x49c   : > { %6392 = vmatmul.bf16.gmra.mxu3 %v9745_v58  ;;  %v7957_v31 = vor.u32 %v10780_v21, %v7956_v61  ;;  %v10795_v61 = vld [vmem:[%s11582_s21 + $0x13c] sm:$0xf]  ;;  %v8084_v21 = vld [vmem:[%s11582_s21 + $0x140] sm:$0xf] }
 0x49d   : > { %6570 = vmatmul.bf16.gmra.mxu1 %v9753_v47  ;;  %v13050_v37 = vadd.f32 %v6528_v13, %v6440_v55  ;;  %v11418_v47 = vld [vmem:[%s13939_s1 + $0x5b0] sm:$0xff] }
 0x49e   : > { %v6264_v8 = vpop.f32.mrf.mxu2  ;;  %6933 = vmatpush.bf16.msra.mxu2 %v11418_v47 }
 0x49f   : > { %v6353_v2 = vpop.f32.mrf.mxu3  ;;  %v6265_v63 = vadd.f32 %v6264_v8, %v12741_v33  ;;  %v7961_v33 = vor.u32 %v10765_v26, %v7958_v19  ;;  %v10811_v26 = vld [vmem:[%s11582_s21 + $0x1b4] sm:$0xf0]  ;;  %v10796_v19 = vld [vmem:[%s11582_s21 + $0x144] sm:$0xf] }
 0x4a0   : > { %v6444_v3 = vpop.f32.mrf.mxu0 }
 0x4a1   : > { %v6354_v5 = vadd.f32 %v6353_v2, %v6265_v63 }
 0x4a2   : > { %v6533_v57 = vpop.f32.mrf.mxu1 }
 0x4a3   : > { %v6443_v53 = vadd.f32 %v6442_v49, %v6354_v5  ;;  %v8076_v5 = vld [vmem:[%s11582_s21 + $0x138] sm:$0xf] }
 0x4a5   : > { %v13061_v40 = vadd.f32 %v6531_v59, %v6443_v53  ;;  %v11434_v53 = vld [vmem:[%s13939_s1 + $0x630] sm:$0xff] }
 0x4a6   : > { %v6266_v13 = vpop.f32.mrf.mxu2  ;;  %7111 = vmatpush.bf16.msra.mxu0 %v11434_v53  ;;  %v10841_v53 = vld [vmem:[%s11582_s21 + $0x2a4] sm:$0xf0] }
 0x4a7   : > { %v6355_v43 = vpop.f32.mrf.mxu3  ;;  %v6267_v32 = vadd.f32 %v6266_v13, %v12750_v50  ;;  %v11426_v50 = vld [vmem:[%s13939_s1 + $0x5f0] sm:$0xff] }
 0x4a8   : > { %v6447_v29 = vpop.f32.mrf.mxu0  ;;  %7022 = vmatpush.bf16.msra.mxu3 %v11426_v50 }
 0x4a9   : > { %v6356_v6 = vadd.f32 %v6355_v43, %v6267_v32  ;;  %v8085_v32 = vor.u32 %v10811_v26, %v8084_v21 }
 0x4aa   : > { %v6536_v58 = vpop.f32.mrf.mxu1 }
 0x4ab   : > { %v6445_v48 = vadd.f32 %v6444_v3, %v6356_v6  ;;  %6584 = vmatmul.bf16.vlgmr.msrb.gmra.mxu2 %v7957_v31  ;;  %6762 = vmatmul.bf16.vlgmr.msrb.gmra.mxu0 %v7965_v4  ;;  %v10810_v3 = vld [vmem:[%s11582_s21 + $0x1ac] sm:$0xf0]  ;;  %v8089_v31 = vor.u32 %v10796_v19, %v8086_v17 }
 0x4ac   : > { %6673 = vmatmul.bf16.vlgmr.msrb.gmra.mxu3 %v7961_v33  ;;  %v8077_v13 = vor.u32 %v10810_v3, %v8076_v5  ;;  %v8198_v5 = vld [vmem:[%s11582_s21 + $0x2a0] sm:$0xf0]  ;;  %v8204_v3 = vld [vmem:[%s11582_s21 + $0x230] sm:$0xf] }
 0x4ad   : > { %6851 = vmatmul.bf16.vlgmr.msrb.gmra.mxu1 %v7969_v11  ;;  %v13070_v24 = vadd.f32 %v6533_v57, %v6445_v48  ;;  %v8078_v57 = vld [vmem:[%s11582_s21 + $0x1b0] sm:$0xf0] }
 0x4ae   : > { %v6269_v49 = vpop.f32.mrf.mxu2  ;;  %v8081_v43 = vor.u32 %v10795_v61, %v8078_v57  ;;  %v10826_v61 = vld [vmem:[%s11582_s21 + $0x234] sm:$0xf]  ;;  %v8206_v57 = vld [vmem:[%s11582_s21 + $0x2a8] sm:$0xf0] }
 0x4af   : > { %v6358_v59 = vpop.f32.mrf.mxu3  ;;  %v6270_v55 = vadd.f32 %v6269_v49, %v12764_v60 }
 0x4b0   : > { %v6449_v8 = vpop.f32.mrf.mxu0 }
 0x4b1   : > { %v6359_v46 = vadd.f32 %v6358_v59, %v6270_v55 }
 0x4b2   : > { %v6538_v2 = vpop.f32.mrf.mxu1 }
 0x4b3   : > { %v6448_v63 = vadd.f32 %v6447_v29, %v6359_v46  ;;  %v11442_v29 = vld [vmem:[%s13939_s1 + $0x670] sm:$0xff]  ;;  %v8196_v46 = vld [vmem:[%s11582_s21 + $0x228] sm:$0xf] }
 0x4b4   : > { %7200 = vmatpush.bf16.msra.mxu1 %v11442_v29 }
 0x4b5   : > { %v13084_v62 = vadd.f32 %v6536_v58, %v6448_v63  ;;  %v10825_v63 = vld [vmem:[%s11582_s21 + $0x22c] sm:$0xf] }
 0x4b6   : > { %v6271_v60 = vpop.f32.mrf.mxu2 }
 0x4b7   : > { %v6360_v12 = vpop.f32.mrf.mxu3  ;;  %v6272_v1 = vadd.f32 %v6271_v60, %v12770_v54  ;;  %v8205_v60 = vor.u32 %v10841_v53, %v8204_v3  ;;  %v8326_v3 = vld [vmem:[%s11582_s21 + $0x398] sm:$0xf0] }
 0x4b8   : > { %v6452_v4 = vpop.f32.mrf.mxu0 }
 0x4b9   : > { %v6361_v33 = vadd.f32 %v6360_v12, %v6272_v1  ;;  %v8209_v12 = vor.u32 %v10826_v61, %v8206_v57 }
 0x4ba   : > { %v6541_v11 = vpop.f32.mrf.mxu1 }
 0x4bb   : > { %v6450_v6 = vadd.f32 %v6449_v8, %v6361_v33  ;;  %6589 = vmatmul.bf16.gmra.mxu2 %v8077_v13  ;;  %6767 = vmatmul.bf16.gmra.mxu0 %v8085_v32  ;;  %v10840_v8 = vld [vmem:[%s11582_s21 + $0x29c] sm:$0xf0] }
 0x4bc   : > { %6678 = vmatmul.bf16.gmra.mxu3 %v8081_v43  ;;  %v8197_v17 = vor.u32 %v10840_v8, %v8196_v46  ;;  %v10855_v46 = vld [vmem:[%s11582_s21 + $0x31c] sm:$0xf]  ;;  %v8324_v8 = vld [vmem:[%s11582_s21 + $0x320] sm:$0xf] }
 0x4bd   : > { %6856 = vmatmul.bf16.gmra.mxu1 %v8089_v31  ;;  %v13090_v54 = vadd.f32 %v6538_v2, %v6450_v6  ;;  %v11417_v31 = vld [vmem:[%s13939_s1 + $0x5a8] sm:$0xff] }
 0x4be   : > { %v6274_v58 = vpop.f32.mrf.mxu2  ;;  %6934 = vmatpush.bf16.msra.mxu2 %v11417_v31 }
 0x4bf   : > { %v6363_v48 = vpop.f32.mrf.mxu3  ;;  %v6275_v47 = vadd.f32 %v6274_v58, %v12781_v20  ;;  %v8201_v20 = vor.u32 %v10825_v63, %v8198_v5  ;;  %v10871_v63 = vld [vmem:[%s11582_s21 + $0x394] sm:$0xf0]  ;;  %v10856_v5 = vld [vmem:[%s11582_s21 + $0x324] sm:$0xf] }
 0x4c0   : > { %v6454_v49 = vpop.f32.mrf.mxu0 }
 0x4c1   : > { %v6364_v50 = vadd.f32 %v6363_v48, %v6275_v47 }
 0x4c2   : > { %v6543_v59 = vpop.f32.mrf.mxu1 }
 0x4c3   : > { %v6453_v55 = vadd.f32 %v6452_v4, %v6364_v50  ;;  %v8316_v50 = vld [vmem:[%s11582_s21 + $0x318] sm:$0xf] }
 0x4c5   : > { %v13101_v21 = vadd.f32 %v6541_v11, %v6453_v55  ;;  %v11433_v55 = vld [vmem:[%s13939_s1 + $0x628] sm:$0xff] }
 0x4c6   : > { %v6276_v2 = vpop.f32.mrf.mxu2  ;;  %7112 = vmatpush.bf16.msra.mxu0 %v11433_v55  ;;  %v10901_v55 = vld [vmem:[%s11582_s21 + $0x484] sm:$0xf0] }
 0x4c7   : > { %v6365_v26 = vpop.f32.mrf.mxu3  ;;  %v6277_v19 = vadd.f32 %v6276_v2, %v12790_v38  ;;  %v11425_v38 = vld [vmem:[%s13939_s1 + $0x5e8] sm:$0xff] }
 0x4c8   : > { %v6457_v13 = vpop.f32.mrf.mxu0  ;;  %7023 = vmatpush.bf16.msra.mxu3 %v11425_v38 }
 0x4c9   : > { %v6366_v1 = vadd.f32 %v6365_v26, %v6277_v19  ;;  %v8325_v19 = vor.u32 %v10871_v63, %v8324_v8 }
 0x4ca   : > { %v6546_v43 = vpop.f32.mrf.mxu1 }
 0x4cb   : > { %v6455_v32 = vadd.f32 %v6454_v49, %v6366_v1  ;;  %6594 = vmatmul.bf16.gmra.mxu2 %v8197_v17  ;;  %6772 = vmatmul.bf16.gmra.mxu0 %v8205_v60  ;;  %v10870_v49 = vld [vmem:[%s11582_s21 + $0x38c] sm:$0xf0]  ;;  %v8329_v17 = vor.u32 %v10856_v5, %v8326_v3 }
 0x4cc   : > { %6683 = vmatmul.bf16.gmra.mxu3 %v8201_v20  ;;  %v8317_v2 = vor.u32 %v10870_v49, %v8316_v50  ;;  %v8438_v50 = vld [vmem:[%s11582_s21 + $0x480] sm:$0xf0]  ;;  %v8444_v49 = vld [vmem:[%s11582_s21 + $0x410] sm:$0xf] }
 0x4cd   : > { %6861 = vmatmul.bf16.gmra.mxu1 %v8209_v12  ;;  %v13110_v33 = vadd.f32 %v6543_v59, %v6455_v32  ;;  %v8318_v59 = vld [vmem:[%s11582_s21 + $0x390] sm:$0xf0] }
 0x4ce   : > { %v6279_v4 = vpop.f32.mrf.mxu2  ;;  %v8321_v26 = vor.u32 %v10855_v46, %v8318_v59  ;;  %v10886_v46 = vld [vmem:[%s11582_s21 + $0x414] sm:$0xf]  ;;  %v8446_v59 = vld [vmem:[%s11582_s21 + $0x488] sm:$0xf0] }
 0x4cf   : > { %v6368_v11 = vpop.f32.mrf.mxu3  ;;  %v6280_v6 = vadd.f32 %v6279_v4, %v12804_v0 }
 0x4d0   : > { %v6459_v58 = vpop.f32.mrf.mxu0 }
 0x4d1   : > { %v6369_v29 = vadd.f32 %v6368_v11, %v6280_v6 }
 0x4d2   : > { %v6548_v48 = vpop.f32.mrf.mxu1 }
 0x4d3   : > { %v6458_v47 = vadd.f32 %v6457_v13, %v6369_v29  ;;  %v11441_v13 = vld [vmem:[%s13939_s1 + $0x668] sm:$0xff] }
 0x4d4   : > { %7201 = vmatpush.bf16.msra.mxu1 %v11441_v13  ;;  %v8436_v29 = vld [vmem:[%s11582_s21 + $0x408] sm:$0xf] }
 0x4d5   : > { %v13124_v53 = vadd.f32 %v6546_v43, %v6458_v47  ;;  %v10885_v47 = vld [vmem:[%s11582_s21 + $0x40c] sm:$0xf] }
 0x4d6   : > { %v6281_v0 = vpop.f32.mrf.mxu2 }
 0x4d7   : > { %v6370_v61 = vpop.f32.mrf.mxu3  ;;  %v6282_v57 = vadd.f32 %v6281_v0, %v12810_v45  ;;  %v8445_v0 = vor.u32 %v10901_v55, %v8444_v49  ;;  %v8566_v49 = vld [vmem:[%s11582_s21 + $0x578] sm:$0xf0] }
 0x4d8   : > { %v6462_v60 = vpop.f32.mrf.mxu0 }
 0x4d9   : > { %v6371_v20 = vadd.f32 %v6370_v61, %v6282_v57  ;;  %v8449_v61 = vor.u32 %v10886_v46, %v8446_v59 }
 0x4da   : > { %v6551_v12 = vpop.f32.mrf.mxu1 }
 0x4db   : > { %v6460_v1 = vadd.f32 %v6459_v58, %v6371_v20  ;;  %6599 = vmatmul.bf16.gmra.mxu2 %v8317_v2  ;;  %6777 = vmatmul.bf16.gmra.mxu0 %v8325_v19  ;;  %v10900_v58 = vld [vmem:[%s11582_s21 + $0x47c] sm:$0xf0] }
 0x4dc   : > { %6688 = vmatmul.bf16.gmra.mxu3 %v8321_v26  ;;  %v8437_v3 = vor.u32 %v10900_v58, %v8436_v29  ;;  %v10915_v29 = vld [vmem:[%s11582_s21 + $0x4fc] sm:$0xf]  ;;  %v8564_v58 = vld [vmem:[%s11582_s21 + $0x500] sm:$0xf] }
 0x4dd   : > { %6866 = vmatmul.bf16.gmra.mxu1 %v8329_v17  ;;  %v13130_v45 = vadd.f32 %v6548_v48, %v6460_v1  ;;  %v11416_v17 = vld [vmem:[%s13939_s1 + $0x5a0] sm:$0xff] }
 0x4de   : > { %v6284_v43 = vpop.f32.mrf.mxu2  ;;  %6935 = vmatpush.bf16.msra.mxu2 %v11416_v17 }
 0x4df   : > { %v6373_v32 = vpop.f32.mrf.mxu3  ;;  %v6285_v31 = vadd.f32 %v6284_v43, %v12821_v7  ;;  %v8441_v7 = vor.u32 %v10885_v47, %v8438_v50  ;;  %v10931_v47 = vld [vmem:[%s11582_s21 + $0x574] sm:$0xf0]  ;;  %v10916_v50 = vld [vmem:[%s11582_s21 + $0x504] sm:$0xf] }
 0x4e0   : > { %v6464_v4 = vpop.f32.mrf.mxu0 }
 0x4e1   : > { %v6374_v38 = vadd.f32 %v6373_v32, %v6285_v31 }
 0x4e2   : > { %v6553_v11 = vpop.f32.mrf.mxu1 }
 0x4e3   : > { %v6463_v6 = vadd.f32 %v6462_v60, %v6374_v38  ;;  %v8556_v38 = vld [vmem:[%s11582_s21 + $0x4f8] sm:$0xf] }
 0x4e5   : > { %v13141_v8 = vadd.f32 %v6551_v12, %v6463_v6  ;;  %v11432_v6 = vld [vmem:[%s13939_s1 + $0x620] sm:$0xff] }
 0x4e6   : > { %v6286_v48 = vpop.f32.mrf.mxu2  ;;  %7113 = vmatpush.bf16.msra.mxu0 %v11432_v6  ;;  %v10961_v6 = vld [vmem:[%s11582_s21 + $0x664] sm:$0xf0] }
 0x4e7   : > { %v6375_v63 = vpop.f32.mrf.mxu3  ;;  %v6287_v5 = vadd.f32 %v6286_v48, %v12830_v34  ;;  %v11424_v34 = vld [vmem:[%s13939_s1 + $0x5e0] sm:$0xff] }
 0x4e8   : > { %v6467_v2 = vpop.f32.mrf.mxu0  ;;  %7024 = vmatpush.bf16.msra.mxu3 %v11424_v34 }
 0x4e9   : > { %v6376_v57 = vadd.f32 %v6375_v63, %v6287_v5  ;;  %v8565_v5 = vor.u32 %v10931_v47, %v8564_v58 }
 0x4ea   : > { %v6556_v26 = vpop.f32.mrf.mxu1 }
 0x4eb   : > { %v6465_v19 = vadd.f32 %v6464_v4, %v6376_v57  ;;  %6604 = vmatmul.bf16.gmra.mxu2 %v8437_v3  ;;  %6782 = vmatmul.bf16.gmra.mxu0 %v8445_v0  ;;  %v10930_v4 = vld [vmem:[%s11582_s21 + $0x56c] sm:$0xf0]  ;;  %v8569_v3 = vor.u32 %v10916_v50, %v8566_v49 }
 0x4ec   : > { %6693 = vmatmul.bf16.gmra.mxu3 %v8441_v7  ;;  %v8557_v48 = vor.u32 %v10930_v4, %v8556_v38  ;;  %v8678_v38 = vld [vmem:[%s11582_s21 + $0x660] sm:$0xf0]  ;;  %v8684_v4 = vld [vmem:[%s11582_s21 + $0x5f0] sm:$0xf] }
 0x4ed   : > { %6871 = vmatmul.bf16.gmra.mxu1 %v8449_v61  ;;  %v13150_v20 = vadd.f32 %v6553_v11, %v6465_v19  ;;  %v8558_v11 = vld [vmem:[%s11582_s21 + $0x570] sm:$0xf0] }
 0x4ee   : > { %v6289_v60 = vpop.f32.mrf.mxu2  ;;  %v8561_v63 = vor.u32 %v10915_v29, %v8558_v11  ;;  %v10946_v29 = vld [vmem:[%s11582_s21 + $0x5f4] sm:$0xf]  ;;  %v8686_v11 = vld [vmem:[%s11582_s21 + $0x668] sm:$0xf0] }
 0x4ef   : > { %v6378_v12 = vpop.f32.mrf.mxu3  ;;  %v6290_v1 = vadd.f32 %v6289_v60, %v12844_v16 }
 0x4f0   : > { %v6469_v43 = vpop.f32.mrf.mxu0 }
 0x4f1   : > { %v6379_v13 = vadd.f32 %v6378_v12, %v6290_v1 }
 0x4f2   : > { %v6558_v32 = vpop.f32.mrf.mxu1 }
 0x4f3   : > { %v6468_v31 = vadd.f32 %v6467_v2, %v6379_v13  ;;  %v11440_v2 = vld [vmem:[%s13939_s1 + $0x660] sm:$0xff]  ;;  %v8676_v13 = vld [vmem:[%s11582_s21 + $0x5e8] sm:$0xf] }
 0x4f4   : > { %7202 = vmatpush.bf16.msra.mxu1 %v11440_v2 }
 0x4f5   : > { %v13164_v55 = vadd.f32 %v6556_v26, %v6468_v31  ;;  %v10945_v31 = vld [vmem:[%s11582_s21 + $0x5ec] sm:$0xf] }
 0x4f6   : > { %v6291_v16 = vpop.f32.mrf.mxu2 }
 0x4f7   : > { %v6380_v46 = vpop.f32.mrf.mxu3  ;;  %v6292_v59 = vadd.f32 %v6291_v16, %v12850_v44  ;;  %v8685_v16 = vor.u32 %v10961_v6, %v8684_v4  ;;  %v8806_v4 = vld [vmem:[%s11582_s21 + $0x758] sm:$0xf0] }
 0x4f8   : > { %v6472_v0 = vpop.f32.mrf.mxu0 }
 0x4f9   : > { %v6381_v7 = vadd.f32 %v6380_v46, %v6292_v59  ;;  %v8689_v46 = vor.u32 %v10946_v29, %v8686_v11 }
 0x4fa   : > { %v6561_v61 = vpop.f32.mrf.mxu1 }
 0x4fb   : > { %v6470_v57 = vadd.f32 %v6469_v43, %v6381_v7  ;;  %6609 = vmatmul.bf16.gmra.mxu2 %v8557_v48  ;;  %6787 = vmatmul.bf16.gmra.mxu0 %v8565_v5  ;;  %v10960_v43 = vld [vmem:[%s11582_s21 + $0x65c] sm:$0xf0] }
 0x4fc   : > { %6698 = vmatmul.bf16.gmra.mxu3 %v8561_v63  ;;  %v8677_v49 = vor.u32 %v10960_v43, %v8676_v13  ;;  %v10975_v13 = vld [vmem:[%s11582_s21 + $0x6dc] sm:$0xf]  ;;  %v8804_v43 = vld [vmem:[%s11582_s21 + $0x6e0] sm:$0xf] }
 0x4fd   : > { %6876 = vmatmul.bf16.gmra.mxu1 %v8569_v3  ;;  %v13170_v44 = vadd.f32 %v6558_v32, %v6470_v57  ;;  %v11415_v3 = vld [vmem:[%s13939_s1 + $0x598] sm:$0xff] }
 0x4fe   : > { %v6294_v26 = vpop.f32.mrf.mxu2  ;;  %6936 = vmatpush.bf16.msra.mxu2 %v11415_v3 }
 0x4ff   : > { %v6383_v19 = vpop.f32.mrf.mxu3  ;;  %v6295_v17 = vadd.f32 %v6294_v26, %v12861_v52  ;;  %v8681_v52 = vor.u32 %v10945_v31, %v8678_v38  ;;  %v10991_v31 = vld [vmem:[%s11582_s21 + $0x754] sm:$0xf0]  ;;  %v10976_v38 = vld [vmem:[%s11582_s21 + $0x6e4] sm:$0xf] }
 0x500   : > { %v6474_v60 = vpop.f32.mrf.mxu0 }
 0x501   : > { %v6384_v34 = vadd.f32 %v6383_v19, %v6295_v17 }
 0x502   : > { %v6563_v12 = vpop.f32.mrf.mxu1 }
 0x503   : > { %v6473_v1 = vadd.f32 %v6472_v0, %v6384_v34  ;;  %v8796_v34 = vld [vmem:[%s11582_s21 + $0x6d8] sm:$0xf] }
 0x505   : > { %v13181_v58 = vadd.f32 %v6561_v61, %v6473_v1  ;;  %v11431_v1 = vld [vmem:[%s13939_s1 + $0x618] sm:$0xff] }
 0x506   : > { %v6296_v32 = vpop.f32.mrf.mxu2  ;;  %7114 = vmatpush.bf16.msra.mxu0 %v11431_v1  ;;  %v11021_v1 = vld [vmem:[%s11582_s21 + $0x844] sm:$0xf0] }
 0x507   : > { %v6385_v47 = vpop.f32.mrf.mxu3  ;;  %v6297_v50 = vadd.f32 %v6296_v32, %v12870_v22  ;;  %v11423_v22 = vld [vmem:[%s13939_s1 + $0x5d8] sm:$0xff] }
 0x508   : > { %v6477_v48 = vpop.f32.mrf.mxu0  ;;  %7025 = vmatpush.bf16.msra.mxu3 %v11423_v22 }
 0x509   : > { %v6386_v59 = vadd.f32 %v6385_v47, %v6297_v50  ;;  %v8805_v50 = vor.u32 %v10991_v31, %v8804_v43 }
 0x50a   : > { %v6566_v63 = vpop.f32.mrf.mxu1 }
 0x50b   : > { %v6475_v5 = vadd.f32 %v6474_v60, %v6386_v59  ;;  %6614 = vmatmul.bf16.gmra.mxu2 %v8677_v49  ;;  %6792 = vmatmul.bf16.gmra.mxu0 %v8685_v16  ;;  %v10990_v60 = vld [vmem:[%s11582_s21 + $0x74c] sm:$0xf0]  ;;  %v8809_v49 = vor.u32 %v10976_v38, %v8806_v4 }
 0x50c   : > { %6703 = vmatmul.bf16.gmra.mxu3 %v8681_v52  ;;  %v8797_v32 = vor.u32 %v10990_v60, %v8796_v34  ;;  %v8918_v34 = vld [vmem:[%s11582_s21 + $0x840] sm:$0xf0]  ;;  %v8924_v60 = vld [vmem:[%s11582_s21 + $0x7d0] sm:$0xf] }
 0x50d   : > { %6881 = vmatmul.bf16.gmra.mxu1 %v8689_v46  ;;  %v13190_v7 = vadd.f32 %v6563_v12, %v6475_v5  ;;  %v8798_v12 = vld [vmem:[%s11582_s21 + $0x750] sm:$0xf0] }
 0x50e   : > { %v6299_v0 = vpop.f32.mrf.mxu2  ;;  %v8801_v47 = vor.u32 %v10975_v13, %v8798_v12  ;;  %v11006_v13 = vld [vmem:[%s11582_s21 + $0x7d4] sm:$0xf]  ;;  %v8926_v12 = vld [vmem:[%s11582_s21 + $0x848] sm:$0xf0] }
 0x50f   : > { %v6388_v61 = vpop.f32.mrf.mxu3  ;;  %v6300_v57 = vadd.f32 %v6299_v0, %v12884_v15 }
 0x510   : > { %v6479_v26 = vpop.f32.mrf.mxu0 }
 0x511   : > { %v6389_v2 = vadd.f32 %v6388_v61, %v6300_v57 }
 0x512   : > { %v6568_v19 = vpop.f32.mrf.mxu1 }
 0x513   : > { %v6478_v17 = vadd.f32 %v6477_v48, %v6389_v2  ;;  %v11439_v48 = vld [vmem:[%s13939_s1 + $0x658] sm:$0xff]  ;;  %v8916_v2 = vld [vmem:[%s11582_s21 + $0x7c8] sm:$0xf] }
 0x514   : > { %7203 = vmatpush.bf16.msra.mxu1 %v11439_v48 }
 0x515   : > { %v13204_v6 = vadd.f32 %v6566_v63, %v6478_v17  ;;  %v11005_v17 = vld [vmem:[%s11582_s21 + $0x7cc] sm:$0xf] }
 0x516   : > { %v6301_v15 = vpop.f32.mrf.mxu2 }
 0x517   : > { %v6390_v29 = vpop.f32.mrf.mxu3  ;;  %v6302_v11 = vadd.f32 %v6301_v15, %v12890_v56  ;;  %v8925_v15 = vor.u32 %v11021_v1, %v8924_v60  ;;  %v9046_v60 = vld [vmem:[%s11582_s21 + $0x938] sm:$0xf0] }
 0x518   : > { %v6482_v16 = vpop.f32.mrf.mxu0 }
 0x519   : > { %v6391_v52 = vadd.f32 %v6390_v29, %v6302_v11  ;;  %v8929_v29 = vor.u32 %v11006_v13, %v8926_v12 }
 0x51a   : > { %v6571_v46 = vpop.f32.mrf.mxu1 }
 0x51b   : > { %v6480_v59 = vadd.f32 %v6479_v26, %v6391_v52  ;;  %6619 = vmatmul.bf16.gmra.mxu2 %v8797_v32  ;;  %6797 = vmatmul.bf16.gmra.mxu0 %v8805_v50  ;;  %v11020_v26 = vld [vmem:[%s11582_s21 + $0x83c] sm:$0xf0] }
 0x51c   : > { %6708 = vmatmul.bf16.gmra.mxu3 %v8801_v47  ;;  %v8917_v4 = vor.u32 %v11020_v26, %v8916_v2  ;;  %v11035_v2 = vld [vmem:[%s11582_s21 + $0x8bc] sm:$0xf]  ;;  %v9044_v26 = vld [vmem:[%s11582_s21 + $0x8c0] sm:$0xf] }
 0x51d   : > { %6886 = vmatmul.bf16.gmra.mxu1 %v8809_v49  ;;  %v13210_v56 = vadd.f32 %v6568_v19, %v6480_v59  ;;  %v11414_v49 = vld [vmem:[%s13939_s1 + $0x590] sm:$0xff] }
 0x51e   : > { %v6304_v63 = vpop.f32.mrf.mxu2  ;;  %6937 = vmatpush.bf16.msra.mxu2 %v11414_v49 }
 0x51f   : > { %v6393_v5 = vpop.f32.mrf.mxu3  ;;  %v6305_v3 = vadd.f32 %v6304_v63, %v12901_v41  ;;  %v8921_v41 = vor.u32 %v11005_v17, %v8918_v34  ;;  %v11051_v17 = vld [vmem:[%s11582_s21 + $0x934] sm:$0xf0]  ;;  %v11036_v34 = vld [vmem:[%s11582_s21 + $0x8c4] sm:$0xf] }
 0x520   : > { %v6484_v0 = vpop.f32.mrf.mxu0 }
 0x521   : > { %v6394_v22 = vadd.f32 %v6393_v5, %v6305_v3 }
 0x522   : > { %v6573_v61 = vpop.f32.mrf.mxu1 }
 0x523   : > { %v6483_v57 = vadd.f32 %v6482_v16, %v6394_v22  ;;  %v9036_v22 = vld [vmem:[%s11582_s21 + $0x8b8] sm:$0xf] }
 0x525   : > { %v13221_v43 = vadd.f32 %v6571_v46, %v6483_v57  ;;  %v11430_v57 = vld [vmem:[%s13939_s1 + $0x610] sm:$0xff] }
 0x526   : > { %v6306_v19 = vpop.f32.mrf.mxu2  ;;  %7115 = vmatpush.bf16.msra.mxu0 %v11430_v57  ;;  %v11081_v57 = vld [vmem:[%s11582_s21 + $0xa24] sm:$0xf0] }
 0x527   : > { %v6395_v31 = vpop.f32.mrf.mxu3  ;;  %v6307_v38 = vadd.f32 %v6306_v19, %v12910_v18  ;;  %v11422_v18 = vld [vmem:[%s13939_s1 + $0x5d0] sm:$0xff] }
 0x528   : > { %v6763_v32 = vpop.f32.mrf.mxu0  ;;  %7026 = vmatpush.bf16.msra.mxu3 %v11422_v18 }
 0x529   : > { %v6396_v11 = vadd.f32 %v6395_v31, %v6307_v38  ;;  %v9045_v38 = vor.u32 %v11051_v17, %v9044_v26 }
 0x52a   : > { %v6852_v47 = vpop.f32.mrf.mxu1 }
 0x52b   : > { %v6485_v50 = vadd.f32 %v6484_v0, %v6396_v11  ;;  %6624 = vmatmul.bf16.gmra.mxu2 %v8917_v4  ;;  %6802 = vmatmul.bf16.gmra.mxu0 %v8925_v15  ;;  %v11050_v0 = vld [vmem:[%s11582_s21 + $0x92c] sm:$0xf0]  ;;  %v9049_v4 = vor.u32 %v11036_v34, %v9046_v60 }
 0x52c   : > { %6713 = vmatmul.bf16.gmra.mxu3 %v8921_v41  ;;  %v9037_v19 = vor.u32 %v11050_v0, %v9036_v22  ;;  %v9158_v22 = vld [vmem:[%s11582_s21 + $0xa20] sm:$0xf0]  ;;  %v9164_v0 = vld [vmem:[%s11582_s21 + $0x9b0] sm:$0xf] }
 0x52d   : > { %6891 = vmatmul.bf16.gmra.mxu1 %v8929_v29  ;;  %v13230_v52 = vadd.f32 %v6573_v61, %v6485_v50  ;;  %v9038_v61 = vld [vmem:[%s11582_s21 + $0x930] sm:$0xf0] }
 0x52e   : > { %v6585_v16 = vpop.f32.mrf.mxu2  ;;  %v9041_v31 = vor.u32 %v11035_v2, %v9038_v61  ;;  %v11066_v2 = vld [vmem:[%s11582_s21 + $0x9b4] sm:$0xf]  ;;  %v9166_v61 = vld [vmem:[%s11582_s21 + $0xa28] sm:$0xf0] }
 0x52f   : > { %v6674_v46 = vpop.f32.mrf.mxu3  ;;  %v6586_v59 = vadd.f32 %v6585_v16, %v12924_v10 }
 0x530   : > { %v6765_v63 = vpop.f32.mrf.mxu0 }
 0x531   : > { %v6675_v48 = vadd.f32 %v6674_v46, %v6586_v59 }
 0x532   : > { %v6854_v5 = vpop.f32.mrf.mxu1 }
 0x533   : > { %v6764_v3 = vadd.f32 %v6763_v32, %v6675_v48  ;;  %v11438_v32 = vld [vmem:[%s13939_s1 + $0x650] sm:$0xff]  ;;  %v9156_v48 = vld [vmem:[%s11582_s21 + $0x9a8] sm:$0xf] }
 0x534   : > { %7204 = vmatpush.bf16.msra.mxu1 %v11438_v32 }
 0x535   : > { %v13244_v1 = vadd.f32 %v6852_v47, %v6764_v3  ;;  %v11065_v3 = vld [vmem:[%s11582_s21 + $0x9ac] sm:$0xf] }
 0x536   : > { %v6587_v10 = vpop.f32.mrf.mxu2 }
 0x537   : > { %v6676_v13 = vpop.f32.mrf.mxu3  ;;  %v6588_v12 = vadd.f32 %v6587_v10, %v12930_v42  ;;  %v9165_v10 = vor.u32 %v11081_v57, %v9164_v0  ;;  %v9286_v0 = vld [vmem:[%s11582_s21 + $0xb18] sm:$0xf0] }
 0x538   : > { %v6768_v15 = vpop.f32.mrf.mxu0 }
 0x539   : > { %v6677_v41 = vadd.f32 %v6676_v13, %v6588_v12  ;;  %v9169_v13 = vor.u32 %v11066_v2, %v9166_v61 }
 0x53a   : > { %v6857_v29 = vpop.f32.mrf.mxu1 }
 0x53b   : > { %v6766_v11 = vadd.f32 %v6765_v63, %v6677_v41  ;;  %6629 = vmatmul.bf16.gmra.mxu2 %v9037_v19  ;;  %6807 = vmatmul.bf16.gmra.mxu0 %v9045_v38  ;;  %v11080_v63 = vld [vmem:[%s11582_s21 + $0xa1c] sm:$0xf0] }
 0x53c   : > { %6718 = vmatmul.bf16.gmra.mxu3 %v9041_v31  ;;  %v9157_v60 = vor.u32 %v11080_v63, %v9156_v48  ;;  %v11095_v48 = vld [vmem:[%s11582_s21 + $0xa9c] sm:$0xf]  ;;  %v9284_v63 = vld [vmem:[%s11582_s21 + $0xaa0] sm:$0xf] }
 0x53d   : > { %6896 = vmatmul.bf16.gmra.mxu1 %v9049_v4  ;;  %v13250_v42 = vadd.f32 %v6854_v5, %v6766_v11  ;;  %v11413_v4 = vld [vmem:[%s13939_s1 + $0x588] sm:$0xff] }
 0x53e   : > { %v6590_v47 = vpop.f32.mrf.mxu2  ;;  %6938 = vmatpush.bf16.msra.mxu2 %v11413_v4 }
 0x53f   : > { %v6679_v50 = vpop.f32.mrf.mxu3  ;;  %v6591_v49 = vadd.f32 %v6590_v47, %v12941_v23  ;;  %v9161_v23 = vor.u32 %v11065_v3, %v9158_v22  ;;  %v11111_v3 = vld [vmem:[%s11582_s21 + $0xb14] sm:$0xf0]  ;;  %v11096_v22 = vld [vmem:[%s11582_s21 + $0xaa4] sm:$0xf] }
 0x540   : > { %v6770_v16 = vpop.f32.mrf.mxu0 }
 0x541   : > { %v6680_v18 = vadd.f32 %v6679_v50, %v6591_v49 }
 0x542   : > { %v6859_v46 = vpop.f32.mrf.mxu1 }
 0x543   : > { %v6769_v59 = vadd.f32 %v6768_v15, %v6680_v18  ;;  %v9276_v18 = vld [vmem:[%s11582_s21 + $0xa98] sm:$0xf] }
 0x545   : > { %v13261_v26 = vadd.f32 %v6857_v29, %v6769_v59  ;;  %v11429_v59 = vld [vmem:[%s13939_s1 + $0x608] sm:$0xff] }
 0x546   : > { %v6592_v5 = vpop.f32.mrf.mxu2  ;;  %7116 = vmatpush.bf16.msra.mxu0 %v11429_v59  ;;  %v11141_v59 = vld [vmem:[%s11582_s21 + $0xc04] sm:$0xf0] }
 0x547   : > { %v6681_v17 = vpop.f32.mrf.mxu3  ;;  %v6593_v34 = vadd.f32 %v6592_v5, %v12950_v25  ;;  %v11421_v25 = vld [vmem:[%s13939_s1 + $0x5c8] sm:$0xff] }
 0x548   : > { %v6773_v19 = vpop.f32.mrf.mxu0  ;;  %7027 = vmatpush.bf16.msra.mxu3 %v11421_v25 }
 0x549   : > { %v6682_v12 = vadd.f32 %v6681_v17, %v6593_v34  ;;  %v9285_v34 = vor.u32 %v11111_v3, %v9284_v63 }
 0x54a   : > { %v6862_v31 = vpop.f32.mrf.mxu1 }
 0x54b   : > { %v6771_v38 = vadd.f32 %v6770_v16, %v6682_v12  ;;  %6634 = vmatmul.bf16.gmra.mxu2 %v9157_v60  ;;  %6812 = vmatmul.bf16.gmra.mxu0 %v9165_v10  ;;  %v11110_v16 = vld [vmem:[%s11582_s21 + $0xb0c] sm:$0xf0]  ;;  %v9289_v60 = vor.u32 %v11096_v22, %v9286_v0 }
 0x54c   : > { %6723 = vmatmul.bf16.gmra.mxu3 %v9161_v23  ;;  %v9277_v5 = vor.u32 %v11110_v16, %v9276_v18  ;;  %v9398_v18 = vld [vmem:[%s11582_s21 + $0xc00] sm:$0xf0]  ;;  %v9404_v16 = vld [vmem:[%s11582_s21 + $0xb90] sm:$0xf] }
 0x54d   : > { %6901 = vmatmul.bf16.gmra.mxu1 %v9169_v13  ;;  %v13270_v41 = vadd.f32 %v6859_v46, %v6771_v38  ;;  %v9278_v46 = vld [vmem:[%s11582_s21 + $0xb10] sm:$0xf0] }
 0x54e   : > { %v6595_v15 = vpop.f32.mrf.mxu2  ;;  %v9281_v17 = vor.u32 %v11095_v48, %v9278_v46  ;;  %v11126_v48 = vld [vmem:[%s11582_s21 + $0xb94] sm:$0xf]  ;;  %v9406_v46 = vld [vmem:[%s11582_s21 + $0xc08] sm:$0xf0] }
 0x54f   : > { %v6684_v29 = vpop.f32.mrf.mxu3  ;;  %v6596_v11 = vadd.f32 %v6595_v15, %v12964_v14 }
 0x550   : > { %v6775_v47 = vpop.f32.mrf.mxu0 }
 0x551   : > { %v6685_v32 = vadd.f32 %v6684_v29, %v6596_v11 }
 0x552   : > { %v6864_v50 = vpop.f32.mrf.mxu1 }
 0x553   : > { %v6774_v49 = vadd.f32 %v6773_v19, %v6685_v32  ;;  %v11437_v19 = vld [vmem:[%s13939_s1 + $0x648] sm:$0xff] }
 0x554   : > { %7205 = vmatpush.bf16.msra.mxu1 %v11437_v19  ;;  %v9396_v32 = vld [vmem:[%s11582_s21 + $0xb88] sm:$0xf] }
 0x555   : > { %v13284_v57 = vadd.f32 %v6862_v31, %v6774_v49  ;;  %v11125_v49 = vld [vmem:[%s11582_s21 + $0xb8c] sm:$0xf] }
 0x556   : > { %v6597_v14 = vpop.f32.mrf.mxu2 }
 0x557   : > { %v6686_v2 = vpop.f32.mrf.mxu3  ;;  %v6598_v61 = vadd.f32 %v6597_v14, %v12970_v30  ;;  %v9405_v14 = vor.u32 %v11141_v59, %v9404_v16  ;;  %v9526_v16 = vld [vmem:[%s11582_s21 + $0xcf8] sm:$0xf0] }
 0x558   : > { %v6778_v10 = vpop.f32.mrf.mxu0 }
 0x559   : > { %v6687_v23 = vadd.f32 %v6686_v2, %v6598_v61  ;;  %v9409_v2 = vor.u32 %v11126_v48, %v9406_v46 }
 0x55a   : > { %v6867_v13 = vpop.f32.mrf.mxu1 }
 0x55b   : > { %v6776_v12 = vadd.f32 %v6775_v47, %v6687_v23  ;;  %6639 = vmatmul.bf16.gmra.mxu2 %v9277_v5  ;;  %6817 = vmatmul.bf16.gmra.mxu0 %v9285_v34  ;;  %v11140_v47 = vld [vmem:[%s11582_s21 + $0xbfc] sm:$0xf0] }
 0x55c   : > { %6728 = vmatmul.bf16.gmra.mxu3 %v9281_v17  ;;  %v9397_v0 = vor.u32 %v11140_v47, %v9396_v32  ;;  %v11155_v32 = vld [vmem:[%s11582_s21 + $0xc7c] sm:$0xf]  ;;  %v9524_v47 = vld [vmem:[%s11582_s21 + $0xc80] sm:$0xf] }
 0x55d   : > { %6906 = vmatmul.bf16.gmra.mxu1 %v9289_v60  ;;  %v13290_v30 = vadd.f32 %v6864_v50, %v6776_v12  ;;  %v11412_v60 = vld [vmem:[%s13939_s1 + $0x580] sm:$0xff] }
 0x55e   : > { %v6600_v31 = vpop.f32.mrf.mxu2  ;;  %6939 = vmatpush.bf16.msra.mxu2 %v11412_v60 }
 0x55f   : > { %v6689_v38 = vpop.f32.mrf.mxu3  ;;  %v6601_v4 = vadd.f32 %v6600_v31, %v12981_v9  ;;  %v9401_v9 = vor.u32 %v11125_v49, %v9398_v18  ;;  %v11171_v49 = vld [vmem:[%s11582_s21 + $0xcf4] sm:$0xf0]  ;;  %v11156_v18 = vld [vmem:[%s11582_s21 + $0xc84] sm:$0xf] }
 0x560   : > { %v6780_v15 = vpop.f32.mrf.mxu0 }
 0x561   : > { %v6690_v25 = vadd.f32 %v6689_v38, %v6601_v4 }
 0x562   : > { %v6869_v29 = vpop.f32.mrf.mxu1 }
 0x563   : > { %v6779_v11 = vadd.f32 %v6778_v10, %v6690_v25  ;;  %v9516_v25 = vld [vmem:[%s11582_s21 + $0xc78] sm:$0xf] }
 0x565   : > { %v13301_v63 = vadd.f32 %v6867_v13, %v6779_v11  ;;  %v11428_v11 = vld [vmem:[%s13939_s1 + $0x600] sm:$0xff] }
 0x566   : > { %v6602_v50 = vpop.f32.mrf.mxu2  ;;  %7117 = vmatpush.bf16.msra.mxu0 %v11428_v11  ;;  %v11201_v11 = vld [vmem:[%s11582_s21 + $0xde4] sm:$0xf0] }
 0x567   : > { %v6691_v3 = vpop.f32.mrf.mxu3  ;;  %v6603_v22 = vadd.f32 %v6602_v50, %v12990_v39  ;;  %v11420_v39 = vld [vmem:[%s13939_s1 + $0x5c0] sm:$0xff] }
 0x568   : > { %v6783_v5 = vpop.f32.mrf.mxu0  ;;  %7028 = vmatpush.bf16.msra.mxu3 %v11420_v39 }
 0x569   : > { %v6692_v61 = vadd.f32 %v6691_v3, %v6603_v22  ;;  %v9525_v22 = vor.u32 %v11171_v49, %v9524_v47 }
 0x56a   : > { %v6872_v17 = vpop.f32.mrf.mxu1 }
 0x56b   : > { %v6781_v34 = vadd.f32 %v6780_v15, %v6692_v61  ;;  %6644 = vmatmul.bf16.gmra.mxu2 %v9397_v0  ;;  %6822 = vmatmul.bf16.gmra.mxu0 %v9405_v14  ;;  %v11170_v15 = vld [vmem:[%s11582_s21 + $0xcec] sm:$0xf0]  ;;  %v9529_v0 = vor.u32 %v11156_v18, %v9526_v16 }
 0x56c   : > { %6733 = vmatmul.bf16.gmra.mxu3 %v9401_v9  ;;  %v9517_v50 = vor.u32 %v11170_v15, %v9516_v25  ;;  %v9638_v25 = vld [vmem:[%s11582_s21 + $0xde0] sm:$0xf0]  ;;  %v9644_v15 = vld [vmem:[%s11582_s21 + $0xd70] sm:$0xf] }
 0x56d   : > { %6911 = vmatmul.bf16.gmra.mxu1 %v9409_v2  ;;  %v13310_v23 = vadd.f32 %v6869_v29, %v6781_v34  ;;  %v9518_v29 = vld [vmem:[%s11582_s21 + $0xcf0] sm:$0xf0] }
 0x56e   : > { %v6605_v10 = vpop.f32.mrf.mxu2  ;;  %v9521_v3 = vor.u32 %v11155_v32, %v9518_v29  ;;  %v11186_v32 = vld [vmem:[%s11582_s21 + $0xd74] sm:$0xf]  ;;  %v9646_v29 = vld [vmem:[%s11582_s21 + $0xde8] sm:$0xf0] }
 0x56f   : > { %v6694_v13 = vpop.f32.mrf.mxu3  ;;  %v6606_v12 = vadd.f32 %v6605_v10, %v13004_v36 }
 0x570   : > { %v6785_v31 = vpop.f32.mrf.mxu0 }
 0x571   : > { %v6695_v19 = vadd.f32 %v6694_v13, %v6606_v12 }
 0x572   : > { %v6874_v38 = vpop.f32.mrf.mxu1 }
 0x573   : > { %v6784_v4 = vadd.f32 %v6783_v5, %v6695_v19  ;;  %v11436_v5 = vld [vmem:[%s13939_s1 + $0x640] sm:$0xff]  ;;  %v9636_v19 = vld [vmem:[%s11582_s21 + $0xd68] sm:$0xf] }
 0x574   : > { %7206 = vmatpush.bf16.msra.mxu1 %v11436_v5 }
 0x575   : > { %v13324_v59 = vadd.f32 %v6872_v17, %v6784_v4  ;;  %v11185_v4 = vld [vmem:[%s11582_s21 + $0xd6c] sm:$0xf] }
 0x576   : > { %v6607_v36 = vpop.f32.mrf.mxu2 }
 0x577   : > { %v6696_v48 = vpop.f32.mrf.mxu3  ;;  %v6608_v46 = vadd.f32 %v6607_v36, %v13010_v28  ;;  %v9645_v36 = vor.u32 %v11201_v11, %v9644_v15  ;;  %v9766_v15 = vld [vmem:[%s11582_s21 + $0xed8] sm:$0xf0] }
 0x578   : > { %v6788_v14 = vpop.f32.mrf.mxu0 }
 0x579   : > { %v6697_v9 = vadd.f32 %v6696_v48, %v6608_v46  ;;  %v9649_v48 = vor.u32 %v11186_v32, %v9646_v29 }
 0x57a   : > { %v6877_v2 = vpop.f32.mrf.mxu1 }
 0x57b   : > { %v6786_v61 = vadd.f32 %v6785_v31, %v6697_v9  ;;  %6649 = vmatmul.bf16.gmra.mxu2 %v9517_v50  ;;  %6827 = vmatmul.bf16.gmra.mxu0 %v9525_v22  ;;  %v11200_v31 = vld [vmem:[%s11582_s21 + $0xddc] sm:$0xf0] }
 0x57c   : > { %6738 = vmatmul.bf16.gmra.mxu3 %v9521_v3  ;;  %v9637_v16 = vor.u32 %v11200_v31, %v9636_v19  ;;  %v11215_v19 = vld [vmem:[%s11582_s21 + $0xe5c] sm:$0xf]  ;;  %v9764_v31 = vld [vmem:[%s11582_s21 + $0xe60] sm:$0xf] }
 0x57d   : > { %6916 = vmatmul.bf16.gmra.mxu1 %v9529_v0  ;;  %v13330_v28 = vadd.f32 %v6874_v38, %v6786_v61  ;;  %v11451_v0 = vld [vmem:[%s13939_s1 + $0x6b8] sm:$0xff] }
 0x57e   : > { %v6610_v17 = vpop.f32.mrf.mxu2  ;;  %7288 = vmatpush.bf16.msrb.mxu2 %v11451_v0 }
 0x57f   : > { %v6699_v34 = vpop.f32.mrf.mxu3  ;;  %v6611_v60 = vadd.f32 %v6610_v17, %v13021_v51  ;;  %v9641_v51 = vor.u32 %v11185_v4, %v9638_v25  ;;  %v11231_v4 = vld [vmem:[%s11582_s21 + $0xed4] sm:$0xf0]  ;;  %v11216_v25 = vld [vmem:[%s11582_s21 + $0xe64] sm:$0xf] }
 0x580   : > { %v6790_v10 = vpop.f32.mrf.mxu0 }
 0x581   : > { %v6700_v39 = vadd.f32 %v6699_v34, %v6611_v60 }
 0x582   : > { %v6879_v13 = vpop.f32.mrf.mxu1 }
 0x583   : > { %v6789_v12 = vadd.f32 %v6788_v14, %v6700_v39  ;;  %v9756_v39 = vld [vmem:[%s11582_s21 + $0xe58] sm:$0xf] }
 0x585   : > { %v13341_v47 = vadd.f32 %v6877_v2, %v6789_v12  ;;  %v11467_v12 = vld [vmem:[%s13939_s1 + $0x738] sm:$0xff] }
 0x586   : > { %v6612_v38 = vpop.f32.mrf.mxu2  ;;  %7466 = vmatpush.bf16.msrb.mxu0 %v11467_v12  ;;  %v10783_v12 = vld [vmem:[%s11582_s21 + $0xd4] sm:$0xf0] }
 0x587   : > { %v6701_v49 = vpop.f32.mrf.mxu3  ;;  %v6613_v18 = vadd.f32 %v6612_v38, %v13030_v27  ;;  %v11459_v27 = vld [vmem:[%s13939_s1 + $0x6f8] sm:$0xff] }
 0x588   : > { %v6793_v50 = vpop.f32.mrf.mxu0  ;;  %7377 = vmatpush.bf16.msrb.mxu3 %v11459_v27 }
 0x589   : > { %v6702_v46 = vadd.f32 %v6701_v49, %v6613_v18  ;;  %v9765_v18 = vor.u32 %v11231_v4, %v9764_v31 }
 0x58a   : > { %v6882_v3 = vpop.f32.mrf.mxu1 }
 0x58b   : > { %v6791_v22 = vadd.f32 %v6790_v10, %v6702_v46  ;;  %6654 = vmatmul.bf16.gmra.mxu2 %v9637_v16  ;;  %6832 = vmatmul.bf16.gmra.mxu0 %v9645_v36  ;;  %v11230_v10 = vld [vmem:[%s11582_s21 + $0xecc] sm:$0xf0]  ;;  %v9769_v16 = vor.u32 %v11216_v25, %v9766_v15 }
 0x58c   : > { %6743 = vmatmul.bf16.gmra.mxu3 %v9641_v51  ;;  %v9757_v38 = vor.u32 %v11230_v10, %v9756_v39  ;;  %v7974_v39 = vld [vmem:[%s11582_s21 + $0xd0] sm:$0xf0]  ;;  %v7980_v10 = vld [vmem:[%s11582_s21 + $0x60] sm:$0xf] }
 0x58d   : > { %6921 = vmatmul.bf16.gmra.mxu1 %v9649_v48  ;;  %v13350_v9 = vadd.f32 %v6879_v13, %v6791_v22  ;;  %v9758_v13 = vld [vmem:[%s11582_s21 + $0xed0] sm:$0xf0] }
 0x58e   : > { %v6615_v14 = vpop.f32.mrf.mxu2  ;;  %v9761_v49 = vor.u32 %v11215_v19, %v9758_v13  ;;  %v10768_v19 = vld [vmem:[%s11582_s21 + $0x64] sm:$0xf]  ;;  %v7982_v13 = vld [vmem:[%s11582_s21 + $0xd8] sm:$0xf0] }
 0x58f   : > { %v6704_v2 = vpop.f32.mrf.mxu3  ;;  %v6616_v61 = vadd.f32 %v6615_v14, %v13044_v35 }
 0x590   : > { %v6795_v17 = vpop.f32.mrf.mxu0 }
 0x591   : > { %v6705_v5 = vadd.f32 %v6704_v2, %v6616_v61 }
 0x592   : > { %v6884_v34 = vpop.f32.mrf.mxu1 }
 0x593   : > { %v6794_v60 = vadd.f32 %v6793_v50, %v6705_v5  ;;  %v11469_v50 = vld [vmem:[%s13939_s1 + $0x748] sm:$0xff]  ;;  %v7972_v5 = vld [vmem:[%s11582_s21 + $0x58] sm:$0xf] }
 0x594   : > { %7561 = vmatpush.bf16.msrb.mxu1 %v11469_v50 }
 0x595   : > { %v13364_v11 = vadd.f32 %v6882_v3, %v6794_v60  ;;  %v10767_v60 = vld [vmem:[%s11582_s21 + $0x5c] sm:$0xf] }
 0x596   : > { %v6617_v35 = vpop.f32.mrf.mxu2 }
 0x597   : > { %v6706_v32 = vpop.f32.mrf.mxu3  ;;  %v6618_v29 = vadd.f32 %v6617_v35, %v13050_v37  ;;  %v7981_v35 = vor.u32 %v10783_v12, %v7980_v10  ;;  %v8102_v10 = vld [vmem:[%s11582_s21 + $0x1c8] sm:$0xf0] }
 0x598   : > { %v6798_v36 = vpop.f32.mrf.mxu0 }
 0x599   : > { %v6707_v51 = vadd.f32 %v6706_v32, %v6618_v29  ;;  %v7985_v32 = vor.u32 %v10768_v19, %v7982_v13 }
 0x59a   : > { %v6887_v48 = vpop.f32.mrf.mxu1 }
 0x59b   : > { %v6796_v46 = vadd.f32 %v6795_v17, %v6707_v51  ;;  %6659 = vmatmul.bf16.gmra.mxu2 %v9757_v38  ;;  %6837 = vmatmul.bf16.gmra.mxu0 %v9765_v18  ;;  %v10782_v17 = vld [vmem:[%s11582_s21 + $0xcc] sm:$0xf0] }
 0x59c   : > { %6748 = vmatmul.bf16.gmra.mxu3 %v9761_v49  ;;  %v7973_v15 = vor.u32 %v10782_v17, %v7972_v5  ;;  %v10797_v5 = vld [vmem:[%s11582_s21 + $0x14c] sm:$0xf]  ;;  %v8100_v17 = vld [vmem:[%s11582_s21 + $0x150] sm:$0xf] }
 0x59d   : > { %6926 = vmatmul.bf16.gmra.mxu1 %v9769_v16  ;;  %v13370_v37 = vadd.f32 %v6884_v34, %v6796_v46  ;;  %v11450_v16 = vld [vmem:[%s13939_s1 + $0x6b0] sm:$0xff] }
 0x59e   : > { %v6620_v3 = vpop.f32.mrf.mxu2  ;;  %7289 = vmatpush.bf16.msrb.mxu2 %v11450_v16 }
 0x59f   : > { %v6709_v22 = vpop.f32.mrf.mxu3  ;;  %v6621_v0 = vadd.f32 %v6620_v3, %v13061_v40  ;;  %v7977_v40 = vor.u32 %v10767_v60, %v7974_v39  ;;  %v10813_v60 = vld [vmem:[%s11582_s21 + $0x1c4] sm:$0xf0]  ;;  %v10798_v39 = vld [vmem:[%s11582_s21 + $0x154] sm:$0xf] }
 0x5a0   : > { %v6800_v14 = vpop.f32.mrf.mxu0 }
 0x5a1   : > { %v6710_v27 = vadd.f32 %v6709_v22, %v6621_v0 }
 0x5a2   : > { %v6889_v2 = vpop.f32.mrf.mxu1 }
 0x5a3   : > { %v6799_v61 = vadd.f32 %v6798_v36, %v6710_v27  ;;  %v8092_v27 = vld [vmem:[%s11582_s21 + $0x148] sm:$0xf] }
 0x5a5   : > { %v13381_v31 = vadd.f32 %v6887_v48, %v6799_v61  ;;  %v11466_v61 = vld [vmem:[%s13939_s1 + $0x730] sm:$0xff] }
 0x5a6   : > { %v6622_v34 = vpop.f32.mrf.mxu2  ;;  %7467 = vmatpush.bf16.msrb.mxu0 %v11466_v61  ;;  %v10828_v61 = vld [vmem:[%s11582_s21 + $0x244] sm:$0xf] }
 0x5a7   : > { %v6711_v4 = vpop.f32.mrf.mxu3  ;;  %v6623_v25 = vadd.f32 %v6622_v34, %v13070_v24  ;;  %v11458_v24 = vld [vmem:[%s13939_s1 + $0x6f0] sm:$0xff] }
 0x5a8   : > { %v6803_v38 = vpop.f32.mrf.mxu0  ;;  %7378 = vmatpush.bf16.msrb.mxu3 %v11458_v24 }
 0x5a9   : > { %v6712_v29 = vadd.f32 %v6711_v4, %v6623_v25  ;;  %v8101_v25 = vor.u32 %v10813_v60, %v8100_v17 }
 0x5aa   : > { %v6892_v49 = vpop.f32.mrf.mxu1 }
 0x5ab   : > { %v6801_v18 = vadd.f32 %v6800_v14, %v6712_v29  ;;  %6940 = vmatmul.bf16.vlgmr.msra.gmra.mxu2 %v7973_v15  ;;  %7118 = vmatmul.bf16.vlgmr.msra.gmra.mxu0 %v7981_v35  ;;  %v10812_v14 = vld [vmem:[%s11582_s21 + $0x1bc] sm:$0xf0]  ;;  %v8105_v15 = vor.u32 %v10798_v39, %v8102_v10 }
 0x5ac   : > { %7029 = vmatmul.bf16.vlgmr.msra.gmra.mxu3 %v7977_v40  ;;  %v8093_v34 = vor.u32 %v10812_v14, %v8092_v27  ;;  %v8220_v27 = vld [vmem:[%s11582_s21 + $0x240] sm:$0xf]  ;;  %v10843_v14 = vld [vmem:[%s11582_s21 + $0x2b4] sm:$0xf0] }
 0x5ad   : > { %7207 = vmatmul.bf16.vlgmr.msra.gmra.mxu1 %v7985_v32  ;;  %v13390_v51 = vadd.f32 %v6889_v2, %v6801_v18  ;;  %v8094_v2 = vld [vmem:[%s11582_s21 + $0x1c0] sm:$0xf0]  ;;  %v8221_v10 = vor.u32 %v10843_v14, %v8220_v27  ;;  %v8342_v27 = vld [vmem:[%s11582_s21 + $0x3a8] sm:$0xf0] }
 0x5ae   : > { %v6625_v36 = vpop.f32.mrf.mxu2  ;;  %v8097_v4 = vor.u32 %v10797_v5, %v8094_v2  ;;  %v8222_v5 = vld [vmem:[%s11582_s21 + $0x2b8] sm:$0xf0] }
 0x5af   : > { %v6714_v48 = vpop.f32.mrf.mxu3  ;;  %v6626_v46 = vadd.f32 %v6625_v36, %v13084_v62 }
 0x5b0   : > { %v6805_v3 = vpop.f32.mrf.mxu0 }
 0x5b1   : > { %v6715_v50 = vadd.f32 %v6714_v48, %v6626_v46  ;;  %v8212_v46 = vld [vmem:[%s11582_s21 + $0x238] sm:$0xf] }
 0x5b2   : > { %v6894_v22 = vpop.f32.mrf.mxu1 }
 0x5b3   : > { %v6804_v0 = vadd.f32 %v6803_v38, %v6715_v50  ;;  %v10842_v50 = vld [vmem:[%s11582_s21 + $0x2ac] sm:$0xf0] }
 0x5b4   : > { %v8213_v39 = vor.u32 %v10842_v50, %v8212_v46  ;;  %v10857_v46 = vld [vmem:[%s11582_s21 + $0x32c] sm:$0xf]  ;;  %v8340_v50 = vld [vmem:[%s11582_s21 + $0x330] sm:$0xf] }
 0x5b5   : > { %v13404_v12 = vadd.f32 %v6892_v49, %v6804_v0  ;;  %v8214_v0 = vld [vmem:[%s11582_s21 + $0x2b0] sm:$0xf0] }
 0x5b6   : > { %v6627_v62 = vpop.f32.mrf.mxu2 }
 0x5b7   : > { %v6716_v19 = vpop.f32.mrf.mxu3  ;;  %v6628_v13 = vadd.f32 %v6627_v62, %v13090_v54  ;;  %v8225_v62 = vor.u32 %v10828_v61, %v8222_v5 }
 0x5b8   : > { %v6808_v35 = vpop.f32.mrf.mxu0 }
 0x5b9   : > { %v6717_v40 = vadd.f32 %v6716_v19, %v6628_v13 }
 0x5ba   : > { %v6897_v32 = vpop.f32.mrf.mxu1 }
 0x5bb   : > { %v6806_v29 = vadd.f32 %v6805_v3, %v6717_v40  ;;  %6945 = vmatmul.bf16.gmra.mxu2 %v8093_v34  ;;  %7123 = vmatmul.bf16.gmra.mxu0 %v8101_v25  ;;  %v10827_v3 = vld [vmem:[%s11582_s21 + $0x23c] sm:$0xf]  ;;  %v11449_v25 = vld [vmem:[%s13939_s1 + $0x6a8] sm:$0xff] }
 0x5bc   : > { %7034 = vmatmul.bf16.gmra.mxu3 %v8097_v4  ;;  %7290 = vmatpush.bf16.msrb.mxu2 %v11449_v25 }
 0x5bd   : > { %7212 = vmatmul.bf16.gmra.mxu1 %v8105_v15  ;;  %v13407_v54 = vadd.f32 %v6894_v22, %v6806_v29 }
 0x5be   : > { %v6630_v38 = vpop.f32.mrf.mxu2 }
 0x5bf   : > { %v6719_v49 = vpop.f32.mrf.mxu3  ;;  %v6631_v18 = vadd.f32 %v6630_v38, %v13101_v21  ;;  %v8217_v21 = vor.u32 %v10827_v3, %v8214_v0  ;;  %v10873_v3 = vld [vmem:[%s11582_s21 + $0x3a4] sm:$0xf0]  ;;  %v10858_v0 = vld [vmem:[%s11582_s21 + $0x334] sm:$0xf] }
 0x5c0   : > { %v6810_v24 = vpop.f32.mrf.mxu0 }
 0x5c1   : > { %v6720_v16 = vadd.f32 %v6719_v49, %v6631_v18 }
 0x5c2   : > { %v6899_v36 = vpop.f32.mrf.mxu1 }
 0x5c3   : > { %v6809_v48 = vadd.f32 %v6808_v35, %v6720_v16  ;;  %v8332_v16 = vld [vmem:[%s11582_s21 + $0x328] sm:$0xf] }
 0x5c5   : > { %v13418_v2 = vadd.f32 %v6897_v32, %v6809_v48  ;;  %v11465_v48 = vld [vmem:[%s13939_s1 + $0x728] sm:$0xff] }
 0x5c6   : > { %v6632_v22 = vpop.f32.mrf.mxu2  ;;  %7468 = vmatpush.bf16.msrb.mxu0 %v11465_v48  ;;  %v10888_v48 = vld [vmem:[%s11582_s21 + $0x424] sm:$0xf] }
 0x5c7   : > { %v6721_v17 = vpop.f32.mrf.mxu3  ;;  %v6633_v60 = vadd.f32 %v6632_v22, %v13110_v33  ;;  %v11457_v33 = vld [vmem:[%s13939_s1 + $0x6e8] sm:$0xff] }
 0x5c8   : > { %v6813_v13 = vpop.f32.mrf.mxu0  ;;  %7379 = vmatpush.bf16.msrb.mxu3 %v11457_v33 }
 0x5c9   : > { %v6722_v19 = vadd.f32 %v6721_v17, %v6633_v60  ;;  %v8341_v60 = vor.u32 %v10873_v3, %v8340_v50 }
 0x5ca   : > { %v6902_v34 = vpop.f32.mrf.mxu1 }
 0x5cb   : > { %v6811_v4 = vadd.f32 %v6810_v24, %v6722_v19  ;;  %6950 = vmatmul.bf16.gmra.mxu2 %v8213_v39  ;;  %7128 = vmatmul.bf16.gmra.mxu0 %v8221_v10  ;;  %v10872_v24 = vld [vmem:[%s11582_s21 + $0x39c] sm:$0xf0]  ;;  %v8345_v39 = vor.u32 %v10858_v0, %v8342_v27 }
 0x5cc   : > { %7039 = vmatmul.bf16.gmra.mxu3 %v8217_v21  ;;  %v8333_v22 = vor.u32 %v10872_v24, %v8332_v16  ;;  %v8460_v16 = vld [vmem:[%s11582_s21 + $0x420] sm:$0xf]  ;;  %v10903_v24 = vld [vmem:[%s11582_s21 + $0x494] sm:$0xf0] }
 0x5cd   : > { %7217 = vmatmul.bf16.gmra.mxu1 %v8225_v62  ;;  %v13427_v15 = vadd.f32 %v6899_v36, %v6811_v4  ;;  %v8334_v36 = vld [vmem:[%s11582_s21 + $0x3a0] sm:$0xf0]  ;;  %v8461_v27 = vor.u32 %v10903_v24, %v8460_v16  ;;  %v8582_v16 = vld [vmem:[%s11582_s21 + $0x588] sm:$0xf0] }
 0x5ce   : > { %v6635_v40 = vpop.f32.mrf.mxu2  ;;  %v8337_v17 = vor.u32 %v10857_v46, %v8334_v36  ;;  %v8462_v46 = vld [vmem:[%s11582_s21 + $0x498] sm:$0xf0] }
 0x5cf   : > { %v6724_v35 = vpop.f32.mrf.mxu3  ;;  %v6636_v32 = vadd.f32 %v6635_v40, %v13124_v53 }
 0x5d0   : > { %v6815_v38 = vpop.f32.mrf.mxu0 }
 0x5d1   : > { %v6725_v29 = vadd.f32 %v6724_v35, %v6636_v32  ;;  %v8452_v32 = vld [vmem:[%s11582_s21 + $0x418] sm:$0xf] }
 0x5d2   : > { %v6904_v49 = vpop.f32.mrf.mxu1 }
 0x5d3   : > { %v6814_v18 = vadd.f32 %v6813_v13, %v6725_v29  ;;  %v10902_v29 = vld [vmem:[%s11582_s21 + $0x48c] sm:$0xf0] }
 0x5d4   : > { %v8453_v0 = vor.u32 %v10902_v29, %v8452_v32  ;;  %v10917_v32 = vld [vmem:[%s11582_s21 + $0x50c] sm:$0xf]  ;;  %v8580_v29 = vld [vmem:[%s11582_s21 + $0x510] sm:$0xf] }
 0x5d5   : > { %v13441_v14 = vadd.f32 %v6902_v34, %v6814_v18  ;;  %v8454_v18 = vld [vmem:[%s11582_s21 + $0x490] sm:$0xf0] }
 0x5d6   : > { %v6637_v53 = vpop.f32.mrf.mxu2 }
 0x5d7   : > { %v6726_v61 = vpop.f32.mrf.mxu3  ;;  %v6638_v5 = vadd.f32 %v6637_v53, %v13130_v45  ;;  %v8465_v53 = vor.u32 %v10888_v48, %v8462_v46 }
 0x5d8   : > { %v6818_v10 = vpop.f32.mrf.mxu0 }
 0x5d9   : > { %v6727_v21 = vadd.f32 %v6726_v61, %v6638_v5 }
 0x5da   : > { %v6907_v62 = vpop.f32.mrf.mxu1 }
 0x5db   : > { %v6816_v19 = vadd.f32 %v6815_v38, %v6727_v21  ;;  %6955 = vmatmul.bf16.gmra.mxu2 %v8333_v22  ;;  %7133 = vmatmul.bf16.gmra.mxu0 %v8341_v60  ;;  %v10887_v38 = vld [vmem:[%s11582_s21 + $0x41c] sm:$0xf]  ;;  %v11448_v60 = vld [vmem:[%s13939_s1 + $0x6a0] sm:$0xff] }
 0x5dc   : > { %7044 = vmatmul.bf16.gmra.mxu3 %v8337_v17  ;;  %7291 = vmatpush.bf16.msrb.mxu2 %v11448_v60 }
 0x5dd   : > { %7222 = vmatmul.bf16.gmra.mxu1 %v8345_v39  ;;  %v13444_v45 = vadd.f32 %v6904_v49, %v6816_v19 }
 0x5de   : > { %v6640_v13 = vpop.f32.mrf.mxu2 }
 0x5df   : > { %v6729_v34 = vpop.f32.mrf.mxu3  ;;  %v6641_v4 = vadd.f32 %v6640_v13, %v13141_v8  ;;  %v8457_v8 = vor.u32 %v10887_v38, %v8454_v18  ;;  %v10933_v38 = vld [vmem:[%s11582_s21 + $0x584] sm:$0xf0]  ;;  %v10918_v18 = vld [vmem:[%s11582_s21 + $0x514] sm:$0xf] }
 0x5e0   : > { %v6820_v33 = vpop.f32.mrf.mxu0 }
 0x5e1   : > { %v6730_v25 = vadd.f32 %v6729_v34, %v6641_v4 }
 0x5e2   : > { %v6909_v40 = vpop.f32.mrf.mxu1 }
 0x5e3   : > { %v6819_v35 = vadd.f32 %v6818_v10, %v6730_v25  ;;  %v8572_v25 = vld [vmem:[%s11582_s21 + $0x508] sm:$0xf] }
 0x5e5   : > { %v13455_v36 = vadd.f32 %v6907_v62, %v6819_v35  ;;  %v11464_v35 = vld [vmem:[%s13939_s1 + $0x720] sm:$0xff] }
 0x5e6   : > { %v6642_v49 = vpop.f32.mrf.mxu2  ;;  %7469 = vmatpush.bf16.msrb.mxu0 %v11464_v35  ;;  %v10948_v35 = vld [vmem:[%s11582_s21 + $0x604] sm:$0xf] }
 0x5e7   : > { %v6731_v50 = vpop.f32.mrf.mxu3  ;;  %v6643_v3 = vadd.f32 %v6642_v49, %v13150_v20  ;;  %v11456_v20 = vld [vmem:[%s13939_s1 + $0x6e0] sm:$0xff] }
 0x5e8   : > { %v6823_v5 = vpop.f32.mrf.mxu0  ;;  %7380 = vmatpush.bf16.msrb.mxu3 %v11456_v20 }
 0x5e9   : > { %v6732_v61 = vadd.f32 %v6731_v50, %v6643_v3  ;;  %v8581_v3 = vor.u32 %v10933_v38, %v8580_v29 }
 0x5ea   : > { %v6912_v22 = vpop.f32.mrf.mxu1 }
 0x5eb   : > { %v6821_v17 = vadd.f32 %v6820_v33, %v6732_v61  ;;  %6960 = vmatmul.bf16.gmra.mxu2 %v8453_v0  ;;  %7138 = vmatmul.bf16.gmra.mxu0 %v8461_v27  ;;  %v10932_v33 = vld [vmem:[%s11582_s21 + $0x57c] sm:$0xf0]  ;;  %v8585_v0 = vor.u32 %v10918_v18, %v8582_v16 }
 0x5ec   : > { %7049 = vmatmul.bf16.gmra.mxu3 %v8457_v8  ;;  %v8573_v49 = vor.u32 %v10932_v33, %v8572_v25  ;;  %v8700_v25 = vld [vmem:[%s11582_s21 + $0x600] sm:$0xf]  ;;  %v10963_v33 = vld [vmem:[%s11582_s21 + $0x674] sm:$0xf0] }
 0x5ed   : > { %7227 = vmatmul.bf16.gmra.mxu1 %v8465_v53  ;;  %v13464_v39 = vadd.f32 %v6909_v40, %v6821_v17  ;;  %v8574_v40 = vld [vmem:[%s11582_s21 + $0x580] sm:$0xf0]  ;;  %v8701_v16 = vor.u32 %v10963_v33, %v8700_v25  ;;  %v8822_v25 = vld [vmem:[%s11582_s21 + $0x768] sm:$0xf0] }
 0x5ee   : > { %v6645_v21 = vpop.f32.mrf.mxu2  ;;  %v8577_v50 = vor.u32 %v10917_v32, %v8574_v40  ;;  %v8702_v32 = vld [vmem:[%s11582_s21 + $0x678] sm:$0xf0] }
 0x5ef   : > { %v6734_v10 = vpop.f32.mrf.mxu3  ;;  %v6646_v62 = vadd.f32 %v6645_v21, %v13164_v55 }
 0x5f0   : > { %v6825_v13 = vpop.f32.mrf.mxu0 }
 0x5f1   : > { %v6735_v19 = vadd.f32 %v6734_v10, %v6646_v62  ;;  %v8692_v62 = vld [vmem:[%s11582_s21 + $0x5f8] sm:$0xf] }
 0x5f2   : > { %v6914_v34 = vpop.f32.mrf.mxu1 }
 0x5f3   : > { %v6824_v4 = vadd.f32 %v6823_v5, %v6735_v19  ;;  %v10962_v19 = vld [vmem:[%s11582_s21 + $0x66c] sm:$0xf0] }
 0x5f4   : > { %v8693_v18 = vor.u32 %v10962_v19, %v8692_v62  ;;  %v10977_v62 = vld [vmem:[%s11582_s21 + $0x6ec] sm:$0xf]  ;;  %v8820_v19 = vld [vmem:[%s11582_s21 + $0x6f0] sm:$0xf] }
 0x5f5   : > { %v13478_v24 = vadd.f32 %v6912_v22, %v6824_v4  ;;  %v8694_v4 = vld [vmem:[%s11582_s21 + $0x670] sm:$0xf0] }
 0x5f6   : > { %v6647_v55 = vpop.f32.mrf.mxu2 }
 0x5f7   : > { %v6736_v48 = vpop.f32.mrf.mxu3  ;;  %v6648_v46 = vadd.f32 %v6647_v55, %v13170_v44  ;;  %v8705_v55 = vor.u32 %v10948_v35, %v8702_v32 }
 0x5f8   : > { %v6828_v27 = vpop.f32.mrf.mxu0 }
 0x5f9   : > { %v6737_v8 = vadd.f32 %v6736_v48, %v6648_v46 }
 0x5fa   : > { %v6917_v53 = vpop.f32.mrf.mxu1 }
 0x5fb   : > { %v6826_v61 = vadd.f32 %v6825_v13, %v6737_v8  ;;  %6965 = vmatmul.bf16.gmra.mxu2 %v8573_v49  ;;  %7143 = vmatmul.bf16.gmra.mxu0 %v8581_v3  ;;  %v10947_v13 = vld [vmem:[%s11582_s21 + $0x5fc] sm:$0xf] }
 0x5fc   : > { %7054 = vmatmul.bf16.gmra.mxu3 %v8577_v50  ;;  %v11447_v3 = vld [vmem:[%s13939_s1 + $0x698] sm:$0xff] }
 0x5fd   : > { %7232 = vmatmul.bf16.gmra.mxu1 %v8585_v0  ;;  %v13481_v44 = vadd.f32 %v6914_v34, %v6826_v61  ;;  %7292 = vmatpush.bf16.msrb.mxu2 %v11447_v3 }
 0x5fe   : > { %v6650_v5 = vpop.f32.mrf.mxu2 }
 0x5ff   : > { %v6739_v22 = vpop.f32.mrf.mxu3  ;;  %v6651_v17 = vadd.f32 %v6650_v5, %v13181_v58  ;;  %v8697_v58 = vor.u32 %v10947_v13, %v8694_v4  ;;  %v10993_v13 = vld [vmem:[%s11582_s21 + $0x764] sm:$0xf0]  ;;  %v10978_v4 = vld [vmem:[%s11582_s21 + $0x6f4] sm:$0xf] }
 0x600   : > { %v6830_v20 = vpop.f32.mrf.mxu0 }
 0x601   : > { %v6740_v60 = vadd.f32 %v6739_v22, %v6651_v17 }
 0x602   : > { %v6919_v21 = vpop.f32.mrf.mxu1 }
 0x603   : > { %v6829_v10 = vadd.f32 %v6828_v27, %v6740_v60  ;;  %v8812_v60 = vld [vmem:[%s11582_s21 + $0x6e8] sm:$0xf] }
 0x605   : > { %v13492_v40 = vadd.f32 %v6917_v53, %v6829_v10  ;;  %v11463_v10 = vld [vmem:[%s13939_s1 + $0x718] sm:$0xff] }
 0x606   : > { %v6652_v34 = vpop.f32.mrf.mxu2  ;;  %7470 = vmatpush.bf16.msrb.mxu0 %v11463_v10  ;;  %v11023_v10 = vld [vmem:[%s11582_s21 + $0x854] sm:$0xf0] }
 0x607   : > { %v6741_v29 = vpop.f32.mrf.mxu3  ;;  %v6653_v38 = vadd.f32 %v6652_v34, %v13190_v7  ;;  %v11455_v7 = vld [vmem:[%s13939_s1 + $0x6d8] sm:$0xff] }
 0x608   : > { %v6833_v46 = vpop.f32.mrf.mxu0  ;;  %7381 = vmatpush.bf16.msrb.mxu3 %v11455_v7 }
 0x609   : > { %v6742_v48 = vadd.f32 %v6741_v29, %v6653_v38  ;;  %v8821_v38 = vor.u32 %v10993_v13, %v8820_v19 }
 0x60a   : > { %v6922_v49 = vpop.f32.mrf.mxu1 }
 0x60b   : > { %v6831_v50 = vadd.f32 %v6830_v20, %v6742_v48  ;;  %6970 = vmatmul.bf16.gmra.mxu2 %v8693_v18  ;;  %7148 = vmatmul.bf16.gmra.mxu0 %v8701_v16  ;;  %v10992_v20 = vld [vmem:[%s11582_s21 + $0x75c] sm:$0xf0]  ;;  %v8825_v18 = vor.u32 %v10978_v4, %v8822_v25 }
 0x60c   : > { %7059 = vmatmul.bf16.gmra.mxu3 %v8697_v58  ;;  %v8813_v34 = vor.u32 %v10992_v20, %v8812_v60  ;;  %v8934_v60 = vld [vmem:[%s11582_s21 + $0x850] sm:$0xf0]  ;;  %v8940_v20 = vld [vmem:[%s11582_s21 + $0x7e0] sm:$0xf] }
 0x60d   : > { %7237 = vmatmul.bf16.gmra.mxu1 %v8705_v55  ;;  %v13501_v0 = vadd.f32 %v6919_v21, %v6831_v50  ;;  %v8814_v21 = vld [vmem:[%s11582_s21 + $0x760] sm:$0xf0] }
 0x60e   : > { %v6655_v8 = vpop.f32.mrf.mxu2  ;;  %v8817_v29 = vor.u32 %v10977_v62, %v8814_v21  ;;  %v11008_v62 = vld [vmem:[%s11582_s21 + $0x7e4] sm:$0xf]  ;;  %v8942_v21 = vld [vmem:[%s11582_s21 + $0x858] sm:$0xf0] }
 0x60f   : > { %v6744_v27 = vpop.f32.mrf.mxu3  ;;  %v6656_v53 = vadd.f32 %v6655_v8, %v13204_v6 }
 0x610   : > { %v6835_v5 = vpop.f32.mrf.mxu0 }
 0x611   : > { %v6745_v61 = vadd.f32 %v6744_v27, %v6656_v53 }
 0x612   : > { %v6924_v22 = vpop.f32.mrf.mxu1 }
 0x613   : > { %v6834_v17 = vadd.f32 %v6833_v46, %v6745_v61  ;;  %v11468_v46 = vld [vmem:[%s13939_s1 + $0x740] sm:$0xff]  ;;  %v8932_v61 = vld [vmem:[%s11582_s21 + $0x7d8] sm:$0xf] }
 0x614   : > { %7562 = vmatpush.bf16.msrb.mxu1 %v11468_v46 }
 0x615   : > { %v13515_v33 = vadd.f32 %v6922_v49, %v6834_v17  ;;  %v11007_v17 = vld [vmem:[%s11582_s21 + $0x7dc] sm:$0xf] }
 0x616   : > { %v6657_v6 = vpop.f32.mrf.mxu2 }
 0x617   : > { %v6746_v35 = vpop.f32.mrf.mxu3  ;;  %v6658_v32 = vadd.f32 %v6657_v6, %v13210_v56  ;;  %v8941_v6 = vor.u32 %v11023_v10, %v8940_v20  ;;  %v9062_v20 = vld [vmem:[%s11582_s21 + $0x948] sm:$0xf0] }
 0x618   : > { %v6838_v16 = vpop.f32.mrf.mxu0 }
 0x619   : > { %v6747_v58 = vadd.f32 %v6746_v35, %v6658_v32  ;;  %v8945_v35 = vor.u32 %v11008_v62, %v8942_v21 }
 0x61a   : > { %v6927_v55 = vpop.f32.mrf.mxu1 }
 0x61b   : > { %v6836_v48 = vadd.f32 %v6835_v5, %v6747_v58  ;;  %6975 = vmatmul.bf16.gmra.mxu2 %v8813_v34  ;;  %7153 = vmatmul.bf16.gmra.mxu0 %v8821_v38  ;;  %v11022_v5 = vld [vmem:[%s11582_s21 + $0x84c] sm:$0xf0] }
 0x61c   : > { %7064 = vmatmul.bf16.gmra.mxu3 %v8817_v29  ;;  %v8933_v25 = vor.u32 %v11022_v5, %v8932_v61  ;;  %v11037_v61 = vld [vmem:[%s11582_s21 + $0x8cc] sm:$0xf]  ;;  %v9060_v5 = vld [vmem:[%s11582_s21 + $0x8d0] sm:$0xf] }
 0x61d   : > { %7242 = vmatmul.bf16.gmra.mxu1 %v8825_v18  ;;  %v13521_v56 = vadd.f32 %v6924_v22, %v6836_v48  ;;  %v11446_v18 = vld [vmem:[%s13939_s1 + $0x690] sm:$0xff] }
 0x61e   : > { %v6660_v49 = vpop.f32.mrf.mxu2  ;;  %7293 = vmatpush.bf16.msrb.mxu2 %v11446_v18 }
 0x61f   : > { %v6749_v50 = vpop.f32.mrf.mxu3  ;;  %v6661_v3 = vadd.f32 %v6660_v49, %v13221_v43  ;;  %v8937_v43 = vor.u32 %v11007_v17, %v8934_v60  ;;  %v11053_v17 = vld [vmem:[%s11582_s21 + $0x944] sm:$0xf0]  ;;  %v11038_v60 = vld [vmem:[%s11582_s21 + $0x8d4] sm:$0xf] }
 0x620   : > { %v6840_v8 = vpop.f32.mrf.mxu0 }
 0x621   : > { %v6750_v7 = vadd.f32 %v6749_v50, %v6661_v3 }
 0x622   : > { %v6929_v27 = vpop.f32.mrf.mxu1 }
 0x623   : > { %v6839_v53 = vadd.f32 %v6838_v16, %v6750_v7  ;;  %v9052_v7 = vld [vmem:[%s11582_s21 + $0x8c8] sm:$0xf] }
 0x625   : > { %v13532_v19 = vadd.f32 %v6927_v55, %v6839_v53  ;;  %v11462_v53 = vld [vmem:[%s13939_s1 + $0x710] sm:$0xff] }
 0x626   : > { %v6662_v22 = vpop.f32.mrf.mxu2  ;;  %7471 = vmatpush.bf16.msrb.mxu0 %v11462_v53  ;;  %v11068_v53 = vld [vmem:[%s11582_s21 + $0x9c4] sm:$0xf] }
 0x627   : > { %v6751_v13 = vpop.f32.mrf.mxu3  ;;  %v6663_v4 = vadd.f32 %v6662_v22, %v13230_v52  ;;  %v11454_v52 = vld [vmem:[%s13939_s1 + $0x6d0] sm:$0xff] }
 0x628   : > { %v7119_v34 = vpop.f32.mrf.mxu0  ;;  %7382 = vmatpush.bf16.msrb.mxu3 %v11454_v52 }
 0x629   : > { %v6752_v32 = vadd.f32 %v6751_v13, %v6663_v4  ;;  %v9061_v4 = vor.u32 %v11053_v17, %v9060_v5 }
 0x62a   : > { %v7208_v29 = vpop.f32.mrf.mxu1 }
 0x62b   : > { %v6841_v38 = vadd.f32 %v6840_v8, %v6752_v32  ;;  %6980 = vmatmul.bf16.gmra.mxu2 %v8933_v25  ;;  %7158 = vmatmul.bf16.gmra.mxu0 %v8941_v6  ;;  %v11052_v8 = vld [vmem:[%s11582_s21 + $0x93c] sm:$0xf0]  ;;  %v9065_v25 = vor.u32 %v11038_v60, %v9062_v20 }
 0x62c   : > { %7069 = vmatmul.bf16.gmra.mxu3 %v8937_v43  ;;  %v9053_v22 = vor.u32 %v11052_v8, %v9052_v7  ;;  %v9180_v7 = vld [vmem:[%s11582_s21 + $0x9c0] sm:$0xf]  ;;  %v11083_v8 = vld [vmem:[%s11582_s21 + $0xa34] sm:$0xf0] }
 0x62d   : > { %7247 = vmatmul.bf16.gmra.mxu1 %v8945_v35  ;;  %v13541_v58 = vadd.f32 %v6929_v27, %v6841_v38  ;;  %v9054_v27 = vld [vmem:[%s11582_s21 + $0x940] sm:$0xf0]  ;;  %v9181_v20 = vor.u32 %v11083_v8, %v9180_v7  ;;  %v9302_v7 = vld [vmem:[%s11582_s21 + $0xb28] sm:$0xf0] }
 0x62e   : > { %v6941_v16 = vpop.f32.mrf.mxu2  ;;  %v9057_v13 = vor.u32 %v11037_v61, %v9054_v27  ;;  %v9182_v61 = vld [vmem:[%s11582_s21 + $0xa38] sm:$0xf0] }
 0x62f   : > { %v7030_v55 = vpop.f32.mrf.mxu3  ;;  %v6942_v48 = vadd.f32 %v6941_v16, %v13244_v1 }
 0x630   : > { %v7121_v49 = vpop.f32.mrf.mxu0 }
 0x631   : > { %v7031_v46 = vadd.f32 %v7030_v55, %v6942_v48  ;;  %v9172_v48 = vld [vmem:[%s11582_s21 + $0x9b8] sm:$0xf] }
 0x632   : > { %v7210_v50 = vpop.f32.mrf.mxu1 }
 0x633   : > { %v7120_v3 = vadd.f32 %v7119_v34, %v7031_v46  ;;  %v11082_v46 = vld [vmem:[%s11582_s21 + $0xa2c] sm:$0xf0] }
 0x634   : > { %v9173_v60 = vor.u32 %v11082_v46, %v9172_v48  ;;  %v11097_v48 = vld [vmem:[%s11582_s21 + $0xaac] sm:$0xf]  ;;  %v9300_v46 = vld [vmem:[%s11582_s21 + $0xab0] sm:$0xf] }
 0x635   : > { %v13555_v10 = vadd.f32 %v7208_v29, %v7120_v3  ;;  %v9174_v3 = vld [vmem:[%s11582_s21 + $0xa30] sm:$0xf0] }
 0x636   : > { %v6943_v1 = vpop.f32.mrf.mxu2 }
 0x637   : > { %v7032_v62 = vpop.f32.mrf.mxu3  ;;  %v6944_v21 = vadd.f32 %v6943_v1, %v13250_v42  ;;  %v9185_v1 = vor.u32 %v11068_v53, %v9182_v61 }
 0x638   : > { %v7124_v6 = vpop.f32.mrf.mxu0 }
 0x639   : > { %v7033_v43 = vadd.f32 %v7032_v62, %v6944_v21 }
 0x63a   : > { %v7213_v35 = vpop.f32.mrf.mxu1 }
 0x63b   : > { %v7122_v32 = vadd.f32 %v7121_v49, %v7033_v43  ;;  %6985 = vmatmul.bf16.gmra.mxu2 %v9053_v22  ;;  %7163 = vmatmul.bf16.gmra.mxu0 %v9061_v4  ;;  %v11067_v49 = vld [vmem:[%s11582_s21 + $0x9bc] sm:$0xf]  ;;  %v11445_v4 = vld [vmem:[%s13939_s1 + $0x688] sm:$0xff] }
 0x63c   : > { %7074 = vmatmul.bf16.gmra.mxu3 %v9057_v13  ;;  %7294 = vmatpush.bf16.msrb.mxu2 %v11445_v4 }
 0x63d   : > { %7252 = vmatmul.bf16.gmra.mxu1 %v9065_v25  ;;  %v13558_v42 = vadd.f32 %v7210_v50, %v7122_v32 }
 0x63e   : > { %v6946_v34 = vpop.f32.mrf.mxu2 }
 0x63f   : > { %v7035_v29 = vpop.f32.mrf.mxu3  ;;  %v6947_v38 = vadd.f32 %v6946_v34, %v13261_v26  ;;  %v9177_v26 = vor.u32 %v11067_v49, %v9174_v3  ;;  %v11113_v49 = vld [vmem:[%s11582_s21 + $0xb24] sm:$0xf0]  ;;  %v11098_v3 = vld [vmem:[%s11582_s21 + $0xab4] sm:$0xf] }
 0x640   : > { %v7126_v52 = vpop.f32.mrf.mxu0 }
 0x641   : > { %v7036_v18 = vadd.f32 %v7035_v29, %v6947_v38 }
 0x642   : > { %v7215_v16 = vpop.f32.mrf.mxu1 }
 0x643   : > { %v7125_v55 = vadd.f32 %v7124_v6, %v7036_v18  ;;  %v9292_v18 = vld [vmem:[%s11582_s21 + $0xaa8] sm:$0xf] }
 0x645   : > { %v13569_v27 = vadd.f32 %v7213_v35, %v7125_v55  ;;  %v11461_v55 = vld [vmem:[%s13939_s1 + $0x708] sm:$0xff] }
 0x646   : > { %v6948_v50 = vpop.f32.mrf.mxu2  ;;  %7472 = vmatpush.bf16.msrb.mxu0 %v11461_v55  ;;  %v11128_v55 = vld [vmem:[%s11582_s21 + $0xba4] sm:$0xf] }
 0x647   : > { %v7037_v5 = vpop.f32.mrf.mxu3  ;;  %v6949_v17 = vadd.f32 %v6948_v50, %v13270_v41  ;;  %v11453_v41 = vld [vmem:[%s13939_s1 + $0x6c8] sm:$0xff] }
 0x648   : > { %v7129_v21 = vpop.f32.mrf.mxu0  ;;  %7383 = vmatpush.bf16.msrb.mxu3 %v11453_v41 }
 0x649   : > { %v7038_v62 = vadd.f32 %v7037_v5, %v6949_v17  ;;  %v9301_v17 = vor.u32 %v11113_v49, %v9300_v46 }
 0x64a   : > { %v7218_v22 = vpop.f32.mrf.mxu1 }
 0x64b   : > { %v7127_v13 = vadd.f32 %v7126_v52, %v7038_v62  ;;  %6990 = vmatmul.bf16.gmra.mxu2 %v9173_v60  ;;  %7168 = vmatmul.bf16.gmra.mxu0 %v9181_v20  ;;  %v11112_v52 = vld [vmem:[%s11582_s21 + $0xb1c] sm:$0xf0]  ;;  %v9305_v60 = vor.u32 %v11098_v3, %v9302_v7 }
 0x64c   : > { %7079 = vmatmul.bf16.gmra.mxu3 %v9177_v26  ;;  %v9293_v50 = vor.u32 %v11112_v52, %v9292_v18  ;;  %v9420_v18 = vld [vmem:[%s11582_s21 + $0xba0] sm:$0xf]  ;;  %v11143_v52 = vld [vmem:[%s11582_s21 + $0xc14] sm:$0xf0] }
 0x64d   : > { %7257 = vmatmul.bf16.gmra.mxu1 %v9185_v1  ;;  %v13578_v25 = vadd.f32 %v7215_v16, %v7127_v13  ;;  %v9294_v16 = vld [vmem:[%s11582_s21 + $0xb20] sm:$0xf0]  ;;  %v9421_v7 = vor.u32 %v11143_v52, %v9420_v18  ;;  %v9542_v18 = vld [vmem:[%s11582_s21 + $0xd08] sm:$0xf0] }
 0x64e   : > { %v6951_v43 = vpop.f32.mrf.mxu2  ;;  %v9297_v5 = vor.u32 %v11097_v48, %v9294_v16  ;;  %v9422_v48 = vld [vmem:[%s11582_s21 + $0xc18] sm:$0xf0] }
 0x64f   : > { %v7040_v6 = vpop.f32.mrf.mxu3  ;;  %v6952_v35 = vadd.f32 %v6951_v43, %v13284_v57 }
 0x650   : > { %v7131_v34 = vpop.f32.mrf.mxu0 }
 0x651   : > { %v7041_v32 = vadd.f32 %v7040_v6, %v6952_v35  ;;  %v9412_v35 = vld [vmem:[%s11582_s21 + $0xb98] sm:$0xf] }
 0x652   : > { %v7220_v29 = vpop.f32.mrf.mxu1 }
 0x653   : > { %v7130_v38 = vadd.f32 %v7129_v21, %v7041_v32  ;;  %v11142_v32 = vld [vmem:[%s11582_s21 + $0xc0c] sm:$0xf0] }
 0x654   : > { %v9413_v3 = vor.u32 %v11142_v32, %v9412_v35  ;;  %v11157_v35 = vld [vmem:[%s11582_s21 + $0xc8c] sm:$0xf]  ;;  %v9540_v32 = vld [vmem:[%s11582_s21 + $0xc90] sm:$0xf] }
 0x655   : > { %v13592_v8 = vadd.f32 %v7218_v22, %v7130_v38  ;;  %v9414_v38 = vld [vmem:[%s11582_s21 + $0xc10] sm:$0xf0] }
 0x656   : > { %v6953_v57 = vpop.f32.mrf.mxu2 }
 0x657   : > { %v7042_v53 = vpop.f32.mrf.mxu3  ;;  %v6954_v61 = vadd.f32 %v6953_v57, %v13290_v30  ;;  %v9425_v57 = vor.u32 %v11128_v55, %v9422_v48 }
 0x658   : > { %v7134_v20 = vpop.f32.mrf.mxu0 }
 0x659   : > { %v7043_v26 = vadd.f32 %v7042_v53, %v6954_v61 }
 0x65a   : > { %v7223_v1 = vpop.f32.mrf.mxu1 }
 0x65b   : > { %v7132_v62 = vadd.f32 %v7131_v34, %v7043_v26  ;;  %6995 = vmatmul.bf16.gmra.mxu2 %v9293_v50  ;;  %7173 = vmatmul.bf16.gmra.mxu0 %v9301_v17  ;;  %v11127_v34 = vld [vmem:[%s11582_s21 + $0xb9c] sm:$0xf]  ;;  %v11444_v17 = vld [vmem:[%s13939_s1 + $0x680] sm:$0xff] }
 0x65c   : > { %7084 = vmatmul.bf16.gmra.mxu3 %v9297_v5  ;;  %7295 = vmatpush.bf16.msrb.mxu2 %v11444_v17 }
 0x65d   : > { %7262 = vmatmul.bf16.gmra.mxu1 %v9305_v60  ;;  %v13595_v30 = vadd.f32 %v7220_v29, %v7132_v62 }
 0x65e   : > { %v6956_v21 = vpop.f32.mrf.mxu2 }
 0x65f   : > { %v7045_v22 = vpop.f32.mrf.mxu3  ;;  %v6957_v13 = vadd.f32 %v6956_v21, %v13301_v63  ;;  %v9417_v63 = vor.u32 %v11127_v34, %v9414_v38  ;;  %v11173_v34 = vld [vmem:[%s11582_s21 + $0xd04] sm:$0xf0]  ;;  %v11158_v38 = vld [vmem:[%s11582_s21 + $0xc94] sm:$0xf] }
 0x660   : > { %v7136_v41 = vpop.f32.mrf.mxu0 }
 0x661   : > { %v7046_v4 = vadd.f32 %v7045_v22, %v6957_v13 }
 0x662   : > { %v7225_v43 = vpop.f32.mrf.mxu1 }
 0x663   : > { %v7135_v6 = vadd.f32 %v7134_v20, %v7046_v4  ;;  %v9532_v4 = vld [vmem:[%s11582_s21 + $0xc88] sm:$0xf] }
 0x665   : > { %v13606_v16 = vadd.f32 %v7223_v1, %v7135_v6  ;;  %v11460_v6 = vld [vmem:[%s13939_s1 + $0x700] sm:$0xff] }
 0x666   : > { %v6958_v29 = vpop.f32.mrf.mxu2  ;;  %7473 = vmatpush.bf16.msrb.mxu0 %v11460_v6  ;;  %v11188_v6 = vld [vmem:[%s11582_s21 + $0xd84] sm:$0xf] }
 0x667   : > { %v7047_v46 = vpop.f32.mrf.mxu3  ;;  %v6959_v49 = vadd.f32 %v6958_v29, %v13310_v23  ;;  %v11452_v23 = vld [vmem:[%s13939_s1 + $0x6c0] sm:$0xff] }
 0x668   : > { %v7139_v61 = vpop.f32.mrf.mxu0  ;;  %7384 = vmatpush.bf16.msrb.mxu3 %v11452_v23 }
 0x669   : > { %v7048_v53 = vadd.f32 %v7047_v46, %v6959_v49  ;;  %v9541_v49 = vor.u32 %v11173_v34, %v9540_v32 }
 0x66a   : > { %v7228_v50 = vpop.f32.mrf.mxu1 }
 0x66b   : > { %v7137_v5 = vadd.f32 %v7136_v41, %v7048_v53  ;;  %7000 = vmatmul.bf16.gmra.mxu2 %v9413_v3  ;;  %7178 = vmatmul.bf16.gmra.mxu0 %v9421_v7  ;;  %v11172_v41 = vld [vmem:[%s11582_s21 + $0xcfc] sm:$0xf0]  ;;  %v9545_v3 = vor.u32 %v11158_v38, %v9542_v18 }
 0x66c   : > { %7089 = vmatmul.bf16.gmra.mxu3 %v9417_v63  ;;  %v9533_v29 = vor.u32 %v11172_v41, %v9532_v4  ;;  %v9660_v4 = vld [vmem:[%s11582_s21 + $0xd80] sm:$0xf]  ;;  %v11203_v41 = vld [vmem:[%s11582_s21 + $0xdf4] sm:$0xf0] }
 0x66d   : > { %7267 = vmatmul.bf16.gmra.mxu1 %v9425_v57  ;;  %v13615_v60 = vadd.f32 %v7225_v43, %v7137_v5  ;;  %v9534_v43 = vld [vmem:[%s11582_s21 + $0xd00] sm:$0xf0]  ;;  %v9661_v18 = vor.u32 %v11203_v41, %v9660_v4 }
 0x66e   : > { %v6961_v26 = vpop.f32.mrf.mxu2  ;;  %v9537_v46 = vor.u32 %v11157_v35, %v9534_v43  ;;  %v9662_v35 = vld [vmem:[%s11582_s21 + $0xdf8] sm:$0xf0] }
 0x66f   : > { %v7050_v20 = vpop.f32.mrf.mxu3  ;;  %v6962_v1 = vadd.f32 %v6961_v26, %v13324_v59 }
 0x670   : > { %v7141_v21 = vpop.f32.mrf.mxu0 }
 0x671   : > { %v7051_v62 = vadd.f32 %v7050_v20, %v6962_v1  ;;  %v9652_v1 = vld [vmem:[%s11582_s21 + $0xd78] sm:$0xf] }
 0x672   : > { %v7230_v22 = vpop.f32.mrf.mxu1 }
 0x673   : > { %v7140_v13 = vadd.f32 %v7139_v61, %v7051_v62  ;;  %v11202_v62 = vld [vmem:[%s11582_s21 + $0xdec] sm:$0xf0] }
 0x674   : > { %v9653_v38 = vor.u32 %v11202_v62, %v9652_v1  ;;  %v11233_v1 = vld [vmem:[%s11582_s21 + $0xee4] sm:$0xf0]  ;;  %v11218_v62 = vld [vmem:[%s11582_s21 + $0xe74] sm:$0xf] }
 0x675   : > { %v13629_v52 = vadd.f32 %v7228_v50, %v7140_v13  ;;  %v9654_v13 = vld [vmem:[%s11582_s21 + $0xdf0] sm:$0xf0] }
 0x676   : > { %v6963_v59 = vpop.f32.mrf.mxu2 }
 0x677   : > { %v7052_v55 = vpop.f32.mrf.mxu3  ;;  %v6964_v48 = vadd.f32 %v6963_v59, %v13330_v28  ;;  %v9665_v59 = vor.u32 %v11188_v6, %v9662_v35 }
 0x678   : > { %v7144_v7 = vpop.f32.mrf.mxu0 }
 0x679   : > { %v7053_v63 = vadd.f32 %v7052_v55, %v6964_v48 }
 0x67a   : > { %v7233_v57 = vpop.f32.mrf.mxu1 }
 0x67b   : > { %v7142_v53 = vadd.f32 %v7141_v21, %v7053_v63  ;;  %7005 = vmatmul.bf16.gmra.mxu2 %v9533_v29  ;;  %7183 = vmatmul.bf16.gmra.mxu0 %v9541_v49  ;;  %v11187_v21 = vld [vmem:[%s11582_s21 + $0xd7c] sm:$0xf] }
 0x67c   : > { %7094 = vmatmul.bf16.gmra.mxu3 %v9537_v46 }
 0x67d   : > { %7272 = vmatmul.bf16.gmra.mxu1 %v9545_v3  ;;  %v13632_v28 = vadd.f32 %v7230_v22, %v7142_v53 }
 0x67e   : > { %v6966_v61 = vpop.f32.mrf.mxu2 }
 0x67f   : > { %v7055_v50 = vpop.f32.mrf.mxu3  ;;  %v6967_v5 = vadd.f32 %v6966_v61, %v13341_v47  ;;  %v9657_v47 = vor.u32 %v11187_v21, %v9654_v13  ;;  %v9782_v21 = vld [vmem:[%s11582_s21 + $0xee8] sm:$0xf0] }
 0x680   : > { %v7146_v23 = vpop.f32.mrf.mxu0 }
 0x681   : > { %v7056_v17 = vadd.f32 %v7055_v50, %v6967_v5  ;;  %v9772_v50 = vld [vmem:[%s11582_s21 + $0xe68] sm:$0xf]  ;;  %v11232_v5 = vld [vmem:[%s11582_s21 + $0xedc] sm:$0xf0] }
 0x682   : > { %v7235_v26 = vpop.f32.mrf.mxu1  ;;  %v9773_v6 = vor.u32 %v11232_v5, %v9772_v50  ;;  %v10785_v50 = vld [vmem:[%s11582_s21 + $0xe4] sm:$0xf0]  ;;  %v10770_v5 = vld [vmem:[%s11582_s21 + $0x74] sm:$0xf] }
 0x683   : > { %v7145_v20 = vadd.f32 %v7144_v7, %v7056_v17  ;;  %v11217_v17 = vld [vmem:[%s11582_s21 + $0xe6c] sm:$0xf] }
 0x685   : > { %v13643_v43 = vadd.f32 %v7233_v57, %v7145_v20  ;;  %v9780_v20 = vld [vmem:[%s11582_s21 + $0xe70] sm:$0xf] }
 0x686   : > { %v6968_v22 = vpop.f32.mrf.mxu2  ;;  %v9781_v35 = vor.u32 %v11233_v1, %v9780_v20 }
 0x687   : > { %v7057_v32 = vpop.f32.mrf.mxu3  ;;  %v6969_v34 = vadd.f32 %v6968_v22, %v13350_v9  ;;  %v9785_v22 = vor.u32 %v11218_v62, %v9782_v21 }
 0x688   : > { %v7149_v48 = vpop.f32.mrf.mxu0 }
 0x689   : > { %v7058_v55 = vadd.f32 %v7057_v32, %v6969_v34 }
 0x68a   : > { %v7238_v29 = vpop.f32.mrf.mxu1 }
 0x68b   : > { %v7147_v46 = vadd.f32 %v7146_v23, %v7058_v55  ;;  %7010 = vmatmul.bf16.gmra.mxu2 %v9653_v38  ;;  %7188 = vmatmul.bf16.gmra.mxu0 %v9661_v18  ;;  %v9774_v23 = vld [vmem:[%s11582_s21 + $0xee0] sm:$0xf0] }
 0x68c   : > { %7099 = vmatmul.bf16.gmra.mxu3 %v9657_v47 }
 0x68d   : > { %7277 = vmatmul.bf16.gmra.mxu1 %v9665_v59  ;;  %v13646_v9 = vadd.f32 %v7235_v26, %v7147_v46 }
 0x68e   : > { %v6971_v49 = vpop.f32.mrf.mxu2 }
 0x68f   : > { %v7060_v3 = vpop.f32.mrf.mxu3  ;;  %v6972_v63 = vadd.f32 %v6971_v49, %v13364_v11  ;;  %v9777_v11 = vor.u32 %v11217_v17, %v9774_v23  ;;  %v7998_v17 = vld [vmem:[%s11582_s21 + $0xe8] sm:$0xf0] }
 0x690   : > { %v7151_v57 = vpop.f32.mrf.mxu0 }
 0x691   : > { %v7061_v7 = vadd.f32 %v7060_v3, %v6972_v63  ;;  %v7988_v3 = vld [vmem:[%s11582_s21 + $0x68] sm:$0xf]  ;;  %v10784_v63 = vld [vmem:[%s11582_s21 + $0xdc] sm:$0xf0] }
 0x692   : > { %v7240_v53 = vpop.f32.mrf.mxu1  ;;  %v7989_v62 = vor.u32 %v10784_v63, %v7988_v3  ;;  %v10815_v3 = vld [vmem:[%s11582_s21 + $0x1d4] sm:$0xf0]  ;;  %v10800_v63 = vld [vmem:[%s11582_s21 + $0x164] sm:$0xf] }
 0x693   : > { %v7150_v61 = vadd.f32 %v7149_v48, %v7061_v7  ;;  %v10769_v7 = vld [vmem:[%s11582_s21 + $0x6c] sm:$0xf] }
 0x695   : > { %v13657_v13 = vadd.f32 %v7238_v29, %v7150_v61  ;;  %v7996_v61 = vld [vmem:[%s11582_s21 + $0x70] sm:$0xf] }
 0x696   : > { %v6973_v26 = vpop.f32.mrf.mxu2  ;;  %v7997_v21 = vor.u32 %v10785_v50, %v7996_v61 }
 0x697   : > { %v7062_v4 = vpop.f32.mrf.mxu3  ;;  %v6974_v41 = vadd.f32 %v6973_v26, %v13370_v37  ;;  %v8001_v26 = vor.u32 %v10770_v5, %v7998_v17 }
 0x698   : > { %v7154_v34 = vpop.f32.mrf.mxu0 }
 0x699   : > { %v7063_v32 = vadd.f32 %v7062_v4, %v6974_v41 }
 0x69a   : > { %v7243_v38 = vpop.f32.mrf.mxu1 }
 0x69b   : > { %v7152_v47 = vadd.f32 %v7151_v57, %v7063_v32  ;;  %7015 = vmatmul.bf16.gmra.mxu2 %v9773_v6  ;;  %7193 = vmatmul.bf16.gmra.mxu0 %v9781_v35  ;;  %v7990_v57 = vld [vmem:[%s11582_s21 + $0xe0] sm:$0xf0] }
 0x69c   : > { %7104 = vmatmul.bf16.gmra.mxu3 %v9777_v11 }
 0x69d   : > { %7282 = vmatmul.bf16.gmra.mxu1 %v9785_v22  ;;  %v13660_v37 = vadd.f32 %v7240_v53, %v7152_v47 }
 0x69e   : > { %v6976_v18 = vpop.f32.mrf.mxu2 }
 0x69f   : > { %v7065_v59 = vpop.f32.mrf.mxu3  ;;  %v6977_v55 = vadd.f32 %v6976_v18, %v13381_v31  ;;  %v7993_v31 = vor.u32 %v10769_v7, %v7990_v57  ;;  %v8118_v7 = vld [vmem:[%s11582_s21 + $0x1d8] sm:$0xf0] }
 0x6a0   : > { %v7156_v29 = vpop.f32.mrf.mxu0 }
 0x6a1   : > { %v7066_v48 = vadd.f32 %v7065_v59, %v6977_v55  ;;  %v8108_v59 = vld [vmem:[%s11582_s21 + $0x158] sm:$0xf]  ;;  %v10814_v55 = vld [vmem:[%s11582_s21 + $0x1cc] sm:$0xf0] }
 0x6a2   : > { %v7245_v46 = vpop.f32.mrf.mxu1  ;;  %v8109_v5 = vor.u32 %v10814_v55, %v8108_v59  ;;  %v10845_v59 = vld [vmem:[%s11582_s21 + $0x2c4] sm:$0xf0]  ;;  %v10830_v55 = vld [vmem:[%s11582_s21 + $0x254] sm:$0xf] }
 0x6a3   : > { %v7155_v49 = vadd.f32 %v7154_v34, %v7066_v48  ;;  %v10799_v48 = vld [vmem:[%s11582_s21 + $0x15c] sm:$0xf] }
 0x6a5   : > { %v13671_v23 = vadd.f32 %v7243_v38, %v7155_v49  ;;  %v8116_v49 = vld [vmem:[%s11582_s21 + $0x160] sm:$0xf] }
 0x6a6   : > { %v6978_v53 = vpop.f32.mrf.mxu2  ;;  %v8117_v17 = vor.u32 %v10815_v3, %v8116_v49 }
 0x6a7   : > { %v7067_v20 = vpop.f32.mrf.mxu3  ;;  %v6979_v1 = vadd.f32 %v6978_v53, %v13390_v51  ;;  %v8121_v53 = vor.u32 %v10800_v63, %v8118_v7 }
 0x6a8   : > { %v7159_v41 = vpop.f32.mrf.mxu0 }
 0x6a9   : > { %v7068_v4 = vadd.f32 %v7067_v20, %v6979_v1 }
 0x6aa   : > { %v7248_v6 = vpop.f32.mrf.mxu1 }
 0x6ab   : > { %v7157_v11 = vadd.f32 %v7156_v29, %v7068_v4  ;;  %7296 = vmatmul.bf16.vlgmr.msrb.gmra.mxu2 %v7989_v62  ;;  %7474 = vmatmul.bf16.vlgmr.msrb.gmra.mxu0 %v7997_v21  ;;  %v8110_v29 = vld [vmem:[%s11582_s21 + $0x1d0] sm:$0xf0] }
 0x6ac   : > { %7385 = vmatmul.bf16.vlgmr.msrb.gmra.mxu3 %v7993_v31 }
 0x6ad   : > { %10738 = vmatmul.msk.bf16.vlgmr.msrb.gmra.mxu1 %vm4925_vm0, %v8001_v26  ;;  %v13675_v51 = vadd.f32 %v7245_v46, %v7157_v11 }
 0x6ae   : > { %v6981_v35 = vpop.f32.mrf.mxu2 }
 0x6af   : > { %v7070_v22 = vpop.f32.mrf.mxu3  ;;  %v6982_v32 = vadd.f32 %v6981_v35, %v13404_v12  ;;  %v8113_v12 = vor.u32 %v10799_v48, %v8110_v29  ;;  %v8238_v48 = vld [vmem:[%s11582_s21 + $0x2c8] sm:$0xf0] }
 0x6b0   : > { %v7161_v38 = vpop.f32.mrf.mxu0 }
 0x6b1   : > { %v7071_v34 = vadd.f32 %v7070_v22, %v6982_v32  ;;  %v8228_v22 = vld [vmem:[%s11582_s21 + $0x248] sm:$0xf]  ;;  %v10844_v32 = vld [vmem:[%s11582_s21 + $0x2bc] sm:$0xf0] }
 0x6b2   : > { %v7250_v47 = vpop.f32.mrf.mxu1  ;;  %v8229_v63 = vor.u32 %v10844_v32, %v8228_v22  ;;  %v10875_v22 = vld [vmem:[%s11582_s21 + $0x3b4] sm:$0xf0]  ;;  %v10860_v32 = vld [vmem:[%s11582_s21 + $0x344] sm:$0xf] }
 0x6b3   : > { %v7160_v18 = vadd.f32 %v7159_v41, %v7071_v34  ;;  %v10829_v34 = vld [vmem:[%s11582_s21 + $0x24c] sm:$0xf] }
 0x6b5   : > { %v13686_v57 = vadd.f32 %v7248_v6, %v7160_v18  ;;  %v8236_v18 = vld [vmem:[%s11582_s21 + $0x250] sm:$0xf] }
 0x6b6   : > { %v6983_v46 = vpop.f32.mrf.mxu2  ;;  %v8237_v7 = vor.u32 %v10845_v59, %v8236_v18 }
 0x6b7   : > { %v7072_v61 = vpop.f32.mrf.mxu3  ;;  %v6984_v50 = vadd.f32 %v6983_v46, %v13407_v54  ;;  %v8241_v46 = vor.u32 %v10830_v55, %v8238_v48 }
 0x6b8   : > { %v7164_v1 = vpop.f32.mrf.mxu0 }
 0x6b9   : > { %v7073_v20 = vadd.f32 %v7072_v61, %v6984_v50 }
 0x6ba   : > { %v7253_v62 = vpop.f32.mrf.mxu1 }
 0x6bb   : > { %v7162_v31 = vadd.f32 %v7161_v38, %v7073_v20  ;;  %7301 = vmatmul.bf16.gmra.mxu2 %v8109_v5  ;;  %7479 = vmatmul.bf16.gmra.mxu0 %v8117_v17  ;;  %v8230_v38 = vld [vmem:[%s11582_s21 + $0x2c0] sm:$0xf0] }
 0x6bc   : > { %7390 = vmatmul.bf16.gmra.mxu3 %v8113_v12 }
 0x6bd   : > { %10739 = vmatmul.msk.bf16.gmra.mxu1 %vm4925_vm0, %v8121_v53  ;;  %v13690_v54 = vadd.f32 %v7250_v47, %v7162_v31 }
 0x6be   : > { %v6986_v21 = vpop.f32.mrf.mxu2 }
 0x6bf   : > { %v7075_v26 = vpop.f32.mrf.mxu3  ;;  %v6987_v4 = vadd.f32 %v6986_v21, %v13418_v2  ;;  %v8233_v2 = vor.u32 %v10829_v34, %v8230_v38  ;;  %v8358_v34 = vld [vmem:[%s11582_s21 + $0x3b8] sm:$0xf0] }
 0x6c0   : > { %v7166_v6 = vpop.f32.mrf.mxu0 }
 0x6c1   : > { %v7076_v41 = vadd.f32 %v7075_v26, %v6987_v4  ;;  %v8348_v26 = vld [vmem:[%s11582_s21 + $0x338] sm:$0xf]  ;;  %v10874_v4 = vld [vmem:[%s11582_s21 + $0x3ac] sm:$0xf0] }
 0x6c2   : > { %v7255_v11 = vpop.f32.mrf.mxu1  ;;  %v8349_v55 = vor.u32 %v10874_v4, %v8348_v26  ;;  %v10905_v26 = vld [vmem:[%s11582_s21 + $0x4a4] sm:$0xf0]  ;;  %v10890_v4 = vld [vmem:[%s11582_s21 + $0x434] sm:$0xf] }
 0x6c3   : > { %v7165_v35 = vadd.f32 %v7164_v1, %v7076_v41  ;;  %v10859_v41 = vld [vmem:[%s11582_s21 + $0x33c] sm:$0xf] }
 0x6c5   : > { %v13701_v29 = vadd.f32 %v7253_v62, %v7165_v35  ;;  %v8356_v35 = vld [vmem:[%s11582_s21 + $0x340] sm:$0xf] }
 0x6c6   : > { %v6988_v47 = vpop.f32.mrf.mxu2  ;;  %v8357_v48 = vor.u32 %v10875_v22, %v8356_v35 }
 0x6c7   : > { %v7077_v49 = vpop.f32.mrf.mxu3  ;;  %v6989_v3 = vadd.f32 %v6988_v47, %v13427_v15  ;;  %v8361_v47 = vor.u32 %v10860_v32, %v8358_v34 }
 0x6c8   : > { %v7169_v50 = vpop.f32.mrf.mxu0 }
 0x6c9   : > { %v7078_v61 = vadd.f32 %v7077_v49, %v6989_v3 }
 0x6ca   : > { %v7258_v5 = vpop.f32.mrf.mxu1 }
 0x6cb   : > { %v7167_v12 = vadd.f32 %v7166_v6, %v7078_v61  ;;  %7306 = vmatmul.bf16.gmra.mxu2 %v8229_v63  ;;  %7484 = vmatmul.bf16.gmra.mxu0 %v8237_v7  ;;  %v8350_v6 = vld [vmem:[%s11582_s21 + $0x3b0] sm:$0xf0] }
 0x6cc   : > { %7395 = vmatmul.bf16.gmra.mxu3 %v8233_v2 }
 0x6cd   : > { %10740 = vmatmul.msk.bf16.gmra.mxu1 %vm4925_vm0, %v8241_v46  ;;  %v13705_v15 = vadd.f32 %v7255_v11, %v7167_v12 }
 0x6ce   : > { %v6991_v17 = vpop.f32.mrf.mxu2 }
 0x6cf   : > { %v7080_v53 = vpop.f32.mrf.mxu3  ;;  %v6992_v20 = vadd.f32 %v6991_v17, %v13441_v14  ;;  %v8353_v14 = vor.u32 %v10859_v41, %v8350_v6  ;;  %v8478_v41 = vld [vmem:[%s11582_s21 + $0x4a8] sm:$0xf0] }
 0x6d0   : > { %v7171_v62 = vpop.f32.mrf.mxu0 }
 0x6d1   : > { %v7081_v1 = vadd.f32 %v7080_v53, %v6992_v20  ;;  %v8468_v53 = vld [vmem:[%s11582_s21 + $0x428] sm:$0xf]  ;;  %v10904_v20 = vld [vmem:[%s11582_s21 + $0x49c] sm:$0xf0] }
 0x6d2   : > { %v7260_v31 = vpop.f32.mrf.mxu1  ;;  %v8469_v32 = vor.u32 %v10904_v20, %v8468_v53  ;;  %v10935_v53 = vld [vmem:[%s11582_s21 + $0x594] sm:$0xf0]  ;;  %v10920_v20 = vld [vmem:[%s11582_s21 + $0x524] sm:$0xf] }
 0x6d3   : > { %v7170_v21 = vadd.f32 %v7169_v50, %v7081_v1  ;;  %v10889_v1 = vld [vmem:[%s11582_s21 + $0x42c] sm:$0xf] }
 0x6d5   : > { %v13716_v38 = vadd.f32 %v7258_v5, %v7170_v21  ;;  %v8476_v21 = vld [vmem:[%s11582_s21 + $0x430] sm:$0xf] }
 0x6d6   : > { %v6993_v11 = vpop.f32.mrf.mxu2  ;;  %v8477_v34 = vor.u32 %v10905_v26, %v8476_v21 }
 0x6d7   : > { %v7082_v18 = vpop.f32.mrf.mxu3  ;;  %v6994_v59 = vadd.f32 %v6993_v11, %v13444_v45  ;;  %v8481_v11 = vor.u32 %v10890_v4, %v8478_v41 }
 0x6d8   : > { %v7174_v3 = vpop.f32.mrf.mxu0 }
 0x6d9   : > { %v7083_v49 = vadd.f32 %v7082_v18, %v6994_v59 }
 0x6da   : > { %v7263_v63 = vpop.f32.mrf.mxu1 }
 0x6db   : > { %v7172_v2 = vadd.f32 %v7171_v62, %v7083_v49  ;;  %7311 = vmatmul.bf16.gmra.mxu2 %v8349_v55  ;;  %7489 = vmatmul.bf16.gmra.mxu0 %v8357_v48  ;;  %v8470_v62 = vld [vmem:[%s11582_s21 + $0x4a0] sm:$0xf0] }
 0x6dc   : > { %7400 = vmatmul.bf16.gmra.mxu3 %v8353_v14 }
 0x6dd   : > { %10741 = vmatmul.msk.bf16.gmra.mxu1 %vm4925_vm0, %v8361_v47  ;;  %v13720_v45 = vadd.f32 %v7260_v31, %v7172_v2 }
 0x6de   : > { %v6996_v7 = vpop.f32.mrf.mxu2 }
 0x6df   : > { %v7085_v46 = vpop.f32.mrf.mxu3  ;;  %v6997_v61 = vadd.f32 %v6996_v7, %v13455_v36  ;;  %v8473_v36 = vor.u32 %v10889_v1, %v8470_v62  ;;  %v8598_v1 = vld [vmem:[%s11582_s21 + $0x598] sm:$0xf0] }
 0x6e0   : > { %v7176_v5 = vpop.f32.mrf.mxu0 }
 0x6e1   : > { %v7086_v50 = vadd.f32 %v7085_v46, %v6997_v61  ;;  %v8588_v46 = vld [vmem:[%s11582_s21 + $0x518] sm:$0xf]  ;;  %v10934_v61 = vld [vmem:[%s11582_s21 + $0x58c] sm:$0xf0] }
 0x6e2   : > { %v7265_v12 = vpop.f32.mrf.mxu1  ;;  %v8589_v4 = vor.u32 %v10934_v61, %v8588_v46  ;;  %v10965_v46 = vld [vmem:[%s11582_s21 + $0x684] sm:$0xf0]  ;;  %v10950_v61 = vld [vmem:[%s11582_s21 + $0x614] sm:$0xf] }
 0x6e3   : > { %v7175_v17 = vadd.f32 %v7174_v3, %v7086_v50  ;;  %v10919_v50 = vld [vmem:[%s11582_s21 + $0x51c] sm:$0xf] }
 0x6e5   : > { %v13731_v6 = vadd.f32 %v7263_v63, %v7175_v17  ;;  %v8596_v17 = vld [vmem:[%s11582_s21 + $0x520] sm:$0xf] }
 0x6e6   : > { %v6998_v31 = vpop.f32.mrf.mxu2  ;;  %v8597_v41 = vor.u32 %v10935_v53, %v8596_v17 }
 0x6e7   : > { %v7087_v35 = vpop.f32.mrf.mxu3  ;;  %v6999_v22 = vadd.f32 %v6998_v31, %v13464_v39  ;;  %v8601_v31 = vor.u32 %v10920_v20, %v8598_v1 }
 0x6e8   : > { %v7179_v59 = vpop.f32.mrf.mxu0 }
 0x6e9   : > { %v7088_v18 = vadd.f32 %v7087_v35, %v6999_v22 }
 0x6ea   : > { %v7268_v55 = vpop.f32.mrf.mxu1 }
 0x6eb   : > { %v7177_v14 = vadd.f32 %v7176_v5, %v7088_v18  ;;  %7316 = vmatmul.bf16.gmra.mxu2 %v8469_v32  ;;  %7494 = vmatmul.bf16.gmra.mxu0 %v8477_v34  ;;  %v8590_v5 = vld [vmem:[%s11582_s21 + $0x590] sm:$0xf0] }
 0x6ec   : > { %7405 = vmatmul.bf16.gmra.mxu3 %v8473_v36 }
 0x6ed   : > { %10742 = vmatmul.msk.bf16.gmra.mxu1 %vm4925_vm0, %v8481_v11  ;;  %v13735_v39 = vadd.f32 %v7265_v12, %v7177_v14 }
 0x6ee   : > { %v7001_v48 = vpop.f32.mrf.mxu2 }
 0x6ef   : > { %v7090_v47 = vpop.f32.mrf.mxu3  ;;  %v7002_v49 = vadd.f32 %v7001_v48, %v13478_v24  ;;  %v8593_v24 = vor.u32 %v10919_v50, %v8590_v5  ;;  %v8718_v50 = vld [vmem:[%s11582_s21 + $0x688] sm:$0xf0] }
 0x6f0   : > { %v7181_v63 = vpop.f32.mrf.mxu0 }
 0x6f1   : > { %v7091_v3 = vadd.f32 %v7090_v47, %v7002_v49  ;;  %v8708_v47 = vld [vmem:[%s11582_s21 + $0x608] sm:$0xf]  ;;  %v10964_v49 = vld [vmem:[%s11582_s21 + $0x67c] sm:$0xf0] }
 0x6f2   : > { %v7270_v2 = vpop.f32.mrf.mxu1  ;;  %v8709_v20 = vor.u32 %v10964_v49, %v8708_v47  ;;  %v10995_v47 = vld [vmem:[%s11582_s21 + $0x774] sm:$0xf0]  ;;  %v10980_v49 = vld [vmem:[%s11582_s21 + $0x704] sm:$0xf] }
 0x6f3   : > { %v7180_v7 = vadd.f32 %v7179_v59, %v7091_v3  ;;  %v10949_v3 = vld [vmem:[%s11582_s21 + $0x60c] sm:$0xf] }
 0x6f5   : > { %v13746_v62 = vadd.f32 %v7268_v55, %v7180_v7  ;;  %v8716_v7 = vld [vmem:[%s11582_s21 + $0x610] sm:$0xf] }
 0x6f6   : > { %v7003_v12 = vpop.f32.mrf.mxu2  ;;  %v8717_v1 = vor.u32 %v10965_v46, %v8716_v7 }
 0x6f7   : > { %v7092_v21 = vpop.f32.mrf.mxu3  ;;  %v7004_v26 = vadd.f32 %v7003_v12, %v13481_v44  ;;  %v8721_v12 = vor.u32 %v10950_v61, %v8718_v50 }
 0x6f8   : > { %v7184_v22 = vpop.f32.mrf.mxu0 }
 0x6f9   : > { %v7093_v35 = vadd.f32 %v7092_v21, %v7004_v26 }
 0x6fa   : > { %v7273_v32 = vpop.f32.mrf.mxu1 }
 0x6fb   : > { %v7182_v36 = vadd.f32 %v7181_v63, %v7093_v35  ;;  %7321 = vmatmul.bf16.gmra.mxu2 %v8589_v4  ;;  %7499 = vmatmul.bf16.gmra.mxu0 %v8597_v41  ;;  %v8710_v63 = vld [vmem:[%s11582_s21 + $0x680] sm:$0xf0] }
 0x6fc   : > { %7410 = vmatmul.bf16.gmra.mxu3 %v8593_v24 }
 0x6fd   : > { %10743 = vmatmul.msk.bf16.gmra.mxu1 %vm4925_vm0, %v8601_v31  ;;  %v13750_v44 = vadd.f32 %v7270_v2, %v7182_v36 }
 0x6fe   : > { %v7006_v34 = vpop.f32.mrf.mxu2 }
 0x6ff   : > { %v7095_v11 = vpop.f32.mrf.mxu3  ;;  %v7007_v18 = vadd.f32 %v7006_v34, %v13492_v40  ;;  %v8713_v40 = vor.u32 %v10949_v3, %v8710_v63  ;;  %v8838_v3 = vld [vmem:[%s11582_s21 + $0x778] sm:$0xf0] }
 0x700   : > { %v7186_v55 = vpop.f32.mrf.mxu0 }
 0x701   : > { %v7096_v59 = vadd.f32 %v7095_v11, %v7007_v18  ;;  %v8828_v11 = vld [vmem:[%s11582_s21 + $0x6f8] sm:$0xf]  ;;  %v10994_v18 = vld [vmem:[%s11582_s21 + $0x76c] sm:$0xf0] }
 0x702   : > { %v7275_v14 = vpop.f32.mrf.mxu1  ;;  %v8829_v61 = vor.u32 %v10994_v18, %v8828_v11  ;;  %v11025_v11 = vld [vmem:[%s11582_s21 + $0x864] sm:$0xf0]  ;;  %v11010_v18 = vld [vmem:[%s11582_s21 + $0x7f4] sm:$0xf] }
 0x703   : > { %v7185_v48 = vadd.f32 %v7184_v22, %v7096_v59  ;;  %v10979_v59 = vld [vmem:[%s11582_s21 + $0x6fc] sm:$0xf] }
 0x705   : > { %v13761_v5 = vadd.f32 %v7273_v32, %v7185_v48  ;;  %v8836_v48 = vld [vmem:[%s11582_s21 + $0x700] sm:$0xf] }
 0x706   : > { %v7008_v2 = vpop.f32.mrf.mxu2  ;;  %v8837_v50 = vor.u32 %v10995_v47, %v8836_v48 }
 0x707   : > { %v7097_v17 = vpop.f32.mrf.mxu3  ;;  %v7009_v53 = vadd.f32 %v7008_v2, %v13501_v0  ;;  %v8841_v2 = vor.u32 %v10980_v49, %v8838_v3 }
 0x708   : > { %v7189_v26 = vpop.f32.mrf.mxu0 }
 0x709   : > { %v7098_v21 = vadd.f32 %v7097_v17, %v7009_v53 }
 0x70a   : > { %v7278_v4 = vpop.f32.mrf.mxu1 }
 0x70b   : > { %v7187_v24 = vadd.f32 %v7186_v55, %v7098_v21  ;;  %7326 = vmatmul.bf16.gmra.mxu2 %v8709_v20  ;;  %7504 = vmatmul.bf16.gmra.mxu0 %v8717_v1  ;;  %v8830_v55 = vld [vmem:[%s11582_s21 + $0x770] sm:$0xf0] }
 0x70c   : > { %7415 = vmatmul.bf16.gmra.mxu3 %v8713_v40 }
 0x70d   : > { %10744 = vmatmul.msk.bf16.gmra.mxu1 %vm4925_vm0, %v8721_v12  ;;  %v13765_v0 = vadd.f32 %v7275_v14, %v7187_v24 }
 0x70e   : > { %v7011_v41 = vpop.f32.mrf.mxu2 }
 0x70f   : > { %v7100_v31 = vpop.f32.mrf.mxu3  ;;  %v7012_v35 = vadd.f32 %v7011_v41, %v13515_v33  ;;  %v8833_v33 = vor.u32 %v10979_v59, %v8830_v55  ;;  %v8958_v59 = vld [vmem:[%s11582_s21 + $0x868] sm:$0xf0] }
 0x710   : > { %v7191_v32 = vpop.f32.mrf.mxu0 }
 0x711   : > { %v7101_v22 = vadd.f32 %v7100_v31, %v7012_v35  ;;  %v8948_v31 = vld [vmem:[%s11582_s21 + $0x7e8] sm:$0xf]  ;;  %v11024_v35 = vld [vmem:[%s11582_s21 + $0x85c] sm:$0xf0] }
 0x712   : > { %v7280_v36 = vpop.f32.mrf.mxu1  ;;  %v8949_v49 = vor.u32 %v11024_v35, %v8948_v31  ;;  %v11055_v31 = vld [vmem:[%s11582_s21 + $0x954] sm:$0xf0]  ;;  %v11040_v35 = vld [vmem:[%s11582_s21 + $0x8e4] sm:$0xf] }
 0x713   : > { %v7190_v34 = vadd.f32 %v7189_v26, %v7101_v22  ;;  %v11009_v22 = vld [vmem:[%s11582_s21 + $0x7ec] sm:$0xf] }
 0x715   : > { %v13776_v63 = vadd.f32 %v7278_v4, %v7190_v34  ;;  %v8956_v34 = vld [vmem:[%s11582_s21 + $0x7f0] sm:$0xf] }
 0x716   : > { %v7013_v14 = vpop.f32.mrf.mxu2  ;;  %v8957_v3 = vor.u32 %v11025_v11, %v8956_v34 }
 0x717   : > { %v7102_v7 = vpop.f32.mrf.mxu3  ;;  %v7014_v46 = vadd.f32 %v7013_v14, %v13521_v56  ;;  %v8961_v14 = vor.u32 %v11010_v18, %v8958_v59 }
 0x718   : > { %v7194_v53 = vpop.f32.mrf.mxu0 }
 0x719   : > { %v7103_v17 = vadd.f32 %v7102_v7, %v7014_v46 }
 0x71a   : > { %v7283_v20 = vpop.f32.mrf.mxu1 }
 0x71b   : > { %v7192_v40 = vadd.f32 %v7191_v32, %v7103_v17  ;;  %7331 = vmatmul.bf16.gmra.mxu2 %v8829_v61  ;;  %7509 = vmatmul.bf16.gmra.mxu0 %v8837_v50  ;;  %v8950_v32 = vld [vmem:[%s11582_s21 + $0x860] sm:$0xf0] }
 0x71c   : > { %7420 = vmatmul.bf16.gmra.mxu3 %v8833_v33 }
 0x71d   : > { %10745 = vmatmul.msk.bf16.gmra.mxu1 %vm4925_vm0, %v8841_v2  ;;  %v13780_v56 = vadd.f32 %v7280_v36, %v7192_v40 }
 0x71e   : > { %v7016_v1 = vpop.f32.mrf.mxu2 }
 0x71f   : > { %v7105_v12 = vpop.f32.mrf.mxu3  ;;  %v7017_v21 = vadd.f32 %v7016_v1, %v13532_v19  ;;  %v8953_v19 = vor.u32 %v11009_v22, %v8950_v32 }
 0x720   : > { %v7196_v4 = vpop.f32.mrf.mxu0 }
 0x721   : > { %v7106_v26 = vadd.f32 %v7105_v12, %v7017_v21  ;;  %v9068_v12 = vld [vmem:[%s11582_s21 + $0x8d8] sm:$0xf]  ;;  %v11054_v21 = vld [vmem:[%s11582_s21 + $0x94c] sm:$0xf0] }
 0x722   : > { %v7285_v24 = vpop.f32.mrf.mxu1  ;;  %v9069_v11 = vor.u32 %v11054_v21, %v9068_v12  ;;  %v11069_v12 = vld [vmem:[%s11582_s21 + $0x9cc] sm:$0xf]  ;;  %v9190_v21 = vld [vmem:[%s11582_s21 + $0xa40] sm:$0xf0] }
 0x723   : > { %v7195_v41 = vadd.f32 %v7194_v53, %v7106_v26  ;;  %v11039_v26 = vld [vmem:[%s11582_s21 + $0x8dc] sm:$0xf] }
 0x725   : > { %v13791_v55 = vadd.f32 %v7283_v20, %v7195_v41 }
 0x726   : > { %v7018_v36 = vpop.f32.mrf.mxu2 }
 0x727   : > { %v7107_v48 = vpop.f32.mrf.mxu3  ;;  %v7019_v47 = vadd.f32 %v7018_v36, %v13541_v58 }
 0x728   : > { %v7475_v46 = vpop.f32.mrf.mxu0 }
 0x729   : > { %v7108_v7 = vadd.f32 %v7107_v48, %v7019_v47 }
 0x72a   : > { %v7564_v61 = vpop.f32.mrf.mxu1 }
 0x72b   : > { %v7197_v33 = vadd.f32 %v7196_v4, %v7108_v7  ;;  %7336 = vmatmul.bf16.gmra.mxu2 %v8949_v49  ;;  %7514 = vmatmul.bf16.gmra.mxu0 %v8957_v3  ;;  %v9070_v4 = vld [vmem:[%s11582_s21 + $0x950] sm:$0xf0] }
 0x72c   : > { %7425 = vmatmul.bf16.gmra.mxu3 %v8953_v19  ;;  %v9073_v18 = vor.u32 %v11039_v26, %v9070_v4  ;;  %v9196_v26 = vld [vmem:[%s11582_s21 + $0x9d0] sm:$0xf] }
 0x72d   : > { %10746 = vmatmul.msk.bf16.gmra.mxu1 %vm4925_vm0, %v8961_v14  ;;  %v13795_v58 = vadd.f32 %v7285_v24, %v7197_v33  ;;  %v9076_v24 = vld [vmem:[%s11582_s21 + $0x8e0] sm:$0xf] }
 0x72e   : > { %v7297_v50 = vpop.f32.mrf.mxu2  ;;  %v9077_v59 = vor.u32 %v11055_v31, %v9076_v24  ;;  %v11085_v24 = vld [vmem:[%s11582_s21 + $0xa44] sm:$0xf0]  ;;  %v11070_v31 = vld [vmem:[%s11582_s21 + $0x9d4] sm:$0xf] }
 0x72f   : > { %v7386_v2 = vpop.f32.mrf.mxu3  ;;  %v7298_v17 = vadd.f32 %v7297_v50, %v13555_v10  ;;  %v9078_v10 = vld [vmem:[%s11582_s21 + $0x958] sm:$0xf0] }
 0x730   : > { %v7477_v20 = vpop.f32.mrf.mxu0  ;;  %v9081_v36 = vor.u32 %v11040_v35, %v9078_v10  ;;  %v9198_v35 = vld [vmem:[%s11582_s21 + $0xa48] sm:$0xf0] }
 0x731   : > { %v7387_v53 = vadd.f32 %v7386_v2, %v7298_v17 }
 0x732   : > { %v7566_v40 = vpop.f32.mrf.mxu1 }
 0x733   : > { %v7476_v1 = vadd.f32 %v7475_v46, %v7387_v53 }
 0x735   : > { %v7565_v41 = vadd.f32 %v7564_v61, %v7476_v1  ;;  %v11084_v1 = vld [vmem:[%s11582_s21 + $0xa3c] sm:$0xf0] }
 0x736   : > { %v7299_v22 = vpop.f32.mrf.mxu2 }
 0x737   : > { %v7388_v32 = vpop.f32.mrf.mxu3  ;;  %7644 = vst [vmem:[%s13804_s29] sm:$0xff] %v7565_v41  ;;  %v7300_v34 = vadd.f32 %v7299_v22, %v13558_v42  ;;  %v7713_v7 = vmul.f32 %v7565_v41, %v7565_v41 }
 0x738   : > { %v7480_v47 = vpop.f32.mrf.mxu0 }
 0x739   : > { %v7389_v48 = vadd.f32 %v7388_v32, %v7300_v34 }
 0x73a   : > { %v7569_v49 = vpop.f32.mrf.mxu1 }
 0x73b   : > { %v7478_v19 = vadd.f32 %v7477_v20, %v7389_v48  ;;  %7341 = vmatmul.bf16.gmra.mxu2 %v9069_v11  ;;  %7519 = vmatmul.bf16.gmra.mxu0 %v9077_v59  ;;  %v9193_v11 = vor.u32 %v11069_v12, %v9190_v21  ;;  %v9201_v59 = vor.u32 %v11070_v31, %v9198_v35  ;;  %v9316_v12 = vld [vmem:[%s11582_s21 + $0xac0] sm:$0xf] }
 0x73c   : > { %7430 = vmatmul.bf16.gmra.mxu3 %v9073_v18  ;;  %v9197_v18 = vor.u32 %v11085_v24, %v9196_v26  ;;  %v11115_v26 = vld [vmem:[%s11582_s21 + $0xb34] sm:$0xf0]  ;;  %v9318_v24 = vld [vmem:[%s11582_s21 + $0xb38] sm:$0xf0] }
 0x73d   : > { %10747 = vmatmul.msk.bf16.gmra.mxu1 %vm4925_vm0, %v9081_v36  ;;  %v7567_v3 = vadd.f32 %v7566_v40, %v7478_v19  ;;  %v9188_v40 = vld [vmem:[%s11582_s21 + $0x9c8] sm:$0xf] }
 0x73e   : > { %v7302_v42 = vpop.f32.mrf.mxu2  ;;  %v9189_v22 = vor.u32 %v11084_v1, %v9188_v40  ;;  %v11114_v40 = vld [vmem:[%s11582_s21 + $0xb2c] sm:$0xf0]  ;;  %v9310_v1 = vld [vmem:[%s11582_s21 + $0xb30] sm:$0xf0] }
 0x73f   : > { %v7391_v14 = vpop.f32.mrf.mxu3  ;;  %7645 = vst [vmem:[%s13804_s29 + $0x8] sm:$0xff] %v7567_v3  ;;  %v7676_v46 = vadd.f32 %v7567_v3, %v7565_v41  ;;  %v7714_v61 = vmul.f32 %v7567_v3, %v7567_v3  ;;  %v7303_v33 = vadd.f32 %v7302_v42, %v13569_v27 }
 0x740   : > { %v7482_v17 = vpop.f32.mrf.mxu0 }
 0x741   : > { %v7745_v50 = vadd.f32 %v7714_v61, %v7713_v7  ;;  %v7392_v2 = vadd.f32 %v7391_v14, %v7303_v33 }
 0x742   : > { %v7571_v53 = vpop.f32.mrf.mxu1 }
 0x743   : > { %v7481_v20 = vadd.f32 %v7480_v47, %v7392_v2 }
 0x745   : > { %v7570_v4 = vadd.f32 %v7569_v49, %v7481_v20  ;;  %v9308_v20 = vld [vmem:[%s11582_s21 + $0xab8] sm:$0xf] }
 0x746   : > { %v7304_v41 = vpop.f32.mrf.mxu2 }
 0x747   : > { %v7393_v10 = vpop.f32.mrf.mxu3  ;;  %7646 = vst [vmem:[%s13804_s29 + $0x10] sm:$0xff] %v7570_v4  ;;  %v7677_v27 = vadd.f32 %v7676_v46, %v7570_v4  ;;  %v7715_v32 = vmul.f32 %v7570_v4, %v7570_v4  ;;  %v7305_v34 = vadd.f32 %v7304_v41, %v13578_v25  ;;  %v11100_v4 = vld [vmem:[%s11582_s21 + $0xac4] sm:$0xf]  ;;  %v9309_v41 = vor.u32 %v11114_v40, %v9308_v20  ;;  %v9436_v20 = vld [vmem:[%s11582_s21 + $0xbb0] sm:$0xf] }
 0x748   : > { %v7485_v47 = vpop.f32.mrf.mxu0 }
 0x749   : > { %v7746_v36 = vadd.f32 %v7745_v50, %v7715_v32  ;;  %v7394_v48 = vadd.f32 %v7393_v10, %v7305_v34  ;;  %v9317_v32 = vor.u32 %v11115_v26, %v9316_v12  ;;  %v9321_v34 = vor.u32 %v11100_v4, %v9318_v24  ;;  %v9438_v12 = vld [vmem:[%s11582_s21 + $0xc28] sm:$0xf0] }
 0x74a   : > { %v7574_v19 = vpop.f32.mrf.mxu1 }
 0x74b   : > { %v7483_v49 = vadd.f32 %v7482_v17, %v7394_v48  ;;  %7346 = vmatmul.bf16.gmra.mxu2 %v9189_v22  ;;  %7524 = vmatmul.bf16.gmra.mxu0 %v9197_v18 }
 0x74c   : > { %7435 = vmatmul.bf16.gmra.mxu3 %v9193_v11 }
 0x74d   : > { %10748 = vmatmul.msk.bf16.gmra.mxu1 %vm4925_vm0, %v9201_v59  ;;  %v7572_v3 = vadd.f32 %v7571_v53, %v7483_v49  ;;  %v11099_v53 = vld [vmem:[%s11582_s21 + $0xabc] sm:$0xf] }
 0x74e   : > { %v7307_v25 = vpop.f32.mrf.mxu2 }
 0x74f   : > { %v7396_v42 = vpop.f32.mrf.mxu3  ;;  %7647 = vst [vmem:[%s13804_s29 + $0x18] sm:$0xff] %v7572_v3  ;;  %v7678_v14 = vadd.f32 %v7677_v27, %v7572_v3  ;;  %v7716_v7 = vmul.f32 %v7572_v3, %v7572_v3  ;;  %v7308_v46 = vadd.f32 %v7307_v25, %v13592_v8  ;;  %v9313_v27 = vor.u32 %v11099_v53, %v9310_v1  ;;  %v11145_v53 = vld [vmem:[%s11582_s21 + $0xc24] sm:$0xf0]  ;;  %v11130_v1 = vld [vmem:[%s11582_s21 + $0xbb4] sm:$0xf] }
 0x750   : > { %v7487_v50 = vpop.f32.mrf.mxu0 }
 0x751   : > { %v7747_v61 = vadd.f32 %v7746_v36, %v7716_v7  ;;  %v7397_v33 = vadd.f32 %v7396_v42, %v7308_v46 }
 0x752   : > { %v7576_v2 = vpop.f32.mrf.mxu1 }
 0x753   : > { %v7486_v17 = vadd.f32 %v7485_v47, %v7397_v33  ;;  %v9428_v33 = vld [vmem:[%s11582_s21 + $0xba8] sm:$0xf] }
 0x755   : > { %v7575_v21 = vadd.f32 %v7574_v19, %v7486_v17  ;;  %v9430_v17 = vld [vmem:[%s11582_s21 + $0xc20] sm:$0xf0] }
 0x756   : > { %v7309_v31 = vpop.f32.mrf.mxu2 }
 0x757   : > { %v7398_v35 = vpop.f32.mrf.mxu3  ;;  %7648 = vst [vmem:[%s13804_s29 + $0x20] sm:$0xff] %v7575_v21  ;;  %v7679_v8 = vadd.f32 %v7678_v14, %v7575_v21  ;;  %v7717_v10 = vmul.f32 %v7575_v21, %v7575_v21  ;;  %v7310_v22 = vadd.f32 %v7309_v31, %v13595_v30 }
 0x758   : > { %v7490_v59 = vpop.f32.mrf.mxu0 }
 0x759   : > { %v7748_v11 = vadd.f32 %v7747_v61, %v7717_v10  ;;  %v7399_v18 = vadd.f32 %v7398_v35, %v7310_v22 }
 0x75a   : > { %v7579_v36 = vpop.f32.mrf.mxu1 }
 0x75b   : > { %v7488_v48 = vadd.f32 %v7487_v50, %v7399_v18  ;;  %7351 = vmatmul.bf16.gmra.mxu2 %v9309_v41  ;;  %7529 = vmatmul.bf16.gmra.mxu0 %v9317_v32  ;;  %v11144_v50 = vld [vmem:[%s11582_s21 + $0xc1c] sm:$0xf0]  ;;  %v9437_v41 = vor.u32 %v11145_v53, %v9436_v20 }
 0x75c   : > { %7440 = vmatmul.bf16.gmra.mxu3 %v9313_v27  ;;  %v9429_v4 = vor.u32 %v11144_v50, %v9428_v33  ;;  %v11175_v33 = vld [vmem:[%s11582_s21 + $0xd14] sm:$0xf0]  ;;  %v11160_v50 = vld [vmem:[%s11582_s21 + $0xca4] sm:$0xf] }
 0x75d   : > { %10749 = vmatmul.msk.bf16.gmra.mxu1 %vm4925_vm0, %v9321_v34  ;;  %v7577_v47 = vadd.f32 %v7576_v2, %v7488_v48  ;;  %v11129_v2 = vld [vmem:[%s11582_s21 + $0xbac] sm:$0xf] }
 0x75e   : > { %v7312_v30 = vpop.f32.mrf.mxu2  ;;  %v9433_v35 = vor.u32 %v11129_v2, %v9430_v17  ;;  %v9558_v2 = vld [vmem:[%s11582_s21 + $0xd18] sm:$0xf0] }
 0x75f   : > { %v7401_v19 = vpop.f32.mrf.mxu3  ;;  %7649 = vst [vmem:[%s13804_s29 + $0x28] sm:$0xff] %v7577_v47  ;;  %v7680_v49 = vadd.f32 %v7679_v8, %v7577_v47  ;;  %v7718_v3 = vmul.f32 %v7577_v47, %v7577_v47  ;;  %v7313_v25 = vadd.f32 %v7312_v30, %v13606_v16  ;;  %v9441_v8 = vor.u32 %v11130_v1, %v9438_v12 }
 0x760   : > { %v7492_v7 = vpop.f32.mrf.mxu0 }
 0x761   : > { %v7749_v42 = vadd.f32 %v7748_v11, %v7718_v3  ;;  %v7402_v14 = vadd.f32 %v7401_v19, %v7313_v25  ;;  %v9548_v25 = vld [vmem:[%s11582_s21 + $0xc98] sm:$0xf] }
 0x762   : > { %v7581_v46 = vpop.f32.mrf.mxu1 }
 0x763   : > { %v7491_v61 = vadd.f32 %v7490_v59, %v7402_v14  ;;  %v11159_v14 = vld [vmem:[%s11582_s21 + $0xc9c] sm:$0xf] }
 0x765   : > { %v7580_v40 = vadd.f32 %v7579_v36, %v7491_v61 }
 0x766   : > { %v7314_v21 = vpop.f32.mrf.mxu2 }
 0x767   : > { %v7403_v26 = vpop.f32.mrf.mxu3  ;;  %7650 = vst [vmem:[%s13804_s29 + $0x30] sm:$0xff] %v7580_v40  ;;  %v7681_v16 = vadd.f32 %v7680_v49, %v7580_v40  ;;  %v7719_v24 = vmul.f32 %v7580_v40, %v7580_v40  ;;  %v7315_v31 = vadd.f32 %v7314_v21, %v13615_v60 }
 0x768   : > { %v7495_v27 = vpop.f32.mrf.mxu0 }
 0x769   : > { %v7750_v10 = vadd.f32 %v7749_v42, %v7719_v24  ;;  %v7404_v22 = vadd.f32 %v7403_v26, %v7315_v31  ;;  %v11174_v42 = vld [vmem:[%s11582_s21 + $0xd0c] sm:$0xf0]  ;;  %v9561_v26 = vor.u32 %v11160_v50, %v9558_v2 }
 0x76a   : > { %v7584_v32 = vpop.f32.mrf.mxu1  ;;  %v9549_v40 = vor.u32 %v11174_v42, %v9548_v25  ;;  %v9678_v25 = vld [vmem:[%s11582_s21 + $0xe08] sm:$0xf0] }
 0x76b   : > { %v7493_v34 = vadd.f32 %v7492_v7, %v7404_v22  ;;  %7356 = vmatmul.bf16.gmra.mxu2 %v9429_v4  ;;  %7534 = vmatmul.bf16.gmra.mxu0 %v9437_v41  ;;  %v9550_v7 = vld [vmem:[%s11582_s21 + $0xd10] sm:$0xf0] }
 0x76c   : > { %7445 = vmatmul.bf16.gmra.mxu3 %v9433_v35  ;;  %v9553_v12 = vor.u32 %v11159_v14, %v9550_v7 }
 0x76d   : > { %10750 = vmatmul.msk.bf16.gmra.mxu1 %vm4925_vm0, %v9441_v8  ;;  %v7582_v11 = vadd.f32 %v7581_v46, %v7493_v34  ;;  %v9556_v46 = vld [vmem:[%s11582_s21 + $0xca0] sm:$0xf] }
 0x76e   : > { %v7317_v60 = vpop.f32.mrf.mxu2  ;;  %v9557_v21 = vor.u32 %v11175_v33, %v9556_v46 }
 0x76f   : > { %v7406_v18 = vpop.f32.mrf.mxu3  ;;  %7651 = vst [vmem:[%s13804_s29 + $0x38] sm:$0xff] %v7582_v11  ;;  %v7682_v59 = vadd.f32 %v7681_v16, %v7582_v11  ;;  %v7720_v36 = vmul.f32 %v7582_v11, %v7582_v11  ;;  %v7318_v48 = vadd.f32 %v7317_v60, %v13629_v52 }
 0x770   : > { %v7497_v19 = vpop.f32.mrf.mxu0 }
 0x771   : > { %v7751_v47 = vadd.f32 %v7750_v10, %v7720_v36  ;;  %v7407_v30 = vadd.f32 %v7406_v18, %v7318_v48  ;;  %v11204_v36 = vld [vmem:[%s11582_s21 + $0xdfc] sm:$0xf0]  ;;  %v11189_v48 = vld [vmem:[%s11582_s21 + $0xd8c] sm:$0xf] }
 0x772   : > { %v7586_v49 = vpop.f32.mrf.mxu1 }
 0x773   : > { %v7496_v3 = vadd.f32 %v7495_v27, %v7407_v30  ;;  %v9676_v30 = vld [vmem:[%s11582_s21 + $0xd90] sm:$0xf] }
 0x775   : > { %v7585_v61 = vadd.f32 %v7584_v32, %v7496_v3  ;;  %v11190_v3 = vld [vmem:[%s11582_s21 + $0xd94] sm:$0xf] }
 0x776   : > { %v7319_v17 = vpop.f32.mrf.mxu2  ;;  %v9681_v2 = vor.u32 %v11190_v3, %v9678_v25 }
 0x777   : > { %v7408_v20 = vpop.f32.mrf.mxu3  ;;  %7652 = vst [vmem:[%s13804_s29 + $0x40] sm:$0xff] %v7585_v61  ;;  %v7683_v52 = vadd.f32 %v7682_v59, %v7585_v61  ;;  %v7721_v53 = vmul.f32 %v7585_v61, %v7585_v61  ;;  %v7320_v1 = vadd.f32 %v7319_v17, %v13632_v28  ;;  %v9668_v59 = vld [vmem:[%s11582_s21 + $0xd88] sm:$0xf] }
 0x778   : > { %v7500_v24 = vpop.f32.mrf.mxu0  ;;  %v9669_v7 = vor.u32 %v11204_v36, %v9668_v59 }
 0x779   : > { %v7752_v4 = vadd.f32 %v7751_v47, %v7721_v53  ;;  %v7409_v16 = vadd.f32 %v7408_v20, %v7320_v1  ;;  %v9670_v47 = vld [vmem:[%s11582_s21 + $0xe00] sm:$0xf0] }
 0x77a   : > { %v7589_v31 = vpop.f32.mrf.mxu1  ;;  %v9673_v33 = vor.u32 %v11189_v48, %v9670_v47 }
 0x77b   : > { %v7498_v35 = vadd.f32 %v7497_v19, %v7409_v16  ;;  %7361 = vmatmul.bf16.gmra.mxu2 %v9549_v40  ;;  %7539 = vmatmul.bf16.gmra.mxu0 %v9557_v21 }
 0x77c   : > { %7450 = vmatmul.bf16.gmra.mxu3 %v9553_v12 }
 0x77d   : > { %10751 = vmatmul.msk.bf16.gmra.mxu1 %vm4925_vm0, %v9561_v26  ;;  %v7587_v41 = vadd.f32 %v7586_v49, %v7498_v35  ;;  %v11205_v49 = vld [vmem:[%s11582_s21 + $0xe04] sm:$0xf0] }
 0x77e   : > { %v7322_v28 = vpop.f32.mrf.mxu2  ;;  %v9677_v50 = vor.u32 %v11205_v49, %v9676_v30 }
 0x77f   : > { %v7411_v8 = vpop.f32.mrf.mxu3  ;;  %7653 = vst [vmem:[%s13804_s29 + $0x48] sm:$0xff] %v7587_v41  ;;  %v7684_v10 = vadd.f32 %v7683_v52, %v7587_v41  ;;  %v7722_v22 = vmul.f32 %v7587_v41, %v7587_v41  ;;  %v7323_v27 = vadd.f32 %v7322_v28, %v13643_v43  ;;  %v9788_v28 = vld [vmem:[%s11582_s21 + $0xe78] sm:$0xf] }
 0x780   : > { %v7502_v11 = vpop.f32.mrf.mxu0 }
 0x781   : > { %v7753_v32 = vadd.f32 %v7752_v4, %v7722_v22  ;;  %v7412_v34 = vadd.f32 %v7411_v8, %v7323_v27  ;;  %v11234_v8 = vld [vmem:[%s11582_s21 + $0xeec] sm:$0xf0]  ;;  %v9790_v22 = vld [vmem:[%s11582_s21 + $0xef0] sm:$0xf0]  ;;  %v9796_v27 = vld [vmem:[%s11582_s21 + $0xe80] sm:$0xf] }
 0x782   : > { %v7591_v60 = vpop.f32.mrf.mxu1  ;;  %v9789_v36 = vor.u32 %v11234_v8, %v9788_v28 }
 0x783   : > { %v7501_v18 = vadd.f32 %v7500_v24, %v7412_v34  ;;  %v11235_v34 = vld [vmem:[%s11582_s21 + $0xef4] sm:$0xf0] }
 0x785   : > { %v7590_v19 = vadd.f32 %v7589_v31, %v7501_v18 }
 0x786   : > { %v7324_v42 = vpop.f32.mrf.mxu2 }
 0x787   : > { %v7413_v14 = vpop.f32.mrf.mxu3  ;;  %7654 = vst [vmem:[%s13804_s29 + $0x50] sm:$0xff] %v7590_v19  ;;  %v7685_v43 = vadd.f32 %v7684_v10, %v7590_v19  ;;  %v7723_v46 = vmul.f32 %v7590_v19, %v7590_v19  ;;  %v7325_v61 = vadd.f32 %v7324_v42, %v13646_v9  ;;  %v11219_v10 = vld [vmem:[%s11582_s21 + $0xe7c] sm:$0xf]  ;;  %v9797_v19 = vor.u32 %v11235_v34, %v9796_v27 }
 0x788   : > { %v7505_v40 = vpop.f32.mrf.mxu0  ;;  %v9793_v30 = vor.u32 %v11219_v10, %v9790_v22 }
 0x789   : > { %v7754_v17 = vadd.f32 %v7753_v32, %v7723_v46  ;;  %v7414_v20 = vadd.f32 %v7413_v14, %v7325_v61 }
 0x78a   : > { %v7594_v52 = vpop.f32.mrf.mxu1 }
 0x78b   : > { %v7503_v53 = vadd.f32 %v7502_v11, %v7414_v20  ;;  %7366 = vmatmul.bf16.gmra.mxu2 %v9669_v7  ;;  %7544 = vmatmul.bf16.gmra.mxu0 %v9677_v50  ;;  %v11220_v11 = vld [vmem:[%s11582_s21 + $0xe84] sm:$0xf] }
 0x78c   : > { %7455 = vmatmul.bf16.gmra.mxu3 %v9673_v33 }
 0x78d   : > { %10752 = vmatmul.msk.bf16.gmra.mxu1 %vm4925_vm0, %v9681_v2  ;;  %v7592_v1 = vadd.f32 %v7591_v60, %v7503_v53  ;;  %v9798_v60 = vld [vmem:[%s11582_s21 + $0xef8] sm:$0xf0] }
 0x78e   : > { %v7327_v9 = vpop.f32.mrf.mxu2  ;;  %v9801_v49 = vor.u32 %v11220_v11, %v9798_v60 }
 0x78f   : > { %v7416_v12 = vpop.f32.mrf.mxu3  ;;  %7655 = vst [vmem:[%s13804_s29 + $0x58] sm:$0xff] %v7592_v1  ;;  %v7686_v21 = vadd.f32 %v7685_v43, %v7592_v1  ;;  %v7724_v26 = vmul.f32 %v7592_v1, %v7592_v1  ;;  %v7328_v4 = vadd.f32 %v7327_v9, %v13657_v13 }
 0x790   : > { %v7507_v31 = vpop.f32.mrf.mxu0 }
 0x791   : > { %v7755_v16 = vadd.f32 %v7754_v17, %v7724_v26  ;;  %v7417_v24 = vadd.f32 %v7416_v12, %v7328_v4 }
 0x792   : > { %v7596_v35 = vpop.f32.mrf.mxu1 }
 0x793   : > { %v7506_v41 = vadd.f32 %v7505_v40, %v7417_v24 }
 0x795   : > { %v7595_v32 = vadd.f32 %v7594_v52, %v7506_v41 }
 0x796   : > { %v7329_v18 = vpop.f32.mrf.mxu2 }
 0x797   : > { %v7418_v59 = vpop.f32.mrf.mxu3  ;;  %7656 = vst [vmem:[%s13804_s29 + $0x60] sm:$0xff] %v7595_v32  ;;  %v7687_v13 = vadd.f32 %v7686_v21, %v7595_v32  ;;  %v7725_v48 = vmul.f32 %v7595_v32, %v7595_v32  ;;  %v7330_v47 = vadd.f32 %v7329_v18, %v13660_v37 }
 0x798   : > { %v7510_v42 = vpop.f32.mrf.mxu0 }
 0x799   : > { %v7756_v3 = vadd.f32 %v7755_v16, %v7725_v48  ;;  %v7419_v25 = vadd.f32 %v7418_v59, %v7330_v47 }
 0x79a   : > { %v7599_v14 = vpop.f32.mrf.mxu1 }
 0x79b   : > { %v7508_v7 = vadd.f32 %v7507_v31, %v7419_v25  ;;  %7371 = vmatmul.bf16.gmra.mxu2 %v9789_v36  ;;  %7549 = vmatmul.bf16.gmra.mxu0 %v9797_v19 }
 0x79c   : > { %7460 = vmatmul.bf16.gmra.mxu3 %v9793_v30 }
 0x79d   : > { %10753 = vmatmul.msk.bf16.gmra.mxu1 %vm4925_vm0, %v9801_v49  ;;  %v7597_v43 = vadd.f32 %v7596_v35, %v7508_v7 }
 0x79e   : > { %v7332_v46 = vpop.f32.mrf.mxu2 }
 0x79f   : > { %v7421_v61 = vpop.f32.mrf.mxu3  ;;  %7657 = vst [vmem:[%s13804_s29 + $0x68] sm:$0xff] %v7597_v43  ;;  %v7688_v37 = vadd.f32 %v7687_v13, %v7597_v43  ;;  %v7726_v33 = vmul.f32 %v7597_v43, %v7597_v43  ;;  %v7333_v50 = vadd.f32 %v7332_v46, %v13671_v23 }
 0x7a0   : > { %v7512_v20 = vpop.f32.mrf.mxu0 }
 0x7a1   : > { %v7757_v2 = vadd.f32 %v7756_v3, %v7726_v33  ;;  %v7422_v17 = vadd.f32 %v7421_v61, %v7333_v50 }
 0x7a2   : > { %v7601_v40 = vpop.f32.mrf.mxu1 }
 0x7a3   : > { %v7511_v52 = vadd.f32 %v7510_v42, %v7422_v17 }
 0x7a5   : > { %v7600_v53 = vadd.f32 %v7599_v14, %v7511_v52 }
 0x7a6   : > { %v7334_v1 = vpop.f32.mrf.mxu2 }
 0x7a7   : > { %v7423_v9 = vpop.f32.mrf.mxu3  ;;  %7658 = vst [vmem:[%s13804_s29 + $0x70] sm:$0xff] %v7600_v53  ;;  %v7689_v12 = vadd.f32 %v7688_v37, %v7600_v53  ;;  %v7727_v21 = vmul.f32 %v7600_v53, %v7600_v53  ;;  %v7335_v26 = vadd.f32 %v7334_v1, %v13675_v51 }
 0x7a8   : > { %v7515_v24 = vpop.f32.mrf.mxu0 }
 0x7a9   : > { %v7758_v4 = vadd.f32 %v7757_v2, %v7727_v21  ;;  %v7424_v16 = vadd.f32 %v7423_v9, %v7335_v26 }
 0x7aa   : > { %v7604_v31 = vpop.f32.mrf.mxu1 }
 0x7ab   : > { %v7513_v35 = vadd.f32 %v7512_v20, %v7424_v16 }
 0x7ad   : > { %v7602_v23 = vadd.f32 %v7601_v40, %v7513_v35 }
 0x7ae   : > { %v7337_v41 = vpop.f32.mrf.mxu2 }
 0x7af   : > { %v7426_v28 = vpop.f32.mrf.mxu3  ;;  %7659 = vst [vmem:[%s13804_s29 + $0x78] sm:$0xff] %v7602_v23  ;;  %v7690_v8 = vadd.f32 %v7689_v12, %v7602_v23  ;;  %v7728_v10 = vmul.f32 %v7602_v23, %v7602_v23  ;;  %v7338_v22 = vadd.f32 %v7337_v41, %v13686_v57 }
 0x7b0   : > { %v7517_v34 = vpop.f32.mrf.mxu0 }
 0x7b1   : > { %v7759_v27 = vadd.f32 %v7758_v4, %v7728_v10  ;;  %v7427_v32 = vadd.f32 %v7426_v28, %v7338_v22 }
 0x7b2   : > { %v7606_v11 = vpop.f32.mrf.mxu1 }
 0x7b3   : > { %v7516_v60 = vadd.f32 %v7515_v24, %v7427_v32 }
 0x7b5   : > { %v7605_v51 = vadd.f32 %v7604_v31, %v7516_v60 }
 0x7b6   : > { %v7339_v18 = vpop.f32.mrf.mxu2 }
 0x7b7   : > { %v7428_v59 = vpop.f32.mrf.mxu3  ;;  %7660 = vst [vmem:[%s13804_s29 + $0x80] sm:$0xff] %v7605_v51  ;;  %v7691_v36 = vadd.f32 %v7690_v8, %v7605_v51  ;;  %v7729_v13 = vmul.f32 %v7605_v51, %v7605_v51  ;;  %v7340_v48 = vadd.f32 %v7339_v18, %v13690_v54 }
 0x7b8   : > { %v7520_v19 = vpop.f32.mrf.mxu0 }
 0x7b9   : > { %v7760_v47 = vadd.f32 %v7759_v27, %v7729_v13  ;;  %v7429_v30 = vadd.f32 %v7428_v59, %v7340_v48 }
 0x7ba   : > { %v7609_v49 = vpop.f32.mrf.mxu1 }
 0x7bb   : > { %v7518_v3 = vadd.f32 %v7517_v34, %v7429_v30 }
 0x7bd   : > { %v7607_v57 = vadd.f32 %v7606_v11, %v7518_v3 }
 0x7be   : > { %v7342_v25 = vpop.f32.mrf.mxu2 }
 0x7bf   : > { %v7431_v42 = vpop.f32.mrf.mxu3  ;;  %7661 = vst [vmem:[%s13804_s29 + $0x88] sm:$0xff] %v7607_v57  ;;  %v7692_v14 = vadd.f32 %v7691_v36, %v7607_v57  ;;  %v7730_v7 = vmul.f32 %v7607_v57, %v7607_v57  ;;  %v7343_v43 = vadd.f32 %v7342_v25, %v13701_v29 }
 0x7c0   : > { %v7522_v37 = vpop.f32.mrf.mxu0 }
 0x7c1   : > { %v7761_v46 = vadd.f32 %v7760_v47, %v7730_v7  ;;  %v7432_v61 = vadd.f32 %v7431_v42, %v7343_v43 }
 0x7c2   : > { %v7611_v33 = vpop.f32.mrf.mxu1 }
 0x7c3   : > { %v7521_v50 = vadd.f32 %v7520_v19, %v7432_v61 }
 0x7c5   : > { %v7610_v54 = vadd.f32 %v7609_v49, %v7521_v50 }
 0x7c6   : > { %v7344_v2 = vpop.f32.mrf.mxu2 }
 0x7c7   : > { %v7433_v17 = vpop.f32.mrf.mxu3  ;;  %7662 = vst [vmem:[%s13804_s29 + $0x90] sm:$0xff] %v7610_v54  ;;  %v7693_v20 = vadd.f32 %v7692_v14, %v7610_v54  ;;  %v7731_v40 = vmul.f32 %v7610_v54, %v7610_v54  ;;  %v7345_v52 = vadd.f32 %v7344_v2, %v13705_v15 }
 0x7c8   : > { %v7525_v9 = vpop.f32.mrf.mxu0 }
 0x7c9   : > { %v7762_v53 = vadd.f32 %v7761_v46, %v7731_v40  ;;  %v7434_v1 = vadd.f32 %v7433_v17, %v7345_v52 }
 0x7ca   : > { %v7614_v12 = vpop.f32.mrf.mxu1 }
 0x7cb   : > { %v7523_v21 = vadd.f32 %v7522_v37, %v7434_v1 }
 0x7cd   : > { %v7612_v29 = vadd.f32 %v7611_v33, %v7523_v21 }
 0x7ce   : > { %v7347_v26 = vpop.f32.mrf.mxu2 }
 0x7cf   : > { %v7436_v4 = vpop.f32.mrf.mxu3  ;;  %7663 = vst [vmem:[%s13804_s29 + $0x98] sm:$0xff] %v7612_v29  ;;  %v7694_v16 = vadd.f32 %v7693_v20, %v7612_v29  ;;  %v7732_v24 = vmul.f32 %v7612_v29, %v7612_v29  ;;  %v7348_v31 = vadd.f32 %v7347_v26, %v13716_v38 }
 0x7d0   : > { %v7527_v41 = vpop.f32.mrf.mxu0 }
 0x7d1   : > { %v7763_v35 = vadd.f32 %v7762_v53, %v7732_v24  ;;  %v7437_v23 = vadd.f32 %v7436_v4, %v7348_v31 }
 0x7d2   : > { %v7616_v28 = vpop.f32.mrf.mxu1 }
 0x7d3   : > { %v7526_v8 = vadd.f32 %v7525_v9, %v7437_v23 }
 0x7d5   : > { %v7615_v15 = vadd.f32 %v7614_v12, %v7526_v8 }
 0x7d6   : > { %v7349_v10 = vpop.f32.mrf.mxu2 }
 0x7d7   : > { %v7438_v22 = vpop.f32.mrf.mxu3  ;;  %7664 = vst [vmem:[%s13804_s29 + $0xa0] sm:$0xff] %v7615_v15  ;;  %v7695_v27 = vadd.f32 %v7694_v16, %v7615_v15  ;;  %v7733_v32 = vmul.f32 %v7615_v15, %v7615_v15  ;;  %v7350_v34 = vadd.f32 %v7349_v10, %v13720_v45 }
 0x7d8   : > { %v7530_v51 = vpop.f32.mrf.mxu0 }
 0x7d9   : > { %v7764_v11 = vadd.f32 %v7763_v35, %v7733_v32  ;;  %v7439_v60 = vadd.f32 %v7438_v22, %v7350_v34 }
 0x7da   : > { %v7619_v18 = vpop.f32.mrf.mxu1 }
 0x7db   : > { %v7528_v59 = vadd.f32 %v7527_v41, %v7439_v60 }
 0x7dd   : > { %v7617_v38 = vadd.f32 %v7616_v28, %v7528_v59 }
 0x7de   : > { %v7352_v36 = vpop.f32.mrf.mxu2 }
 0x7df   : > { %v7441_v13 = vpop.f32.mrf.mxu3  ;;  %7665 = vst [vmem:[%s13804_s29 + $0xa8] sm:$0xff] %v7617_v38  ;;  %v7696_v48 = vadd.f32 %v7695_v27, %v7617_v38  ;;  %v7734_v47 = vmul.f32 %v7617_v38, %v7617_v38  ;;  %v7353_v30 = vadd.f32 %v7352_v36, %v13731_v6 }
 0x7e0   : > { %v7532_v3 = vpop.f32.mrf.mxu0 }
 0x7e1   : > { %v7765_v19 = vadd.f32 %v7764_v11, %v7734_v47  ;;  %v7442_v49 = vadd.f32 %v7441_v13, %v7353_v30 }
 0x7e2   : > { %v7621_v57 = vpop.f32.mrf.mxu1 }
 0x7e3   : > { %v7531_v25 = vadd.f32 %v7530_v51, %v7442_v49 }
 0x7e5   : > { %v7620_v45 = vadd.f32 %v7619_v18, %v7531_v25 }
 0x7e6   : > { %v7354_v42 = vpop.f32.mrf.mxu2 }
 0x7e7   : > { %v7443_v14 = vpop.f32.mrf.mxu3  ;;  %7666 = vst [vmem:[%s13804_s29 + $0xb0] sm:$0xff] %v7620_v45  ;;  %v7697_v7 = vadd.f32 %v7696_v48, %v7620_v45  ;;  %v7735_v43 = vmul.f32 %v7620_v45, %v7620_v45  ;;  %v7355_v46 = vadd.f32 %v7354_v42, %v13735_v39 }
 0x7e8   : > { %v7535_v33 = vpop.f32.mrf.mxu0 }
 0x7e9   : > { %v7766_v61 = vadd.f32 %v7765_v19, %v7735_v43  ;;  %v7444_v37 = vadd.f32 %v7443_v14, %v7355_v46 }
 0x7ea   : > { %v7624_v50 = vpop.f32.mrf.mxu1 }
 0x7eb   : > { %v7533_v54 = vadd.f32 %v7532_v3, %v7444_v37 }
 0x7ed   : > { %v7622_v6 = vadd.f32 %v7621_v57, %v7533_v54 }
 0x7ee   : > { %v7357_v2 = vpop.f32.mrf.mxu2 }
 0x7ef   : > { %v7446_v17 = vpop.f32.mrf.mxu3  ;;  %7667 = vst [vmem:[%s13804_s29 + $0xb8] sm:$0xff] %v7622_v6  ;;  %v7698_v20 = vadd.f32 %v7697_v7, %v7622_v6  ;;  %v7736_v40 = vmul.f32 %v7622_v6, %v7622_v6  ;;  %v7358_v52 = vadd.f32 %v7357_v2, %v13746_v62 }
 0x7f0   : > { %v7537_v9 = vpop.f32.mrf.mxu0 }
 0x7f1   : > { %v7767_v53 = vadd.f32 %v7766_v61, %v7736_v40  ;;  %v7447_v1 = vadd.f32 %v7446_v17, %v7358_v52 }
 0x7f2   : > { %v7626_v12 = vpop.f32.mrf.mxu1 }
 0x7f3   : > { %v7536_v21 = vadd.f32 %v7535_v33, %v7447_v1 }
 0x7f5   : > { %v7625_v39 = vadd.f32 %v7624_v50, %v7536_v21 }
 0x7f6   : > { %v7359_v29 = vpop.f32.mrf.mxu2 }
 0x7f7   : > { %v7448_v26 = vpop.f32.mrf.mxu3  ;;  %7668 = vst [vmem:[%s13804_s29 + $0xc0] sm:$0xff] %v7625_v39  ;;  %v7699_v4 = vadd.f32 %v7698_v20, %v7625_v39  ;;  %v7737_v16 = vmul.f32 %v7625_v39, %v7625_v39  ;;  %v7360_v24 = vadd.f32 %v7359_v29, %v13750_v44 }
 0x7f8   : > { %v7540_v23 = vpop.f32.mrf.mxu0 }
 0x7f9   : > { %v7768_v31 = vadd.f32 %v7767_v53, %v7737_v16  ;;  %v7449_v35 = vadd.f32 %v7448_v26, %v7360_v24 }
 0x7fa   : > { %v7629_v41 = vpop.f32.mrf.mxu1 }
 0x7fb   : > { %v7538_v28 = vadd.f32 %v7537_v9, %v7449_v35 }
 0x7fd   : > { %v7627_v62 = vadd.f32 %v7626_v12, %v7538_v28 }
 0x7fe   : > { %v7362_v8 = vpop.f32.mrf.mxu2 }
 0x7ff   : > { %v7451_v15 = vpop.f32.mrf.mxu3  ;;  %7669 = vst [vmem:[%s13804_s29 + $0xc8] sm:$0xff] %v7627_v62  ;;  %v7700_v10 = vadd.f32 %v7699_v4, %v7627_v62  ;;  %v7738_v22 = vmul.f32 %v7627_v62, %v7627_v62  ;;  %v7363_v27 = vadd.f32 %v7362_v8, %v13761_v5 }
 0x800   : > { %v7542_v11 = vpop.f32.mrf.mxu0 }
 0x801   : > { %v7769_v32 = vadd.f32 %v7768_v31, %v7738_v22  ;;  %v7452_v34 = vadd.f32 %v7451_v15, %v7363_v27 }
 0x802   : > { %v7631_v51 = vpop.f32.mrf.mxu1 }
 0x803   : > { %v7541_v60 = vadd.f32 %v7540_v23, %v7452_v34 }
 0x805   : > { %v7630_v44 = vadd.f32 %v7629_v41, %v7541_v60 }
 0x806   : > { %v7364_v18 = vpop.f32.mrf.mxu2 }
 0x807   : > { %v7453_v59 = vpop.f32.mrf.mxu3  ;;  %7670 = vst [vmem:[%s13804_s29 + $0xd0] sm:$0xff] %v7630_v44  ;;  %v7701_v38 = vadd.f32 %v7700_v10, %v7630_v44  ;;  %v7739_v36 = vmul.f32 %v7630_v44, %v7630_v44  ;;  %v7365_v13 = vadd.f32 %v7364_v18, %v13765_v0 }
 0x808   : > { %v7545_v19 = vpop.f32.mrf.mxu0 }
 0x809   : > { %v7770_v48 = vadd.f32 %v7769_v32, %v7739_v36  ;;  %v7454_v47 = vadd.f32 %v7453_v59, %v7365_v13 }
 0x80a   : > { %v7634_v49 = vpop.f32.mrf.mxu1 }
 0x80b   : > { %v7543_v30 = vadd.f32 %v7542_v11, %v7454_v47 }
 0x80d   : > { %v7632_v5 = vadd.f32 %v7631_v51, %v7543_v30 }
 0x80e   : > { %v7367_v3 = vpop.f32.mrf.mxu2 }
 0x80f   : > { %v7456_v57 = vpop.f32.mrf.mxu3  ;;  %7671 = vst [vmem:[%s13804_s29 + $0xd8] sm:$0xff] %v7632_v5  ;;  %v7702_v25 = vadd.f32 %v7701_v38, %v7632_v5  ;;  %v7740_v45 = vmul.f32 %v7632_v5, %v7632_v5  ;;  %v7368_v42 = vadd.f32 %v7367_v3, %v13776_v63 }
 0x810   : > { %v7547_v0 = vpop.f32.mrf.mxu0 }
 0x811   : > { %v7771_v14 = vadd.f32 %v7770_v48, %v7740_v45  ;;  %v7457_v7 = vadd.f32 %v7456_v57, %v7368_v42 }
 0x812   : > { %v7636_v6 = vpop.f32.mrf.mxu1 }
 0x813   : > { %v7546_v43 = vadd.f32 %v7545_v19, %v7457_v7 }
 0x815   : > { %v7635_v46 = vadd.f32 %v7634_v49, %v7546_v43 }
 0x816   : > { %v7369_v61 = vpop.f32.mrf.mxu2 }
 0x817   : > { %v7458_v37 = vpop.f32.mrf.mxu3  ;;  %7672 = vst [vmem:[%s13804_s29 + $0xe0] sm:$0xff] %v7635_v46  ;;  %v7703_v33 = vadd.f32 %v7702_v25, %v7635_v46  ;;  %v7741_v50 = vmul.f32 %v7635_v46, %v7635_v46  ;;  %v7370_v54 = vadd.f32 %v7369_v61, %v13780_v56 }
 0x818   : > { %v7550_v12 = vpop.f32.mrf.mxu0 }
 0x819   : > { %v7772_v2 = vadd.f32 %v7771_v14, %v7741_v50  ;;  %v7459_v17 = vadd.f32 %v7458_v37, %v7370_v54 }
 0x81a   : > { %v7639_v29 = vpop.f32.mrf.mxu1 }
 0x81b   : > { %v7548_v20 = vadd.f32 %v7547_v0, %v7459_v17 }
 0x81d   : > { %v7637_v40 = vadd.f32 %v7636_v6, %v7548_v20 }
 0x81e   : > { %v7372_v63 = vpop.f32.mrf.mxu2 }
 0x81f   : > { %v7461_v52 = vpop.f32.mrf.mxu3  ;;  %7673 = vst [vmem:[%s13804_s29 + $0xe8] sm:$0xff] %v7637_v40  ;;  %v7704_v53 = vadd.f32 %v7703_v33, %v7637_v40  ;;  %v7742_v1 = vmul.f32 %v7637_v40, %v7637_v40  ;;  %v7373_v9 = vadd.f32 %v7372_v63, %v13791_v55 }
 0x820   : > { %v7552_v28 = vpop.f32.mrf.mxu0 }
 0x821   : > { %v7773_v21 = vadd.f32 %v7772_v2, %v7742_v1  ;;  %v7462_v39 = vadd.f32 %v7461_v52, %v7373_v9 }
 0x822   : > { %v7641_v62 = vpop.f32.mrf.mxu1 }
 0x823   : > { %v7551_v26 = vadd.f32 %v7550_v12, %v7462_v39 }
 0x825   : > { %v7640_v56 = vadd.f32 %v7639_v29, %v7551_v26 }
 0x826   : > { %v7374_v4 = vpop.f32.mrf.mxu2 }
 0x827   : > { %7674 = vst [vmem:[%s13804_s29 + $0xf0] sm:$0xff] %v7640_v56  ;;  %v7705_v16 = vadd.f32 %v7704_v53, %v7640_v56  ;;  %v7743_v24 = vmul.f32 %v7640_v56, %v7640_v56  ;;  %v7375_v31 = vadd.f32 %v7374_v4, %v13795_v58  ;;  %v7463_v35 = vpop.f32.mrf.mxu3 }
 0x829   : > { %v7774_v23 = vadd.f32 %v7773_v21, %v7743_v24  ;;  %v7464_v41 = vadd.f32 %v7463_v35, %v7375_v31 }
 0x82b   : > { %v7553_v55 = vadd.f32 %v7552_v28, %v7464_v41 }
 0x82d   : > { %v7642_v8 = vadd.f32 %v7641_v62, %v7553_v55 }
 0x82f   : > { %7675 = vst [vmem:[%s13804_s29 + $0xf8] sm:$0xff] %v7642_v8  ;;  %v7706_v15 = vadd.f32 %v7705_v16, %v7642_v8  ;;  %v7744_v10 = vmul.f32 %v7642_v8, %v7642_v8 }
 0x831   : > { %v7707_v22 = vrot.slane %v7706_v15, 4  ;;  %v7775_v27 = vadd.f32 %v7774_v23, %v7744_v10 }
 0x833   : > { %v7708_v32 = vadd.f32 %v7707_v22, %v7706_v15  ;;  %v7776_v34 = vrot.slane %v7775_v27, 4 }
 0x835   : > { %v7709_v11 = vrot.slane %v7708_v32, 2  ;;  %v7777_v60 = vadd.f32 %v7776_v34, %v7775_v27 }
 0x837   : > { %v7710_v58 = vadd.f32 %v7709_v11, %v7708_v32  ;;  %v7778_v51 = vrot.slane %v7777_v60, 2 }
 0x839   : > { %v7711_v44 = vrot.slane %v7710_v58, 1  ;;  %v7779_v18 = vadd.f32 %v7778_v51, %v7777_v60 }
 0x83b   : > { %v7780_v59 = vrot.slane %v7779_v18, 1  ;;  %v7712_v38 = vadd.f32 %v7711_v44, %v7710_v58 }
 0x83d   : > { %v7781_v36 = vadd.f32 %v7780_v59, %v7779_v18 }
 0x83f   : > { %v7783_v13 = vsel %vm7782_vm1, %v7712_v38, %v7781_v36 }
 0x840   : > { %7784 = vst [vmem:[%s187_s4] sm:$0x3] %v7783_v13 }
 0x841 PF: > { %s14_s12 = sadd.s32 1, %s11501_s12  }
 0x842   : > { %p11_p5 = scmp.ge.s32.totalorder %s14_s12, 4  }
 0x844   :  { %13 = sbr.rel (!%p11_p5) target bundleno = 1 (0x1), region = 70 }

// kernel: cnn_model_forward.21
= control target key start
LH: loop header
LB: loop body
LE: loop exit
PB: predicated region body
PF: predicated region fallthrough
CT: control target
= control target key end

     0   :  { %s2385_s12 = smov 0   ;;  %s2855_s0 = inlined_call_operand.vmem [shape: bf16[512,585], index: 0, kind: input, shape index: {}]   ;;  %s2856_s1 = inlined_call_operand.vmem [shape: bf16[585,128], index: 1, kind: input, shape index: {}]   ;;  %s2857_s2 = inlined_call_operand.vmem [shape: f32[512,128], index: 2, kind: output, shape index: {0}]   ;;  %s2858_s3 = inlined_call_operand.vmem [shape: f32[2,2,128], index: 3, kind: output, shape index: {1}]  }
   0x1 LB: > { %s2391_s13 = sadd.s32 4294967295, %s2362_s12   ;;  %p1713_p0 = scmp.ge.s32.totalorder %s2362_s12, 1  ;;  %s2362_s12 = sphi %s2385_s12, %s14_s12  }
   0x2   : > { %p142_p1 = scmp.lt.s32.totalorder %s2362_s12, 3 }
   0x4   : > { %p143_p2 = pnand %p1713_p0, %p142_p1 }
   0x5   : > { %s1714_s20 = sshll.u32 (!%p143_p2), %s2391_s13, 5  ;;  %p184_p4 = scmp.lt.s32.totalorder (!%p143_p2), %s2391_s13, 1 }
   0x6   : > { %146 = sbr.rel (%p143_p2) target bundleno = 511 (0x1ff), region = 28  ;;  %p172_p3 = scmp.lt.s32.totalorder (!%p143_p2), %s1714_s20, 63 }
   0xb   : > { %v2292_v0 = vld [vmem:[%s2856_s1 + $0x38] sm:$0xff]  ;;  %v2291_v1 = vld [vmem:[%s2856_s1 + $0x30] sm:$0xff]  ;;  %v2290_v2 = vld [vmem:[%s2856_s1 + $0x28] sm:$0xff]  ;;  %s2860_s20 = smov (!%p172_p3, %s1714_s20), 63  ;;  %vm1029_vm0 = vcmask 1043456   ;;  %vm1030_vm1 = vcmask 1044480  }
   0xc   : > { %2322 = vmatpush.bf16.msra.mxu1 %v2292_v0  ;;  %2323 = vmatpush.bf16.msra.mxu2 %v2292_v0  ;;  %v2289_v3 = vld [vmem:[%s2856_s1 + $0x20] sm:$0xff]  ;;  %v2288_v4 = vld [vmem:[%s2856_s1 + $0x18] sm:$0xff]  ;;  %v2287_v5 = vld [vmem:[%s2856_s1 + $0x10] sm:$0xff]  ;;  %s2346_s27 = smul.u32 20, %s2860_s20  ;;  %v2364_v12 = vmov 65535   ;;  %vm980_vm2 = vcmask 596992  }
   0xd   : > { %2324 = vmatpush.bf16.msra.mxu3 %v2292_v0  ;;  %1036 = vmatpush.bf16.msra.mxu0 %v2292_v0  ;;  %v2286_v6 = vld [vmem:[%s2856_s1 + $0x8] sm:$0xff]  ;;  %v2285_v7 = vld [vmem:[%s2856_s1] sm:$0xff]  ;;  %v1031_v13 = vsel %vm1029_vm0, 4294967295, %v2364_v12  ;;  %v2308_v21 = vld [vmem:[%s2856_s1 + $0xb8] sm:$0xff]  ;;  %s1717_s25 = sshll.u32 %s2860_s20, 3  ;;  %s2862_s13 = smov (!%p184_p4, %s2391_s13), 1 }
   0xe   : > { %s2423_s5 = scalar_lea.vmem %s2855_s0, %s2346_s27  ;;  %v2185_v8 = vld [vmem:[%s2856_s1 + $0x120] sm:$0xf]  ;;  %v2321_v9 = vld [vmem:[%s2856_s1 + $0x120] sm:$0x10]  ;;  %v2316_v22 = vld [vmem:[%s2856_s1 + $0xf8] sm:$0xff]  ;;  %v1032_v23 = vsel %vm1030_vm1, %v1031_v13, 0  ;;  %s2701_s28 = scalar_lea.vmem %s2857_s2, %s1717_s25 }
   0xf   : > { %v1801_v10 = vld [vmem:[%s2423_s5 + $0xa0] sm:$0xf]  ;;  %v2227_v11 = vld [vmem:[%s2423_s5 + $0xb0] sm:$0xf0]  ;;  %v2186_v20 = vor.u32 %v2321_v9, %v2185_v8  ;;  %v2300_v28 = vld [vmem:[%s2856_s1 + $0x78] sm:$0xff]  ;;  %s1718_s20 = sshll.u32 %s2862_s13, 1 }
  0x10   : > { %2325 = vmatpush.bf16.msra.mxu1 %v2291_v1  ;;  %2326 = vmatpush.bf16.msra.mxu2 %v2291_v1  ;;  %v1881_v14 = vld [vmem:[%s2423_s5 + $0x140] sm:$0xf]  ;;  %v2247_v15 = vld [vmem:[%s2423_s5 + $0x150] sm:$0xf0]  ;;  %v1802_v24 = vor.u32 %v2227_v11, %v1801_v10  ;;  %v2320_v33 = vld [vmem:[%s2856_s1 + $0x118] sm:$0xff]  ;;  %vm1619_vm3 = vcmask 1040384   ;;  %s187_s30 = scalar_lea.vmem %s2858_s3, %s1718_s20 }
  0x11   : > { %2327 = vmatpush.bf16.msra.mxu3 %v2291_v1  ;;  %1037 = vmatpush.bf16.msra.mxu0 %v2291_v1  ;;  %v1961_v16 = vld [vmem:[%s2423_s5 + $0x1e0] sm:$0xf]  ;;  %v2267_v17 = vld [vmem:[%s2423_s5 + $0x1f0] sm:$0xf0]  ;;  %v1882_v25 = vor.u32 %v2247_v15, %v1881_v14  ;;  %v1034_v29 = vand.u32 %v2186_v20, %v1032_v23  ;;  %v2306_v34 = vld [vmem:[%s2856_s1 + $0xa8] sm:$0xff] }
  0x12   : > { %v1721_v18 = vld [vmem:[%s2423_s5] sm:$0xf]  ;;  %v2207_v19 = vld [vmem:[%s2423_s5 + $0x10] sm:$0xf0]  ;;  %v1962_v26 = vor.u32 %v2267_v17, %v1961_v16  ;;  %v2314_v35 = vld [vmem:[%s2856_s1 + $0xe8] sm:$0xff] }
  0x13   : > { %v1722_v27 = vor.u32 %v2207_v19, %v1721_v18  ;;  %v2307_v30 = vld [vmem:[%s2856_s1 + $0xb0] sm:$0xff]  ;;  %v2298_v36 = vld [vmem:[%s2856_s1 + $0x68] sm:$0xff]  ;;  %v2305_v38 = vld [vmem:[%s2856_s1 + $0xa0] sm:$0xff] }
  0x14   : > { %2328 = vmatpush.bf16.msra.mxu1 %v2290_v2  ;;  %2329 = vmatpush.bf16.msra.mxu2 %v2290_v2  ;;  %v2315_v31 = vld [vmem:[%s2856_s1 + $0xf0] sm:$0xff]  ;;  %v2313_v39 = vld [vmem:[%s2856_s1 + $0xe0] sm:$0xff]  ;;  %v1821_v40 = vld [vmem:[%s2423_s5 + $0xc8] sm:$0xf] }
  0x15   : > { %2330 = vmatpush.bf16.msra.mxu3 %v2290_v2  ;;  %1038 = vmatpush.bf16.msra.mxu0 %v2290_v2  ;;  %v2299_v32 = vld [vmem:[%s2856_s1 + $0x70] sm:$0xff]  ;;  %v2232_v41 = vld [vmem:[%s2423_s5 + $0xd8] sm:$0xf0]  ;;  %v1901_v42 = vld [vmem:[%s2423_s5 + $0x168] sm:$0xf] }
  0x16   : > { %v2319_v37 = vld [vmem:[%s2856_s1 + $0x110] sm:$0xff]  ;;  %v2252_v43 = vld [vmem:[%s2423_s5 + $0x178] sm:$0xf0]  ;;  %v1981_v44 = vld [vmem:[%s2423_s5 + $0x208] sm:$0xf]  ;;  %v1822_v51 = vor.u32 %v2232_v41, %v1821_v40 }
  0x17   : > { %v2272_v45 = vld [vmem:[%s2423_s5 + $0x218] sm:$0xf0]  ;;  %v1741_v46 = vld [vmem:[%s2423_s5 + $0x28] sm:$0xf]  ;;  %v2297_v48 = vld [vmem:[%s2856_s1 + $0x60] sm:$0xff]  ;;  %v1902_v52 = vor.u32 %v2252_v43, %v1901_v42 }
  0x18   : > { %2331 = vmatpush.bf16.msra.mxu1 %v2289_v3  ;;  %2332 = vmatpush.bf16.msra.mxu2 %v2289_v3  ;;  %v2212_v47 = vld [vmem:[%s2423_s5 + $0x38] sm:$0xf0]  ;;  %v1982_v53 = vor.u32 %v2272_v45, %v1981_v44  ;;  %v2303_v56 = vld [vmem:[%s2856_s1 + $0x90] sm:$0xff]  ;;  %v2318_v58 = vld [vmem:[%s2856_s1 + $0x108] sm:$0xff] }
  0x19   : > { %2333 = vmatpush.bf16.msra.mxu3 %v2289_v3  ;;  %1039 = vmatpush.bf16.msra.mxu0 %v2289_v3  ;;  %v2304_v49 = vld [vmem:[%s2856_s1 + $0x98] sm:$0xff]  ;;  %v1742_v54 = vor.u32 %v2212_v47, %v1741_v46  ;;  %v2311_v57 = vld [vmem:[%s2856_s1 + $0xd0] sm:$0xff]  ;;  %v2302_v60 = vld [vmem:[%s2856_s1 + $0x88] sm:$0xff] }
  0x1a   : > { %v2312_v50 = vld [vmem:[%s2856_s1 + $0xd8] sm:$0xff]  ;;  %v2295_v59 = vld [vmem:[%s2856_s1 + $0x50] sm:$0xff]  ;;  %v2310_v61 = vld [vmem:[%s2856_s1 + $0xc8] sm:$0xff] }
  0x1b   : > { %v2296_v55 = vld [vmem:[%s2856_s1 + $0x58] sm:$0xff]  ;;  %v2317_v62 = vld [vmem:[%s2856_s1 + $0x100] sm:$0xff]  ;;  %v2294_v63 = vld [vmem:[%s2856_s1 + $0x48] sm:$0xff] }
  0x1c   : > { %2334 = vmatpush.bf16.msra.mxu1 %v2288_v4  ;;  %2335 = vmatpush.bf16.msra.mxu2 %v2288_v4  ;;  %v2301_v0 = vld [vmem:[%s2856_s1 + $0x80] sm:$0xff]  ;;  %v1841_v2 = vld [vmem:[%s2423_s5 + $0xf0] sm:$0xf]  ;;  %v1861_v15 = vld [vmem:[%s2423_s5 + $0x118] sm:$0xf] }
  0x1d   : > { %2336 = vmatpush.bf16.msra.mxu3 %v2288_v4  ;;  %1040 = vmatpush.bf16.msra.mxu0 %v2288_v4  ;;  %v2309_v1 = vld [vmem:[%s2856_s1 + $0xc0] sm:$0xff]  ;;  %v1921_v4 = vld [vmem:[%s2423_s5 + $0x190] sm:$0xf]  ;;  %v2242_v16 = vld [vmem:[%s2423_s5 + $0x128] sm:$0xf0] }
  0x1e   : > { %v2237_v3 = vld [vmem:[%s2423_s5 + $0x100] sm:$0xf0]  ;;  %v1761_v8 = vld [vmem:[%s2423_s5 + $0x50] sm:$0xf]  ;;  %v1941_v17 = vld [vmem:[%s2423_s5 + $0x1b8] sm:$0xf]  ;;  %v1862_v23 = vor.u32 %v2242_v16, %v1861_v15 }
  0x1f   : > { %v2217_v9 = vld [vmem:[%s2423_s5 + $0x60] sm:$0xf0]  ;;  %v1842_v11 = vor.u32 %v2237_v3, %v1841_v2  ;;  %v2262_v18 = vld [vmem:[%s2423_s5 + $0x1c8] sm:$0xf0]  ;;  %v2021_v19 = vld [vmem:[%s2423_s5 + $0x258] sm:$0xf] }
  0x20   : > { %2337 = vmatpush.bf16.msra.mxu1 %v2287_v5  ;;  %2338 = vmatpush.bf16.msra.mxu2 %v2287_v5  ;;  %v2293_v10 = vld [vmem:[%s2856_s1 + $0x40] sm:$0xff]  ;;  %v1762_v14 = vor.u32 %v2217_v9, %v1761_v8  ;;  %v2282_v20 = vld [vmem:[%s2423_s5 + $0x268] sm:$0xf0]  ;;  %v1749_v41 = vld [vmem:[%s2423_s5 + $0x30] sm:$0xf] }
  0x21   : > { %2339 = vmatpush.bf16.msra.mxu3 %v2287_v5  ;;  %1041 = vmatpush.bf16.msra.mxu0 %v2287_v5  ;;  %v2257_v5 = vld [vmem:[%s2423_s5 + $0x1a0] sm:$0xf0]  ;;  %v1743_v40 = vld [vmem:[%s2423_s5 + $0x3c] sm:$0xf0]  ;;  %v2211_v43 = vld [vmem:[%s2423_s5 + $0x34] sm:$0xf] }
  0x22   : > { %v1922_v12 = vor.u32 %v2257_v5, %v1921_v4  ;;  %v2213_v42 = vld [vmem:[%s2423_s5 + $0x40] sm:$0xf0]  ;;  %v1751_v44 = vld [vmem:[%s2423_s5 + $0x44] sm:$0xf0]  ;;  %v1757_v45 = vld [vmem:[%s2423_s5 + $0x38] sm:$0xf] }
  0x23   : > { %v2214_v46 = vld [vmem:[%s2423_s5 + $0x48] sm:$0xf0]  ;;  %v2223_v2 = vld [vmem:[%s2423_s5 + $0x90] sm:$0xf0]  ;;  %v2221_v3 = vld [vmem:[%s2423_s5 + $0x84] sm:$0xf] }
  0x24   : > { %2340 = vmatpush.bf16.msra.mxu1 %v2286_v6  ;;  %2341 = vmatpush.bf16.msra.mxu2 %v2286_v6  ;;  %v1791_v4 = vld [vmem:[%s2423_s5 + $0x94] sm:$0xf0]  ;;  %v1797_v5 = vld [vmem:[%s2423_s5 + $0x88] sm:$0xf]  ;;  %v2226_v15 = vld [vmem:[%s2423_s5 + $0xac] sm:$0xf] }
  0x25   : > { %2342 = vmatpush.bf16.msra.mxu3 %v2286_v6  ;;  %1042 = vmatpush.bf16.msra.mxu0 %v2286_v6  ;;  %v2001_v6 = vld [vmem:[%s2423_s5 + $0x230] sm:$0xf]  ;;  %v1794_v9 = vor.u32 %v2221_v3, %v1791_v4  ;;  %v1811_v16 = vld [vmem:[%s2423_s5 + $0xbc] sm:$0xf0] }
  0x28   : > { %2343 = vmatpush.bf16.msra.mxu1 %v2285_v7  ;;  %2344 = vmatpush.bf16.msra.mxu2 %v2285_v7 }
  0x29   : > { %2345 = vmatpush.bf16.msra.mxu3 %v2285_v7  ;;  %1043 = vmatpush.bf16.msra.mxu0 %v2285_v7  ;;  %v2277_v7 = vld [vmem:[%s2423_s5 + $0x240] sm:$0xf0] }
  0x2a   : > { %v2002_v13 = vor.u32 %v2277_v7, %v2001_v6  ;;  %v2224_v6 = vld [vmem:[%s2423_s5 + $0x98] sm:$0xf0] }
  0x2b   : > { %1064 = vmatmul.bf16.vlgmr.msra.gmra.mxu1 %v1802_v24  ;;  %1084 = vmatmul.bf16.vlgmr.msra.gmra.mxu2 %v1882_v25  ;;  %v1942_v24 = vor.u32 %v2262_v18, %v1941_v17  ;;  %v2022_v25 = vor.u32 %v2282_v20, %v2021_v19  ;;  %v1817_v17 = vld [vmem:[%s2423_s5 + $0xb0] sm:$0xf]  ;;  %v2229_v18 = vld [vmem:[%s2423_s5 + $0xc0] sm:$0xf0] }
  0x2c   : > { %1214 = vmatpush.bf16.msrb.mxu2 %v2308_v21  ;;  %1104 = vmatmul.bf16.vlgmr.msra.gmra.mxu3 %v1962_v26  ;;  %v1781_v21 = vld [vmem:[%s2423_s5 + $0x78] sm:$0xf] }
  0x2d   : > { %1303 = vmatpush.bf16.msrb.mxu3 %v2316_v22  ;;  %1044 = vmatmul.bf16.vlgmr.msra.gmra.mxu0 %v1722_v27  ;;  %v2222_v22 = vld [vmem:[%s2423_s5 + $0x88] sm:$0xf0]  ;;  %v2205_v27 = vld [vmem:[%s2423_s5 + $0x4] sm:$0xf] }
  0x2e   : > { %1125 = vmatpush.bf16.msrb.mxu1 %v2300_v28  ;;  %1395 = vmatpush.bf16.msrb.mxu0 %v1034_v29  ;;  %v1782_v26 = vor.u32 %v2222_v22, %v1781_v21  ;;  %v1723_v28 = vld [vmem:[%s2423_s5 + $0x14] sm:$0xf0]  ;;  %v1729_v29 = vld [vmem:[%s2423_s5 + $0x8] sm:$0xf]  ;;  %v1814_v22 = vor.u32 %v2226_v15, %v1811_v16 }
  0x30   : > { %1215 = vmatpush.bf16.msrb.mxu2 %v2307_v30  ;;  %v2208_v30 = vld [vmem:[%s2423_s5 + $0x18] sm:$0xf0] }
  0x31   : > { %1304 = vmatpush.bf16.msrb.mxu3 %v2315_v31  ;;  %v2206_v31 = vld [vmem:[%s2423_s5 + $0xc] sm:$0xf] }
  0x32   : > { %1126 = vmatpush.bf16.msrb.mxu1 %v2299_v32  ;;  %1396 = vmatpush.bf16.msrb.mxu0 %v2320_v33  ;;  %v1731_v32 = vld [vmem:[%s2423_s5 + $0x1c] sm:$0xf0]  ;;  %v1737_v33 = vld [vmem:[%s2423_s5 + $0x10] sm:$0xf] }
  0x34   : > { %1216 = vmatpush.bf16.msrb.mxu2 %v2306_v34  ;;  %v2209_v34 = vld [vmem:[%s2423_s5 + $0x20] sm:$0xf0] }
  0x35   : > { %1305 = vmatpush.bf16.msrb.mxu3 %v2314_v35  ;;  %v1726_v35 = vor.u32 %v2205_v27, %v1723_v28 }
  0x36   : > { %1127 = vmatpush.bf16.msrb.mxu1 %v2298_v36  ;;  %1397 = vmatpush.bf16.msrb.mxu0 %v2319_v37  ;;  %v1730_v36 = vor.u32 %v2208_v30, %v1729_v29  ;;  %v1734_v37 = vor.u32 %v2206_v31, %v1731_v32  ;;  %v2230_v29 = vld [vmem:[%s2423_s5 + $0xcc] sm:$0xf]  ;;  %v1823_v30 = vld [vmem:[%s2423_s5 + $0xdc] sm:$0xf0]  ;;  %v1829_v31 = vld [vmem:[%s2423_s5 + $0xd0] sm:$0xf] }
  0x37   : > { %v2233_v32 = vld [vmem:[%s2423_s5 + $0xe0] sm:$0xf0] }
  0x38   : > { %1217 = vmatpush.bf16.msrb.mxu2 %v2305_v38  ;;  %v1738_v38 = vor.u32 %v2209_v34, %v1737_v33  ;;  %v2231_v33 = vld [vmem:[%s2423_s5 + $0xd4] sm:$0xf]  ;;  %v1831_v34 = vld [vmem:[%s2423_s5 + $0xe4] sm:$0xf0] }
  0x39   : > { %1306 = vmatpush.bf16.msrb.mxu3 %v2313_v39  ;;  %v2210_v39 = vld [vmem:[%s2423_s5 + $0x2c] sm:$0xf] }
  0x3a   : > { %1128 = vmatpush.bf16.msrb.mxu1 %v2297_v48  ;;  %1398 = vmatpush.bf16.msrb.mxu0 %v2318_v58  ;;  %v1746_v47 = vor.u32 %v2210_v39, %v1743_v40  ;;  %v1750_v48 = vor.u32 %v2213_v42, %v1749_v41  ;;  %v2219_v58 = vld [vmem:[%s2423_s5 + $0x70] sm:$0xf0]  ;;  %v1826_v39 = vor.u32 %v2230_v29, %v1823_v30 }
  0x3b   : > { %1069 = vmatmul.bf16.gmra.mxu1 %v1822_v51  ;;  %1089 = vmatmul.bf16.gmra.mxu2 %v1902_v52  ;;  %v2215_v51 = vld [vmem:[%s2423_s5 + $0x54] sm:$0xf]  ;;  %v1763_v52 = vld [vmem:[%s2423_s5 + $0x64] sm:$0xf0]  ;;  %v1830_v40 = vor.u32 %v2233_v32, %v1829_v31  ;;  %v1834_v42 = vor.u32 %v2231_v33, %v1831_v34  ;;  %v2245_v31 = vld [vmem:[%s2423_s5 + $0x144] sm:$0xf] }
  0x3c   : > { %1218 = vmatpush.bf16.msrb.mxu2 %v2304_v49  ;;  %1109 = vmatmul.bf16.gmra.mxu3 %v1982_v53  ;;  %v1754_v49 = vor.u32 %v2211_v43, %v1751_v44  ;;  %v1769_v53 = vld [vmem:[%s2423_s5 + $0x58] sm:$0xf]  ;;  %v1889_v33 = vld [vmem:[%s2423_s5 + $0x148] sm:$0xf]  ;;  %v2248_v34 = vld [vmem:[%s2423_s5 + $0x158] sm:$0xf0] }
  0x3d   : > { %1307 = vmatpush.bf16.msrb.mxu3 %v2312_v50  ;;  %1049 = vmatmul.bf16.gmra.mxu0 %v1742_v54  ;;  %v1758_v50 = vor.u32 %v2214_v46, %v1757_v45  ;;  %v2218_v54 = vld [vmem:[%s2423_s5 + $0x68] sm:$0xf0]  ;;  %v1883_v32 = vld [vmem:[%s2423_s5 + $0x154] sm:$0xf0] }
  0x3e   : > { %1129 = vmatpush.bf16.msrb.mxu1 %v2296_v55  ;;  %1399 = vmatpush.bf16.msrb.mxu0 %v2317_v62  ;;  %v2216_v55 = vld [vmem:[%s2423_s5 + $0x5c] sm:$0xf] }
  0x40   : > { %1219 = vmatpush.bf16.msrb.mxu2 %v2303_v56  ;;  %v1771_v56 = vld [vmem:[%s2423_s5 + $0x6c] sm:$0xf0] }
  0x41   : > { %1308 = vmatpush.bf16.msrb.mxu3 %v2311_v57  ;;  %v1777_v57 = vld [vmem:[%s2423_s5 + $0x60] sm:$0xf] }
  0x42   : > { %1130 = vmatpush.bf16.msrb.mxu1 %v2295_v59  ;;  %v1766_v59 = vor.u32 %v2215_v51, %v1763_v52  ;;  %v1778_v62 = vor.u32 %v2219_v58, %v1777_v57  ;;  %v1849_v51 = vld [vmem:[%s2423_s5 + $0xf8] sm:$0xf]  ;;  %v2238_v52 = vld [vmem:[%s2423_s5 + $0x108] sm:$0xf0] }
  0x44   : > { %1220 = vmatpush.bf16.msrb.mxu2 %v2302_v60  ;;  %v1770_v60 = vor.u32 %v2218_v54, %v1769_v53  ;;  %v2236_v53 = vld [vmem:[%s2423_s5 + $0xfc] sm:$0xf]  ;;  %v1851_v54 = vld [vmem:[%s2423_s5 + $0x10c] sm:$0xf0] }
  0x45   : > { %1309 = vmatpush.bf16.msrb.mxu3 %v2310_v61  ;;  %v1774_v61 = vor.u32 %v2216_v55, %v1771_v56  ;;  %v1857_v55 = vld [vmem:[%s2423_s5 + $0x100] sm:$0xf]  ;;  %v2239_v56 = vld [vmem:[%s2423_s5 + $0x110] sm:$0xf0] }
  0x46   : > { %1131 = vmatpush.bf16.msrb.mxu1 %v2294_v63  ;;  %v2220_v63 = vld [vmem:[%s2423_s5 + $0x7c] sm:$0xf] }
  0x48   : > { %1221 = vmatpush.bf16.msrb.mxu2 %v2301_v0  ;;  %v1783_v0 = vld [vmem:[%s2423_s5 + $0x8c] sm:$0xf0] }
  0x49   : > { %1310 = vmatpush.bf16.msrb.mxu3 %v2309_v1  ;;  %v1789_v1 = vld [vmem:[%s2423_s5 + $0x80] sm:$0xf]  ;;  %v1786_v7 = vor.u32 %v2220_v63, %v1783_v0  ;;  %v1858_v63 = vor.u32 %v2239_v56, %v1857_v55 }
  0x4a   : > { %1132 = vmatpush.bf16.msrb.mxu1 %v2293_v10  ;;  %v1790_v8 = vor.u32 %v2223_v2, %v1789_v1  ;;  %v1798_v10 = vor.u32 %v2224_v6, %v1797_v5  ;;  %v2240_v5 = vld [vmem:[%s2423_s5 + $0x11c] sm:$0xf]  ;;  %v1863_v6 = vld [vmem:[%s2423_s5 + $0x12c] sm:$0xf0] }
  0x4b   : > { %1074 = vmatmul.bf16.gmra.mxu1 %v1842_v11  ;;  %1094 = vmatmul.bf16.gmra.mxu2 %v1922_v12  ;;  %v2225_v11 = vld [vmem:[%s2423_s5 + $0xa4] sm:$0xf]  ;;  %v1803_v12 = vld [vmem:[%s2423_s5 + $0xb4] sm:$0xf0]  ;;  %v1866_v15 = vor.u32 %v2240_v5, %v1863_v6 }
  0x4c   : > { %1114 = vmatmul.bf16.gmra.mxu3 %v2002_v13  ;;  %v1809_v13 = vld [vmem:[%s2423_s5 + $0xa8] sm:$0xf]  ;;  %v1806_v19 = vor.u32 %v2225_v11, %v1803_v12  ;;  %v2244_v12 = vld [vmem:[%s2423_s5 + $0x138] sm:$0xf0] }
  0x4d   : > { %1054 = vmatmul.bf16.gmra.mxu0 %v1762_v14  ;;  %v2228_v14 = vld [vmem:[%s2423_s5 + $0xb8] sm:$0xf0]  ;;  %v1877_v11 = vld [vmem:[%s2423_s5 + $0x128] sm:$0xf] }
  0x4e   : > { %v1810_v20 = vor.u32 %v2228_v14, %v1809_v13 }
  0x5b   : > { %1079 = vmatmul.bf16.gmra.mxu1 %v1862_v23  ;;  %1099 = vmatmul.bf16.gmra.mxu2 %v1942_v24  ;;  %v1818_v23 = vor.u32 %v2229_v18, %v1817_v17 }
  0x5c   : > { %1119 = vmatmul.bf16.gmra.mxu3 %v2022_v25 }
  0x5d   : > { %1059 = vmatmul.bf16.gmra.mxu0 %v1782_v26 }
  0x6b   : > { %1133 = vmatmul.bf16.vlgmr.msrb.gmra.mxu1 %v1726_v35  ;;  %1222 = vmatmul.bf16.vlgmr.msrb.gmra.mxu2 %v1730_v36  ;;  %v1837_v35 = vld [vmem:[%s2423_s5 + $0xd8] sm:$0xf]  ;;  %v2234_v36 = vld [vmem:[%s2423_s5 + $0xe8] sm:$0xf0] }
  0x6c   : > { %1311 = vmatmul.bf16.vlgmr.msrb.gmra.mxu3 %v1734_v37  ;;  %v1838_v43 = vor.u32 %v2234_v36, %v1837_v35  ;;  %v2246_v35 = vld [vmem:[%s2423_s5 + $0x14c] sm:$0xf]  ;;  %v1891_v36 = vld [vmem:[%s2423_s5 + $0x15c] sm:$0xf0] }
  0x6d   : > { %2187 = vmatmul.msk.bf16.vlgmr.msrb.gmra.mxu0 %vm980_vm2, %v1738_v38 }
  0x7b   : > { %1138 = vmatmul.bf16.gmra.mxu1 %v1746_v47  ;;  %1227 = vmatmul.bf16.gmra.mxu2 %v1750_v48 }
  0x7c   : > { %1316 = vmatmul.bf16.gmra.mxu3 %v1754_v49  ;;  %v2235_v49 = vld [vmem:[%s2423_s5 + $0xf4] sm:$0xf] }
  0x7d   : > { %2188 = vmatmul.msk.bf16.gmra.mxu0 %vm980_vm2, %v1758_v50  ;;  %v1843_v50 = vld [vmem:[%s2423_s5 + $0x104] sm:$0xf0] }
  0x8b   : > { %1143 = vmatmul.bf16.gmra.mxu1 %v1766_v59  ;;  %1232 = vmatmul.bf16.gmra.mxu2 %v1770_v60  ;;  %v1846_v59 = vor.u32 %v2235_v49, %v1843_v50  ;;  %v1850_v60 = vor.u32 %v2238_v52, %v1849_v51  ;;  %v1886_v49 = vor.u32 %v2245_v31, %v1883_v32 }
  0x8c   : > { %1321 = vmatmul.bf16.gmra.mxu3 %v1774_v61  ;;  %v1890_v50 = vor.u32 %v2248_v34, %v1889_v33  ;;  %v1894_v52 = vor.u32 %v2246_v35, %v1891_v36 }
  0x8d   : > { %2189 = vmatmul.msk.bf16.gmra.mxu0 %vm980_vm2, %v1778_v62  ;;  %v1854_v62 = vor.u32 %v2236_v53, %v1851_v54 }
  0x9b   : > { %1148 = vmatmul.bf16.gmra.mxu1 %v1786_v7  ;;  %1237 = vmatmul.bf16.gmra.mxu2 %v1790_v8  ;;  %v1869_v7 = vld [vmem:[%s2423_s5 + $0x120] sm:$0xf]  ;;  %v2243_v8 = vld [vmem:[%s2423_s5 + $0x130] sm:$0xf0] }
  0x9c   : > { %1326 = vmatmul.bf16.gmra.mxu3 %v1794_v9  ;;  %v2241_v9 = vld [vmem:[%s2423_s5 + $0x124] sm:$0xf]  ;;  %v1870_v16 = vor.u32 %v2243_v8, %v1869_v7  ;;  %v2250_v7 = vld [vmem:[%s2423_s5 + $0x16c] sm:$0xf]  ;;  %v1903_v8 = vld [vmem:[%s2423_s5 + $0x17c] sm:$0xf0] }
  0x9d   : > { %2190 = vmatmul.msk.bf16.gmra.mxu0 %vm980_vm2, %v1798_v10  ;;  %v1871_v10 = vld [vmem:[%s2423_s5 + $0x134] sm:$0xf0]  ;;  %v1906_v32 = vor.u32 %v2250_v7, %v1903_v8  ;;  %v1923_v7 = vld [vmem:[%s2423_s5 + $0x1a4] sm:$0xf0] }
  0x9e   : > { %v1874_v18 = vor.u32 %v2241_v9, %v1871_v10  ;;  %v2253_v9 = vld [vmem:[%s2423_s5 + $0x180] sm:$0xf0]  ;;  %v2251_v10 = vld [vmem:[%s2423_s5 + $0x174] sm:$0xf]  ;;  %v1929_v8 = vld [vmem:[%s2423_s5 + $0x198] sm:$0xf] }
  0xa8   : > { %v2595_v21 = vpop.f32.mrf.mxu1 }
  0xaa   : > { %v2597_v24 = vpop.f32.mrf.mxu0 }
  0xab   : > { %1153 = vmatmul.bf16.gmra.mxu1 %v1806_v19  ;;  %1242 = vmatmul.bf16.gmra.mxu2 %v1810_v20  ;;  %v1878_v19 = vor.u32 %v2244_v12, %v1877_v11  ;;  %v1911_v12 = vld [vmem:[%s2423_s5 + $0x184] sm:$0xf0] }
  0xac   : > { %1331 = vmatmul.bf16.gmra.mxu3 %v1814_v22  ;;  %v1914_v35 = vor.u32 %v2251_v10, %v1911_v12  ;;  %v1937_v12 = vld [vmem:[%s2423_s5 + $0x1a0] sm:$0xf] }
  0xad   : > { %2191 = vmatmul.msk.bf16.gmra.mxu0 %vm980_vm2, %v1818_v23 }
  0xae   : > { %v2600_v25 = vpop.f32.mrf.mxu2 }
  0xaf   : > { %v2602_v26 = vpop.f32.mrf.mxu3 }
  0xb0   : > { %v2604_v27 = vpop.f32.mrf.mxu1 }
  0xb2   : > { %v2606_v28 = vpop.f32.mrf.mxu0 }
  0xb6   : > { %v2616_v37 = vpop.f32.mrf.mxu2 }
  0xb7   : > { %v2618_v38 = vpop.f32.mrf.mxu3 }
  0xb8   : > { %v2620_v41 = vpop.f32.mrf.mxu1 }
  0xba   : > { %v2622_v44 = vpop.f32.mrf.mxu0 }
  0xbb   : > { %1158 = vmatmul.bf16.gmra.mxu1 %v1826_v39  ;;  %1247 = vmatmul.bf16.gmra.mxu2 %v1830_v40  ;;  %v1897_v39 = vld [vmem:[%s2423_s5 + $0x150] sm:$0xf]  ;;  %v2249_v40 = vld [vmem:[%s2423_s5 + $0x160] sm:$0xf0] }
  0xbc   : > { %1336 = vmatmul.bf16.gmra.mxu3 %v1834_v42  ;;  %v1898_v53 = vor.u32 %v2249_v40, %v1897_v39 }
  0xbd   : > { %2192 = vmatmul.msk.bf16.gmra.mxu0 %vm980_vm2, %v1838_v43 }
  0xbe   : > { %v2625_v45 = vpop.f32.mrf.mxu2 }
  0xbf   : > { %v2627_v46 = vpop.f32.mrf.mxu3 }
  0xc0   : > { %v2629_v47 = vpop.f32.mrf.mxu1 }
  0xc2   : > { %v2631_v48 = vpop.f32.mrf.mxu0 }
  0xc6   : > { %v2641_v57 = vpop.f32.mrf.mxu2 }
  0xc7   : > { %v2643_v58 = vpop.f32.mrf.mxu3 }
  0xc8   : > { %v2645_v61 = vpop.f32.mrf.mxu1 }
  0xca   : > { %v2647_v0 = vpop.f32.mrf.mxu0 }
  0xcb   : > { %1163 = vmatmul.bf16.gmra.mxu1 %v1846_v59  ;;  %1252 = vmatmul.bf16.gmra.mxu2 %v1850_v60 }
  0xcc   : > { %1341 = vmatmul.bf16.gmra.mxu3 %v1854_v62 }
  0xcd   : > { %2193 = vmatmul.msk.bf16.gmra.mxu0 %vm980_vm2, %v1858_v63 }
  0xce   : > { %v2650_v1 = vpop.f32.mrf.mxu2 }
  0xcf   : > { %v2652_v2 = vpop.f32.mrf.mxu3 }
  0xd0   : > { %v2654_v3 = vpop.f32.mrf.mxu1 }
  0xd2   : > { %v2656_v4 = vpop.f32.mrf.mxu0 }
  0xd6   : > { %v2666_v13 = vpop.f32.mrf.mxu2 }
  0xd7   : > { %v2668_v14 = vpop.f32.mrf.mxu3 }
  0xd8   : > { %v2670_v17 = vpop.f32.mrf.mxu1 }
  0xda   : > { %v2672_v20 = vpop.f32.mrf.mxu0 }
  0xdb   : > { %1168 = vmatmul.bf16.gmra.mxu1 %v1866_v15  ;;  %1257 = vmatmul.bf16.gmra.mxu2 %v1870_v16  ;;  %v1917_v15 = vld [vmem:[%s2423_s5 + $0x178] sm:$0xf]  ;;  %v2254_v16 = vld [vmem:[%s2423_s5 + $0x188] sm:$0xf0] }
  0xdc   : > { %1346 = vmatmul.bf16.gmra.mxu3 %v1874_v18  ;;  %v1918_v36 = vor.u32 %v2254_v16, %v1917_v15  ;;  %v2259_v15 = vld [vmem:[%s2423_s5 + $0x1b0] sm:$0xf0] }
  0xdd   : > { %2194 = vmatmul.msk.bf16.gmra.mxu0 %vm980_vm2, %v1878_v19 }
  0xde   : > { %v2675_v22 = vpop.f32.mrf.mxu2 }
  0xdf   : > { %v2677_v23 = vpop.f32.mrf.mxu3 }
  0xe0   : > { %v2679_v29 = vpop.f32.mrf.mxu1 }
  0xe2   : > { %v2681_v30 = vpop.f32.mrf.mxu0 }
  0xe6   : > { %v2691_v42 = vpop.f32.mrf.mxu2 }
  0xe7   : > { %v2693_v43 = vpop.f32.mrf.mxu3 }
  0xe8   : > { %v1134_v51 = vpop.f32.mrf.mxu1 }
  0xe9   : > { %v1135_v55 = vadd.f32 %v1134_v51, %v2597_v24  ;;  %v1909_v24 = vld [vmem:[%s2423_s5 + $0x170] sm:$0xf] }
  0xea   : > { %v1401_v54 = vpop.f32.mrf.mxu0  ;;  %v1910_v33 = vor.u32 %v2253_v9, %v1909_v24  ;;  %v2258_v24 = vld [vmem:[%s2423_s5 + $0x1a8] sm:$0xf0]  ;;  %v1931_v9 = vld [vmem:[%s2423_s5 + $0x1ac] sm:$0xf0] }
  0xeb   : > { %1173 = vmatmul.bf16.gmra.mxu1 %v1886_v49  ;;  %1262 = vmatmul.bf16.gmra.mxu2 %v1890_v50 }
  0xec   : > { %1351 = vmatmul.bf16.gmra.mxu3 %v1894_v52 }
  0xed   : > { %2195 = vmatmul.msk.bf16.gmra.mxu0 %vm980_vm2, %v1898_v53 }
  0xee   : > { %v1223_v56 = vpop.f32.mrf.mxu2 }
  0xef   : > { %v1224_v59 = vadd.f32 %v1223_v56, %v1135_v55  ;;  %v1312_v60 = vpop.f32.mrf.mxu3 }
  0xf0   : > { %v1136_v62 = vpop.f32.mrf.mxu1 }
  0xf1   : > { %v1313_v63 = vadd.f32 %v1312_v60, %v1224_v59  ;;  %v1137_v11 = vadd.f32 %v1136_v62, %v2606_v28 }
  0xf2   : > { %v1403_v5 = vpop.f32.mrf.mxu0 }
  0xf3   : > { %v1402_v6 = vadd.f32 %v1401_v54, %v1313_v63 }
  0xf5   : > { %1481 = vst [vmem:[%s2701_s28] sm:$0xff] %v1402_v6  ;;  %v1550_v28 = vmul.f32 %v1402_v6, %v1402_v6 }
  0xf6   : > { %v1225_v18 = vpop.f32.mrf.mxu2 }
  0xf7   : > { %v1226_v19 = vadd.f32 %v1225_v18, %v1137_v11  ;;  %v1314_v31 = vpop.f32.mrf.mxu3 }
  0xf8   : > { %v1139_v34 = vpop.f32.mrf.mxu1 }
  0xf9   : > { %v1315_v39 = vadd.f32 %v1314_v31, %v1226_v19  ;;  %v1140_v52 = vadd.f32 %v1139_v34, %v2622_v44 }
  0xfa   : > { %v1406_v40 = vpop.f32.mrf.mxu0 }
  0xfb   : > { %v1404_v49 = vadd.f32 %v1403_v5, %v1315_v39  ;;  %1178 = vmatmul.bf16.gmra.mxu1 %v1906_v32  ;;  %1267 = vmatmul.bf16.gmra.mxu2 %v1910_v33  ;;  %v2255_v5 = vld [vmem:[%s2423_s5 + $0x194] sm:$0xf]  ;;  %v1930_v33 = vor.u32 %v2258_v24, %v1929_v8  ;;  %v2261_v8 = vld [vmem:[%s2423_s5 + $0x1c4] sm:$0xf]  ;;  %v1951_v24 = vld [vmem:[%s2423_s5 + $0x1d4] sm:$0xf0] }
  0xfc   : > { %1356 = vmatmul.bf16.gmra.mxu3 %v1914_v35  ;;  %v1926_v32 = vor.u32 %v2255_v5, %v1923_v7  ;;  %v1949_v5 = vld [vmem:[%s2423_s5 + $0x1c0] sm:$0xf]  ;;  %v2263_v7 = vld [vmem:[%s2423_s5 + $0x1d0] sm:$0xf0] }
  0xfd   : > { %2196 = vmatmul.msk.bf16.gmra.mxu0 %vm980_vm2, %v1918_v36  ;;  %1482 = vst [vmem:[%s2701_s28 + $0x8] sm:$0xff] %v1404_v49  ;;  %v1513_v50 = vadd.f32 %v1404_v49, %v1402_v6  ;;  %v1551_v51 = vmul.f32 %v1404_v49, %v1404_v49  ;;  %v2256_v6 = vld [vmem:[%s2423_s5 + $0x19c] sm:$0xf]  ;;  %v1938_v36 = vor.u32 %v2259_v15, %v1937_v12 }
  0xfe   : > { %v1228_v53 = vpop.f32.mrf.mxu2  ;;  %v1934_v35 = vor.u32 %v2256_v6, %v1931_v9 }
  0xff   : > { %v1582_v54 = vadd.f32 %v1551_v51, %v1550_v28  ;;  %v1229_v55 = vadd.f32 %v1228_v53, %v1140_v52  ;;  %v1317_v56 = vpop.f32.mrf.mxu3 }
 0x100   : > { %v1141_v59 = vpop.f32.mrf.mxu1 }
 0x101   : > { %v1318_v60 = vadd.f32 %v1317_v56, %v1229_v55  ;;  %v1142_v44 = vadd.f32 %v1141_v59, %v2631_v48 }
 0x102   : > { %v1408_v62 = vpop.f32.mrf.mxu0 }
 0x103   : > { %v1407_v63 = vadd.f32 %v1406_v40, %v1318_v60 }
 0x105   : > { %1483 = vst [vmem:[%s2701_s28 + $0x10] sm:$0xff] %v1407_v63  ;;  %v1514_v10 = vadd.f32 %v1513_v50, %v1407_v63  ;;  %v1552_v11 = vmul.f32 %v1407_v63, %v1407_v63  ;;  %v1943_v63 = vld [vmem:[%s2423_s5 + $0x1cc] sm:$0xf0] }
 0x106   : > { %v1230_v16 = vpop.f32.mrf.mxu2 }
 0x107   : > { %v1583_v18 = vadd.f32 %v1582_v54, %v1552_v11  ;;  %v1231_v19 = vadd.f32 %v1230_v16, %v1142_v44  ;;  %v1319_v31 = vpop.f32.mrf.mxu3  ;;  %v2264_v11 = vld [vmem:[%s2423_s5 + $0x1d8] sm:$0xf0] }
 0x108   : > { %v1144_v34 = vpop.f32.mrf.mxu1 }
 0x109   : > { %v1320_v39 = vadd.f32 %v1319_v31, %v1231_v19  ;;  %v1145_v50 = vadd.f32 %v1144_v34, %v2647_v0  ;;  %v1950_v19 = vor.u32 %v2263_v7, %v1949_v5 }
 0x10a   : > { %v1411_v40 = vpop.f32.mrf.mxu0 }
 0x10b   : > { %v1409_v49 = vadd.f32 %v1408_v62, %v1320_v39  ;;  %1183 = vmatmul.bf16.gmra.mxu1 %v1926_v32  ;;  %1272 = vmatmul.bf16.gmra.mxu2 %v1930_v33  ;;  %v2260_v62 = vld [vmem:[%s2423_s5 + $0x1bc] sm:$0xf]  ;;  %v1954_v32 = vor.u32 %v2261_v8, %v1951_v24  ;;  %v1977_v8 = vld [vmem:[%s2423_s5 + $0x1f0] sm:$0xf]  ;;  %v2269_v24 = vld [vmem:[%s2423_s5 + $0x200] sm:$0xf0] }
 0x10c   : > { %1361 = vmatmul.bf16.gmra.mxu3 %v1934_v35 }
 0x10d   : > { %2197 = vmatmul.msk.bf16.gmra.mxu0 %vm980_vm2, %v1938_v36  ;;  %1484 = vst [vmem:[%s2701_s28 + $0x18] sm:$0xff] %v1409_v49  ;;  %v1515_v48 = vadd.f32 %v1514_v10, %v1409_v49  ;;  %v1553_v28 = vmul.f32 %v1409_v49, %v1409_v49  ;;  %v1957_v10 = vld [vmem:[%s2423_s5 + $0x1c8] sm:$0xf] }
 0x10e   : > { %v1233_v51 = vpop.f32.mrf.mxu2  ;;  %v1958_v33 = vor.u32 %v2264_v11, %v1957_v10 }
 0x10f   : > { %v1584_v52 = vadd.f32 %v1583_v18, %v1553_v28  ;;  %v1234_v53 = vadd.f32 %v1233_v51, %v1145_v50  ;;  %v1322_v54 = vpop.f32.mrf.mxu3  ;;  %v1946_v18 = vor.u32 %v2260_v62, %v1943_v63  ;;  %v2266_v62 = vld [vmem:[%s2423_s5 + $0x1ec] sm:$0xf]  ;;  %v1971_v63 = vld [vmem:[%s2423_s5 + $0x1fc] sm:$0xf0] }
 0x110   : > { %v1146_v55 = vpop.f32.mrf.mxu1 }
 0x111   : > { %v1323_v56 = vadd.f32 %v1322_v54, %v1234_v53  ;;  %v1147_v0 = vadd.f32 %v1146_v55, %v2656_v4  ;;  %v2265_v55 = vld [vmem:[%s2423_s5 + $0x1e4] sm:$0xf] }
 0x112   : > { %v1413_v59 = vpop.f32.mrf.mxu0 }
 0x113   : > { %v1412_v60 = vadd.f32 %v1411_v40, %v1323_v56  ;;  %v1963_v56 = vld [vmem:[%s2423_s5 + $0x1f4] sm:$0xf0] }
 0x114   : > { %v1966_v11 = vor.u32 %v2265_v55, %v1963_v56 }
 0x115   : > { %1485 = vst [vmem:[%s2701_s28 + $0x20] sm:$0xff] %v1412_v60  ;;  %v1516_v6 = vadd.f32 %v1515_v48, %v1412_v60  ;;  %v1554_v9 = vmul.f32 %v1412_v60, %v1412_v60  ;;  %v2268_v60 = vld [vmem:[%s2423_s5 + $0x1f8] sm:$0xf0] }
 0x116   : > { %v1235_v44 = vpop.f32.mrf.mxu2 }
 0x117   : > { %v1585_v12 = vadd.f32 %v1584_v52, %v1554_v9  ;;  %v1236_v15 = vadd.f32 %v1235_v44, %v1147_v0  ;;  %v1324_v16 = vpop.f32.mrf.mxu3 }
 0x118   : > { %v1149_v31 = vpop.f32.mrf.mxu1 }
 0x119   : > { %v1325_v34 = vadd.f32 %v1324_v16, %v1236_v15  ;;  %v1150_v40 = vadd.f32 %v1149_v31, %v2672_v20  ;;  %v1974_v15 = vor.u32 %v2266_v62, %v1971_v63  ;;  %v1978_v16 = vor.u32 %v2269_v24, %v1977_v8 }
 0x11a   : > { %v1416_v35 = vpop.f32.mrf.mxu0 }
 0x11b   : > { %v1414_v36 = vadd.f32 %v1413_v59, %v1325_v34  ;;  %1188 = vmatmul.bf16.gmra.mxu1 %v1946_v18  ;;  %1277 = vmatmul.bf16.gmra.mxu2 %v1950_v19  ;;  %v1969_v59 = vld [vmem:[%s2423_s5 + $0x1e8] sm:$0xf] }
 0x11c   : > { %1366 = vmatmul.bf16.gmra.mxu3 %v1954_v32  ;;  %v1970_v44 = vor.u32 %v2268_v60, %v1969_v59  ;;  %v1997_v59 = vld [vmem:[%s2423_s5 + $0x218] sm:$0xf]  ;;  %v2274_v60 = vld [vmem:[%s2423_s5 + $0x228] sm:$0xf0] }
 0x11d   : > { %2198 = vmatmul.msk.bf16.gmra.mxu0 %vm980_vm2, %v1958_v33  ;;  %1486 = vst [vmem:[%s2701_s28 + $0x28] sm:$0xff] %v1414_v36  ;;  %v1517_v4 = vadd.f32 %v1516_v6, %v1414_v36  ;;  %v1555_v39 = vmul.f32 %v1414_v36, %v1414_v36 }
 0x11e   : > { %v1238_v49 = vpop.f32.mrf.mxu2 }
 0x11f   : > { %v1586_v48 = vadd.f32 %v1585_v12, %v1555_v39  ;;  %v1239_v28 = vadd.f32 %v1238_v49, %v1150_v40  ;;  %v1327_v50 = vpop.f32.mrf.mxu3 }
 0x120   : > { %v1151_v51 = vpop.f32.mrf.mxu1 }
 0x121   : > { %v1328_v52 = vadd.f32 %v1327_v50, %v1239_v28  ;;  %v1152_v20 = vadd.f32 %v1151_v51, %v2681_v30  ;;  %v2270_v28 = vld [vmem:[%s2423_s5 + $0x20c] sm:$0xf]  ;;  %v1983_v50 = vld [vmem:[%s2423_s5 + $0x21c] sm:$0xf0]  ;;  %v1989_v51 = vld [vmem:[%s2423_s5 + $0x210] sm:$0xf] }
 0x122   : > { %v1418_v53 = vpop.f32.mrf.mxu0 }
 0x123   : > { %v1417_v54 = vadd.f32 %v1416_v35, %v1328_v52  ;;  %v2273_v52 = vld [vmem:[%s2423_s5 + $0x220] sm:$0xf0] }
 0x124   : > { %v1990_v8 = vor.u32 %v2273_v52, %v1989_v51 }
 0x125   : > { %1487 = vst [vmem:[%s2701_s28 + $0x30] sm:$0xff] %v1417_v54  ;;  %v1518_v5 = vadd.f32 %v1517_v4, %v1417_v54  ;;  %v1556_v7 = vmul.f32 %v1417_v54, %v1417_v54  ;;  %v1991_v54 = vld [vmem:[%s2423_s5 + $0x224] sm:$0xf0] }
 0x126   : > { %v1240_v6 = vpop.f32.mrf.mxu2 }
 0x127   : > { %v1587_v9 = vadd.f32 %v1586_v48, %v1556_v7  ;;  %v1241_v0 = vadd.f32 %v1240_v6, %v1152_v20  ;;  %v1329_v10 = vpop.f32.mrf.mxu3  ;;  %v1986_v20 = vor.u32 %v2270_v28, %v1983_v50  ;;  %v2017_v28 = vld [vmem:[%s2423_s5 + $0x240] sm:$0xf]  ;;  %v2279_v50 = vld [vmem:[%s2423_s5 + $0x250] sm:$0xf0] }
 0x128   : > { %v1154_v12 = vpop.f32.mrf.mxu1 }
 0x129   : > { %v1330_v18 = vadd.f32 %v1329_v10, %v1241_v0  ;;  %v1155_v33 = vadd.f32 %v1154_v12, %v2595_v21 }
 0x12a   : > { %v1421_v19 = vpop.f32.mrf.mxu0 }
 0x12b   : > { %v1419_v31 = vadd.f32 %v1418_v53, %v1330_v18  ;;  %1193 = vmatmul.bf16.gmra.mxu1 %v1966_v11  ;;  %1282 = vmatmul.bf16.gmra.mxu2 %v1970_v44  ;;  %v2271_v53 = vld [vmem:[%s2423_s5 + $0x214] sm:$0xf] }
 0x12c   : > { %1371 = vmatmul.bf16.gmra.mxu3 %v1974_v15  ;;  %v1994_v6 = vor.u32 %v2271_v53, %v1991_v54 }
 0x12d   : > { %2199 = vmatmul.msk.bf16.gmra.mxu0 %vm980_vm2, %v1978_v16  ;;  %1488 = vst [vmem:[%s2701_s28 + $0x38] sm:$0xff] %v1419_v31  ;;  %v1519_v30 = vadd.f32 %v1518_v5, %v1419_v31  ;;  %v1557_v32 = vmul.f32 %v1419_v31, %v1419_v31 }
 0x12e   : > { %v1243_v34 = vpop.f32.mrf.mxu2 }
 0x12f   : > { %v1588_v35 = vadd.f32 %v1587_v9, %v1557_v32  ;;  %v1244_v36 = vadd.f32 %v1243_v34, %v1155_v33  ;;  %v1332_v4 = vpop.f32.mrf.mxu3  ;;  %v1998_v9 = vor.u32 %v2274_v60, %v1997_v59  ;;  %v2275_v34 = vld [vmem:[%s2423_s5 + $0x234] sm:$0xf]  ;;  %v2018_v60 = vor.u32 %v2279_v50, %v2017_v28 }
 0x130   : > { %v1156_v39 = vpop.f32.mrf.mxu1 }
 0x131   : > { %v1333_v40 = vadd.f32 %v1332_v4, %v1244_v36  ;;  %v1157_v21 = vadd.f32 %v1156_v39, %v2604_v27  ;;  %v2009_v36 = vld [vmem:[%s2423_s5 + $0x238] sm:$0xf]  ;;  %v2278_v4 = vld [vmem:[%s2423_s5 + $0x248] sm:$0xf0]  ;;  %v2276_v39 = vld [vmem:[%s2423_s5 + $0x23c] sm:$0xf] }
 0x132   : > { %v1423_v49 = vpop.f32.mrf.mxu0 }
 0x133   : > { %v1422_v48 = vadd.f32 %v1421_v19, %v1333_v40  ;;  %v2011_v40 = vld [vmem:[%s2423_s5 + $0x24c] sm:$0xf0] }
 0x134   : > { %v2014_v59 = vor.u32 %v2276_v39, %v2011_v40 }
 0x135   : > { %1489 = vst [vmem:[%s2701_s28 + $0x40] sm:$0xff] %v1422_v48  ;;  %v1520_v55 = vadd.f32 %v1519_v30, %v1422_v48  ;;  %v1558_v56 = vmul.f32 %v1422_v48, %v1422_v48 }
 0x136   : > { %v1245_v62 = vpop.f32.mrf.mxu2 }
 0x137   : > { %v1589_v63 = vadd.f32 %v1588_v35, %v1558_v56  ;;  %v1246_v5 = vadd.f32 %v1245_v62, %v1157_v21  ;;  %v1334_v7 = vpop.f32.mrf.mxu3  ;;  %v2003_v35 = vld [vmem:[%s2423_s5 + $0x244] sm:$0xf0]  ;;  %v2010_v56 = vor.u32 %v2278_v4, %v2009_v36 }
 0x138   : > { %v1159_v24 = vpop.f32.mrf.mxu1 }
 0x139   : > { %v1335_v0 = vadd.f32 %v1334_v7, %v1246_v5  ;;  %v1160_v12 = vadd.f32 %v1159_v24, %v2620_v41 }
 0x13a   : > { %v1426_v10 = vpop.f32.mrf.mxu0 }
 0x13b   : > { %v1424_v11 = vadd.f32 %v1423_v49, %v1335_v0  ;;  %1198 = vmatmul.bf16.gmra.mxu1 %v1986_v20  ;;  %1287 = vmatmul.bf16.gmra.mxu2 %v1990_v8 }
 0x13c   : > { %1376 = vmatmul.bf16.gmra.mxu3 %v1994_v6 }
 0x13d   : > { %2200 = vmatmul.msk.bf16.gmra.mxu0 %vm980_vm2, %v1998_v9  ;;  %1490 = vst [vmem:[%s2701_s28 + $0x48] sm:$0xff] %v1424_v11  ;;  %v1521_v27 = vadd.f32 %v1520_v55, %v1424_v11  ;;  %v1559_v44 = vmul.f32 %v1424_v11, %v1424_v11  ;;  %v2006_v55 = vor.u32 %v2275_v34, %v2003_v35 }
 0x13e   : > { %v1248_v15 = vpop.f32.mrf.mxu2 }
 0x13f   : > { %v1590_v16 = vadd.f32 %v1589_v63, %v1559_v44  ;;  %v1249_v18 = vadd.f32 %v1248_v15, %v1160_v12  ;;  %v1337_v19 = vpop.f32.mrf.mxu3  ;;  %v2280_v44 = vld [vmem:[%s2423_s5 + $0x25c] sm:$0xf]  ;;  %v2023_v12 = vld [vmem:[%s2423_s5 + $0x26c] sm:$0xf0]  ;;  %v2029_v15 = vld [vmem:[%s2423_s5 + $0x260] sm:$0xf] }
 0x140   : > { %v1161_v31 = vpop.f32.mrf.mxu1  ;;  %v2026_v39 = vor.u32 %v2280_v44, %v2023_v12 }
 0x141   : > { %v1338_v30 = vadd.f32 %v1337_v19, %v1249_v18  ;;  %v1162_v41 = vadd.f32 %v1161_v31, %v2629_v47  ;;  %v2281_v18 = vld [vmem:[%s2423_s5 + $0x264] sm:$0xf]  ;;  %v2031_v19 = vld [vmem:[%s2423_s5 + $0x274] sm:$0xf0] }
 0x142   : > { %v1428_v32 = vpop.f32.mrf.mxu0 }
 0x143   : > { %v1427_v33 = vadd.f32 %v1426_v10, %v1338_v30 }
 0x145   : > { %1491 = vst [vmem:[%s2701_s28 + $0x50] sm:$0xff] %v1427_v33  ;;  %v1522_v49 = vadd.f32 %v1521_v27, %v1427_v33  ;;  %v1560_v48 = vmul.f32 %v1427_v33, %v1427_v33  ;;  %v2284_v33 = vld [vmem:[%s2423_s5 + $0x278] sm:$0xf0] }
 0x146   : > { %v1250_v51 = vpop.f32.mrf.mxu2 }
 0x147   : > { %v1591_v52 = vadd.f32 %v1590_v16, %v1560_v48  ;;  %v1251_v53 = vadd.f32 %v1250_v51, %v1162_v41  ;;  %v1339_v54 = vpop.f32.mrf.mxu3  ;;  %v2283_v16 = vld [vmem:[%s2423_s5 + $0x270] sm:$0xf0]  ;;  %v2034_v48 = vor.u32 %v2281_v18, %v2031_v19 }
 0x148   : > { %v1164_v21 = vpop.f32.mrf.mxu1  ;;  %v2030_v40 = vor.u32 %v2283_v16, %v2029_v15 }
 0x149   : > { %v1340_v62 = vadd.f32 %v1339_v54, %v1251_v53  ;;  %v1165_v20 = vadd.f32 %v1164_v21, %v2645_v61 }
 0x14a   : > { %v1431_v63 = vpop.f32.mrf.mxu0 }
 0x14b   : > { %v1429_v5 = vadd.f32 %v1428_v32, %v1340_v62  ;;  %1203 = vmatmul.bf16.gmra.mxu1 %v2006_v55  ;;  %1292 = vmatmul.bf16.gmra.mxu2 %v2010_v56  ;;  %v2037_v32 = vld [vmem:[%s2423_s5 + $0x268] sm:$0xf] }
 0x14c   : > { %1381 = vmatmul.bf16.gmra.mxu3 %v2014_v59  ;;  %v2038_v41 = vor.u32 %v2284_v33, %v2037_v32 }
 0x14d   : > { %2201 = vmatmul.msk.bf16.gmra.mxu0 %vm980_vm2, %v2018_v60  ;;  %1492 = vst [vmem:[%s2701_s28 + $0x58] sm:$0xff] %v1429_v5  ;;  %v1523_v47 = vadd.f32 %v1522_v49, %v1429_v5  ;;  %v1561_v7 = vmul.f32 %v1429_v5, %v1429_v5 }
 0x14e   : > { %v1253_v8 = vpop.f32.mrf.mxu2 }
 0x14f   : > { %v1592_v24 = vadd.f32 %v1591_v52, %v1561_v7  ;;  %v1254_v6 = vadd.f32 %v1253_v8, %v1165_v20  ;;  %v1342_v9 = vpop.f32.mrf.mxu3 }
 0x150   : > { %v1166_v0 = vpop.f32.mrf.mxu1 }
 0x151   : > { %v1343_v10 = vadd.f32 %v1342_v9, %v1254_v6  ;;  %v1167_v61 = vadd.f32 %v1166_v0, %v2654_v3 }
 0x152   : > { %v1433_v11 = vpop.f32.mrf.mxu0 }
 0x153   : > { %v1432_v27 = vadd.f32 %v1431_v63, %v1343_v10 }
 0x155   : > { %1493 = vst [vmem:[%s2701_s28 + $0x60] sm:$0xff] %v1432_v27  ;;  %v1524_v31 = vadd.f32 %v1523_v47, %v1432_v27  ;;  %v1562_v30 = vmul.f32 %v1432_v27, %v1432_v27 }
 0x156   : > { %v1255_v34 = vpop.f32.mrf.mxu2 }
 0x157   : > { %v1593_v35 = vadd.f32 %v1592_v24, %v1562_v30  ;;  %v1256_v36 = vadd.f32 %v1255_v34, %v1167_v61  ;;  %v1344_v4 = vpop.f32.mrf.mxu3 }
 0x158   : > { %v1169_v49 = vpop.f32.mrf.mxu1 }
 0x159   : > { %v1345_v28 = vadd.f32 %v1344_v4, %v1256_v36  ;;  %v1170_v53 = vadd.f32 %v1169_v49, %v2670_v17 }
 0x15a   : > { %v1436_v50 = vpop.f32.mrf.mxu0 }
 0x15b   : > { %v1434_v51 = vadd.f32 %v1433_v11, %v1345_v28  ;;  %1208 = vmatmul.bf16.gmra.mxu1 %v2026_v39  ;;  %1297 = vmatmul.bf16.gmra.mxu2 %v2030_v40 }
 0x15c   : > { %1386 = vmatmul.bf16.gmra.mxu3 %v2034_v48 }
 0x15d   : > { %2202 = vmatmul.msk.bf16.gmra.mxu0 %vm980_vm2, %v2038_v41  ;;  %1494 = vst [vmem:[%s2701_s28 + $0x68] sm:$0xff] %v1434_v51  ;;  %v1525_v3 = vadd.f32 %v1524_v31, %v1434_v51  ;;  %v1563_v52 = vmul.f32 %v1434_v51, %v1434_v51 }
 0x15e   : > { %v1258_v54 = vpop.f32.mrf.mxu2 }
 0x15f   : > { %v1594_v55 = vadd.f32 %v1593_v35, %v1563_v52  ;;  %v1259_v56 = vadd.f32 %v1258_v54, %v1170_v53  ;;  %v1347_v21 = vpop.f32.mrf.mxu3 }
 0x160   : > { %v1171_v59 = vpop.f32.mrf.mxu1 }
 0x161   : > { %v1348_v60 = vadd.f32 %v1347_v21, %v1259_v56  ;;  %v1172_v7 = vadd.f32 %v1171_v59, %v2679_v29 }
 0x162   : > { %v1438_v62 = vpop.f32.mrf.mxu0 }
 0x163   : > { %v1437_v63 = vadd.f32 %v1436_v50, %v1348_v60 }
 0x165   : > { %1495 = vst [vmem:[%s2701_s28 + $0x70] sm:$0xff] %v1437_v63  ;;  %v1526_v5 = vadd.f32 %v1525_v3, %v1437_v63  ;;  %v1564_v47 = vmul.f32 %v1437_v63, %v1437_v63 }
 0x166   : > { %v1260_v20 = vpop.f32.mrf.mxu2 }
 0x167   : > { %v1595_v8 = vadd.f32 %v1594_v55, %v1564_v47  ;;  %v1261_v24 = vadd.f32 %v1260_v20, %v1172_v7  ;;  %v1349_v6 = vpop.f32.mrf.mxu3 }
 0x168   : > { %v1174_v9 = vpop.f32.mrf.mxu1 }
 0x169   : > { %v1350_v17 = vadd.f32 %v1349_v6, %v1261_v24  ;;  %v1175_v44 = vadd.f32 %v1174_v9, %v2600_v25 }
 0x16a   : > { %v1441_v0 = vpop.f32.mrf.mxu0 }
 0x16b   : > { %v1439_v10 = vadd.f32 %v1438_v62, %v1350_v17 }
 0x16d   : > { %1496 = vst [vmem:[%s2701_s28 + $0x78] sm:$0xff] %v1439_v10  ;;  %v1527_v11 = vadd.f32 %v1526_v5, %v1439_v10  ;;  %v1565_v27 = vmul.f32 %v1439_v10, %v1439_v10 }
 0x16e   : > { %v1263_v12 = vpop.f32.mrf.mxu2 }
 0x16f   : > { %v1596_v15 = vadd.f32 %v1595_v8, %v1565_v27  ;;  %v1264_v16 = vadd.f32 %v1263_v12, %v1175_v44  ;;  %v1352_v18 = vpop.f32.mrf.mxu3 }
 0x170   : > { %v1176_v19 = vpop.f32.mrf.mxu1 }
 0x171   : > { %v1353_v29 = vadd.f32 %v1352_v18, %v1264_v16  ;;  %v1177_v33 = vadd.f32 %v1176_v19, %v2616_v37 }
 0x172   : > { %v1443_v31 = vpop.f32.mrf.mxu0 }
 0x173   : > { %v1442_v30 = vadd.f32 %v1441_v0, %v1353_v29 }
 0x175   : > { %1497 = vst [vmem:[%s2701_s28 + $0x80] sm:$0xff] %v1442_v30  ;;  %v1528_v61 = vadd.f32 %v1527_v11, %v1442_v30  ;;  %v1566_v32 = vmul.f32 %v1442_v30, %v1442_v30 }
 0x176   : > { %v1265_v34 = vpop.f32.mrf.mxu2 }
 0x177   : > { %v1597_v35 = vadd.f32 %v1596_v15, %v1566_v32  ;;  %v1266_v36 = vadd.f32 %v1265_v34, %v1177_v33  ;;  %v1354_v4 = vpop.f32.mrf.mxu3 }
 0x178   : > { %v1179_v39 = vpop.f32.mrf.mxu1 }
 0x179   : > { %v1355_v25 = vadd.f32 %v1354_v4, %v1266_v36  ;;  %v1180_v28 = vadd.f32 %v1179_v39, %v2625_v45 }
 0x17a   : > { %v1446_v40 = vpop.f32.mrf.mxu0 }
 0x17b   : > { %v1444_v49 = vadd.f32 %v1443_v31, %v1355_v25 }
 0x17d   : > { %1498 = vst [vmem:[%s2701_s28 + $0x88] sm:$0xff] %v1444_v49  ;;  %v1529_v48 = vadd.f32 %v1528_v61, %v1444_v49  ;;  %v1567_v41 = vmul.f32 %v1444_v49, %v1444_v49 }
 0x17e   : > { %v1268_v50 = vpop.f32.mrf.mxu2 }
 0x17f   : > { %v1598_v51 = vadd.f32 %v1597_v35, %v1567_v41  ;;  %v1269_v3 = vadd.f32 %v1268_v50, %v1180_v28  ;;  %v1357_v52 = vpop.f32.mrf.mxu3 }
 0x180   : > { %v1181_v53 = vpop.f32.mrf.mxu1 }
 0x181   : > { %v1358_v37 = vadd.f32 %v1357_v52, %v1269_v3  ;;  %v1182_v59 = vadd.f32 %v1181_v53, %v2641_v57 }
 0x182   : > { %v1448_v54 = vpop.f32.mrf.mxu0 }
 0x183   : > { %v1447_v55 = vadd.f32 %v1446_v40, %v1358_v37 }
 0x185   : > { %1499 = vst [vmem:[%s2701_s28 + $0x90] sm:$0xff] %v1447_v55  ;;  %v1530_v56 = vadd.f32 %v1529_v48, %v1447_v55  ;;  %v1568_v21 = vmul.f32 %v1447_v55, %v1447_v55 }
 0x186   : > { %v1270_v60 = vpop.f32.mrf.mxu2 }
 0x187   : > { %v1599_v62 = vadd.f32 %v1598_v51, %v1568_v21  ;;  %v1271_v63 = vadd.f32 %v1270_v60, %v1182_v59  ;;  %v1359_v5 = vpop.f32.mrf.mxu3 }
 0x188   : > { %v1184_v47 = vpop.f32.mrf.mxu1 }
 0x189   : > { %v1360_v45 = vadd.f32 %v1359_v5, %v1271_v63  ;;  %v1185_v6 = vadd.f32 %v1184_v47, %v2650_v1 }
 0x18a   : > { %v1451_v7 = vpop.f32.mrf.mxu0 }
 0x18b   : > { %v1449_v20 = vadd.f32 %v1448_v54, %v1360_v45 }
 0x18d   : > { %1500 = vst [vmem:[%s2701_s28 + $0x98] sm:$0xff] %v1449_v20  ;;  %v1531_v8 = vadd.f32 %v1530_v56, %v1449_v20  ;;  %v1569_v24 = vmul.f32 %v1449_v20, %v1449_v20 }
 0x18e   : > { %v1273_v9 = vpop.f32.mrf.mxu2 }
 0x18f   : > { %v1600_v17 = vadd.f32 %v1599_v62, %v1569_v24  ;;  %v1274_v0 = vadd.f32 %v1273_v9, %v1185_v6  ;;  %v1362_v10 = vpop.f32.mrf.mxu3 }
 0x190   : > { %v1186_v11 = vpop.f32.mrf.mxu1 }
 0x191   : > { %v1363_v57 = vadd.f32 %v1362_v10, %v1274_v0  ;;  %v1187_v16 = vadd.f32 %v1186_v11, %v2666_v13 }
 0x192   : > { %v1453_v27 = vpop.f32.mrf.mxu0 }
 0x193   : > { %v1452_v44 = vadd.f32 %v1451_v7, %v1363_v57 }
 0x195   : > { %1501 = vst [vmem:[%s2701_s28 + $0xa0] sm:$0xff] %v1452_v44  ;;  %v2807_v12 = vadd.f32 %v1531_v8, %v1452_v44  ;;  %v1570_v15 = vmul.f32 %v1452_v44, %v1452_v44 }
 0x196   : > { %v1275_v18 = vpop.f32.mrf.mxu2 }
 0x197   : > { %v2810_v19 = vadd.f32 %v1600_v17, %v1570_v15  ;;  %v1276_v1 = vadd.f32 %v1275_v18, %v1187_v16  ;;  %v1364_v29 = vpop.f32.mrf.mxu3 }
 0x198   : > { %v1189_v31 = vpop.f32.mrf.mxu1 }
 0x199   : > { %v1365_v30 = vadd.f32 %v1364_v29, %v1276_v1  ;;  %v1190_v33 = vadd.f32 %v1189_v31, %v2675_v22 }
 0x19a   : > { %v1456_v61 = vpop.f32.mrf.mxu0 }
 0x19b   : > { %v2812_v32 = vadd.f32 %v1453_v27, %v1365_v30 }
 0x19d   : > { %1502 = vst [vmem:[%s2701_s28 + $0xa8] sm:$0xff] %v2812_v32 }
 0x19e   : > { %v1278_v34 = vpop.f32.mrf.mxu2 }
 0x19f   : > { %v1279_v35 = vadd.f32 %v1278_v34, %v1190_v33  ;;  %v1367_v36 = vpop.f32.mrf.mxu3  ;;  %v1571_v34 = vmul.f32 %v2812_v32, %v2812_v32 }
 0x1a0   : > { %v1191_v13 = vpop.f32.mrf.mxu1 }
 0x1a1   : > { %v1368_v4 = vadd.f32 %v1367_v36, %v1279_v35  ;;  %v1192_v40 = vadd.f32 %v1191_v13, %v2691_v42 }
 0x1a2   : > { %v1458_v39 = vpop.f32.mrf.mxu0 }
 0x1a3   : > { %v2817_v25 = vadd.f32 %v1456_v61, %v1368_v4 }
 0x1a5   : > { %1503 = vst [vmem:[%s2701_s28 + $0xb0] sm:$0xff] %v2817_v25  ;;  %v1572_v4 = vmul.f32 %v2817_v25, %v2817_v25 }
 0x1a6   : > { %v1280_v49 = vpop.f32.mrf.mxu2 }
 0x1a7   : > { %v1281_v48 = vadd.f32 %v1280_v49, %v1192_v40  ;;  %v1369_v41 = vpop.f32.mrf.mxu3  ;;  %v1602_v40 = vadd.f32 %v2810_v19, %v1571_v34 }
 0x1a8   : > { %v1194_v28 = vpop.f32.mrf.mxu1 }
 0x1a9   : > { %v1370_v50 = vadd.f32 %v1369_v41, %v1281_v48  ;;  %v1195_v3 = vadd.f32 %v1194_v28, %v2602_v26  ;;  %v1603_v41 = vadd.f32 %v1602_v40, %v1572_v4 }
 0x1aa   : > { %v1461_v22 = vpop.f32.mrf.mxu0 }
 0x1ab   : > { %v1459_v51 = vadd.f32 %v1458_v39, %v1370_v50 }
 0x1ad   : > { %1504 = vst [vmem:[%s2701_s28 + $0xb8] sm:$0xff] %v1459_v51  ;;  %v1573_v49 = vmul.f32 %v1459_v51, %v1459_v51 }
 0x1ae   : > { %v1283_v52 = vpop.f32.mrf.mxu2 }
 0x1af   : > { %v1284_v53 = vadd.f32 %v1283_v52, %v1195_v3  ;;  %v1372_v37 = vpop.f32.mrf.mxu3  ;;  %v1604_v52 = vadd.f32 %v1603_v41, %v1573_v49 }
 0x1b0   : > { %v1196_v54 = vpop.f32.mrf.mxu1 }
 0x1b1   : > { %v1373_v55 = vadd.f32 %v1372_v37, %v1284_v53  ;;  %v1197_v42 = vadd.f32 %v1196_v54, %v2618_v38 }
 0x1b2   : > { %v1463_v56 = vpop.f32.mrf.mxu0 }
 0x1b3   : > { %v1462_v21 = vadd.f32 %v1461_v22, %v1373_v55 }
 0x1b5   : > { %1505 = vst [vmem:[%s2701_s28 + $0xc0] sm:$0xff] %v1462_v21  ;;  %v1574_v50 = vmul.f32 %v1462_v21, %v1462_v21 }
 0x1b6   : > { %v1285_v59 = vpop.f32.mrf.mxu2 }
 0x1b7   : > { %v1286_v60 = vadd.f32 %v1285_v59, %v1197_v42  ;;  %v1374_v62 = vpop.f32.mrf.mxu3  ;;  %v1605_v55 = vadd.f32 %v1604_v52, %v1574_v50 }
 0x1b8   : > { %v1199_v63 = vpop.f32.mrf.mxu1 }
 0x1b9   : > { %v1375_v5 = vadd.f32 %v1374_v62, %v1286_v60  ;;  %v1200_v26 = vadd.f32 %v1199_v63, %v2627_v46 }
 0x1ba   : > { %v1466_v47 = vpop.f32.mrf.mxu0 }
 0x1bb   : > { %v1464_v45 = vadd.f32 %v1463_v56, %v1375_v5 }
 0x1bd   : > { %1506 = vst [vmem:[%s2701_s28 + $0xc8] sm:$0xff] %v1464_v45 }
 0x1be   : > { %v1288_v7 = vpop.f32.mrf.mxu2 }
 0x1bf   : > { %v1289_v20 = vadd.f32 %v1288_v7, %v1200_v26  ;;  %v1377_v8 = vpop.f32.mrf.mxu3 }
 0x1c0   : > { %v1201_v24 = vpop.f32.mrf.mxu1 }
 0x1c1   : > { %v1378_v6 = vadd.f32 %v1377_v8, %v1289_v20  ;;  %v1202_v38 = vadd.f32 %v1201_v24, %v2643_v58 }
 0x1c2   : > { %v1468_v9 = vpop.f32.mrf.mxu0 }
 0x1c3   : > { %v1467_v17 = vadd.f32 %v1466_v47, %v1378_v6 }
 0x1c5   : > { %1507 = vst [vmem:[%s2701_s28 + $0xd0] sm:$0xff] %v1467_v17  ;;  %v1576_v56 = vmul.f32 %v1467_v17, %v1467_v17 }
 0x1c6   : > { %v1290_v0 = vpop.f32.mrf.mxu2 }
 0x1c7   : > { %v1291_v10 = vadd.f32 %v1290_v0, %v1202_v38  ;;  %v1379_v11 = vpop.f32.mrf.mxu3 }
 0x1c8   : > { %v1204_v57 = vpop.f32.mrf.mxu1 }
 0x1c9   : > { %v1380_v27 = vadd.f32 %v1379_v11, %v1291_v10  ;;  %v1205_v46 = vadd.f32 %v1204_v57, %v2652_v2  ;;  %v1533_v2 = vadd.f32 %v2807_v12, %v2812_v32  ;;  %v1575_v12 = vmul.f32 %v1464_v45, %v1464_v45 }
 0x1ca   : > { %v1471_v15 = vpop.f32.mrf.mxu0 }
 0x1cb   : > { %v1469_v44 = vadd.f32 %v1468_v9, %v1380_v27  ;;  %v1606_v59 = vadd.f32 %v1605_v55, %v1575_v12 }
 0x1cd   : > { %1508 = vst [vmem:[%s2701_s28 + $0xd8] sm:$0xff] %v1469_v44  ;;  %v1607_v63 = vadd.f32 %v1606_v59, %v1576_v56 }
 0x1ce   : > { %v1293_v16 = vpop.f32.mrf.mxu2 }
 0x1cf   : > { %v1294_v18 = vadd.f32 %v1293_v16, %v1205_v46  ;;  %v1382_v1 = vpop.f32.mrf.mxu3 }
 0x1d0   : > { %v1206_v29 = vpop.f32.mrf.mxu1 }
 0x1d1   : > { %v1383_v31 = vadd.f32 %v1382_v1, %v1294_v18  ;;  %v1207_v58 = vadd.f32 %v1206_v29, %v2668_v14  ;;  %v1534_v14 = vadd.f32 %v1533_v2, %v2817_v25 }
 0x1d2   : > { %v1473_v61 = vpop.f32.mrf.mxu0 }
 0x1d3   : > { %v1472_v30 = vadd.f32 %v1471_v15, %v1383_v31  ;;  %v1535_v28 = vadd.f32 %v1534_v14, %v1459_v51  ;;  %v1577_v51 = vmul.f32 %v1469_v44, %v1469_v44 }
 0x1d5   : > { %1509 = vst [vmem:[%s2701_s28 + $0xe0] sm:$0xff] %v1472_v30  ;;  %v1536_v53 = vadd.f32 %v1535_v28, %v1462_v21  ;;  %v1608_v26 = vadd.f32 %v1607_v63, %v1577_v51 }
 0x1d6   : > { %v1295_v33 = vpop.f32.mrf.mxu2 }
 0x1d7   : > { %v1296_v35 = vadd.f32 %v1295_v33, %v1207_v58  ;;  %v1384_v36 = vpop.f32.mrf.mxu3  ;;  %v1537_v19 = vadd.f32 %v1536_v53, %v1464_v45 }
 0x1d8   : > { %v1209_v13 = vpop.f32.mrf.mxu1 }
 0x1d9   : > { %v1385_v39 = vadd.f32 %v1384_v36, %v1296_v35  ;;  %v1210_v22 = vadd.f32 %v1209_v13, %v2677_v23  ;;  %v1538_v60 = vadd.f32 %v1537_v19, %v1467_v17  ;;  %v1578_v23 = vmul.f32 %v1472_v30, %v1472_v30 }
 0x1da   : > { %v1476_v54 = vpop.f32.mrf.mxu0 }
 0x1db   : > { %v1474_v48 = vadd.f32 %v1473_v61, %v1385_v39  ;;  %v1539_v5 = vadd.f32 %v1538_v60, %v1469_v44  ;;  %v1609_v24 = vadd.f32 %v1608_v26, %v1578_v23 }
 0x1dd   : > { %1510 = vst [vmem:[%s2701_s28 + $0xe8] sm:$0xff] %v1474_v48  ;;  %v1540_v7 = vadd.f32 %v1539_v5, %v1472_v30  ;;  %v1579_v20 = vmul.f32 %v1474_v48, %v1474_v48 }
 0x1de   : > { %v1298_v3 = vpop.f32.mrf.mxu2 }
 0x1df   : > { %v1299_v32 = vadd.f32 %v1298_v3, %v1210_v22  ;;  %v1387_v37 = vpop.f32.mrf.mxu3  ;;  %v1541_v6 = vadd.f32 %v1540_v7, %v1474_v48  ;;  %v1610_v0 = vadd.f32 %v1609_v24, %v1579_v20 }
 0x1e0   : > { %v1211_v42 = vpop.f32.mrf.mxu1 }
 0x1e1   : > { %v1388_v25 = vadd.f32 %v1387_v37, %v1299_v32  ;;  %v1212_v21 = vadd.f32 %v1211_v42, %v2693_v43 }
 0x1e2   : > { %v1478_v38 = vpop.f32.mrf.mxu0 }
 0x1e3   : > { %v1477_v62 = vadd.f32 %v1476_v54, %v1388_v25 }
 0x1e5   : > { %1511 = vst [vmem:[%s2701_s28 + $0xf0] sm:$0xff] %v1477_v62  ;;  %v1580_v9 = vmul.f32 %v1477_v62, %v1477_v62  ;;  %v1542_v10 = vadd.f32 %v1541_v6, %v1477_v62 }
 0x1e6   : > { %v1300_v47 = vpop.f32.mrf.mxu2 }
 0x1e7   : > { %v1301_v8 = vadd.f32 %v1300_v47, %v1212_v21  ;;  %v1389_v45 = vpop.f32.mrf.mxu3  ;;  %v1611_v57 = vadd.f32 %v1610_v0, %v1580_v9 }
 0x1e9   : > { %v1390_v17 = vadd.f32 %v1389_v45, %v1301_v8 }
 0x1eb   : > { %v1479_v11 = vadd.f32 %v1478_v38, %v1390_v17 }
 0x1ed   : > { %1512 = vst [vmem:[%s2701_s28 + $0xf8] sm:$0xff] %v1479_v11  ;;  %v1543_v43 = vadd.f32 %v1542_v10, %v1479_v11  ;;  %v1581_v27 = vmul.f32 %v1479_v11, %v1479_v11 }
 0x1ef   : > { %v1544_v44 = vrot.slane %v1543_v43, 4  ;;  %v1612_v15 = vadd.f32 %v1611_v57, %v1581_v27 }
 0x1f1   : > { %v1545_v46 = vadd.f32 %v1544_v44, %v1543_v43  ;;  %v1613_v16 = vrot.slane %v1612_v15, 4 }
 0x1f3   : > { %v1546_v18 = vrot.slane %v1545_v46, 2  ;;  %v1614_v1 = vadd.f32 %v1613_v16, %v1612_v15 }
 0x1f5   : > { %v1547_v29 = vadd.f32 %v1546_v18, %v1545_v46  ;;  %v1615_v31 = vrot.slane %v1614_v1, 2 }
 0x1f7   : > { %v1548_v30 = vrot.slane %v1547_v29, 1  ;;  %v1616_v58 = vadd.f32 %v1615_v31, %v1614_v1 }
 0x1f9   : > { %v1617_v61 = vrot.slane %v1616_v58, 1  ;;  %v1549_v33 = vadd.f32 %v1548_v30, %v1547_v29 }
 0x1fb   : > { %v1618_v34 = vadd.f32 %v1617_v61, %v1616_v58 }
 0x1fd   : > { %v1620_v35 = vsel %vm1619_vm3, %v1549_v33, %v1618_v34 }
 0x1fe   : > { %1621 = vst [vmem:[%s187_s30] sm:$0x3] %v1620_v35 }
 0x1ff PF: > { %s14_s12 = sadd.s32 1, %s2362_s12  }
 0x200   : > { %p11_p5 = scmp.ge.s32.totalorder %s14_s12, 4  }
 0x202   :  { %13 = sbr.rel (!%p11_p5) target bundleno = 1 (0x1), region = 70 }

// kernel: cnn_model_forward.23
= control target key start
LH: loop header
LB: loop body
LE: loop exit
PB: predicated region body
PF: predicated region fallthrough
CT: control target
= control target key end

     0   :  { %s1447_s12 = smov 0   ;;  %s1755_s0 = inlined_call_operand.vmem [shape: bf16[512,288], index: 0, kind: input, shape index: {}]   ;;  %s1756_s1 = inlined_call_operand.vmem [shape: bf16[288,128], index: 1, kind: input, shape index: {}]   ;;  %s1757_s2 = inlined_call_operand.vmem [shape: f32[1,128], index: 2, kind: input, shape index: {}]   ;;  %s1758_s3 = inlined_call_operand.vmem [shape: f32[512,128], index: 3, kind: output, shape index: {}]  }
   0x1 LB: > { %s1034_s13 = sadd.s32 4294967295, %s1425_s12   ;;  %p1038_p0 = scmp.ge.s32.totalorder %s1425_s12, 1  ;;  %s1425_s12 = sphi %s1447_s12, %s13_s12  }
   0x2   : > { %p139_p1 = scmp.lt.s32.totalorder %s1425_s12, 3 }
   0x4   : > { %p140_p2 = pnand %p1038_p0, %p139_p1 }
   0x5   : > { %s1039_s20 = sshll.u32 (!%p140_p2), %s1034_s13, 5 }
   0x6   : > { %143 = sbr.rel (%p140_p2) target bundleno = 372 (0x174), region = 32  ;;  %p165_p3 = scmp.lt.s32.totalorder (!%p140_p2), %s1039_s20, 63 }
   0xb   : > { %v1380_v0 = vld [vmem:[%s1756_s1 + $0x38] sm:$0xff]  ;;  %v1461_v1 = vld [vmem:[%s1756_s1 + $0x88] sm:$0xff]  ;;  %v1379_v3 = vld [vmem:[%s1756_s1 + $0x30] sm:$0xff]  ;;  %s1760_s20 = smov (!%p165_p3, %s1039_s20), 63  ;;  %vm630_vm0 = vcmask 261120  }
   0xc   : > { %v1466_v2 = vld [vmem:[%s1756_s1 + $0x78] sm:$0xff]  ;;  %679 = vmatpush.bf16.msra.mxu0 %v1380_v0  ;;  %1391 = vmatpush.bf16.msra.mxu3 %v1380_v0  ;;  %v1476_v4 = vld [vmem:[%s1756_s1 + $0x80] sm:$0xff]  ;;  %v1387_v5 = vld [vmem:[%s1756_s1 + $0x70] sm:$0xff]  ;;  %s1409_s27 = smul.u32 12, %s1760_s20  ;;  %s1042_s6 = sshll.u32 %s1760_s20, 3 }
   0xd   : > { %863 = vmatpush.bf16.msra.mxu2 %v1461_v1  ;;  %768 = vmatpush.bf16.msra.mxu1 %v1466_v2  ;;  %v1378_v6 = vld [vmem:[%s1756_s1 + $0x28] sm:$0xff]  ;;  %v1377_v11 = vld [vmem:[%s1756_s1 + $0x20] sm:$0xff]  ;;  %v1376_v13 = vld [vmem:[%s1756_s1 + $0x18] sm:$0xff]  ;;  %s1624_s9 = scalar_lea.vmem %s1758_s3, %s1042_s6 }
   0xe   : > { %s1491_s5 = scalar_lea.vmem %s1755_s0, %s1409_s27  ;;  %v1386_v7 = vld [vmem:[%s1756_s1 + $0x68] sm:$0xff]  ;;  %v1385_v12 = vld [vmem:[%s1756_s1 + $0x60] sm:$0xff]  ;;  %v1384_v14 = vld [vmem:[%s1756_s1 + $0x58] sm:$0xff] }
   0xf   : > { %v1053_v8 = vld [vmem:[%s1491_s5 + $0x8] sm:$0xf]  ;;  %v1327_v9 = vld [vmem:[%s1491_s5 + $0x10] sm:$0xf0]  ;;  %v1065_v17 = vld [vmem:[%s1491_s5 + $0x20] sm:$0xf] }
  0x10   : > { %680 = vmatpush.bf16.msra.mxu0 %v1379_v3  ;;  %1392 = vmatpush.bf16.msra.mxu3 %v1379_v3  ;;  %v1054_v10 = vor.u32 %v1327_v9, %v1053_v8  ;;  %v1375_v15 = vld [vmem:[%s1756_s1 + $0x10] sm:$0xff]  ;;  %v1330_v18 = vld [vmem:[%s1491_s5 + $0x28] sm:$0xf0]  ;;  %v1373_v22 = vld [vmem:[%s1756_s1] sm:$0xff] }
  0x11   : > { %864 = vmatpush.bf16.msra.mxu2 %v1476_v4  ;;  %769 = vmatpush.bf16.msra.mxu1 %v1387_v5  ;;  %v1383_v16 = vld [vmem:[%s1756_s1 + $0x50] sm:$0xff]  ;;  %v1374_v19 = vld [vmem:[%s1756_s1 + $0x8] sm:$0xff]  ;;  %v1066_v20 = vor.u32 %v1330_v18, %v1065_v17  ;;  %v1045_v23 = vld [vmem:[%s1491_s5] sm:$0xf] }
  0x12   : > { %v1382_v21 = vld [vmem:[%s1756_s1 + $0x48] sm:$0xff]  ;;  %v1189_v25 = vld [vmem:[%s1491_s5 + $0x120] sm:$0xf]  ;;  %v1325_v28 = vld [vmem:[%s1491_s5 + $0x4] sm:$0xf] }
  0x13   : > { %v1326_v24 = vld [vmem:[%s1491_s5 + $0x8] sm:$0xf0]  ;;  %v1381_v27 = vld [vmem:[%s1756_s1 + $0x40] sm:$0xff]  ;;  %v1047_v29 = vld [vmem:[%s1491_s5 + $0xc] sm:$0xf0] }
  0x14   : > { %681 = vmatpush.bf16.msra.mxu0 %v1378_v6  ;;  %1393 = vmatpush.bf16.msra.mxu3 %v1378_v6  ;;  %v1362_v26 = vld [vmem:[%s1491_s5 + $0x128] sm:$0xf0]  ;;  %v1046_v30 = vor.u32 %v1326_v24, %v1045_v23  ;;  %v1050_v32 = vor.u32 %v1325_v28, %v1047_v29  ;;  %v1077_v33 = vld [vmem:[%s1491_s5 + $0x38] sm:$0xf]  ;;  %v1333_v34 = vld [vmem:[%s1491_s5 + $0x40] sm:$0xf0] }
  0x15   : > { %1307 = vmatmul.msk.bf16.vlgmr.msra.gmra.mxu2 %vm630_vm0, %v1054_v10  ;;  %770 = vmatpush.bf16.msra.mxu1 %v1386_v7  ;;  %v1190_v31 = vor.u32 %v1362_v26, %v1189_v25  ;;  %v1078_v35 = vor.u32 %v1333_v34, %v1077_v33  ;;  %v1057_v36 = vld [vmem:[%s1491_s5 + $0x18] sm:$0xf]  ;;  %v1329_v37 = vld [vmem:[%s1491_s5 + $0x20] sm:$0xf0]  ;;  %v1328_v40 = vld [vmem:[%s1491_s5 + $0x1c] sm:$0xf] }
  0x16   : > { %v1201_v38 = vld [vmem:[%s1491_s5 + $0x138] sm:$0xf]  ;;  %v1365_v39 = vld [vmem:[%s1491_s5 + $0x140] sm:$0xf0]  ;;  %v1059_v41 = vld [vmem:[%s1491_s5 + $0x24] sm:$0xf0]  ;;  %v1058_v42 = vor.u32 %v1329_v37, %v1057_v36 }
  0x17   : > { %v1202_v43 = vor.u32 %v1365_v39, %v1201_v38  ;;  %v1062_v44 = vor.u32 %v1328_v40, %v1059_v41  ;;  %v1089_v45 = vld [vmem:[%s1491_s5 + $0x50] sm:$0xf]  ;;  %v1336_v46 = vld [vmem:[%s1491_s5 + $0x58] sm:$0xf0]  ;;  %v1331_v52 = vld [vmem:[%s1491_s5 + $0x34] sm:$0xf] }
  0x18   : > { %682 = vmatpush.bf16.msra.mxu0 %v1377_v11  ;;  %1394 = vmatpush.bf16.msra.mxu3 %v1377_v11  ;;  %v1090_v47 = vor.u32 %v1336_v46, %v1089_v45  ;;  %v1069_v48 = vld [vmem:[%s1491_s5 + $0x30] sm:$0xf]  ;;  %v1332_v49 = vld [vmem:[%s1491_s5 + $0x38] sm:$0xf0]  ;;  %v1071_v53 = vld [vmem:[%s1491_s5 + $0x3c] sm:$0xf0] }
  0x19   : > { %771 = vmatpush.bf16.msra.mxu1 %v1385_v12  ;;  %v1213_v50 = vld [vmem:[%s1491_s5 + $0x150] sm:$0xf]  ;;  %v1368_v51 = vld [vmem:[%s1491_s5 + $0x158] sm:$0xf0]  ;;  %v1070_v54 = vor.u32 %v1332_v49, %v1069_v48  ;;  %v1074_v56 = vor.u32 %v1331_v52, %v1071_v53  ;;  %v1101_v57 = vld [vmem:[%s1491_s5 + $0x68] sm:$0xf] }
  0x1a   : > { %v1214_v55 = vor.u32 %v1368_v51, %v1213_v50  ;;  %v1339_v58 = vld [vmem:[%s1491_s5 + $0x70] sm:$0xf0]  ;;  %v1081_v60 = vld [vmem:[%s1491_s5 + $0x48] sm:$0xf]  ;;  %v1334_v0 = vld [vmem:[%s1491_s5 + $0x4c] sm:$0xf] }
  0x1b   : > { %v1102_v59 = vor.u32 %v1339_v58, %v1101_v57  ;;  %v1335_v61 = vld [vmem:[%s1491_s5 + $0x50] sm:$0xf0]  ;;  %v1225_v62 = vld [vmem:[%s1491_s5 + $0x168] sm:$0xf]  ;;  %v1342_v6 = vld [vmem:[%s1491_s5 + $0x88] sm:$0xf0] }
  0x1c   : > { %683 = vmatpush.bf16.msra.mxu0 %v1376_v13  ;;  %1395 = vmatpush.bf16.msra.mxu3 %v1376_v13  ;;  %v1371_v63 = vld [vmem:[%s1491_s5 + $0x170] sm:$0xf0]  ;;  %v1093_v8 = vld [vmem:[%s1491_s5 + $0x60] sm:$0xf]  ;;  %v1338_v9 = vld [vmem:[%s1491_s5 + $0x68] sm:$0xf0] }
  0x1d   : > { %772 = vmatpush.bf16.msra.mxu1 %v1384_v14  ;;  %v1226_v3 = vor.u32 %v1371_v63, %v1225_v62  ;;  %v1361_v10 = vld [vmem:[%s1491_s5 + $0x124] sm:$0xf]  ;;  %v1191_v11 = vld [vmem:[%s1491_s5 + $0x12c] sm:$0xf0]  ;;  %v1125_v17 = vld [vmem:[%s1491_s5 + $0x98] sm:$0xf] }
  0x1e   : > { %v1095_v13 = vld [vmem:[%s1491_s5 + $0x6c] sm:$0xf0]  ;;  %v1345_v18 = vld [vmem:[%s1491_s5 + $0xa0] sm:$0xf0]  ;;  %v1203_v23 = vld [vmem:[%s1491_s5 + $0x144] sm:$0xf0] }
  0x1f   : > { %v1340_v24 = vld [vmem:[%s1491_s5 + $0x7c] sm:$0xf]  ;;  %v1107_v25 = vld [vmem:[%s1491_s5 + $0x84] sm:$0xf0]  ;;  %v1137_v29 = vld [vmem:[%s1491_s5 + $0xb0] sm:$0xf] }
  0x20   : > { %684 = vmatpush.bf16.msra.mxu0 %v1375_v15  ;;  %1396 = vmatpush.bf16.msra.mxu3 %v1375_v15  ;;  %v1194_v15 = vor.u32 %v1361_v10, %v1191_v11  ;;  %v1110_v28 = vor.u32 %v1340_v24, %v1107_v25  ;;  %v1344_v33 = vld [vmem:[%s1491_s5 + $0x98] sm:$0xf0]  ;;  %v1367_v34 = vld [vmem:[%s1491_s5 + $0x154] sm:$0xf]  ;;  %v1119_v37 = vld [vmem:[%s1491_s5 + $0x9c] sm:$0xf0] }
  0x21   : > { %773 = vmatpush.bf16.msra.mxu1 %v1383_v16  ;;  %v1343_v36 = vld [vmem:[%s1491_s5 + $0x94] sm:$0xf]  ;;  %v1149_v41 = vld [vmem:[%s1491_s5 + $0xc8] sm:$0xf]  ;;  %v1370_v46 = vld [vmem:[%s1491_s5 + $0x16c] sm:$0xf] }
  0x22   : > { %v1122_v40 = vor.u32 %v1343_v36, %v1119_v37  ;;  %v1347_v45 = vld [vmem:[%s1491_s5 + $0xb0] sm:$0xf0]  ;;  %v1346_v48 = vld [vmem:[%s1491_s5 + $0xac] sm:$0xf]  ;;  %v1131_v49 = vld [vmem:[%s1491_s5 + $0xb4] sm:$0xf0] }
  0x23   : > { %v1134_v53 = vor.u32 %v1346_v48, %v1131_v49  ;;  %v1141_v58 = vld [vmem:[%s1491_s5 + $0xc0] sm:$0xf]  ;;  %v1349_v63 = vld [vmem:[%s1491_s5 + $0xc4] sm:$0xf]  ;;  %v1173_v11 = vld [vmem:[%s1491_s5 + $0xf8] sm:$0xf] }
  0x24   : > { %685 = vmatpush.bf16.msra.mxu0 %v1374_v19  ;;  %1397 = vmatpush.bf16.msra.mxu3 %v1374_v19  ;;  %v1126_v19 = vor.u32 %v1345_v18, %v1125_v17  ;;  %v1614_v62 = vld [vmem:[%s1757_s2] ss:$0 sm:$0xff]  ;;  %v1352_v24 = vld [vmem:[%s1491_s5 + $0xdc] sm:$0xf]  ;;  %v1155_v25 = vld [vmem:[%s1491_s5 + $0xe4] sm:$0xf0] }
  0x25   : > { %1308 = vmatmul.msk.bf16.gmra.mxu2 %vm630_vm0, %v1066_v20  ;;  %774 = vmatpush.bf16.msra.mxu1 %v1382_v21  ;;  %v1105_v20 = vld [vmem:[%s1491_s5 + $0x78] sm:$0xf]  ;;  %v1185_v37 = vld [vmem:[%s1491_s5 + $0x110] sm:$0xf]  ;;  %v1355_v48 = vld [vmem:[%s1491_s5 + $0xf4] sm:$0xf] }
  0x26   : > { %v1167_v49 = vld [vmem:[%s1491_s5 + $0xfc] sm:$0xf0] }
  0x28   : > { %686 = vmatpush.bf16.msra.mxu0 %v1373_v22  ;;  %1398 = vmatpush.bf16.msra.mxu3 %v1373_v22  ;;  %v1364_v22 = vld [vmem:[%s1491_s5 + $0x13c] sm:$0xf] }
  0x29   : > { %775 = vmatpush.bf16.msra.mxu1 %v1381_v27 }
  0x2b   : > { %687 = vmatmul.bf16.vlgmr.msra.gmra.mxu0 %v1046_v30  ;;  %747 = vmatmul.bf16.vlgmr.msra.gmra.mxu3 %v1190_v31  ;;  %v1348_v30 = vld [vmem:[%s1491_s5 + $0xb8] sm:$0xf0] }
  0x2c   : > { %1399 = vmatpush.bf16.msrb.mxu3 %v1466_v2  ;;  %776 = vmatmul.bf16.vlgmr.msra.gmra.mxu1 %v1050_v32  ;;  %v1082_v2 = vor.u32 %v1335_v61, %v1081_v60  ;;  %v1138_v31 = vor.u32 %v1348_v30, %v1137_v29  ;;  %v1117_v32 = vld [vmem:[%s1491_s5 + $0x90] sm:$0xf]  ;;  %v1221_v60 = vld [vmem:[%s1491_s5 + $0x158] sm:$0xf]  ;;  %v1369_v61 = vld [vmem:[%s1491_s5 + $0x160] sm:$0xf0] }
  0x2d   : > { %v1118_v38 = vor.u32 %v1344_v33, %v1117_v32 }
  0x30   : > { %1400 = vmatpush.bf16.msrb.mxu3 %v1387_v5  ;;  %v1113_v5 = vld [vmem:[%s1491_s5 + $0x80] sm:$0xf] }
  0x34   : > { %1401 = vmatpush.bf16.msrb.mxu3 %v1386_v7  ;;  %v1114_v7 = vor.u32 %v1342_v6, %v1113_v5 }
  0x35   : > { %1309 = vmatmul.msk.bf16.gmra.mxu2 %vm630_vm0, %v1078_v35  ;;  %v1215_v35 = vld [vmem:[%s1491_s5 + $0x15c] sm:$0xf0] }
  0x36   : > { %v1218_v39 = vor.u32 %v1367_v34, %v1215_v35 }
  0x38   : > { %1402 = vmatpush.bf16.msrb.mxu3 %v1385_v12  ;;  %v1337_v12 = vld [vmem:[%s1491_s5 + $0x64] sm:$0xf] }
  0x3b   : > { %692 = vmatmul.bf16.gmra.mxu0 %v1058_v42  ;;  %752 = vmatmul.bf16.gmra.mxu3 %v1202_v43  ;;  %v1351_v42 = vld [vmem:[%s1491_s5 + $0xd0] sm:$0xf0] }
  0x3c   : > { %1403 = vmatpush.bf16.msrb.mxu3 %v1384_v14  ;;  %781 = vmatmul.bf16.gmra.mxu1 %v1062_v44  ;;  %v1094_v14 = vor.u32 %v1338_v9, %v1093_v8  ;;  %v1150_v43 = vor.u32 %v1351_v42, %v1149_v41  ;;  %v1129_v44 = vld [vmem:[%s1491_s5 + $0xa8] sm:$0xf] }
  0x3d   : > { %v1130_v50 = vor.u32 %v1347_v45, %v1129_v44  ;;  %v1165_v45 = vld [vmem:[%s1491_s5 + $0xf0] sm:$0xf] }
  0x40   : > { %1404 = vmatpush.bf16.msrb.mxu3 %v1383_v16  ;;  %v1098_v16 = vor.u32 %v1337_v12, %v1095_v13  ;;  %v1357_v12 = vld [vmem:[%s1491_s5 + $0x100] sm:$0xf0] }
  0x41   : > { %v1174_v17 = vor.u32 %v1357_v12, %v1173_v11 }
  0x44   : > { %1405 = vmatpush.bf16.msrb.mxu3 %v1382_v21  ;;  %v1341_v21 = vld [vmem:[%s1491_s5 + $0x80] sm:$0xf0] }
  0x45   : > { %1310 = vmatmul.msk.bf16.gmra.mxu2 %vm630_vm0, %v1090_v47  ;;  %v1106_v26 = vor.u32 %v1341_v21, %v1105_v20  ;;  %v1227_v47 = vld [vmem:[%s1491_s5 + $0x174] sm:$0xf0]  ;;  %v1353_v20 = vld [vmem:[%s1491_s5 + $0xe0] sm:$0xf0]  ;;  %v1233_v21 = vld [vmem:[%s1491_s5 + $0x170] sm:$0xf] }
  0x46   : > { %v1230_v51 = vor.u32 %v1370_v46, %v1227_v47  ;;  %v1356_v46 = vld [vmem:[%s1491_s5 + $0xf8] sm:$0xf0] }
  0x48   : > { %1406 = vmatpush.bf16.msrb.mxu3 %v1381_v27  ;;  %v1206_v27 = vor.u32 %v1364_v22, %v1203_v23  ;;  %v1372_v22 = vld [vmem:[%s1491_s5 + $0x178] sm:$0xf0] }
  0x4b   : > { %697 = vmatmul.bf16.gmra.mxu0 %v1070_v54  ;;  %757 = vmatmul.bf16.gmra.mxu3 %v1214_v55  ;;  %v1161_v54 = vld [vmem:[%s1491_s5 + $0xe0] sm:$0xf]  ;;  %v1354_v55 = vld [vmem:[%s1491_s5 + $0xe8] sm:$0xf0] }
  0x4c   : > { %1407 = vmatpush.bf16.msra.mxu3 %v1461_v1  ;;  %786 = vmatmul.bf16.gmra.mxu1 %v1074_v56  ;;  %v1083_v1 = vld [vmem:[%s1491_s5 + $0x54] sm:$0xf0]  ;;  %v1162_v57 = vor.u32 %v1354_v55, %v1161_v54  ;;  %v1170_v54 = vor.u32 %v1355_v48, %v1167_v49 }
  0x50   : > { %1408 = vmatpush.bf16.msra.mxu3 %v1476_v4  ;;  %v1086_v4 = vor.u32 %v1334_v0, %v1083_v1  ;;  %v1143_v0 = vld [vmem:[%s1491_s5 + $0xcc] sm:$0xf0] }
  0x51   : > { %v1146_v5 = vor.u32 %v1349_v63, %v1143_v0 }
  0x55   : > { %1311 = vmatmul.msk.bf16.gmra.mxu2 %vm630_vm0, %v1102_v59  ;;  %v1350_v59 = vld [vmem:[%s1491_s5 + $0xc8] sm:$0xf0] }
  0x56   : > { %v1142_v1 = vor.u32 %v1350_v59, %v1141_v58 }
  0x5b   : > { %702 = vmatmul.bf16.gmra.mxu0 %v1082_v2  ;;  %762 = vmatmul.bf16.gmra.mxu3 %v1226_v3  ;;  %v1222_v2 = vor.u32 %v1369_v61, %v1221_v60  ;;  %v1197_v60 = vld [vmem:[%s1491_s5 + $0x128] sm:$0xf]  ;;  %v1363_v61 = vld [vmem:[%s1491_s5 + $0x130] sm:$0xf0] }
  0x5c   : > { %791 = vmatmul.bf16.gmra.mxu1 %v1086_v4 }
  0x65   : > { %1312 = vmatmul.msk.bf16.gmra.mxu2 %vm630_vm0, %v1114_v7 }
  0x6b   : > { %707 = vmatmul.bf16.gmra.mxu0 %v1094_v14  ;;  %836 = vmatmul.bf16.vlgmr.msrb.gmra.mxu3 %v1194_v15 }
  0x6c   : > { %796 = vmatmul.bf16.gmra.mxu1 %v1098_v16 }
  0x75   : > { %1313 = vmatmul.msk.bf16.gmra.mxu2 %vm630_vm0, %v1126_v19  ;;  %v1153_v19 = vld [vmem:[%s1491_s5 + $0xd8] sm:$0xf] }
  0x7b   : > { %712 = vmatmul.bf16.gmra.mxu0 %v1106_v26  ;;  %841 = vmatmul.bf16.gmra.mxu3 %v1206_v27  ;;  %v1154_v27 = vor.u32 %v1353_v20, %v1153_v19 }
  0x7c   : > { %801 = vmatmul.bf16.gmra.mxu1 %v1110_v28  ;;  %v1234_v28 = vor.u32 %v1372_v22, %v1233_v21  ;;  %v1209_v21 = vld [vmem:[%s1491_s5 + $0x140] sm:$0xf]  ;;  %v1366_v22 = vld [vmem:[%s1491_s5 + $0x148] sm:$0xf0] }
  0x85   : > { %1314 = vmatmul.msk.bf16.gmra.mxu2 %vm630_vm0, %v1138_v31  ;;  %v1158_v31 = vor.u32 %v1352_v24, %v1155_v25 }
  0x8b   : > { %717 = vmatmul.bf16.gmra.mxu0 %v1118_v38  ;;  %846 = vmatmul.bf16.gmra.mxu3 %v1218_v39  ;;  %v1360_v38 = vld [vmem:[%s1491_s5 + $0x118] sm:$0xf0] }
  0x8c   : > { %806 = vmatmul.bf16.gmra.mxu1 %v1122_v40 }
  0x95   : > { %1315 = vmatmul.msk.bf16.gmra.mxu2 %vm630_vm0, %v1150_v43  ;;  %v1186_v43 = vor.u32 %v1360_v38, %v1185_v37 }
  0x98   : > { %v866_v52 = vpop.f32.mrf.mxu2 }
  0x9b   : > { %722 = vmatmul.bf16.gmra.mxu0 %v1130_v50  ;;  %851 = vmatmul.bf16.gmra.mxu3 %v1230_v51  ;;  %v1166_v51 = vor.u32 %v1356_v46, %v1165_v45 }
  0x9c   : > { %811 = vmatmul.bf16.gmra.mxu1 %v1134_v53 }
  0xa0   : > { %v868_v56 = vpop.f32.mrf.mxu2 }
  0xa5   : > { %1316 = vmatmul.msk.bf16.gmra.mxu2 %vm630_vm0, %v1162_v57 }
  0xa8   : > { %v871_v3 = vpop.f32.mrf.mxu2  ;;  %v688_v4 = vpop.f32.mrf.mxu0 }
  0xa9   : > { %v689_v6 = vadd.f32 %v1614_v62, %v688_v4  ;;  %v777_v7 = vpop.f32.mrf.mxu1 }
  0xab   : > { %v778_v8 = vadd.f32 %v777_v7, %v689_v6  ;;  %727 = vmatmul.bf16.gmra.mxu0 %v1142_v1  ;;  %1321 = vmatmul.msk.bf16.vlgmr.msra.gmra.mxu3 %vm630_vm0, %v1222_v2  ;;  %v1359_v6 = vld [vmem:[%s1491_s5 + $0x110] sm:$0xf0] }
  0xac   : > { %816 = vmatmul.bf16.gmra.mxu1 %v1146_v5  ;;  %v1177_v5 = vld [vmem:[%s1491_s5 + $0x108] sm:$0xf] }
  0xad   : > { %v867_v9 = vadd.f32 %v866_v52, %v778_v8  ;;  %v1358_v8 = vld [vmem:[%s1491_s5 + $0x10c] sm:$0xf]  ;;  %v1178_v12 = vor.u32 %v1359_v6, %v1177_v5 }
  0xae   : > { %v1626_v10 = vpop.f32.mrf.mxu3 }
  0xaf   : > { %946 = vst [vmem:[%s1624_s9] sm:$0xff] %v867_v9  ;;  %v1179_v9 = vld [vmem:[%s1491_s5 + $0x114] sm:$0xf0]  ;;  %v749_v38 = vadd.f32 %v1614_v62, %v1626_v10 }
  0xb0   : > { %v873_v13 = vpop.f32.mrf.mxu2  ;;  %v690_v14 = vpop.f32.mrf.mxu0 }
  0xb1   : > { %v691_v15 = vadd.f32 %v1614_v62, %v690_v14  ;;  %v779_v16 = vpop.f32.mrf.mxu1 }
  0xb3   : > { %v780_v18 = vadd.f32 %v779_v16, %v691_v15  ;;  %v1182_v15 = vor.u32 %v1358_v8, %v1179_v9 }
  0xb5   : > { %v869_v23 = vadd.f32 %v868_v56, %v780_v18  ;;  %1317 = vmatmul.msk.bf16.gmra.mxu2 %vm630_vm0, %v1174_v17 }
  0xb6   : > { %v1639_v26 = vpop.f32.mrf.mxu3 }
  0xb7   : > { %947 = vst [vmem:[%s1624_s9 + $0x8] sm:$0xff] %v869_v23 }
  0xb8   : > { %v876_v29 = vpop.f32.mrf.mxu2  ;;  %v693_v30 = vpop.f32.mrf.mxu0 }
  0xb9   : > { %v694_v32 = vadd.f32 %v1614_v62, %v693_v30  ;;  %v782_v33 = vpop.f32.mrf.mxu1 }
  0xbb   : > { %v783_v34 = vadd.f32 %v782_v33, %v694_v32  ;;  %732 = vmatmul.bf16.gmra.mxu0 %v1154_v27  ;;  %1322 = vmatmul.msk.bf16.gmra.mxu3 %vm630_vm0, %v1234_v28  ;;  %v1210_v28 = vor.u32 %v1366_v22, %v1209_v21 }
  0xbc   : > { %821 = vmatmul.bf16.gmra.mxu1 %v1158_v31 }
  0xbd   : > { %v872_v35 = vadd.f32 %v871_v3, %v783_v34  ;;  %v1198_v3 = vor.u32 %v1363_v61, %v1197_v60 }
  0xbe   : > { %v1644_v36 = vpop.f32.mrf.mxu3 }
  0xbf   : > { %948 = vst [vmem:[%s1624_s9 + $0x10] sm:$0xff] %v872_v35 }
  0xc0   : > { %v878_v39 = vpop.f32.mrf.mxu2  ;;  %v695_v40 = vpop.f32.mrf.mxu0 }
  0xc1   : > { %v696_v41 = vadd.f32 %v1614_v62, %v695_v40  ;;  %v784_v42 = vpop.f32.mrf.mxu1 }
  0xc3   : > { %v785_v44 = vadd.f32 %v784_v42, %v696_v41 }
  0xc5   : > { %v874_v47 = vadd.f32 %v873_v13, %v785_v44  ;;  %1318 = vmatmul.msk.bf16.gmra.mxu2 %vm630_vm0, %v1186_v43 }
  0xc6   : > { %v1655_v50 = vpop.f32.mrf.mxu3 }
  0xc7   : > { %949 = vst [vmem:[%s1624_s9 + $0x18] sm:$0xff] %v874_v47  ;;  %v751_v47 = vadd.f32 %v1614_v62, %v1639_v26 }
  0xc8   : > { %v881_v52 = vpop.f32.mrf.mxu2  ;;  %v698_v53 = vpop.f32.mrf.mxu0 }
  0xc9   : > { %v699_v55 = vadd.f32 %v1614_v62, %v698_v53  ;;  %v787_v56 = vpop.f32.mrf.mxu1 }
  0xcb   : > { %v788_v57 = vadd.f32 %v787_v56, %v699_v55  ;;  %737 = vmatmul.bf16.gmra.mxu0 %v1166_v51  ;;  %v754_v56 = vadd.f32 %v1614_v62, %v1644_v36 }
  0xcc   : > { %826 = vmatmul.bf16.gmra.mxu1 %v1170_v54 }
  0xcd   : > { %v877_v58 = vadd.f32 %v876_v29, %v788_v57 }
  0xce   : > { %v1659_v59 = vpop.f32.mrf.mxu3 }
  0xcf   : > { %950 = vst [vmem:[%s1624_s9 + $0x20] sm:$0xff] %v877_v58 }
  0xd0   : > { %v883_v63 = vpop.f32.mrf.mxu2  ;;  %v700_v0 = vpop.f32.mrf.mxu0 }
  0xd1   : > { %v701_v1 = vadd.f32 %v1614_v62, %v700_v0  ;;  %v789_v2 = vpop.f32.mrf.mxu1 }
  0xd3   : > { %v790_v4 = vadd.f32 %v789_v2, %v701_v1  ;;  %v756_v2 = vadd.f32 %v1614_v62, %v1655_v50 }
  0xd5   : > { %v879_v7 = vadd.f32 %v878_v39, %v790_v4  ;;  %1319 = vmatmul.msk.bf16.gmra.mxu2 %vm630_vm0, %v1198_v3 }
  0xd6   : > { %v1670_v11 = vpop.f32.mrf.mxu3 }
  0xd7   : > { %951 = vst [vmem:[%s1624_s9 + $0x28] sm:$0xff] %v879_v7 }
  0xd8   : > { %v886_v13 = vpop.f32.mrf.mxu2  ;;  %v703_v14 = vpop.f32.mrf.mxu0 }
  0xd9   : > { %v704_v16 = vadd.f32 %v1614_v62, %v703_v14  ;;  %v792_v17 = vpop.f32.mrf.mxu1 }
  0xdb   : > { %v793_v18 = vadd.f32 %v792_v17, %v704_v16  ;;  %742 = vmatmul.bf16.gmra.mxu0 %v1178_v12 }
  0xdc   : > { %831 = vmatmul.bf16.gmra.mxu1 %v1182_v15 }
  0xdd   : > { %v882_v19 = vadd.f32 %v881_v52, %v793_v18 }
  0xde   : > { %v1674_v20 = vpop.f32.mrf.mxu3 }
  0xdf   : > { %952 = vst [vmem:[%s1624_s9 + $0x30] sm:$0xff] %v882_v19 }
  0xe0   : > { %v888_v23 = vpop.f32.mrf.mxu2  ;;  %v705_v24 = vpop.f32.mrf.mxu0 }
  0xe1   : > { %v706_v25 = vadd.f32 %v1614_v62, %v705_v24  ;;  %v794_v27 = vpop.f32.mrf.mxu1 }
  0xe3   : > { %v795_v29 = vadd.f32 %v794_v27, %v706_v25 }
  0xe5   : > { %v884_v30 = vadd.f32 %v883_v63, %v795_v29  ;;  %1320 = vmatmul.msk.bf16.gmra.mxu2 %vm630_vm0, %v1210_v28 }
  0xe6   : > { %v1681_v31 = vpop.f32.mrf.mxu3 }
  0xe7   : > { %953 = vst [vmem:[%s1624_s9 + $0x38] sm:$0xff] %v884_v30 }
  0xe8   : > { %v891_v32 = vpop.f32.mrf.mxu2  ;;  %v708_v33 = vpop.f32.mrf.mxu0 }
  0xe9   : > { %v709_v34 = vadd.f32 %v1614_v62, %v708_v33  ;;  %v797_v35 = vpop.f32.mrf.mxu1 }
  0xeb   : > { %v798_v37 = vadd.f32 %v797_v35, %v709_v34 }
  0xed   : > { %v887_v39 = vadd.f32 %v886_v13, %v798_v37 }
  0xee   : > { %v837_v40 = vpop.f32.mrf.mxu3 }
  0xef   : > { %954 = vst [vmem:[%s1624_s9 + $0x40] sm:$0xff] %v887_v39  ;;  %v1688_v41 = vadd.f32 %v837_v40, %v749_v38 }
  0xf0   : > { %v893_v42 = vpop.f32.mrf.mxu2  ;;  %v710_v43 = vpop.f32.mrf.mxu0 }
  0xf1   : > { %v711_v44 = vadd.f32 %v1614_v62, %v710_v43  ;;  %v799_v45 = vpop.f32.mrf.mxu1  ;;  %v759_v43 = vadd.f32 %v1614_v62, %v1659_v59 }
  0xf3   : > { %v800_v46 = vadd.f32 %v799_v45, %v711_v44 }
  0xf5   : > { %v889_v48 = vadd.f32 %v888_v23, %v800_v46 }
  0xf6   : > { %v839_v49 = vpop.f32.mrf.mxu3 }
  0xf7   : > { %955 = vst [vmem:[%s1624_s9 + $0x48] sm:$0xff] %v889_v48  ;;  %v1694_v51 = vadd.f32 %v839_v49, %v751_v47 }
  0xf8   : > { %v896_v10 = vpop.f32.mrf.mxu2  ;;  %v713_v52 = vpop.f32.mrf.mxu0 }
  0xf9   : > { %v714_v53 = vadd.f32 %v1614_v62, %v713_v52  ;;  %v802_v54 = vpop.f32.mrf.mxu1 }
  0xfb   : > { %v803_v55 = vadd.f32 %v802_v54, %v714_v53  ;;  %v761_v54 = vadd.f32 %v1614_v62, %v1670_v11 }
  0xfd   : > { %v892_v57 = vadd.f32 %v891_v32, %v803_v55 }
  0xfe   : > { %v842_v58 = vpop.f32.mrf.mxu3 }
  0xff   : > { %956 = vst [vmem:[%s1624_s9 + $0x50] sm:$0xff] %v892_v57  ;;  %v1700_v60 = vadd.f32 %v842_v58, %v754_v56 }
 0x100   : > { %v898_v26 = vpop.f32.mrf.mxu2  ;;  %v715_v61 = vpop.f32.mrf.mxu0 }
 0x101   : > { %v716_v63 = vadd.f32 %v1614_v62, %v715_v61  ;;  %v804_v0 = vpop.f32.mrf.mxu1 }
 0x103   : > { %v805_v1 = vadd.f32 %v804_v0, %v716_v63 }
 0x105   : > { %v894_v3 = vadd.f32 %v893_v42, %v805_v1  ;;  %v764_v1 = vadd.f32 %v1614_v62, %v1674_v20 }
 0x106   : > { %v844_v4 = vpop.f32.mrf.mxu3 }
 0x107   : > { %957 = vst [vmem:[%s1624_s9 + $0x58] sm:$0xff] %v894_v3  ;;  %v1706_v5 = vadd.f32 %v844_v4, %v756_v2 }
 0x108   : > { %v901_v36 = vpop.f32.mrf.mxu2  ;;  %v718_v6 = vpop.f32.mrf.mxu0 }
 0x109   : > { %v719_v7 = vadd.f32 %v1614_v62, %v718_v6  ;;  %v807_v8 = vpop.f32.mrf.mxu1 }
 0x10b   : > { %v808_v9 = vadd.f32 %v807_v8, %v719_v7 }
 0x10d   : > { %v897_v12 = vadd.f32 %v896_v10, %v808_v9 }
 0x10e   : > { %v847_v13 = vpop.f32.mrf.mxu3 }
 0x10f   : > { %958 = vst [vmem:[%s1624_s9 + $0x60] sm:$0xff] %v897_v12  ;;  %v848_v45 = vadd.f32 %v847_v13, %v759_v43  ;;  %v766_v12 = vadd.f32 %v1614_v62, %v1681_v31 }
 0x110   : > { %v903_v14 = vpop.f32.mrf.mxu2  ;;  %v720_v15 = vpop.f32.mrf.mxu0 }
 0x111   : > { %v721_v50 = vadd.f32 %v1614_v62, %v720_v15  ;;  %v809_v16 = vpop.f32.mrf.mxu1 }
 0x113   : > { %v810_v17 = vadd.f32 %v809_v16, %v721_v50 }
 0x115   : > { %v899_v18 = vadd.f32 %v898_v26, %v810_v17 }
 0x116   : > { %v849_v19 = vpop.f32.mrf.mxu3 }
 0x117   : > { %959 = vst [vmem:[%s1624_s9 + $0x68] sm:$0xff] %v899_v18  ;;  %v850_v59 = vadd.f32 %v849_v19, %v761_v54 }
 0x118   : > { %v906_v21 = vpop.f32.mrf.mxu2  ;;  %v723_v22 = vpop.f32.mrf.mxu0 }
 0x119   : > { %v724_v23 = vadd.f32 %v1614_v62, %v723_v22  ;;  %v812_v24 = vpop.f32.mrf.mxu1 }
 0x11b   : > { %v813_v25 = vadd.f32 %v812_v24, %v724_v23 }
 0x11d   : > { %v902_v27 = vadd.f32 %v901_v36, %v813_v25 }
 0x11e   : > { %v852_v28 = vpop.f32.mrf.mxu3 }
 0x11f   : > { %960 = vst [vmem:[%s1624_s9 + $0x70] sm:$0xff] %v902_v27  ;;  %v853_v11 = vadd.f32 %v852_v28, %v764_v1 }
 0x120   : > { %v908_v29 = vpop.f32.mrf.mxu2  ;;  %v725_v30 = vpop.f32.mrf.mxu0 }
 0x121   : > { %v726_v32 = vadd.f32 %v1614_v62, %v725_v30  ;;  %v814_v33 = vpop.f32.mrf.mxu1 }
 0x123   : > { %v815_v34 = vadd.f32 %v814_v33, %v726_v32 }
 0x125   : > { %v904_v35 = vadd.f32 %v903_v14, %v815_v34 }
 0x126   : > { %v854_v37 = vpop.f32.mrf.mxu3 }
 0x127   : > { %961 = vst [vmem:[%s1624_s9 + $0x78] sm:$0xff] %v904_v35  ;;  %v855_v20 = vadd.f32 %v854_v37, %v766_v12 }
 0x128   : > { %v911_v38 = vpop.f32.mrf.mxu2  ;;  %v728_v39 = vpop.f32.mrf.mxu0 }
 0x129   : > { %v729_v40 = vadd.f32 %v1614_v62, %v728_v39  ;;  %v817_v42 = vpop.f32.mrf.mxu1 }
 0x12b   : > { %v818_v44 = vadd.f32 %v817_v42, %v729_v40 }
 0x12d   : > { %v907_v46 = vadd.f32 %v906_v21, %v818_v44 }
 0x12e   : > { %v936_v47 = vpop.f32.mrf.mxu3 }
 0x12f   : > { %962 = vst [vmem:[%s1624_s9 + $0x80] sm:$0xff] %v907_v46  ;;  %v937_v48 = vadd.f32 %v936_v47, %v848_v45 }
 0x130   : > { %v913_v49 = vpop.f32.mrf.mxu2  ;;  %v730_v10 = vpop.f32.mrf.mxu0 }
 0x131   : > { %974 = vst [vmem:[%s1624_s9 + $0xe0] sm:$0xff] %v937_v48  ;;  %v731_v52 = vadd.f32 %v1614_v62, %v730_v10  ;;  %v819_v53 = vpop.f32.mrf.mxu1 }
 0x133   : > { %v820_v55 = vadd.f32 %v819_v53, %v731_v52 }
 0x135   : > { %v909_v56 = vadd.f32 %v908_v29, %v820_v55 }
 0x136   : > { %v938_v57 = vpop.f32.mrf.mxu3 }
 0x137   : > { %963 = vst [vmem:[%s1624_s9 + $0x88] sm:$0xff] %v909_v56  ;;  %v939_v58 = vadd.f32 %v938_v57, %v850_v59 }
 0x138   : > { %v916_v26 = vpop.f32.mrf.mxu2  ;;  %v733_v61 = vpop.f32.mrf.mxu0 }
 0x139   : > { %975 = vst [vmem:[%s1624_s9 + $0xe8] sm:$0xff] %v939_v58  ;;  %v734_v63 = vadd.f32 %v1614_v62, %v733_v61  ;;  %v822_v0 = vpop.f32.mrf.mxu1 }
 0x13b   : > { %v823_v2 = vadd.f32 %v822_v0, %v734_v63 }
 0x13d   : > { %v912_v3 = vadd.f32 %v911_v38, %v823_v2 }
 0x13e   : > { %v941_v4 = vpop.f32.mrf.mxu3 }
 0x13f   : > { %964 = vst [vmem:[%s1624_s9 + $0x90] sm:$0xff] %v912_v3  ;;  %v942_v36 = vadd.f32 %v941_v4, %v853_v11 }
 0x140   : > { %v918_v6 = vpop.f32.mrf.mxu2  ;;  %v735_v7 = vpop.f32.mrf.mxu0 }
 0x141   : > { %976 = vst [vmem:[%s1624_s9 + $0xf0] sm:$0xff] %v942_v36  ;;  %v736_v8 = vadd.f32 %v1614_v62, %v735_v7  ;;  %v824_v9 = vpop.f32.mrf.mxu1 }
 0x143   : > { %v825_v13 = vadd.f32 %v824_v9, %v736_v8 }
 0x145   : > { %v914_v14 = vadd.f32 %v913_v49, %v825_v13 }
 0x146   : > { %v943_v15 = vpop.f32.mrf.mxu3 }
 0x147   : > { %965 = vst [vmem:[%s1624_s9 + $0x98] sm:$0xff] %v914_v14  ;;  %v944_v50 = vadd.f32 %v943_v15, %v855_v20 }
 0x148   : > { %v921_v16 = vpop.f32.mrf.mxu2  ;;  %v738_v17 = vpop.f32.mrf.mxu0 }
 0x149   : > { %977 = vst [vmem:[%s1624_s9 + $0xf8] sm:$0xff] %v944_v50  ;;  %v739_v18 = vadd.f32 %v1614_v62, %v738_v17  ;;  %v827_v19 = vpop.f32.mrf.mxu1 }
 0x14b   : > { %v828_v21 = vadd.f32 %v827_v19, %v739_v18 }
 0x14d   : > { %v917_v22 = vadd.f32 %v916_v26, %v828_v21 }
 0x14f   : > { %966 = vst [vmem:[%s1624_s9 + $0xa0] sm:$0xff] %v917_v22 }
 0x150   : > { %v923_v23 = vpop.f32.mrf.mxu2  ;;  %v740_v31 = vpop.f32.mrf.mxu0 }
 0x151   : > { %v741_v24 = vadd.f32 %v1614_v62, %v740_v31  ;;  %v829_v25 = vpop.f32.mrf.mxu1 }
 0x153   : > { %v830_v27 = vadd.f32 %v829_v25, %v741_v24 }
 0x155   : > { %v919_v28 = vadd.f32 %v918_v6, %v830_v27 }
 0x157   : > { %967 = vst [vmem:[%s1624_s9 + $0xa8] sm:$0xff] %v919_v28 }
 0x158   : > { %v926_v29 = vpop.f32.mrf.mxu2  ;;  %v743_v30 = vpop.f32.mrf.mxu0 }
 0x159   : > { %v927_v32 = vadd.f32 %v926_v29, %v1688_v41  ;;  %v744_v33 = vadd.f32 %v1614_v62, %v743_v30  ;;  %v832_v34 = vpop.f32.mrf.mxu1 }
 0x15b   : > { %970 = vst [vmem:[%s1624_s9 + $0xc0] sm:$0xff] %v927_v32  ;;  %v833_v35 = vadd.f32 %v832_v34, %v744_v33 }
 0x15d   : > { %v922_v37 = vadd.f32 %v921_v16, %v833_v35 }
 0x15f   : > { %968 = vst [vmem:[%s1624_s9 + $0xb0] sm:$0xff] %v922_v37 }
 0x160   : > { %v928_v38 = vpop.f32.mrf.mxu2  ;;  %v745_v39 = vpop.f32.mrf.mxu0 }
 0x161   : > { %v929_v40 = vadd.f32 %v928_v38, %v1694_v51  ;;  %v746_v42 = vadd.f32 %v1614_v62, %v745_v39  ;;  %v834_v43 = vpop.f32.mrf.mxu1 }
 0x163   : > { %971 = vst [vmem:[%s1624_s9 + $0xc8] sm:$0xff] %v929_v40  ;;  %v835_v44 = vadd.f32 %v834_v43, %v746_v42 }
 0x165   : > { %v924_v45 = vadd.f32 %v923_v23, %v835_v44 }
 0x167   : > { %969 = vst [vmem:[%s1624_s9 + $0xb8] sm:$0xff] %v924_v45 }
 0x168   : > { %v931_v41 = vpop.f32.mrf.mxu2 }
 0x169   : > { %v932_v46 = vadd.f32 %v931_v41, %v1700_v60 }
 0x16b   : > { %972 = vst [vmem:[%s1624_s9 + $0xd0] sm:$0xff] %v932_v46 }
 0x170   : > { %v933_v47 = vpop.f32.mrf.mxu2 }
 0x171   : > { %v934_v48 = vadd.f32 %v933_v47, %v1706_v5 }
 0x173   : > { %973 = vst [vmem:[%s1624_s9 + $0xd8] sm:$0xff] %v934_v48 }
 0x174 PF: > { %s13_s12 = sadd.s32 1, %s1425_s12  }
 0x175   : > { %p10_p4 = scmp.ge.s32.totalorder %s13_s12, 4  }
 0x177   :  { %12 = sbr.rel (!%p10_p4) target bundleno = 1 (0x1), region = 62 }

</bundles_post_ra>
